<compile_context>
chip_gen: v7x
topology: tpu7x:2x2x1
jax: 0.10.0
libtpu: 0.0.40
codegen_flags: <defaults>
</compile_context>

<pallas_src>
import jax
import jax.numpy as jnp
from jax import lax
from jax.experimental import pallas as pl
from jax.experimental.pallas import tpu as pltpu

EPS = 1e-5            # nn.InstanceNorm2d default
LRELU_SLOPE = 0.2     # nn.LeakyReLU(0.2)
_VMEM_LIMIT = 32 * 1024 * 1024


def _cdiv(a, b):
    return -(-a // b)


def _round_up(a, b):
    return _cdiv(a, b) * b


# ---------------------------------------------------------------------------
# Pallas kernels
# ---------------------------------------------------------------------------
def _make_conv_kernel(kh, kw, th, wo, cout, act):
    """Fused conv tile: kh*kw bf16 MXU matmuls accumulated in fp32, then
    bias + optional LeakyReLU(0.2) / Sigmoid.

      x_ref: (1, th + kh - 1, Wp, Cin)  fp32   padded input row window
      w_ref: (kh*kw, Cin, Cout)         bf16   resident across the grid
      b_ref: (1, Cout)                  fp32   resident
      o_ref: (1, th*wo, Cout)           fp32
    """

    def kernel(x_ref, w_ref, b_ref, o_ref):
        x = x_ref[0]                                       # (th_in, Wp, Cin)
        cin = x.shape[-1]
        acc = jnp.zeros((th * wo, cout), jnp.float32)
        for ki in range(kh):
            for kj in range(kw):
                xt = x[ki:ki + th, kj:kj + wo, :].reshape(th * wo, cin)
                acc = acc + jnp.dot(xt.astype(jnp.bfloat16),
                                    w_ref[ki * kw + kj],
                                    preferred_element_type=jnp.float32)
        acc = acc + b_ref[...]
        if act == "lrelu":
            acc = jnp.where(acc > 0, acc, LRELU_SLOPE * acc)
        elif act == "sigmoid":
            acc = 1.0 / (1.0 + jnp.exp(-acc))
        o_ref[...] = acc[None].astype(o_ref.dtype)

    return kernel


def _make_instnorm_kernel(eps, slope):
    """InstanceNorm2d (affine=False, biased variance, like torch) + LeakyReLU
    over one (sample, channel-block).  x_ref / o_ref: (1, HW, cblk)."""

    def kernel(x_ref, o_ref):
        x = x_ref[0].astype(jnp.float32)                   # (HW, cblk)
        mean = jnp.mean(x, axis=0, keepdims=True)
        var = jnp.mean((x - mean) ** 2, axis=0, keepdims=True)
        y = (x - mean) * lax.rsqrt(var + eps)
        y = jnp.where(y > 0, y, slope * y)
        o_ref[...] = y[None].astype(o_ref.dtype)

    return kernel


# ---------------------------------------------------------------------------
# Pallas wrappers
# ---------------------------------------------------------------------------
def _conv_s1_pallas(xp, w_taps, bias, kh, kw, act):
    """Stride-1 'valid' conv of the already-padded NHWC input `xp` with the
    tap-major weight `w_taps` (kh*kw, Cin, Cout)."""
    B, Hp, Wp, Cin = xp.shape
    KT, _, Cout = w_taps.shape
    Ho = Hp - kh + 1
    Wo = Wp - kw + 1

    # Sublane-aligned output width; row tile targets ~512 flattened rows/matmul.
    wo_p = _round_up(Wo, 8)
    th = max(1, min(Ho, max(1, 512 // wo_p)))
    n_t = _cdiv(Ho, th)
    th_in = th + kh - 1

    hp_need = (n_t - 1) * th + th_in
    wp_need = wo_p + kw - 1
    pad_h = max(0, hp_need - Hp)
    pad_w = max(0, wp_need - Wp)
    if pad_h or pad_w:
        xp = jnp.pad(xp, ((0, 0), (0, pad_h), (0, pad_w), (0, 0)))
    Wpp = xp.shape[2]

    # Overlapping row windows (halo = kh-1 rows): ~1x HBM copy at most, instead
    # of the kh*kw blow-up of materialized im2col.  n_t == 1 is a pure reshape.
    if n_t == 1:
        xw = xp[:, None]
    else:
        xw = jnp.stack([xp[:, t * th:t * th + th_in] for t in range(n_t)], axis=1)
    xw = xw.reshape(B * n_t, th_in, Wpp, Cin)

    out = pl.pallas_call(
        _make_conv_kernel(kh, kw, th, wo_p, Cout, act),
        out_shape=jax.ShapeDtypeStruct((B * n_t, th * wo_p, Cout), jnp.float32),
        grid_spec=pltpu.PrefetchScalarGridSpec(
            num_scalar_prefetch=0,
            grid=(B * n_t,),
            in_specs=[
                pl.BlockSpec((1, th_in, Wpp, Cin), lambda i: (i, 0, 0, 0)),
                pl.BlockSpec((KT, Cin, Cout), lambda i: (0, 0, 0)),   # resident
                pl.BlockSpec((1, Cout), lambda i: (0, 0)),            # resident
            ],
            out_specs=pl.BlockSpec((1, th * wo_p, Cout), lambda i: (i, 0, 0)),
        ),
        compiler_params=pltpu.CompilerParams(
            dimension_semantics=("parallel",),
            vmem_limit_bytes=_VMEM_LIMIT),
    )(xw, w_taps, bias.reshape(1, Cout).astype(jnp.float32))

    out = out.reshape(B, n_t * th, wo_p, Cout)
    if n_t * th != Ho or wo_p != Wo:
        out = out[:, :Ho, :Wo]
    return out


def _space_to_depth(xp, w):
    """Rewrite a stride-2 3x3 conv over `xp` (NHWC, already zero-padded) as a
    stride-1 2x2 conv over the 2x2-phase-stacked input (4x channels)."""
    B, Hp, Wp, C = xp.shape
    kh, kw, _, N = w.shape
    He, We = _round_up(Hp, 2), _round_up(Wp, 2)
    if He != Hp or We != Wp:
        xp = jnp.pad(xp, ((0, 0), (0, He - Hp), (0, We - Wp), (0, 0)))
    xq = xp.reshape(B, He // 2, 2, We // 2, 2, C)
    xq = xq.transpose(0, 1, 3, 2, 4, 5).reshape(B, He // 2, We // 2, 4 * C)

    wq = jnp.zeros((2, 2, 2, 2, C, N), w.dtype)
    for di in range(2):
        for a in range(2):
            ki = 2 * di + a
            if ki >= kh:
                continue
            for dj in range(2):
                for b in range(2):
                    kj = 2 * dj + b
                    if kj >= kw:
                        continue
                    wq = wq.at[di, dj, a, b].set(w[ki, kj])
    return xq, wq.reshape(2, 2, 4 * C, N)


def conv_layer(x_nhwc, w_oihw, bias, stride, act=None):
    """PyTorch Conv2d(kernel=3, padding=1, stride in {1,2}) + fused activation."""
    Cout, Cin, kh, kw = w_oihw.shape
    w = jnp.transpose(w_oihw, (2, 3, 1, 0))                # (kh, kw, Cin, Cout)
    xp = jnp.pad(x_nhwc, ((0, 0), (1, 1), (1, 1), (0, 0)))
    if stride == 2:
        xp, w = _space_to_depth(xp, w)
        kh = kw = 2
    k_cin = w.shape[2]
    if k_cin < 8:                                          # keep MXU K dim >= 8
        pad_c = 8 - k_cin
        xp = jnp.pad(xp, ((0, 0), (0, 0), (0, 0), (0, pad_c)))
        w = jnp.pad(w, ((0, 0), (0, 0), (0, pad_c), (0, 0)))
        k_cin = 8
    w_taps = w.reshape(kh * kw, k_cin, Cout).astype(jnp.bfloat16)
    return _conv_s1_pallas(xp, w_taps, bias, kh, kw, act)


def instance_norm_lrelu(x_nhwc):
    """InstanceNorm2d(affine=False) + LeakyReLU(0.2), tiled over (B, C/128)."""
    B, H, W, C = x_nhwc.shape
    HW = H * W
    cblk = 128 if C % 128 == 0 else C
    x = x_nhwc.reshape(B, HW, C)
    out = pl.pallas_call(
        _make_instnorm_kernel(EPS, LRELU_SLOPE),
        out_shape=jax.ShapeDtypeStruct((B, HW, C), jnp.float32),
        grid_spec=pltpu.PrefetchScalarGridSpec(
            num_scalar_prefetch=0,
            grid=(B, C // cblk),
            in_specs=[pl.BlockSpec((1, HW, cblk), lambda b, c: (b, 0, c))],
            out_specs=pl.BlockSpec((1, HW, cblk), lambda b, c: (b, 0, c)),
        ),
        compiler_params=pltpu.CompilerParams(
            dimension_semantics=("parallel", "parallel"),
            vmem_limit_bytes=_VMEM_LIMIT),
    )(x)
    return out.reshape(B, H, W, C)


# ---------------------------------------------------------------------------
# Parameters (matching initialize_weights: Conv2d weight ~ N(0, 0.02), bias 0)
# ---------------------------------------------------------------------------
def init_params(key, input_nc, output_nc, nf):
    shapes = [(nf, input_nc), (nf * 2, nf), (nf * 4, nf * 2), (nf * 4, nf * 4),
              (nf * 8, nf * 4), (nf * 8, nf * 8), (output_nc, nf * 8)]
    keys = jax.random.split(key, len(shapes))
    params = {}
    for i, ((co, ci), k) in enumerate(zip(shapes, keys), start=1):
        params[f"w{i}"] = jax.random.normal(k, (co, ci, 3, 3), jnp.float32) * 0.02
        params[f"b{i}"] = jnp.zeros((co,), jnp.float32)
    return params


# ---------------------------------------------------------------------------
# Forward pass (matches discriminator_nn.forward)
# ---------------------------------------------------------------------------
def discriminator_forward(params, x_nchw):
    p = params
    y = jnp.transpose(x_nchw, (0, 2, 3, 1)).astype(jnp.float32)   # NCHW -> NHWC
    y = conv_layer(y, p["w1"], p["b1"], 1, act="lrelu")
    y = conv_layer(y, p["w2"], p["b2"], 2, act="lrelu")
    y = conv_layer(y, p["w3"], p["b3"], 1, act=None)
    y = instance_norm_lrelu(y)
    y = conv_layer(y, p["w4"], p["b4"], 2, act="lrelu")
    y = conv_layer(y, p["w5"], p["b5"], 1, act=None)
    y = instance_norm_lrelu(y)
    y = conv_layer(y, p["w6"], p["b6"], 1, act=None)
    y = instance_norm_lrelu(y)
    y = conv_layer(y, p["w7"], p["b7"], 1, act="sigmoid")
    return jnp.transpose(y, (0, 3, 1, 2))                          # NHWC -> NCHW


# Pure-JAX reference (fp32, XLA convs) for correctness validation.
def reference_forward(params, x_nchw):
    p = params

    def conv(x, w, b, stride):
        y = lax.conv_general_dilated(
            x, w, window_strides=(stride, stride), padding=((1, 1), (1, 1)),
            dimension_numbers=("NCHW", "OIHW", "NCHW"),
            precision=lax.Precision.HIGHEST)
        return y + b[None, :, None, None]

    def lrelu(x):
        return jnp.where(x > 0, x, LRELU_SLOPE * x)

    def inorm(x):
        mean = jnp.mean(x, axis=(2, 3), keepdims=True)
        var = jnp.mean((x - mean) ** 2, axis=(2, 3), keepdims=True)
        return (x - mean) * lax.rsqrt(var + EPS)

    y = lrelu(conv(x_nchw, p["w1"], p["b1"], 1))
    y = lrelu(conv(y, p["w2"], p["b2"], 2))
    y = lrelu(inorm(conv(y, p["w3"], p["b3"], 1)))
    y = lrelu(conv(y, p["w4"], p["b4"], 2))
    y = lrelu(inorm(conv(y, p["w5"], p["b5"], 1)))
    y = lrelu(inorm(conv(y, p["w6"], p["b6"], 1)))
    y = 1.0 / (1.0 + jnp.exp(-conv(y, p["w7"], p["b7"], 1)))
    return y


# ---------------------------------------------------------------------------
if __name__ == "__main__":
    B, input_nc, output_nc, nf, H, W = 2, 3, 1, 32, 16, 16

    key = jax.random.PRNGKey(0)
    pkey, xkey = jax.random.split(key)
    params = init_params(pkey, input_nc, output_nc, nf)
    x = jax.random.normal(xkey, (B, input_nc, H, W), jnp.float32)

    out = jax.block_until_ready(jax.jit(discriminator_forward)(params, x))
    assert out.shape == (B, output_nc, H // 4, W // 4), out.shape
    assert bool(jnp.all(jnp.isfinite(out)))
    assert bool(jnp.all((out >= 0.0) & (out <= 1.0)))   # sigmoid output range

    ref = jax.block_until_ready(jax.jit(reference_forward)(params, x))
    max_err = float(jnp.max(jnp.abs(out - ref)))
    assert max_err < 5e-2, f"mismatch vs pure-JAX reference: {max_err}"

    print("KERNEL_OK")
</pallas_src>

<mosaic_0001>
module attributes {stable_mosaic.version = 11 : i64} {
  func.func @kernel(%arg0: i32, %arg1: memref<1x18x18x8xf32, #tpu.memory_space<vmem>>, %arg2: memref<9x8x32xbf16, #tpu.memory_space<vmem>>, %arg3: memref<1x32xf32, #tpu.memory_space<vmem>>, %arg4: memref<1x256x32xf32, #tpu.memory_space<vmem>>) attributes {dimension_semantics = [#tpu.dimension_semantics<parallel>], iteration_bounds = array<i64: 2>, scalar_prefetch = 0 : i64, scratch_operands = 0 : i64, tpu.core_type = #tpu.core_type<tc>, window_params = [{transform_indices = @transform_0, window_bounds = array<i64: 1, 18, 18, 8>}, {pipeline_mode = #tpu.pipeline_mode<synchronous>, transform_indices = @transform_1, window_bounds = array<i64: 9, 8, 32>}, {pipeline_mode = #tpu.pipeline_mode<synchronous>, transform_indices = @transform_2, window_bounds = array<i64: 1, 32>}, {transform_indices = @transform_3, window_bounds = array<i64: 1, 256, 32>}]} {
    %c0 = arith.constant 0 : index
    %c0_0 = arith.constant 0 : index
    %c0_1 = arith.constant 0 : index
    %c0_2 = arith.constant 0 : index
    %0 = vector.load %arg1[%c0, %c0_0, %c0_1, %c0_2] : memref<1x18x18x8xf32, #tpu.memory_space<vmem>>, vector<1x18x18x8xf32>
    %1 = vector.shape_cast %0 : vector<1x18x18x8xf32> to vector<18x18x8xf32>
    %cst = arith.constant 0.000000e+00 : f32
    %2 = vector.broadcast %cst : f32 to vector<256x32xf32>
    %3 = vector.extract_strided_slice %1 {offsets = [0, 0, 0], sizes = [16, 16, 8], strides = [1, 1, 1]} : vector<18x18x8xf32> to vector<16x16x8xf32>
    %4 = vector.shape_cast %3 : vector<16x16x8xf32> to vector<256x8xf32>
    %5 = arith.truncf %4 : vector<256x8xf32> to vector<256x8xbf16>
    %c0_3 = arith.constant 0 : index
    %c0_4 = arith.constant 0 : index
    %c0_5 = arith.constant 0 : index
    %6 = vector.load %arg2[%c0_3, %c0_4, %c0_5] : memref<9x8x32xbf16, #tpu.memory_space<vmem>>, vector<1x8x32xbf16>
    %7 = vector.shape_cast %6 : vector<1x8x32xbf16> to vector<8x32xbf16>
    %cst_6 = arith.constant dense<0.000000e+00> : vector<256x32xf32>
    %8 = tpu.matmul %5, %7, %cst_6 {dimension_numbers = #tpu.dot_dimension_numbers<[1], [0], [0], [1], [0, 0, 1, 1], [], []>} : vector<256x8xbf16>, vector<8x32xbf16>, vector<256x32xf32> -> vector<256x32xf32>
    %9 = arith.addf %2, %8 : vector<256x32xf32>
    %10 = vector.extract_strided_slice %1 {offsets = [0, 1, 0], sizes = [16, 16, 8], strides = [1, 1, 1]} : vector<18x18x8xf32> to vector<16x16x8xf32>
    %11 = vector.shape_cast %10 : vector<16x16x8xf32> to vector<256x8xf32>
    %12 = arith.truncf %11 : vector<256x8xf32> to vector<256x8xbf16>
    %c1 = arith.constant 1 : index
    %c0_7 = arith.constant 0 : index
    %c0_8 = arith.constant 0 : index
    %13 = vector.load %arg2[%c1, %c0_7, %c0_8] : memref<9x8x32xbf16, #tpu.memory_space<vmem>>, vector<1x8x32xbf16>
    %14 = vector.shape_cast %13 : vector<1x8x32xbf16> to vector<8x32xbf16>
    %cst_9 = arith.constant dense<0.000000e+00> : vector<256x32xf32>
    %15 = tpu.matmul %12, %14, %cst_9 {dimension_numbers = #tpu.dot_dimension_numbers<[1], [0], [0], [1], [0, 0, 1, 1], [], []>} : vector<256x8xbf16>, vector<8x32xbf16>, vector<256x32xf32> -> vector<256x32xf32>
    %16 = arith.addf %9, %15 : vector<256x32xf32>
    %17 = vector.extract_strided_slice %1 {offsets = [0, 2, 0], sizes = [16, 16, 8], strides = [1, 1, 1]} : vector<18x18x8xf32> to vector<16x16x8xf32>
    %18 = vector.shape_cast %17 : vector<16x16x8xf32> to vector<256x8xf32>
    %19 = arith.truncf %18 : vector<256x8xf32> to vector<256x8xbf16>
    %c2 = arith.constant 2 : index
    %c0_10 = arith.constant 0 : index
    %c0_11 = arith.constant 0 : index
    %20 = vector.load %arg2[%c2, %c0_10, %c0_11] : memref<9x8x32xbf16, #tpu.memory_space<vmem>>, vector<1x8x32xbf16>
    %21 = vector.shape_cast %20 : vector<1x8x32xbf16> to vector<8x32xbf16>
    %cst_12 = arith.constant dense<0.000000e+00> : vector<256x32xf32>
    %22 = tpu.matmul %19, %21, %cst_12 {dimension_numbers = #tpu.dot_dimension_numbers<[1], [0], [0], [1], [0, 0, 1, 1], [], []>} : vector<256x8xbf16>, vector<8x32xbf16>, vector<256x32xf32> -> vector<256x32xf32>
    %23 = arith.addf %16, %22 : vector<256x32xf32>
    %24 = vector.extract_strided_slice %1 {offsets = [1, 0, 0], sizes = [16, 16, 8], strides = [1, 1, 1]} : vector<18x18x8xf32> to vector<16x16x8xf32>
    %25 = vector.shape_cast %24 : vector<16x16x8xf32> to vector<256x8xf32>
    %26 = arith.truncf %25 : vector<256x8xf32> to vector<256x8xbf16>
    %c3 = arith.constant 3 : index
    %c0_13 = arith.constant 0 : index
    %c0_14 = arith.constant 0 : index
    %27 = vector.load %arg2[%c3, %c0_13, %c0_14] : memref<9x8x32xbf16, #tpu.memory_space<vmem>>, vector<1x8x32xbf16>
    %28 = vector.shape_cast %27 : vector<1x8x32xbf16> to vector<8x32xbf16>
    %cst_15 = arith.constant dense<0.000000e+00> : vector<256x32xf32>
    %29 = tpu.matmul %26, %28, %cst_15 {dimension_numbers = #tpu.dot_dimension_numbers<[1], [0], [0], [1], [0, 0, 1, 1], [], []>} : vector<256x8xbf16>, vector<8x32xbf16>, vector<256x32xf32> -> vector<256x32xf32>
    %30 = arith.addf %23, %29 : vector<256x32xf32>
    %31 = vector.extract_strided_slice %1 {offsets = [1, 1, 0], sizes = [16, 16, 8], strides = [1, 1, 1]} : vector<18x18x8xf32> to vector<16x16x8xf32>
    %32 = vector.shape_cast %31 : vector<16x16x8xf32> to vector<256x8xf32>
    %33 = arith.truncf %32 : vector<256x8xf32> to vector<256x8xbf16>
    %c4 = arith.constant 4 : index
    %c0_16 = arith.constant 0 : index
    %c0_17 = arith.constant 0 : index
    %34 = vector.load %arg2[%c4, %c0_16, %c0_17] : memref<9x8x32xbf16, #tpu.memory_space<vmem>>, vector<1x8x32xbf16>
    %35 = vector.shape_cast %34 : vector<1x8x32xbf16> to vector<8x32xbf16>
    %cst_18 = arith.constant dense<0.000000e+00> : vector<256x32xf32>
    %36 = tpu.matmul %33, %35, %cst_18 {dimension_numbers = #tpu.dot_dimension_numbers<[1], [0], [0], [1], [0, 0, 1, 1], [], []>} : vector<256x8xbf16>, vector<8x32xbf16>, vector<256x32xf32> -> vector<256x32xf32>
    %37 = arith.addf %30, %36 : vector<256x32xf32>
    %38 = vector.extract_strided_slice %1 {offsets = [1, 2, 0], sizes = [16, 16, 8], strides = [1, 1, 1]} : vector<18x18x8xf32> to vector<16x16x8xf32>
    %39 = vector.shape_cast %38 : vector<16x16x8xf32> to vector<256x8xf32>
    %40 = arith.truncf %39 : vector<256x8xf32> to vector<256x8xbf16>
    %c5 = arith.constant 5 : index
    %c0_19 = arith.constant 0 : index
    %c0_20 = arith.constant 0 : index
    %41 = vector.load %arg2[%c5, %c0_19, %c0_20] : memref<9x8x32xbf16, #tpu.memory_space<vmem>>, vector<1x8x32xbf16>
    %42 = vector.shape_cast %41 : vector<1x8x32xbf16> to vector<8x32xbf16>
    %cst_21 = arith.constant dense<0.000000e+00> : vector<256x32xf32>
    %43 = tpu.matmul %40, %42, %cst_21 {dimension_numbers = #tpu.dot_dimension_numbers<[1], [0], [0], [1], [0, 0, 1, 1], [], []>} : vector<256x8xbf16>, vector<8x32xbf16>, vector<256x32xf32> -> vector<256x32xf32>
    %44 = arith.addf %37, %43 : vector<256x32xf32>
    %45 = vector.extract_strided_slice %1 {offsets = [2, 0, 0], sizes = [16, 16, 8], strides = [1, 1, 1]} : vector<18x18x8xf32> to vector<16x16x8xf32>
    %46 = vector.shape_cast %45 : vector<16x16x8xf32> to vector<256x8xf32>
    %47 = arith.truncf %46 : vector<256x8xf32> to vector<256x8xbf16>
    %c6 = arith.constant 6 : index
    %c0_22 = arith.constant 0 : index
    %c0_23 = arith.constant 0 : index
    %48 = vector.load %arg2[%c6, %c0_22, %c0_23] : memref<9x8x32xbf16, #tpu.memory_space<vmem>>, vector<1x8x32xbf16>
    %49 = vector.shape_cast %48 : vector<1x8x32xbf16> to vector<8x32xbf16>
    %cst_24 = arith.constant dense<0.000000e+00> : vector<256x32xf32>
    %50 = tpu.matmul %47, %49, %cst_24 {dimension_numbers = #tpu.dot_dimension_numbers<[1], [0], [0], [1], [0, 0, 1, 1], [], []>} : vector<256x8xbf16>, vector<8x32xbf16>, vector<256x32xf32> -> vector<256x32xf32>
    %51 = arith.addf %44, %50 : vector<256x32xf32>
    %52 = vector.extract_strided_slice %1 {offsets = [2, 1, 0], sizes = [16, 16, 8], strides = [1, 1, 1]} : vector<18x18x8xf32> to vector<16x16x8xf32>
    %53 = vector.shape_cast %52 : vector<16x16x8xf32> to vector<256x8xf32>
    %54 = arith.truncf %53 : vector<256x8xf32> to vector<256x8xbf16>
    %c7 = arith.constant 7 : index
    %c0_25 = arith.constant 0 : index
    %c0_26 = arith.constant 0 : index
    %55 = vector.load %arg2[%c7, %c0_25, %c0_26] : memref<9x8x32xbf16, #tpu.memory_space<vmem>>, vector<1x8x32xbf16>
    %56 = vector.shape_cast %55 : vector<1x8x32xbf16> to vector<8x32xbf16>
    %cst_27 = arith.constant dense<0.000000e+00> : vector<256x32xf32>
    %57 = tpu.matmul %54, %56, %cst_27 {dimension_numbers = #tpu.dot_dimension_numbers<[1], [0], [0], [1], [0, 0, 1, 1], [], []>} : vector<256x8xbf16>, vector<8x32xbf16>, vector<256x32xf32> -> vector<256x32xf32>
    %58 = arith.addf %51, %57 : vector<256x32xf32>
    %59 = vector.extract_strided_slice %1 {offsets = [2, 2, 0], sizes = [16, 16, 8], strides = [1, 1, 1]} : vector<18x18x8xf32> to vector<16x16x8xf32>
    %60 = vector.shape_cast %59 : vector<16x16x8xf32> to vector<256x8xf32>
    %61 = arith.truncf %60 : vector<256x8xf32> to vector<256x8xbf16>
    %c8 = arith.constant 8 : index
    %c0_28 = arith.constant 0 : index
    %c0_29 = arith.constant 0 : index
    %62 = vector.load %arg2[%c8, %c0_28, %c0_29] : memref<9x8x32xbf16, #tpu.memory_space<vmem>>, vector<1x8x32xbf16>
    %63 = vector.shape_cast %62 : vector<1x8x32xbf16> to vector<8x32xbf16>
    %cst_30 = arith.constant dense<0.000000e+00> : vector<256x32xf32>
    %64 = tpu.matmul %61, %63, %cst_30 {dimension_numbers = #tpu.dot_dimension_numbers<[1], [0], [0], [1], [0, 0, 1, 1], [], []>} : vector<256x8xbf16>, vector<8x32xbf16>, vector<256x32xf32> -> vector<256x32xf32>
    %65 = arith.addf %58, %64 : vector<256x32xf32>
    %c0_31 = arith.constant 0 : index
    %c0_32 = arith.constant 0 : index
    %66 = vector.load %arg3[%c0_31, %c0_32] : memref<1x32xf32, #tpu.memory_space<vmem>>, vector<1x32xf32>
    %67 = vector.broadcast %66 : vector<1x32xf32> to vector<256x32xf32>
    %68 = arith.addf %65, %67 : vector<256x32xf32>
    %cst_33 = arith.constant 0.000000e+00 : f32
    %69 = vector.broadcast %cst_33 : f32 to vector<256x32xf32>
    %70 = arith.cmpf ogt, %68, %69 : vector<256x32xf32>
    %cst_34 = arith.constant 2.000000e-01 : f32
    %71 = vector.broadcast %cst_34 : f32 to vector<256x32xf32>
    %72 = arith.mulf %71, %68 : vector<256x32xf32>
    %73 = arith.select %70, %68, %72 : vector<256x32xi1>, vector<256x32xf32>
    %74 = vector.shape_cast %73 : vector<256x32xf32> to vector<1x256x32xf32>
    %c0_35 = arith.constant 0 : index
    %c0_36 = arith.constant 0 : index
    %c0_37 = arith.constant 0 : index
    %75 = vector.load %arg4[%c0_35, %c0_36, %c0_37] : memref<1x256x32xf32, #tpu.memory_space<vmem>>, vector<1x256x32xf32>
    tpu.vector_store %arg4[%c0_35, %c0_36, %c0_37], %74 {strides = array<i32>} : memref<1x256x32xf32, #tpu.memory_space<vmem>>, vector<1x256x32xf32>,
    return
  }
  func.func @transform_0(%arg0: i32) -> (i32, i32, i32, i32) {
    %c0_i32 = arith.constant 0 : i32
    %c0_i32_0 = arith.constant 0 : i32
    %c0_i32_1 = arith.constant 0 : i32
    %c0_i32_2 = arith.constant 0 : i32
    return %arg0, %c0_i32, %c0_i32_0, %c0_i32_1 : i32, i32, i32, i32
  }
  func.func @transform_1(%arg0: i32) -> (i32, i32, i32) {
    %c0_i32 = arith.constant 0 : i32
    %c0_i32_0 = arith.constant 0 : i32
    %c0_i32_1 = arith.constant 0 : i32
    %c0_i32_2 = arith.constant 0 : i32
    return %c0_i32, %c0_i32_0, %c0_i32_1 : i32, i32, i32
  }
  func.func @transform_2(%arg0: i32) -> (i32, i32) {
    %c0_i32 = arith.constant 0 : i32
    %c0_i32_0 = arith.constant 0 : i32
    %c0_i32_1 = arith.constant 0 : i32
    return %c0_i32, %c0_i32_0 : i32, i32
  }
  func.func @transform_3(%arg0: i32) -> (i32, i32, i32) {
    %c0_i32 = arith.constant 0 : i32
    %c0_i32_0 = arith.constant 0 : i32
    %c0_i32_1 = arith.constant 0 : i32
    return %arg0, %c0_i32, %c0_i32_0 : i32, i32, i32
  }
}

module attributes {stable_mosaic.version = 11 : i64} {
  func.func @kernel(%arg0: i32, %arg1: memref<1x9x9x128xf32, #tpu.memory_space<vmem>>, %arg2: memref<4x128x64xbf16, #tpu.memory_space<vmem>>, %arg3: memref<1x64xf32, #tpu.memory_space<vmem>>, %arg4: memref<1x64x64xf32, #tpu.memory_space<vmem>>) attributes {dimension_semantics = [#tpu.dimension_semantics<parallel>], iteration_bounds = array<i64: 2>, scalar_prefetch = 0 : i64, scratch_operands = 0 : i64, tpu.core_type = #tpu.core_type<tc>, window_params = [{transform_indices = @transform_0, window_bounds = array<i64: 1, 9, 9, 128>}, {pipeline_mode = #tpu.pipeline_mode<synchronous>, transform_indices = @transform_1, window_bounds = array<i64: 4, 128, 64>}, {pipeline_mode = #tpu.pipeline_mode<synchronous>, transform_indices = @transform_2, window_bounds = array<i64: 1, 64>}, {transform_indices = @transform_3, window_bounds = array<i64: 1, 64, 64>}]} {
    %c0 = arith.constant 0 : index
    %c0_0 = arith.constant 0 : index
    %c0_1 = arith.constant 0 : index
    %c0_2 = arith.constant 0 : index
    %0 = vector.load %arg1[%c0, %c0_0, %c0_1, %c0_2] : memref<1x9x9x128xf32, #tpu.memory_space<vmem>>, vector<1x9x9x128xf32>
    %1 = vector.shape_cast %0 : vector<1x9x9x128xf32> to vector<9x9x128xf32>
    %cst = arith.constant 0.000000e+00 : f32
    %2 = vector.broadcast %cst : f32 to vector<64x64xf32>
    %3 = vector.extract_strided_slice %1 {offsets = [0, 0, 0], sizes = [8, 8, 128], strides = [1, 1, 1]} : vector<9x9x128xf32> to vector<8x8x128xf32>
    %4 = vector.shape_cast %3 : vector<8x8x128xf32> to vector<64x128xf32>
    %5 = arith.truncf %4 : vector<64x128xf32> to vector<64x128xbf16>
    %c0_3 = arith.constant 0 : index
    %c0_4 = arith.constant 0 : index
    %c0_5 = arith.constant 0 : index
    %6 = vector.load %arg2[%c0_3, %c0_4, %c0_5] : memref<4x128x64xbf16, #tpu.memory_space<vmem>>, vector<1x128x64xbf16>
    %7 = vector.shape_cast %6 : vector<1x128x64xbf16> to vector<128x64xbf16>
    %cst_6 = arith.constant dense<0.000000e+00> : vector<64x64xf32>
    %8 = tpu.matmul %5, %7, %cst_6 {dimension_numbers = #tpu.dot_dimension_numbers<[1], [0], [0], [1], [0, 0, 1, 1], [], []>} : vector<64x128xbf16>, vector<128x64xbf16>, vector<64x64xf32> -> vector<64x64xf32>
    %9 = arith.addf %2, %8 : vector<64x64xf32>
    %10 = vector.extract_strided_slice %1 {offsets = [0, 1, 0], sizes = [8, 8, 128], strides = [1, 1, 1]} : vector<9x9x128xf32> to vector<8x8x128xf32>
    %11 = vector.shape_cast %10 : vector<8x8x128xf32> to vector<64x128xf32>
    %12 = arith.truncf %11 : vector<64x128xf32> to vector<64x128xbf16>
    %c1 = arith.constant 1 : index
    %c0_7 = arith.constant 0 : index
    %c0_8 = arith.constant 0 : index
    %13 = vector.load %arg2[%c1, %c0_7, %c0_8] : memref<4x128x64xbf16, #tpu.memory_space<vmem>>, vector<1x128x64xbf16>
    %14 = vector.shape_cast %13 : vector<1x128x64xbf16> to vector<128x64xbf16>
    %cst_9 = arith.constant dense<0.000000e+00> : vector<64x64xf32>
    %15 = tpu.matmul %12, %14, %cst_9 {dimension_numbers = #tpu.dot_dimension_numbers<[1], [0], [0], [1], [0, 0, 1, 1], [], []>} : vector<64x128xbf16>, vector<128x64xbf16>, vector<64x64xf32> -> vector<64x64xf32>
    %16 = arith.addf %9, %15 : vector<64x64xf32>
    %17 = vector.extract_strided_slice %1 {offsets = [1, 0, 0], sizes = [8, 8, 128], strides = [1, 1, 1]} : vector<9x9x128xf32> to vector<8x8x128xf32>
    %18 = vector.shape_cast %17 : vector<8x8x128xf32> to vector<64x128xf32>
    %19 = arith.truncf %18 : vector<64x128xf32> to vector<64x128xbf16>
    %c2 = arith.constant 2 : index
    %c0_10 = arith.constant 0 : index
    %c0_11 = arith.constant 0 : index
    %20 = vector.load %arg2[%c2, %c0_10, %c0_11] : memref<4x128x64xbf16, #tpu.memory_space<vmem>>, vector<1x128x64xbf16>
    %21 = vector.shape_cast %20 : vector<1x128x64xbf16> to vector<128x64xbf16>
    %cst_12 = arith.constant dense<0.000000e+00> : vector<64x64xf32>
    %22 = tpu.matmul %19, %21, %cst_12 {dimension_numbers = #tpu.dot_dimension_numbers<[1], [0], [0], [1], [0, 0, 1, 1], [], []>} : vector<64x128xbf16>, vector<128x64xbf16>, vector<64x64xf32> -> vector<64x64xf32>
    %23 = arith.addf %16, %22 : vector<64x64xf32>
    %24 = vector.extract_strided_slice %1 {offsets = [1, 1, 0], sizes = [8, 8, 128], strides = [1, 1, 1]} : vector<9x9x128xf32> to vector<8x8x128xf32>
    %25 = vector.shape_cast %24 : vector<8x8x128xf32> to vector<64x128xf32>
    %26 = arith.truncf %25 : vector<64x128xf32> to vector<64x128xbf16>
    %c3 = arith.constant 3 : index
    %c0_13 = arith.constant 0 : index
    %c0_14 = arith.constant 0 : index
    %27 = vector.load %arg2[%c3, %c0_13, %c0_14] : memref<4x128x64xbf16, #tpu.memory_space<vmem>>, vector<1x128x64xbf16>
    %28 = vector.shape_cast %27 : vector<1x128x64xbf16> to vector<128x64xbf16>
    %cst_15 = arith.constant dense<0.000000e+00> : vector<64x64xf32>
    %29 = tpu.matmul %26, %28, %cst_15 {dimension_numbers = #tpu.dot_dimension_numbers<[1], [0], [0], [1], [0, 0, 1, 1], [], []>} : vector<64x128xbf16>, vector<128x64xbf16>, vector<64x64xf32> -> vector<64x64xf32>
    %30 = arith.addf %23, %29 : vector<64x64xf32>
    %c0_16 = arith.constant 0 : index
    %c0_17 = arith.constant 0 : index
    %31 = vector.load %arg3[%c0_16, %c0_17] : memref<1x64xf32, #tpu.memory_space<vmem>>, vector<1x64xf32>
    %32 = vector.broadcast %31 : vector<1x64xf32> to vector<64x64xf32>
    %33 = arith.addf %30, %32 : vector<64x64xf32>
    %cst_18 = arith.constant 0.000000e+00 : f32
    %34 = vector.broadcast %cst_18 : f32 to vector<64x64xf32>
    %35 = arith.cmpf ogt, %33, %34 : vector<64x64xf32>
    %cst_19 = arith.constant 2.000000e-01 : f32
    %36 = vector.broadcast %cst_19 : f32 to vector<64x64xf32>
    %37 = arith.mulf %36, %33 : vector<64x64xf32>
    %38 = arith.select %35, %33, %37 : vector<64x64xi1>, vector<64x64xf32>
    %39 = vector.shape_cast %38 : vector<64x64xf32> to vector<1x64x64xf32>
    %c0_20 = arith.constant 0 : index
    %c0_21 = arith.constant 0 : index
    %c0_22 = arith.constant 0 : index
    %40 = vector.load %arg4[%c0_20, %c0_21, %c0_22] : memref<1x64x64xf32, #tpu.memory_space<vmem>>, vector<1x64x64xf32>
    tpu.vector_store %arg4[%c0_20, %c0_21, %c0_22], %39 {strides = array<i32>} : memref<1x64x64xf32, #tpu.memory_space<vmem>>, vector<1x64x64xf32>,
    return
  }
  func.func @transform_0(%arg0: i32) -> (i32, i32, i32, i32) {
    %c0_i32 = arith.constant 0 : i32
    %c0_i32_0 = arith.constant 0 : i32
    %c0_i32_1 = arith.constant 0 : i32
    %c0_i32_2 = arith.constant 0 : i32
    return %arg0, %c0_i32, %c0_i32_0, %c0_i32_1 : i32, i32, i32, i32
  }
  func.func @transform_1(%arg0: i32) -> (i32, i32, i32) {
    %c0_i32 = arith.constant 0 : i32
    %c0_i32_0 = arith.constant 0 : i32
    %c0_i32_1 = arith.constant 0 : i32
    %c0_i32_2 = arith.constant 0 : i32
    return %c0_i32, %c0_i32_0, %c0_i32_1 : i32, i32, i32
  }
  func.func @transform_2(%arg0: i32) -> (i32, i32) {
    %c0_i32 = arith.constant 0 : i32
    %c0_i32_0 = arith.constant 0 : i32
    %c0_i32_1 = arith.constant 0 : i32
    return %c0_i32, %c0_i32_0 : i32, i32
  }
  func.func @transform_3(%arg0: i32) -> (i32, i32, i32) {
    %c0_i32 = arith.constant 0 : i32
    %c0_i32_0 = arith.constant 0 : i32
    %c0_i32_1 = arith.constant 0 : i32
    return %arg0, %c0_i32, %c0_i32_0 : i32, i32, i32
  }
}

module attributes {stable_mosaic.version = 11 : i64} {
  func.func @kernel(%arg0: i32, %arg1: memref<1x10x10x64xf32, #tpu.memory_space<vmem>>, %arg2: memref<9x64x128xbf16, #tpu.memory_space<vmem>>, %arg3: memref<1x128xf32, #tpu.memory_space<vmem>>, %arg4: memref<1x64x128xf32, #tpu.memory_space<vmem>>) attributes {dimension_semantics = [#tpu.dimension_semantics<parallel>], iteration_bounds = array<i64: 2>, scalar_prefetch = 0 : i64, scratch_operands = 0 : i64, tpu.core_type = #tpu.core_type<tc>, window_params = [{transform_indices = @transform_0, window_bounds = array<i64: 1, 10, 10, 64>}, {pipeline_mode = #tpu.pipeline_mode<synchronous>, transform_indices = @transform_1, window_bounds = array<i64: 9, 64, 128>}, {pipeline_mode = #tpu.pipeline_mode<synchronous>, transform_indices = @transform_2, window_bounds = array<i64: 1, 128>}, {transform_indices = @transform_3, window_bounds = array<i64: 1, 64, 128>}]} {
    %c0 = arith.constant 0 : index
    %c0_0 = arith.constant 0 : index
    %c0_1 = arith.constant 0 : index
    %c0_2 = arith.constant 0 : index
    %0 = vector.load %arg1[%c0, %c0_0, %c0_1, %c0_2] : memref<1x10x10x64xf32, #tpu.memory_space<vmem>>, vector<1x10x10x64xf32>
    %1 = vector.shape_cast %0 : vector<1x10x10x64xf32> to vector<10x10x64xf32>
    %cst = arith.constant 0.000000e+00 : f32
    %2 = vector.broadcast %cst : f32 to vector<64x128xf32>
    %3 = vector.extract_strided_slice %1 {offsets = [0, 0, 0], sizes = [8, 8, 64], strides = [1, 1, 1]} : vector<10x10x64xf32> to vector<8x8x64xf32>
    %4 = vector.shape_cast %3 : vector<8x8x64xf32> to vector<64x64xf32>
    %5 = arith.truncf %4 : vector<64x64xf32> to vector<64x64xbf16>
    %c0_3 = arith.constant 0 : index
    %c0_4 = arith.constant 0 : index
    %c0_5 = arith.constant 0 : index
    %6 = vector.load %arg2[%c0_3, %c0_4, %c0_5] : memref<9x64x128xbf16, #tpu.memory_space<vmem>>, vector<1x64x128xbf16>
    %7 = vector.shape_cast %6 : vector<1x64x128xbf16> to vector<64x128xbf16>
    %cst_6 = arith.constant dense<0.000000e+00> : vector<64x128xf32>
    %8 = tpu.matmul %5, %7, %cst_6 {dimension_numbers = #tpu.dot_dimension_numbers<[1], [0], [0], [1], [0, 0, 1, 1], [], []>} : vector<64x64xbf16>, vector<64x128xbf16>, vector<64x128xf32> -> vector<64x128xf32>
    %9 = arith.addf %2, %8 : vector<64x128xf32>
    %10 = vector.extract_strided_slice %1 {offsets = [0, 1, 0], sizes = [8, 8, 64], strides = [1, 1, 1]} : vector<10x10x64xf32> to vector<8x8x64xf32>
    %11 = vector.shape_cast %10 : vector<8x8x64xf32> to vector<64x64xf32>
    %12 = arith.truncf %11 : vector<64x64xf32> to vector<64x64xbf16>
    %c1 = arith.constant 1 : index
    %c0_7 = arith.constant 0 : index
    %c0_8 = arith.constant 0 : index
    %13 = vector.load %arg2[%c1, %c0_7, %c0_8] : memref<9x64x128xbf16, #tpu.memory_space<vmem>>, vector<1x64x128xbf16>
    %14 = vector.shape_cast %13 : vector<1x64x128xbf16> to vector<64x128xbf16>
    %cst_9 = arith.constant dense<0.000000e+00> : vector<64x128xf32>
    %15 = tpu.matmul %12, %14, %cst_9 {dimension_numbers = #tpu.dot_dimension_numbers<[1], [0], [0], [1], [0, 0, 1, 1], [], []>} : vector<64x64xbf16>, vector<64x128xbf16>, vector<64x128xf32> -> vector<64x128xf32>
    %16 = arith.addf %9, %15 : vector<64x128xf32>
    %17 = vector.extract_strided_slice %1 {offsets = [0, 2, 0], sizes = [8, 8, 64], strides = [1, 1, 1]} : vector<10x10x64xf32> to vector<8x8x64xf32>
    %18 = vector.shape_cast %17 : vector<8x8x64xf32> to vector<64x64xf32>
    %19 = arith.truncf %18 : vector<64x64xf32> to vector<64x64xbf16>
    %c2 = arith.constant 2 : index
    %c0_10 = arith.constant 0 : index
    %c0_11 = arith.constant 0 : index
    %20 = vector.load %arg2[%c2, %c0_10, %c0_11] : memref<9x64x128xbf16, #tpu.memory_space<vmem>>, vector<1x64x128xbf16>
    %21 = vector.shape_cast %20 : vector<1x64x128xbf16> to vector<64x128xbf16>
    %cst_12 = arith.constant dense<0.000000e+00> : vector<64x128xf32>
    %22 = tpu.matmul %19, %21, %cst_12 {dimension_numbers = #tpu.dot_dimension_numbers<[1], [0], [0], [1], [0, 0, 1, 1], [], []>} : vector<64x64xbf16>, vector<64x128xbf16>, vector<64x128xf32> -> vector<64x128xf32>
    %23 = arith.addf %16, %22 : vector<64x128xf32>
    %24 = vector.extract_strided_slice %1 {offsets = [1, 0, 0], sizes = [8, 8, 64], strides = [1, 1, 1]} : vector<10x10x64xf32> to vector<8x8x64xf32>
    %25 = vector.shape_cast %24 : vector<8x8x64xf32> to vector<64x64xf32>
    %26 = arith.truncf %25 : vector<64x64xf32> to vector<64x64xbf16>
    %c3 = arith.constant 3 : index
    %c0_13 = arith.constant 0 : index
    %c0_14 = arith.constant 0 : index
    %27 = vector.load %arg2[%c3, %c0_13, %c0_14] : memref<9x64x128xbf16, #tpu.memory_space<vmem>>, vector<1x64x128xbf16>
    %28 = vector.shape_cast %27 : vector<1x64x128xbf16> to vector<64x128xbf16>
    %cst_15 = arith.constant dense<0.000000e+00> : vector<64x128xf32>
    %29 = tpu.matmul %26, %28, %cst_15 {dimension_numbers = #tpu.dot_dimension_numbers<[1], [0], [0], [1], [0, 0, 1, 1], [], []>} : vector<64x64xbf16>, vector<64x128xbf16>, vector<64x128xf32> -> vector<64x128xf32>
    %30 = arith.addf %23, %29 : vector<64x128xf32>
    %31 = vector.extract_strided_slice %1 {offsets = [1, 1, 0], sizes = [8, 8, 64], strides = [1, 1, 1]} : vector<10x10x64xf32> to vector<8x8x64xf32>
    %32 = vector.shape_cast %31 : vector<8x8x64xf32> to vector<64x64xf32>
    %33 = arith.truncf %32 : vector<64x64xf32> to vector<64x64xbf16>
    %c4 = arith.constant 4 : index
    %c0_16 = arith.constant 0 : index
    %c0_17 = arith.constant 0 : index
    %34 = vector.load %arg2[%c4, %c0_16, %c0_17] : memref<9x64x128xbf16, #tpu.memory_space<vmem>>, vector<1x64x128xbf16>
    %35 = vector.shape_cast %34 : vector<1x64x128xbf16> to vector<64x128xbf16>
    %cst_18 = arith.constant dense<0.000000e+00> : vector<64x128xf32>
    %36 = tpu.matmul %33, %35, %cst_18 {dimension_numbers = #tpu.dot_dimension_numbers<[1], [0], [0], [1], [0, 0, 1, 1], [], []>} : vector<64x64xbf16>, vector<64x128xbf16>, vector<64x128xf32> -> vector<64x128xf32>
    %37 = arith.addf %30, %36 : vector<64x128xf32>
    %38 = vector.extract_strided_slice %1 {offsets = [1, 2, 0], sizes = [8, 8, 64], strides = [1, 1, 1]} : vector<10x10x64xf32> to vector<8x8x64xf32>
    %39 = vector.shape_cast %38 : vector<8x8x64xf32> to vector<64x64xf32>
    %40 = arith.truncf %39 : vector<64x64xf32> to vector<64x64xbf16>
    %c5 = arith.constant 5 : index
    %c0_19 = arith.constant 0 : index
    %c0_20 = arith.constant 0 : index
    %41 = vector.load %arg2[%c5, %c0_19, %c0_20] : memref<9x64x128xbf16, #tpu.memory_space<vmem>>, vector<1x64x128xbf16>
    %42 = vector.shape_cast %41 : vector<1x64x128xbf16> to vector<64x128xbf16>
    %cst_21 = arith.constant dense<0.000000e+00> : vector<64x128xf32>
    %43 = tpu.matmul %40, %42, %cst_21 {dimension_numbers = #tpu.dot_dimension_numbers<[1], [0], [0], [1], [0, 0, 1, 1], [], []>} : vector<64x64xbf16>, vector<64x128xbf16>, vector<64x128xf32> -> vector<64x128xf32>
    %44 = arith.addf %37, %43 : vector<64x128xf32>
    %45 = vector.extract_strided_slice %1 {offsets = [2, 0, 0], sizes = [8, 8, 64], strides = [1, 1, 1]} : vector<10x10x64xf32> to vector<8x8x64xf32>
    %46 = vector.shape_cast %45 : vector<8x8x64xf32> to vector<64x64xf32>
    %47 = arith.truncf %46 : vector<64x64xf32> to vector<64x64xbf16>
    %c6 = arith.constant 6 : index
    %c0_22 = arith.constant 0 : index
    %c0_23 = arith.constant 0 : index
    %48 = vector.load %arg2[%c6, %c0_22, %c0_23] : memref<9x64x128xbf16, #tpu.memory_space<vmem>>, vector<1x64x128xbf16>
    %49 = vector.shape_cast %48 : vector<1x64x128xbf16> to vector<64x128xbf16>
    %cst_24 = arith.constant dense<0.000000e+00> : vector<64x128xf32>
    %50 = tpu.matmul %47, %49, %cst_24 {dimension_numbers = #tpu.dot_dimension_numbers<[1], [0], [0], [1], [0, 0, 1, 1], [], []>} : vector<64x64xbf16>, vector<64x128xbf16>, vector<64x128xf32> -> vector<64x128xf32>
    %51 = arith.addf %44, %50 : vector<64x128xf32>
    %52 = vector.extract_strided_slice %1 {offsets = [2, 1, 0], sizes = [8, 8, 64], strides = [1, 1, 1]} : vector<10x10x64xf32> to vector<8x8x64xf32>
    %53 = vector.shape_cast %52 : vector<8x8x64xf32> to vector<64x64xf32>
    %54 = arith.truncf %53 : vector<64x64xf32> to vector<64x64xbf16>
    %c7 = arith.constant 7 : index
    %c0_25 = arith.constant 0 : index
    %c0_26 = arith.constant 0 : index
    %55 = vector.load %arg2[%c7, %c0_25, %c0_26] : memref<9x64x128xbf16, #tpu.memory_space<vmem>>, vector<1x64x128xbf16>
    %56 = vector.shape_cast %55 : vector<1x64x128xbf16> to vector<64x128xbf16>
    %cst_27 = arith.constant dense<0.000000e+00> : vector<64x128xf32>
    %57 = tpu.matmul %54, %56, %cst_27 {dimension_numbers = #tpu.dot_dimension_numbers<[1], [0], [0], [1], [0, 0, 1, 1], [], []>} : vector<64x64xbf16>, vector<64x128xbf16>, vector<64x128xf32> -> vector<64x128xf32>
    %58 = arith.addf %51, %57 : vector<64x128xf32>
    %59 = vector.extract_strided_slice %1 {offsets = [2, 2, 0], sizes = [8, 8, 64], strides = [1, 1, 1]} : vector<10x10x64xf32> to vector<8x8x64xf32>
    %60 = vector.shape_cast %59 : vector<8x8x64xf32> to vector<64x64xf32>
    %61 = arith.truncf %60 : vector<64x64xf32> to vector<64x64xbf16>
    %c8 = arith.constant 8 : index
    %c0_28 = arith.constant 0 : index
    %c0_29 = arith.constant 0 : index
    %62 = vector.load %arg2[%c8, %c0_28, %c0_29] : memref<9x64x128xbf16, #tpu.memory_space<vmem>>, vector<1x64x128xbf16>
    %63 = vector.shape_cast %62 : vector<1x64x128xbf16> to vector<64x128xbf16>
    %cst_30 = arith.constant dense<0.000000e+00> : vector<64x128xf32>
    %64 = tpu.matmul %61, %63, %cst_30 {dimension_numbers = #tpu.dot_dimension_numbers<[1], [0], [0], [1], [0, 0, 1, 1], [], []>} : vector<64x64xbf16>, vector<64x128xbf16>, vector<64x128xf32> -> vector<64x128xf32>
    %65 = arith.addf %58, %64 : vector<64x128xf32>
    %c0_31 = arith.constant 0 : index
    %c0_32 = arith.constant 0 : index
    %66 = vector.load %arg3[%c0_31, %c0_32] : memref<1x128xf32, #tpu.memory_space<vmem>>, vector<1x128xf32>
    %67 = vector.broadcast %66 : vector<1x128xf32> to vector<64x128xf32>
    %68 = arith.addf %65, %67 : vector<64x128xf32>
    %69 = vector.shape_cast %68 : vector<64x128xf32> to vector<1x64x128xf32>
    %c0_33 = arith.constant 0 : index
    %c0_34 = arith.constant 0 : index
    %c0_35 = arith.constant 0 : index
    %70 = vector.load %arg4[%c0_33, %c0_34, %c0_35] : memref<1x64x128xf32, #tpu.memory_space<vmem>>, vector<1x64x128xf32>
    tpu.vector_store %arg4[%c0_33, %c0_34, %c0_35], %69 {strides = array<i32>} : memref<1x64x128xf32, #tpu.memory_space<vmem>>, vector<1x64x128xf32>,
    return
  }
  func.func @transform_0(%arg0: i32) -> (i32, i32, i32, i32) {
    %c0_i32 = arith.constant 0 : i32
    %c0_i32_0 = arith.constant 0 : i32
    %c0_i32_1 = arith.constant 0 : i32
    %c0_i32_2 = arith.constant 0 : i32
    return %arg0, %c0_i32, %c0_i32_0, %c0_i32_1 : i32, i32, i32, i32
  }
  func.func @transform_1(%arg0: i32) -> (i32, i32, i32) {
    %c0_i32 = arith.constant 0 : i32
    %c0_i32_0 = arith.constant 0 : i32
    %c0_i32_1 = arith.constant 0 : i32
    %c0_i32_2 = arith.constant 0 : i32
    return %c0_i32, %c0_i32_0, %c0_i32_1 : i32, i32, i32
  }
  func.func @transform_2(%arg0: i32) -> (i32, i32) {
    %c0_i32 = arith.constant 0 : i32
    %c0_i32_0 = arith.constant 0 : i32
    %c0_i32_1 = arith.constant 0 : i32
    return %c0_i32, %c0_i32_0 : i32, i32
  }
  func.func @transform_3(%arg0: i32) -> (i32, i32, i32) {
    %c0_i32 = arith.constant 0 : i32
    %c0_i32_0 = arith.constant 0 : i32
    %c0_i32_1 = arith.constant 0 : i32
    return %arg0, %c0_i32, %c0_i32_0 : i32, i32, i32
  }
}

module attributes {stable_mosaic.version = 11 : i64} {
  func.func @kernel(%arg0: i32, %arg1: i32, %arg2: memref<1x64x128xf32, #tpu.memory_space<vmem>>, %arg3: memref<1x64x128xf32, #tpu.memory_space<vmem>>) attributes {dimension_semantics = [#tpu.dimension_semantics<parallel>, #tpu.dimension_semantics<parallel>], iteration_bounds = array<i64: 2, 1>, scalar_prefetch = 0 : i64, scratch_operands = 0 : i64, tpu.core_type = #tpu.core_type<tc>, window_params = [{transform_indices = @transform_0, window_bounds = array<i64: 1, 64, 128>}, {transform_indices = @transform_1, window_bounds = array<i64: 1, 64, 128>}]} {
    %c0 = arith.constant 0 : index
    %c0_0 = arith.constant 0 : index
    %c0_1 = arith.constant 0 : index
    %0 = vector.load %arg2[%c0, %c0_0, %c0_1] : memref<1x64x128xf32, #tpu.memory_space<vmem>>, vector<1x64x128xf32>
    %1 = vector.shape_cast %0 : vector<1x64x128xf32> to vector<64x128xf32>
    %cst = arith.constant dense<0.000000e+00> : vector<128xf32>
    %2 = vector.multi_reduction <add>, %1, %cst [0] : vector<64x128xf32> to vector<128xf32>
    %3 = vector.shape_cast %2 : vector<128xf32> to vector<1x128xf32>
    %cst_2 = arith.constant 6.400000e+01 : f32
    %4 = vector.broadcast %cst_2 : f32 to vector<1x128xf32>
    %5 = arith.divf %3, %4 : vector<1x128xf32>
    %6 = vector.broadcast %5 : vector<1x128xf32> to vector<64x128xf32>
    %7 = arith.subf %1, %6 : vector<64x128xf32>
    %8 = arith.mulf %7, %7 : vector<64x128xf32>
    %cst_3 = arith.constant dense<0.000000e+00> : vector<128xf32>
    %9 = vector.multi_reduction <add>, %8, %cst_3 [0] : vector<64x128xf32> to vector<128xf32>
    %10 = vector.shape_cast %9 : vector<128xf32> to vector<1x128xf32>
    %cst_4 = arith.constant 6.400000e+01 : f32
    %11 = vector.broadcast %cst_4 : f32 to vector<1x128xf32>
    %12 = arith.divf %10, %11 : vector<1x128xf32>
    %13 = vector.broadcast %5 : vector<1x128xf32> to vector<64x128xf32>
    %14 = arith.subf %1, %13 : vector<64x128xf32>
    %cst_5 = arith.constant 9.99999974E-6 : f32
    %15 = vector.broadcast %cst_5 : f32 to vector<1x128xf32>
    %16 = arith.addf %12, %15 : vector<1x128xf32>
    %17 = math.rsqrt %16 : vector<1x128xf32>
    %18 = vector.broadcast %17 : vector<1x128xf32> to vector<64x128xf32>
    %19 = arith.mulf %14, %18 : vector<64x128xf32>
    %cst_6 = arith.constant 0.000000e+00 : f32
    %20 = vector.broadcast %cst_6 : f32 to vector<64x128xf32>
    %21 = arith.cmpf ogt, %19, %20 : vector<64x128xf32>
    %cst_7 = arith.constant 2.000000e-01 : f32
    %22 = vector.broadcast %cst_7 : f32 to vector<64x128xf32>
    %23 = arith.mulf %22, %19 : vector<64x128xf32>
    %24 = arith.select %21, %19, %23 : vector<64x128xi1>, vector<64x128xf32>
    %25 = vector.shape_cast %24 : vector<64x128xf32> to vector<1x64x128xf32>
    %c0_8 = arith.constant 0 : index
    %c0_9 = arith.constant 0 : index
    %c0_10 = arith.constant 0 : index
    %26 = vector.load %arg3[%c0_8, %c0_9, %c0_10] : memref<1x64x128xf32, #tpu.memory_space<vmem>>, vector<1x64x128xf32>
    tpu.vector_store %arg3[%c0_8, %c0_9, %c0_10], %25 {strides = array<i32>} : memref<1x64x128xf32, #tpu.memory_space<vmem>>, vector<1x64x128xf32>,
    return
  }
  func.func @transform_0(%arg0: i32, %arg1: i32) -> (i32, i32, i32) {
    %c0_i32 = arith.constant 0 : i32
    %c0_i32_0 = arith.constant 0 : i32
    return %arg0, %c0_i32, %arg1 : i32, i32, i32
  }
  func.func @transform_1(%arg0: i32, %arg1: i32) -> (i32, i32, i32) {
    %c0_i32 = arith.constant 0 : i32
    %c0_i32_0 = arith.constant 0 : i32
    return %arg0, %c0_i32, %arg1 : i32, i32, i32
  }
}

module attributes {stable_mosaic.version = 11 : i64} {
  func.func @kernel(%arg0: i32, %arg1: memref<1x5x9x512xf32, #tpu.memory_space<vmem>>, %arg2: memref<4x512x128xbf16, #tpu.memory_space<vmem>>, %arg3: memref<1x128xf32, #tpu.memory_space<vmem>>, %arg4: memref<1x32x128xf32, #tpu.memory_space<vmem>>) attributes {dimension_semantics = [#tpu.dimension_semantics<parallel>], iteration_bounds = array<i64: 2>, scalar_prefetch = 0 : i64, scratch_operands = 0 : i64, tpu.core_type = #tpu.core_type<tc>, window_params = [{transform_indices = @transform_0, window_bounds = array<i64: 1, 5, 9, 512>}, {pipeline_mode = #tpu.pipeline_mode<synchronous>, transform_indices = @transform_1, window_bounds = array<i64: 4, 512, 128>}, {pipeline_mode = #tpu.pipeline_mode<synchronous>, transform_indices = @transform_2, window_bounds = array<i64: 1, 128>}, {transform_indices = @transform_3, window_bounds = array<i64: 1, 32, 128>}]} {
    %c0 = arith.constant 0 : index
    %c0_0 = arith.constant 0 : index
    %c0_1 = arith.constant 0 : index
    %c0_2 = arith.constant 0 : index
    %0 = vector.load %arg1[%c0, %c0_0, %c0_1, %c0_2] : memref<1x5x9x512xf32, #tpu.memory_space<vmem>>, vector<1x5x9x512xf32>
    %1 = vector.shape_cast %0 : vector<1x5x9x512xf32> to vector<5x9x512xf32>
    %cst = arith.constant 0.000000e+00 : f32
    %2 = vector.broadcast %cst : f32 to vector<32x128xf32>
    %3 = vector.extract_strided_slice %1 {offsets = [0, 0, 0], sizes = [4, 8, 512], strides = [1, 1, 1]} : vector<5x9x512xf32> to vector<4x8x512xf32>
    %4 = vector.shape_cast %3 : vector<4x8x512xf32> to vector<32x512xf32>
    %5 = arith.truncf %4 : vector<32x512xf32> to vector<32x512xbf16>
    %c0_3 = arith.constant 0 : index
    %c0_4 = arith.constant 0 : index
    %c0_5 = arith.constant 0 : index
    %6 = vector.load %arg2[%c0_3, %c0_4, %c0_5] : memref<4x512x128xbf16, #tpu.memory_space<vmem>>, vector<1x512x128xbf16>
    %7 = vector.shape_cast %6 : vector<1x512x128xbf16> to vector<512x128xbf16>
    %cst_6 = arith.constant dense<0.000000e+00> : vector<32x128xf32>
    %8 = tpu.matmul %5, %7, %cst_6 {dimension_numbers = #tpu.dot_dimension_numbers<[1], [0], [0], [1], [0, 0, 1, 1], [], []>} : vector<32x512xbf16>, vector<512x128xbf16>, vector<32x128xf32> -> vector<32x128xf32>
    %9 = arith.addf %2, %8 : vector<32x128xf32>
    %10 = vector.extract_strided_slice %1 {offsets = [0, 1, 0], sizes = [4, 8, 512], strides = [1, 1, 1]} : vector<5x9x512xf32> to vector<4x8x512xf32>
    %11 = vector.shape_cast %10 : vector<4x8x512xf32> to vector<32x512xf32>
    %12 = arith.truncf %11 : vector<32x512xf32> to vector<32x512xbf16>
    %c1 = arith.constant 1 : index
    %c0_7 = arith.constant 0 : index
    %c0_8 = arith.constant 0 : index
    %13 = vector.load %arg2[%c1, %c0_7, %c0_8] : memref<4x512x128xbf16, #tpu.memory_space<vmem>>, vector<1x512x128xbf16>
    %14 = vector.shape_cast %13 : vector<1x512x128xbf16> to vector<512x128xbf16>
    %cst_9 = arith.constant dense<0.000000e+00> : vector<32x128xf32>
    %15 = tpu.matmul %12, %14, %cst_9 {dimension_numbers = #tpu.dot_dimension_numbers<[1], [0], [0], [1], [0, 0, 1, 1], [], []>} : vector<32x512xbf16>, vector<512x128xbf16>, vector<32x128xf32> -> vector<32x128xf32>
    %16 = arith.addf %9, %15 : vector<32x128xf32>
    %17 = vector.extract_strided_slice %1 {offsets = [1, 0, 0], sizes = [4, 8, 512], strides = [1, 1, 1]} : vector<5x9x512xf32> to vector<4x8x512xf32>
    %18 = vector.shape_cast %17 : vector<4x8x512xf32> to vector<32x512xf32>
    %19 = arith.truncf %18 : vector<32x512xf32> to vector<32x512xbf16>
    %c2 = arith.constant 2 : index
    %c0_10 = arith.constant 0 : index
    %c0_11 = arith.constant 0 : index
    %20 = vector.load %arg2[%c2, %c0_10, %c0_11] : memref<4x512x128xbf16, #tpu.memory_space<vmem>>, vector<1x512x128xbf16>
    %21 = vector.shape_cast %20 : vector<1x512x128xbf16> to vector<512x128xbf16>
    %cst_12 = arith.constant dense<0.000000e+00> : vector<32x128xf32>
    %22 = tpu.matmul %19, %21, %cst_12 {dimension_numbers = #tpu.dot_dimension_numbers<[1], [0], [0], [1], [0, 0, 1, 1], [], []>} : vector<32x512xbf16>, vector<512x128xbf16>, vector<32x128xf32> -> vector<32x128xf32>
    %23 = arith.addf %16, %22 : vector<32x128xf32>
    %24 = vector.extract_strided_slice %1 {offsets = [1, 1, 0], sizes = [4, 8, 512], strides = [1, 1, 1]} : vector<5x9x512xf32> to vector<4x8x512xf32>
    %25 = vector.shape_cast %24 : vector<4x8x512xf32> to vector<32x512xf32>
    %26 = arith.truncf %25 : vector<32x512xf32> to vector<32x512xbf16>
    %c3 = arith.constant 3 : index
    %c0_13 = arith.constant 0 : index
    %c0_14 = arith.constant 0 : index
    %27 = vector.load %arg2[%c3, %c0_13, %c0_14] : memref<4x512x128xbf16, #tpu.memory_space<vmem>>, vector<1x512x128xbf16>
    %28 = vector.shape_cast %27 : vector<1x512x128xbf16> to vector<512x128xbf16>
    %cst_15 = arith.constant dense<0.000000e+00> : vector<32x128xf32>
    %29 = tpu.matmul %26, %28, %cst_15 {dimension_numbers = #tpu.dot_dimension_numbers<[1], [0], [0], [1], [0, 0, 1, 1], [], []>} : vector<32x512xbf16>, vector<512x128xbf16>, vector<32x128xf32> -> vector<32x128xf32>
    %30 = arith.addf %23, %29 : vector<32x128xf32>
    %c0_16 = arith.constant 0 : index
    %c0_17 = arith.constant 0 : index
    %31 = vector.load %arg3[%c0_16, %c0_17] : memref<1x128xf32, #tpu.memory_space<vmem>>, vector<1x128xf32>
    %32 = vector.broadcast %31 : vector<1x128xf32> to vector<32x128xf32>
    %33 = arith.addf %30, %32 : vector<32x128xf32>
    %cst_18 = arith.constant 0.000000e+00 : f32
    %34 = vector.broadcast %cst_18 : f32 to vector<32x128xf32>
    %35 = arith.cmpf ogt, %33, %34 : vector<32x128xf32>
    %cst_19 = arith.constant 2.000000e-01 : f32
    %36 = vector.broadcast %cst_19 : f32 to vector<32x128xf32>
    %37 = arith.mulf %36, %33 : vector<32x128xf32>
    %38 = arith.select %35, %33, %37 : vector<32x128xi1>, vector<32x128xf32>
    %39 = vector.shape_cast %38 : vector<32x128xf32> to vector<1x32x128xf32>
    %c0_20 = arith.constant 0 : index
    %c0_21 = arith.constant 0 : index
    %c0_22 = arith.constant 0 : index
    %40 = vector.load %arg4[%c0_20, %c0_21, %c0_22] : memref<1x32x128xf32, #tpu.memory_space<vmem>>, vector<1x32x128xf32>
    tpu.vector_store %arg4[%c0_20, %c0_21, %c0_22], %39 {strides = array<i32>} : memref<1x32x128xf32, #tpu.memory_space<vmem>>, vector<1x32x128xf32>,
    return
  }
  func.func @transform_0(%arg0: i32) -> (i32, i32, i32, i32) {
    %c0_i32 = arith.constant 0 : i32
    %c0_i32_0 = arith.constant 0 : i32
    %c0_i32_1 = arith.constant 0 : i32
    %c0_i32_2 = arith.constant 0 : i32
    return %arg0, %c0_i32, %c0_i32_0, %c0_i32_1 : i32, i32, i32, i32
  }
  func.func @transform_1(%arg0: i32) -> (i32, i32, i32) {
    %c0_i32 = arith.constant 0 : i32
    %c0_i32_0 = arith.constant 0 : i32
    %c0_i32_1 = arith.constant 0 : i32
    %c0_i32_2 = arith.constant 0 : i32
    return %c0_i32, %c0_i32_0, %c0_i32_1 : i32, i32, i32
  }
  func.func @transform_2(%arg0: i32) -> (i32, i32) {
    %c0_i32 = arith.constant 0 : i32
    %c0_i32_0 = arith.constant 0 : i32
    %c0_i32_1 = arith.constant 0 : i32
    return %c0_i32, %c0_i32_0 : i32, i32
  }
  func.func @transform_3(%arg0: i32) -> (i32, i32, i32) {
    %c0_i32 = arith.constant 0 : i32
    %c0_i32_0 = arith.constant 0 : i32
    %c0_i32_1 = arith.constant 0 : i32
    return %arg0, %c0_i32, %c0_i32_0 : i32, i32, i32
  }
}

module attributes {stable_mosaic.version = 11 : i64} {
  func.func @kernel(%arg0: i32, %arg1: memref<1x6x10x128xf32, #tpu.memory_space<vmem>>, %arg2: memref<9x128x256xbf16, #tpu.memory_space<vmem>>, %arg3: memref<1x256xf32, #tpu.memory_space<vmem>>, %arg4: memref<1x32x256xf32, #tpu.memory_space<vmem>>) attributes {dimension_semantics = [#tpu.dimension_semantics<parallel>], iteration_bounds = array<i64: 2>, scalar_prefetch = 0 : i64, scratch_operands = 0 : i64, tpu.core_type = #tpu.core_type<tc>, window_params = [{transform_indices = @transform_0, window_bounds = array<i64: 1, 6, 10, 128>}, {pipeline_mode = #tpu.pipeline_mode<synchronous>, transform_indices = @transform_1, window_bounds = array<i64: 9, 128, 256>}, {pipeline_mode = #tpu.pipeline_mode<synchronous>, transform_indices = @transform_2, window_bounds = array<i64: 1, 256>}, {transform_indices = @transform_3, window_bounds = array<i64: 1, 32, 256>}]} {
    %c0 = arith.constant 0 : index
    %c0_0 = arith.constant 0 : index
    %c0_1 = arith.constant 0 : index
    %c0_2 = arith.constant 0 : index
    %0 = vector.load %arg1[%c0, %c0_0, %c0_1, %c0_2] : memref<1x6x10x128xf32, #tpu.memory_space<vmem>>, vector<1x6x10x128xf32>
    %1 = vector.shape_cast %0 : vector<1x6x10x128xf32> to vector<6x10x128xf32>
    %cst = arith.constant 0.000000e+00 : f32
    %2 = vector.broadcast %cst : f32 to vector<32x256xf32>
    %3 = vector.extract_strided_slice %1 {offsets = [0, 0, 0], sizes = [4, 8, 128], strides = [1, 1, 1]} : vector<6x10x128xf32> to vector<4x8x128xf32>
    %4 = vector.shape_cast %3 : vector<4x8x128xf32> to vector<32x128xf32>
    %5 = arith.truncf %4 : vector<32x128xf32> to vector<32x128xbf16>
    %c0_3 = arith.constant 0 : index
    %c0_4 = arith.constant 0 : index
    %c0_5 = arith.constant 0 : index
    %6 = vector.load %arg2[%c0_3, %c0_4, %c0_5] : memref<9x128x256xbf16, #tpu.memory_space<vmem>>, vector<1x128x256xbf16>
    %7 = vector.shape_cast %6 : vector<1x128x256xbf16> to vector<128x256xbf16>
    %cst_6 = arith.constant dense<0.000000e+00> : vector<32x256xf32>
    %8 = tpu.matmul %5, %7, %cst_6 {dimension_numbers = #tpu.dot_dimension_numbers<[1], [0], [0], [1], [0, 0, 1, 1], [], []>} : vector<32x128xbf16>, vector<128x256xbf16>, vector<32x256xf32> -> vector<32x256xf32>
    %9 = arith.addf %2, %8 : vector<32x256xf32>
    %10 = vector.extract_strided_slice %1 {offsets = [0, 1, 0], sizes = [4, 8, 128], strides = [1, 1, 1]} : vector<6x10x128xf32> to vector<4x8x128xf32>
    %11 = vector.shape_cast %10 : vector<4x8x128xf32> to vector<32x128xf32>
    %12 = arith.truncf %11 : vector<32x128xf32> to vector<32x128xbf16>
    %c1 = arith.constant 1 : index
    %c0_7 = arith.constant 0 : index
    %c0_8 = arith.constant 0 : index
    %13 = vector.load %arg2[%c1, %c0_7, %c0_8] : memref<9x128x256xbf16, #tpu.memory_space<vmem>>, vector<1x128x256xbf16>
    %14 = vector.shape_cast %13 : vector<1x128x256xbf16> to vector<128x256xbf16>
    %cst_9 = arith.constant dense<0.000000e+00> : vector<32x256xf32>
    %15 = tpu.matmul %12, %14, %cst_9 {dimension_numbers = #tpu.dot_dimension_numbers<[1], [0], [0], [1], [0, 0, 1, 1], [], []>} : vector<32x128xbf16>, vector<128x256xbf16>, vector<32x256xf32> -> vector<32x256xf32>
    %16 = arith.addf %9, %15 : vector<32x256xf32>
    %17 = vector.extract_strided_slice %1 {offsets = [0, 2, 0], sizes = [4, 8, 128], strides = [1, 1, 1]} : vector<6x10x128xf32> to vector<4x8x128xf32>
    %18 = vector.shape_cast %17 : vector<4x8x128xf32> to vector<32x128xf32>
    %19 = arith.truncf %18 : vector<32x128xf32> to vector<32x128xbf16>
    %c2 = arith.constant 2 : index
    %c0_10 = arith.constant 0 : index
    %c0_11 = arith.constant 0 : index
    %20 = vector.load %arg2[%c2, %c0_10, %c0_11] : memref<9x128x256xbf16, #tpu.memory_space<vmem>>, vector<1x128x256xbf16>
    %21 = vector.shape_cast %20 : vector<1x128x256xbf16> to vector<128x256xbf16>
    %cst_12 = arith.constant dense<0.000000e+00> : vector<32x256xf32>
    %22 = tpu.matmul %19, %21, %cst_12 {dimension_numbers = #tpu.dot_dimension_numbers<[1], [0], [0], [1], [0, 0, 1, 1], [], []>} : vector<32x128xbf16>, vector<128x256xbf16>, vector<32x256xf32> -> vector<32x256xf32>
    %23 = arith.addf %16, %22 : vector<32x256xf32>
    %24 = vector.extract_strided_slice %1 {offsets = [1, 0, 0], sizes = [4, 8, 128], strides = [1, 1, 1]} : vector<6x10x128xf32> to vector<4x8x128xf32>
    %25 = vector.shape_cast %24 : vector<4x8x128xf32> to vector<32x128xf32>
    %26 = arith.truncf %25 : vector<32x128xf32> to vector<32x128xbf16>
    %c3 = arith.constant 3 : index
    %c0_13 = arith.constant 0 : index
    %c0_14 = arith.constant 0 : index
    %27 = vector.load %arg2[%c3, %c0_13, %c0_14] : memref<9x128x256xbf16, #tpu.memory_space<vmem>>, vector<1x128x256xbf16>
    %28 = vector.shape_cast %27 : vector<1x128x256xbf16> to vector<128x256xbf16>
    %cst_15 = arith.constant dense<0.000000e+00> : vector<32x256xf32>
    %29 = tpu.matmul %26, %28, %cst_15 {dimension_numbers = #tpu.dot_dimension_numbers<[1], [0], [0], [1], [0, 0, 1, 1], [], []>} : vector<32x128xbf16>, vector<128x256xbf16>, vector<32x256xf32> -> vector<32x256xf32>
    %30 = arith.addf %23, %29 : vector<32x256xf32>
    %31 = vector.extract_strided_slice %1 {offsets = [1, 1, 0], sizes = [4, 8, 128], strides = [1, 1, 1]} : vector<6x10x128xf32> to vector<4x8x128xf32>
    %32 = vector.shape_cast %31 : vector<4x8x128xf32> to vector<32x128xf32>
    %33 = arith.truncf %32 : vector<32x128xf32> to vector<32x128xbf16>
    %c4 = arith.constant 4 : index
    %c0_16 = arith.constant 0 : index
    %c0_17 = arith.constant 0 : index
    %34 = vector.load %arg2[%c4, %c0_16, %c0_17] : memref<9x128x256xbf16, #tpu.memory_space<vmem>>, vector<1x128x256xbf16>
    %35 = vector.shape_cast %34 : vector<1x128x256xbf16> to vector<128x256xbf16>
    %cst_18 = arith.constant dense<0.000000e+00> : vector<32x256xf32>
    %36 = tpu.matmul %33, %35, %cst_18 {dimension_numbers = #tpu.dot_dimension_numbers<[1], [0], [0], [1], [0, 0, 1, 1], [], []>} : vector<32x128xbf16>, vector<128x256xbf16>, vector<32x256xf32> -> vector<32x256xf32>
    %37 = arith.addf %30, %36 : vector<32x256xf32>
    %38 = vector.extract_strided_slice %1 {offsets = [1, 2, 0], sizes = [4, 8, 128], strides = [1, 1, 1]} : vector<6x10x128xf32> to vector<4x8x128xf32>
    %39 = vector.shape_cast %38 : vector<4x8x128xf32> to vector<32x128xf32>
    %40 = arith.truncf %39 : vector<32x128xf32> to vector<32x128xbf16>
    %c5 = arith.constant 5 : index
    %c0_19 = arith.constant 0 : index
    %c0_20 = arith.constant 0 : index
    %41 = vector.load %arg2[%c5, %c0_19, %c0_20] : memref<9x128x256xbf16, #tpu.memory_space<vmem>>, vector<1x128x256xbf16>
    %42 = vector.shape_cast %41 : vector<1x128x256xbf16> to vector<128x256xbf16>
    %cst_21 = arith.constant dense<0.000000e+00> : vector<32x256xf32>
    %43 = tpu.matmul %40, %42, %cst_21 {dimension_numbers = #tpu.dot_dimension_numbers<[1], [0], [0], [1], [0, 0, 1, 1], [], []>} : vector<32x128xbf16>, vector<128x256xbf16>, vector<32x256xf32> -> vector<32x256xf32>
    %44 = arith.addf %37, %43 : vector<32x256xf32>
    %45 = vector.extract_strided_slice %1 {offsets = [2, 0, 0], sizes = [4, 8, 128], strides = [1, 1, 1]} : vector<6x10x128xf32> to vector<4x8x128xf32>
    %46 = vector.shape_cast %45 : vector<4x8x128xf32> to vector<32x128xf32>
    %47 = arith.truncf %46 : vector<32x128xf32> to vector<32x128xbf16>
    %c6 = arith.constant 6 : index
    %c0_22 = arith.constant 0 : index
    %c0_23 = arith.constant 0 : index
    %48 = vector.load %arg2[%c6, %c0_22, %c0_23] : memref<9x128x256xbf16, #tpu.memory_space<vmem>>, vector<1x128x256xbf16>
    %49 = vector.shape_cast %48 : vector<1x128x256xbf16> to vector<128x256xbf16>
    %cst_24 = arith.constant dense<0.000000e+00> : vector<32x256xf32>
    %50 = tpu.matmul %47, %49, %cst_24 {dimension_numbers = #tpu.dot_dimension_numbers<[1], [0], [0], [1], [0, 0, 1, 1], [], []>} : vector<32x128xbf16>, vector<128x256xbf16>, vector<32x256xf32> -> vector<32x256xf32>
    %51 = arith.addf %44, %50 : vector<32x256xf32>
    %52 = vector.extract_strided_slice %1 {offsets = [2, 1, 0], sizes = [4, 8, 128], strides = [1, 1, 1]} : vector<6x10x128xf32> to vector<4x8x128xf32>
    %53 = vector.shape_cast %52 : vector<4x8x128xf32> to vector<32x128xf32>
    %54 = arith.truncf %53 : vector<32x128xf32> to vector<32x128xbf16>
    %c7 = arith.constant 7 : index
    %c0_25 = arith.constant 0 : index
    %c0_26 = arith.constant 0 : index
    %55 = vector.load %arg2[%c7, %c0_25, %c0_26] : memref<9x128x256xbf16, #tpu.memory_space<vmem>>, vector<1x128x256xbf16>
    %56 = vector.shape_cast %55 : vector<1x128x256xbf16> to vector<128x256xbf16>
    %cst_27 = arith.constant dense<0.000000e+00> : vector<32x256xf32>
    %57 = tpu.matmul %54, %56, %cst_27 {dimension_numbers = #tpu.dot_dimension_numbers<[1], [0], [0], [1], [0, 0, 1, 1], [], []>} : vector<32x128xbf16>, vector<128x256xbf16>, vector<32x256xf32> -> vector<32x256xf32>
    %58 = arith.addf %51, %57 : vector<32x256xf32>
    %59 = vector.extract_strided_slice %1 {offsets = [2, 2, 0], sizes = [4, 8, 128], strides = [1, 1, 1]} : vector<6x10x128xf32> to vector<4x8x128xf32>
    %60 = vector.shape_cast %59 : vector<4x8x128xf32> to vector<32x128xf32>
    %61 = arith.truncf %60 : vector<32x128xf32> to vector<32x128xbf16>
    %c8 = arith.constant 8 : index
    %c0_28 = arith.constant 0 : index
    %c0_29 = arith.constant 0 : index
    %62 = vector.load %arg2[%c8, %c0_28, %c0_29] : memref<9x128x256xbf16, #tpu.memory_space<vmem>>, vector<1x128x256xbf16>
    %63 = vector.shape_cast %62 : vector<1x128x256xbf16> to vector<128x256xbf16>
    %cst_30 = arith.constant dense<0.000000e+00> : vector<32x256xf32>
    %64 = tpu.matmul %61, %63, %cst_30 {dimension_numbers = #tpu.dot_dimension_numbers<[1], [0], [0], [1], [0, 0, 1, 1], [], []>} : vector<32x128xbf16>, vector<128x256xbf16>, vector<32x256xf32> -> vector<32x256xf32>
    %65 = arith.addf %58, %64 : vector<32x256xf32>
    %c0_31 = arith.constant 0 : index
    %c0_32 = arith.constant 0 : index
    %66 = vector.load %arg3[%c0_31, %c0_32] : memref<1x256xf32, #tpu.memory_space<vmem>>, vector<1x256xf32>
    %67 = vector.broadcast %66 : vector<1x256xf32> to vector<32x256xf32>
    %68 = arith.addf %65, %67 : vector<32x256xf32>
    %69 = vector.shape_cast %68 : vector<32x256xf32> to vector<1x32x256xf32>
    %c0_33 = arith.constant 0 : index
    %c0_34 = arith.constant 0 : index
    %c0_35 = arith.constant 0 : index
    %70 = vector.load %arg4[%c0_33, %c0_34, %c0_35] : memref<1x32x256xf32, #tpu.memory_space<vmem>>, vector<1x32x256xf32>
    tpu.vector_store %arg4[%c0_33, %c0_34, %c0_35], %69 {strides = array<i32>} : memref<1x32x256xf32, #tpu.memory_space<vmem>>, vector<1x32x256xf32>,
    return
  }
  func.func @transform_0(%arg0: i32) -> (i32, i32, i32, i32) {
    %c0_i32 = arith.constant 0 : i32
    %c0_i32_0 = arith.constant 0 : i32
    %c0_i32_1 = arith.constant 0 : i32
    %c0_i32_2 = arith.constant 0 : i32
    return %arg0, %c0_i32, %c0_i32_0, %c0_i32_1 : i32, i32, i32, i32
  }
  func.func @transform_1(%arg0: i32) -> (i32, i32, i32) {
    %c0_i32 = arith.constant 0 : i32
    %c0_i32_0 = arith.constant 0 : i32
    %c0_i32_1 = arith.constant 0 : i32
    %c0_i32_2 = arith.constant 0 : i32
    return %c0_i32, %c0_i32_0, %c0_i32_1 : i32, i32, i32
  }
  func.func @transform_2(%arg0: i32) -> (i32, i32) {
    %c0_i32 = arith.constant 0 : i32
    %c0_i32_0 = arith.constant 0 : i32
    %c0_i32_1 = arith.constant 0 : i32
    return %c0_i32, %c0_i32_0 : i32, i32
  }
  func.func @transform_3(%arg0: i32) -> (i32, i32, i32) {
    %c0_i32 = arith.constant 0 : i32
    %c0_i32_0 = arith.constant 0 : i32
    %c0_i32_1 = arith.constant 0 : i32
    return %arg0, %c0_i32, %c0_i32_0 : i32, i32, i32
  }
}

module attributes {stable_mosaic.version = 11 : i64} {
  func.func @kernel(%arg0: i32, %arg1: i32, %arg2: memref<1x16x128xf32, #tpu.memory_space<vmem>>, %arg3: memref<1x16x128xf32, #tpu.memory_space<vmem>>) attributes {dimension_semantics = [#tpu.dimension_semantics<parallel>, #tpu.dimension_semantics<parallel>], iteration_bounds = array<i64: 2, 2>, scalar_prefetch = 0 : i64, scratch_operands = 0 : i64, tpu.core_type = #tpu.core_type<tc>, window_params = [{transform_indices = @transform_0, window_bounds = array<i64: 1, 16, 128>}, {transform_indices = @transform_1, window_bounds = array<i64: 1, 16, 128>}]} {
    %c0 = arith.constant 0 : index
    %c0_0 = arith.constant 0 : index
    %c0_1 = arith.constant 0 : index
    %0 = vector.load %arg2[%c0, %c0_0, %c0_1] : memref<1x16x128xf32, #tpu.memory_space<vmem>>, vector<1x16x128xf32>
    %1 = vector.shape_cast %0 : vector<1x16x128xf32> to vector<16x128xf32>
    %cst = arith.constant dense<0.000000e+00> : vector<128xf32>
    %2 = vector.multi_reduction <add>, %1, %cst [0] : vector<16x128xf32> to vector<128xf32>
    %3 = vector.shape_cast %2 : vector<128xf32> to vector<1x128xf32>
    %cst_2 = arith.constant 1.600000e+01 : f32
    %4 = vector.broadcast %cst_2 : f32 to vector<1x128xf32>
    %5 = arith.divf %3, %4 : vector<1x128xf32>
    %6 = vector.broadcast %5 : vector<1x128xf32> to vector<16x128xf32>
    %7 = arith.subf %1, %6 : vector<16x128xf32>
    %8 = arith.mulf %7, %7 : vector<16x128xf32>
    %cst_3 = arith.constant dense<0.000000e+00> : vector<128xf32>
    %9 = vector.multi_reduction <add>, %8, %cst_3 [0] : vector<16x128xf32> to vector<128xf32>
    %10 = vector.shape_cast %9 : vector<128xf32> to vector<1x128xf32>
    %cst_4 = arith.constant 1.600000e+01 : f32
    %11 = vector.broadcast %cst_4 : f32 to vector<1x128xf32>
    %12 = arith.divf %10, %11 : vector<1x128xf32>
    %13 = vector.broadcast %5 : vector<1x128xf32> to vector<16x128xf32>
    %14 = arith.subf %1, %13 : vector<16x128xf32>
    %cst_5 = arith.constant 9.99999974E-6 : f32
    %15 = vector.broadcast %cst_5 : f32 to vector<1x128xf32>
    %16 = arith.addf %12, %15 : vector<1x128xf32>
    %17 = math.rsqrt %16 : vector<1x128xf32>
    %18 = vector.broadcast %17 : vector<1x128xf32> to vector<16x128xf32>
    %19 = arith.mulf %14, %18 : vector<16x128xf32>
    %cst_6 = arith.constant 0.000000e+00 : f32
    %20 = vector.broadcast %cst_6 : f32 to vector<16x128xf32>
    %21 = arith.cmpf ogt, %19, %20 : vector<16x128xf32>
    %cst_7 = arith.constant 2.000000e-01 : f32
    %22 = vector.broadcast %cst_7 : f32 to vector<16x128xf32>
    %23 = arith.mulf %22, %19 : vector<16x128xf32>
    %24 = arith.select %21, %19, %23 : vector<16x128xi1>, vector<16x128xf32>
    %25 = vector.shape_cast %24 : vector<16x128xf32> to vector<1x16x128xf32>
    %c0_8 = arith.constant 0 : index
    %c0_9 = arith.constant 0 : index
    %c0_10 = arith.constant 0 : index
    %26 = vector.load %arg3[%c0_8, %c0_9, %c0_10] : memref<1x16x128xf32, #tpu.memory_space<vmem>>, vector<1x16x128xf32>
    tpu.vector_store %arg3[%c0_8, %c0_9, %c0_10], %25 {strides = array<i32>} : memref<1x16x128xf32, #tpu.memory_space<vmem>>, vector<1x16x128xf32>,
    return
  }
  func.func @transform_0(%arg0: i32, %arg1: i32) -> (i32, i32, i32) {
    %c0_i32 = arith.constant 0 : i32
    %c0_i32_0 = arith.constant 0 : i32
    return %arg0, %c0_i32, %arg1 : i32, i32, i32
  }
  func.func @transform_1(%arg0: i32, %arg1: i32) -> (i32, i32, i32) {
    %c0_i32 = arith.constant 0 : i32
    %c0_i32_0 = arith.constant 0 : i32
    return %arg0, %c0_i32, %arg1 : i32, i32, i32
  }
}

module attributes {stable_mosaic.version = 11 : i64} {
  func.func @kernel(%arg0: i32, %arg1: memref<1x6x10x256xf32, #tpu.memory_space<vmem>>, %arg2: memref<9x256x256xbf16, #tpu.memory_space<vmem>>, %arg3: memref<1x256xf32, #tpu.memory_space<vmem>>, %arg4: memref<1x32x256xf32, #tpu.memory_space<vmem>>) attributes {dimension_semantics = [#tpu.dimension_semantics<parallel>], iteration_bounds = array<i64: 2>, scalar_prefetch = 0 : i64, scratch_operands = 0 : i64, tpu.core_type = #tpu.core_type<tc>, window_params = [{transform_indices = @transform_0, window_bounds = array<i64: 1, 6, 10, 256>}, {pipeline_mode = #tpu.pipeline_mode<synchronous>, transform_indices = @transform_1, window_bounds = array<i64: 9, 256, 256>}, {pipeline_mode = #tpu.pipeline_mode<synchronous>, transform_indices = @transform_2, window_bounds = array<i64: 1, 256>}, {transform_indices = @transform_3, window_bounds = array<i64: 1, 32, 256>}]} {
    %c0 = arith.constant 0 : index
    %c0_0 = arith.constant 0 : index
    %c0_1 = arith.constant 0 : index
    %c0_2 = arith.constant 0 : index
    %0 = vector.load %arg1[%c0, %c0_0, %c0_1, %c0_2] : memref<1x6x10x256xf32, #tpu.memory_space<vmem>>, vector<1x6x10x256xf32>
    %1 = vector.shape_cast %0 : vector<1x6x10x256xf32> to vector<6x10x256xf32>
    %cst = arith.constant 0.000000e+00 : f32
    %2 = vector.broadcast %cst : f32 to vector<32x256xf32>
    %3 = vector.extract_strided_slice %1 {offsets = [0, 0, 0], sizes = [4, 8, 256], strides = [1, 1, 1]} : vector<6x10x256xf32> to vector<4x8x256xf32>
    %4 = vector.shape_cast %3 : vector<4x8x256xf32> to vector<32x256xf32>
    %5 = arith.truncf %4 : vector<32x256xf32> to vector<32x256xbf16>
    %c0_3 = arith.constant 0 : index
    %c0_4 = arith.constant 0 : index
    %c0_5 = arith.constant 0 : index
    %6 = vector.load %arg2[%c0_3, %c0_4, %c0_5] : memref<9x256x256xbf16, #tpu.memory_space<vmem>>, vector<1x256x256xbf16>
    %7 = vector.shape_cast %6 : vector<1x256x256xbf16> to vector<256x256xbf16>
    %cst_6 = arith.constant dense<0.000000e+00> : vector<32x256xf32>
    %8 = tpu.matmul %5, %7, %cst_6 {dimension_numbers = #tpu.dot_dimension_numbers<[1], [0], [0], [1], [0, 0, 1, 1], [], []>} : vector<32x256xbf16>, vector<256x256xbf16>, vector<32x256xf32> -> vector<32x256xf32>
    %9 = arith.addf %2, %8 : vector<32x256xf32>
    %10 = vector.extract_strided_slice %1 {offsets = [0, 1, 0], sizes = [4, 8, 256], strides = [1, 1, 1]} : vector<6x10x256xf32> to vector<4x8x256xf32>
    %11 = vector.shape_cast %10 : vector<4x8x256xf32> to vector<32x256xf32>
    %12 = arith.truncf %11 : vector<32x256xf32> to vector<32x256xbf16>
    %c1 = arith.constant 1 : index
    %c0_7 = arith.constant 0 : index
    %c0_8 = arith.constant 0 : index
    %13 = vector.load %arg2[%c1, %c0_7, %c0_8] : memref<9x256x256xbf16, #tpu.memory_space<vmem>>, vector<1x256x256xbf16>
    %14 = vector.shape_cast %13 : vector<1x256x256xbf16> to vector<256x256xbf16>
    %cst_9 = arith.constant dense<0.000000e+00> : vector<32x256xf32>
    %15 = tpu.matmul %12, %14, %cst_9 {dimension_numbers = #tpu.dot_dimension_numbers<[1], [0], [0], [1], [0, 0, 1, 1], [], []>} : vector<32x256xbf16>, vector<256x256xbf16>, vector<32x256xf32> -> vector<32x256xf32>
    %16 = arith.addf %9, %15 : vector<32x256xf32>
    %17 = vector.extract_strided_slice %1 {offsets = [0, 2, 0], sizes = [4, 8, 256], strides = [1, 1, 1]} : vector<6x10x256xf32> to vector<4x8x256xf32>
    %18 = vector.shape_cast %17 : vector<4x8x256xf32> to vector<32x256xf32>
    %19 = arith.truncf %18 : vector<32x256xf32> to vector<32x256xbf16>
    %c2 = arith.constant 2 : index
    %c0_10 = arith.constant 0 : index
    %c0_11 = arith.constant 0 : index
    %20 = vector.load %arg2[%c2, %c0_10, %c0_11] : memref<9x256x256xbf16, #tpu.memory_space<vmem>>, vector<1x256x256xbf16>
    %21 = vector.shape_cast %20 : vector<1x256x256xbf16> to vector<256x256xbf16>
    %cst_12 = arith.constant dense<0.000000e+00> : vector<32x256xf32>
    %22 = tpu.matmul %19, %21, %cst_12 {dimension_numbers = #tpu.dot_dimension_numbers<[1], [0], [0], [1], [0, 0, 1, 1], [], []>} : vector<32x256xbf16>, vector<256x256xbf16>, vector<32x256xf32> -> vector<32x256xf32>
    %23 = arith.addf %16, %22 : vector<32x256xf32>
    %24 = vector.extract_strided_slice %1 {offsets = [1, 0, 0], sizes = [4, 8, 256], strides = [1, 1, 1]} : vector<6x10x256xf32> to vector<4x8x256xf32>
    %25 = vector.shape_cast %24 : vector<4x8x256xf32> to vector<32x256xf32>
    %26 = arith.truncf %25 : vector<32x256xf32> to vector<32x256xbf16>
    %c3 = arith.constant 3 : index
    %c0_13 = arith.constant 0 : index
    %c0_14 = arith.constant 0 : index
    %27 = vector.load %arg2[%c3, %c0_13, %c0_14] : memref<9x256x256xbf16, #tpu.memory_space<vmem>>, vector<1x256x256xbf16>
    %28 = vector.shape_cast %27 : vector<1x256x256xbf16> to vector<256x256xbf16>
    %cst_15 = arith.constant dense<0.000000e+00> : vector<32x256xf32>
    %29 = tpu.matmul %26, %28, %cst_15 {dimension_numbers = #tpu.dot_dimension_numbers<[1], [0], [0], [1], [0, 0, 1, 1], [], []>} : vector<32x256xbf16>, vector<256x256xbf16>, vector<32x256xf32> -> vector<32x256xf32>
    %30 = arith.addf %23, %29 : vector<32x256xf32>
    %31 = vector.extract_strided_slice %1 {offsets = [1, 1, 0], sizes = [4, 8, 256], strides = [1, 1, 1]} : vector<6x10x256xf32> to vector<4x8x256xf32>
    %32 = vector.shape_cast %31 : vector<4x8x256xf32> to vector<32x256xf32>
    %33 = arith.truncf %32 : vector<32x256xf32> to vector<32x256xbf16>
    %c4 = arith.constant 4 : index
    %c0_16 = arith.constant 0 : index
    %c0_17 = arith.constant 0 : index
    %34 = vector.load %arg2[%c4, %c0_16, %c0_17] : memref<9x256x256xbf16, #tpu.memory_space<vmem>>, vector<1x256x256xbf16>
    %35 = vector.shape_cast %34 : vector<1x256x256xbf16> to vector<256x256xbf16>
    %cst_18 = arith.constant dense<0.000000e+00> : vector<32x256xf32>
    %36 = tpu.matmul %33, %35, %cst_18 {dimension_numbers = #tpu.dot_dimension_numbers<[1], [0], [0], [1], [0, 0, 1, 1], [], []>} : vector<32x256xbf16>, vector<256x256xbf16>, vector<32x256xf32> -> vector<32x256xf32>
    %37 = arith.addf %30, %36 : vector<32x256xf32>
    %38 = vector.extract_strided_slice %1 {offsets = [1, 2, 0], sizes = [4, 8, 256], strides = [1, 1, 1]} : vector<6x10x256xf32> to vector<4x8x256xf32>
    %39 = vector.shape_cast %38 : vector<4x8x256xf32> to vector<32x256xf32>
    %40 = arith.truncf %39 : vector<32x256xf32> to vector<32x256xbf16>
    %c5 = arith.constant 5 : index
    %c0_19 = arith.constant 0 : index
    %c0_20 = arith.constant 0 : index
    %41 = vector.load %arg2[%c5, %c0_19, %c0_20] : memref<9x256x256xbf16, #tpu.memory_space<vmem>>, vector<1x256x256xbf16>
    %42 = vector.shape_cast %41 : vector<1x256x256xbf16> to vector<256x256xbf16>
    %cst_21 = arith.constant dense<0.000000e+00> : vector<32x256xf32>
    %43 = tpu.matmul %40, %42, %cst_21 {dimension_numbers = #tpu.dot_dimension_numbers<[1], [0], [0], [1], [0, 0, 1, 1], [], []>} : vector<32x256xbf16>, vector<256x256xbf16>, vector<32x256xf32> -> vector<32x256xf32>
    %44 = arith.addf %37, %43 : vector<32x256xf32>
    %45 = vector.extract_strided_slice %1 {offsets = [2, 0, 0], sizes = [4, 8, 256], strides = [1, 1, 1]} : vector<6x10x256xf32> to vector<4x8x256xf32>
    %46 = vector.shape_cast %45 : vector<4x8x256xf32> to vector<32x256xf32>
    %47 = arith.truncf %46 : vector<32x256xf32> to vector<32x256xbf16>
    %c6 = arith.constant 6 : index
    %c0_22 = arith.constant 0 : index
    %c0_23 = arith.constant 0 : index
    %48 = vector.load %arg2[%c6, %c0_22, %c0_23] : memref<9x256x256xbf16, #tpu.memory_space<vmem>>, vector<1x256x256xbf16>
    %49 = vector.shape_cast %48 : vector<1x256x256xbf16> to vector<256x256xbf16>
    %cst_24 = arith.constant dense<0.000000e+00> : vector<32x256xf32>
    %50 = tpu.matmul %47, %49, %cst_24 {dimension_numbers = #tpu.dot_dimension_numbers<[1], [0], [0], [1], [0, 0, 1, 1], [], []>} : vector<32x256xbf16>, vector<256x256xbf16>, vector<32x256xf32> -> vector<32x256xf32>
    %51 = arith.addf %44, %50 : vector<32x256xf32>
    %52 = vector.extract_strided_slice %1 {offsets = [2, 1, 0], sizes = [4, 8, 256], strides = [1, 1, 1]} : vector<6x10x256xf32> to vector<4x8x256xf32>
    %53 = vector.shape_cast %52 : vector<4x8x256xf32> to vector<32x256xf32>
    %54 = arith.truncf %53 : vector<32x256xf32> to vector<32x256xbf16>
    %c7 = arith.constant 7 : index
    %c0_25 = arith.constant 0 : index
    %c0_26 = arith.constant 0 : index
    %55 = vector.load %arg2[%c7, %c0_25, %c0_26] : memref<9x256x256xbf16, #tpu.memory_space<vmem>>, vector<1x256x256xbf16>
    %56 = vector.shape_cast %55 : vector<1x256x256xbf16> to vector<256x256xbf16>
    %cst_27 = arith.constant dense<0.000000e+00> : vector<32x256xf32>
    %57 = tpu.matmul %54, %56, %cst_27 {dimension_numbers = #tpu.dot_dimension_numbers<[1], [0], [0], [1], [0, 0, 1, 1], [], []>} : vector<32x256xbf16>, vector<256x256xbf16>, vector<32x256xf32> -> vector<32x256xf32>
    %58 = arith.addf %51, %57 : vector<32x256xf32>
    %59 = vector.extract_strided_slice %1 {offsets = [2, 2, 0], sizes = [4, 8, 256], strides = [1, 1, 1]} : vector<6x10x256xf32> to vector<4x8x256xf32>
    %60 = vector.shape_cast %59 : vector<4x8x256xf32> to vector<32x256xf32>
    %61 = arith.truncf %60 : vector<32x256xf32> to vector<32x256xbf16>
    %c8 = arith.constant 8 : index
    %c0_28 = arith.constant 0 : index
    %c0_29 = arith.constant 0 : index
    %62 = vector.load %arg2[%c8, %c0_28, %c0_29] : memref<9x256x256xbf16, #tpu.memory_space<vmem>>, vector<1x256x256xbf16>
    %63 = vector.shape_cast %62 : vector<1x256x256xbf16> to vector<256x256xbf16>
    %cst_30 = arith.constant dense<0.000000e+00> : vector<32x256xf32>
    %64 = tpu.matmul %61, %63, %cst_30 {dimension_numbers = #tpu.dot_dimension_numbers<[1], [0], [0], [1], [0, 0, 1, 1], [], []>} : vector<32x256xbf16>, vector<256x256xbf16>, vector<32x256xf32> -> vector<32x256xf32>
    %65 = arith.addf %58, %64 : vector<32x256xf32>
    %c0_31 = arith.constant 0 : index
    %c0_32 = arith.constant 0 : index
    %66 = vector.load %arg3[%c0_31, %c0_32] : memref<1x256xf32, #tpu.memory_space<vmem>>, vector<1x256xf32>
    %67 = vector.broadcast %66 : vector<1x256xf32> to vector<32x256xf32>
    %68 = arith.addf %65, %67 : vector<32x256xf32>
    %69 = vector.shape_cast %68 : vector<32x256xf32> to vector<1x32x256xf32>
    %c0_33 = arith.constant 0 : index
    %c0_34 = arith.constant 0 : index
    %c0_35 = arith.constant 0 : index
    %70 = vector.load %arg4[%c0_33, %c0_34, %c0_35] : memref<1x32x256xf32, #tpu.memory_space<vmem>>, vector<1x32x256xf32>
    tpu.vector_store %arg4[%c0_33, %c0_34, %c0_35], %69 {strides = array<i32>} : memref<1x32x256xf32, #tpu.memory_space<vmem>>, vector<1x32x256xf32>,
    return
  }
  func.func @transform_0(%arg0: i32) -> (i32, i32, i32, i32) {
    %c0_i32 = arith.constant 0 : i32
    %c0_i32_0 = arith.constant 0 : i32
    %c0_i32_1 = arith.constant 0 : i32
    %c0_i32_2 = arith.constant 0 : i32
    return %arg0, %c0_i32, %c0_i32_0, %c0_i32_1 : i32, i32, i32, i32
  }
  func.func @transform_1(%arg0: i32) -> (i32, i32, i32) {
    %c0_i32 = arith.constant 0 : i32
    %c0_i32_0 = arith.constant 0 : i32
    %c0_i32_1 = arith.constant 0 : i32
    %c0_i32_2 = arith.constant 0 : i32
    return %c0_i32, %c0_i32_0, %c0_i32_1 : i32, i32, i32
  }
  func.func @transform_2(%arg0: i32) -> (i32, i32) {
    %c0_i32 = arith.constant 0 : i32
    %c0_i32_0 = arith.constant 0 : i32
    %c0_i32_1 = arith.constant 0 : i32
    return %c0_i32, %c0_i32_0 : i32, i32
  }
  func.func @transform_3(%arg0: i32) -> (i32, i32, i32) {
    %c0_i32 = arith.constant 0 : i32
    %c0_i32_0 = arith.constant 0 : i32
    %c0_i32_1 = arith.constant 0 : i32
    return %arg0, %c0_i32, %c0_i32_0 : i32, i32, i32
  }
}

module attributes {stable_mosaic.version = 11 : i64} {
  func.func @kernel(%arg0: i32, %arg1: memref<1x6x10x256xf32, #tpu.memory_space<vmem>>, %arg2: memref<9x256x1xbf16, #tpu.memory_space<vmem>>, %arg3: memref<1x1xf32, #tpu.memory_space<vmem>>, %arg4: memref<1x32x1xf32, #tpu.memory_space<vmem>>) attributes {dimension_semantics = [#tpu.dimension_semantics<parallel>], iteration_bounds = array<i64: 2>, scalar_prefetch = 0 : i64, scratch_operands = 0 : i64, tpu.core_type = #tpu.core_type<tc>, window_params = [{transform_indices = @transform_0, window_bounds = array<i64: 1, 6, 10, 256>}, {pipeline_mode = #tpu.pipeline_mode<synchronous>, transform_indices = @transform_1, window_bounds = array<i64: 9, 256, 1>}, {pipeline_mode = #tpu.pipeline_mode<synchronous>, transform_indices = @transform_2, window_bounds = array<i64: 1, 1>}, {transform_indices = @transform_3, window_bounds = array<i64: 1, 32, 1>}]} {
    %c0 = arith.constant 0 : index
    %c0_0 = arith.constant 0 : index
    %c0_1 = arith.constant 0 : index
    %c0_2 = arith.constant 0 : index
    %0 = vector.load %arg1[%c0, %c0_0, %c0_1, %c0_2] : memref<1x6x10x256xf32, #tpu.memory_space<vmem>>, vector<1x6x10x256xf32>
    %1 = vector.shape_cast %0 : vector<1x6x10x256xf32> to vector<6x10x256xf32>
    %cst = arith.constant 0.000000e+00 : f32
    %2 = vector.broadcast %cst : f32 to vector<32x1xf32>
    %3 = vector.extract_strided_slice %1 {offsets = [0, 0, 0], sizes = [4, 8, 256], strides = [1, 1, 1]} : vector<6x10x256xf32> to vector<4x8x256xf32>
    %4 = vector.shape_cast %3 : vector<4x8x256xf32> to vector<32x256xf32>
    %5 = arith.truncf %4 : vector<32x256xf32> to vector<32x256xbf16>
    %c0_3 = arith.constant 0 : index
    %c0_4 = arith.constant 0 : index
    %c0_5 = arith.constant 0 : index
    %6 = vector.load %arg2[%c0_3, %c0_4, %c0_5] : memref<9x256x1xbf16, #tpu.memory_space<vmem>>, vector<1x256x1xbf16>
    %7 = vector.shape_cast %6 : vector<1x256x1xbf16> to vector<256x1xbf16>
    %cst_6 = arith.constant dense<0.000000e+00> : vector<32x1xf32>
    %8 = tpu.matmul %5, %7, %cst_6 {dimension_numbers = #tpu.dot_dimension_numbers<[1], [0], [0], [1], [0, 0, 1, 1], [], []>} : vector<32x256xbf16>, vector<256x1xbf16>, vector<32x1xf32> -> vector<32x1xf32>
    %9 = arith.addf %2, %8 : vector<32x1xf32>
    %10 = vector.extract_strided_slice %1 {offsets = [0, 1, 0], sizes = [4, 8, 256], strides = [1, 1, 1]} : vector<6x10x256xf32> to vector<4x8x256xf32>
    %11 = vector.shape_cast %10 : vector<4x8x256xf32> to vector<32x256xf32>
    %12 = arith.truncf %11 : vector<32x256xf32> to vector<32x256xbf16>
    %c1 = arith.constant 1 : index
    %c0_7 = arith.constant 0 : index
    %c0_8 = arith.constant 0 : index
    %13 = vector.load %arg2[%c1, %c0_7, %c0_8] : memref<9x256x1xbf16, #tpu.memory_space<vmem>>, vector<1x256x1xbf16>
    %14 = vector.shape_cast %13 : vector<1x256x1xbf16> to vector<256x1xbf16>
    %cst_9 = arith.constant dense<0.000000e+00> : vector<32x1xf32>
    %15 = tpu.matmul %12, %14, %cst_9 {dimension_numbers = #tpu.dot_dimension_numbers<[1], [0], [0], [1], [0, 0, 1, 1], [], []>} : vector<32x256xbf16>, vector<256x1xbf16>, vector<32x1xf32> -> vector<32x1xf32>
    %16 = arith.addf %9, %15 : vector<32x1xf32>
    %17 = vector.extract_strided_slice %1 {offsets = [0, 2, 0], sizes = [4, 8, 256], strides = [1, 1, 1]} : vector<6x10x256xf32> to vector<4x8x256xf32>
    %18 = vector.shape_cast %17 : vector<4x8x256xf32> to vector<32x256xf32>
    %19 = arith.truncf %18 : vector<32x256xf32> to vector<32x256xbf16>
    %c2 = arith.constant 2 : index
    %c0_10 = arith.constant 0 : index
    %c0_11 = arith.constant 0 : index
    %20 = vector.load %arg2[%c2, %c0_10, %c0_11] : memref<9x256x1xbf16, #tpu.memory_space<vmem>>, vector<1x256x1xbf16>
    %21 = vector.shape_cast %20 : vector<1x256x1xbf16> to vector<256x1xbf16>
    %cst_12 = arith.constant dense<0.000000e+00> : vector<32x1xf32>
    %22 = tpu.matmul %19, %21, %cst_12 {dimension_numbers = #tpu.dot_dimension_numbers<[1], [0], [0], [1], [0, 0, 1, 1], [], []>} : vector<32x256xbf16>, vector<256x1xbf16>, vector<32x1xf32> -> vector<32x1xf32>
    %23 = arith.addf %16, %22 : vector<32x1xf32>
    %24 = vector.extract_strided_slice %1 {offsets = [1, 0, 0], sizes = [4, 8, 256], strides = [1, 1, 1]} : vector<6x10x256xf32> to vector<4x8x256xf32>
    %25 = vector.shape_cast %24 : vector<4x8x256xf32> to vector<32x256xf32>
    %26 = arith.truncf %25 : vector<32x256xf32> to vector<32x256xbf16>
    %c3 = arith.constant 3 : index
    %c0_13 = arith.constant 0 : index
    %c0_14 = arith.constant 0 : index
    %27 = vector.load %arg2[%c3, %c0_13, %c0_14] : memref<9x256x1xbf16, #tpu.memory_space<vmem>>, vector<1x256x1xbf16>
    %28 = vector.shape_cast %27 : vector<1x256x1xbf16> to vector<256x1xbf16>
    %cst_15 = arith.constant dense<0.000000e+00> : vector<32x1xf32>
    %29 = tpu.matmul %26, %28, %cst_15 {dimension_numbers = #tpu.dot_dimension_numbers<[1], [0], [0], [1], [0, 0, 1, 1], [], []>} : vector<32x256xbf16>, vector<256x1xbf16>, vector<32x1xf32> -> vector<32x1xf32>
    %30 = arith.addf %23, %29 : vector<32x1xf32>
    %31 = vector.extract_strided_slice %1 {offsets = [1, 1, 0], sizes = [4, 8, 256], strides = [1, 1, 1]} : vector<6x10x256xf32> to vector<4x8x256xf32>
    %32 = vector.shape_cast %31 : vector<4x8x256xf32> to vector<32x256xf32>
    %33 = arith.truncf %32 : vector<32x256xf32> to vector<32x256xbf16>
    %c4 = arith.constant 4 : index
    %c0_16 = arith.constant 0 : index
    %c0_17 = arith.constant 0 : index
    %34 = vector.load %arg2[%c4, %c0_16, %c0_17] : memref<9x256x1xbf16, #tpu.memory_space<vmem>>, vector<1x256x1xbf16>
    %35 = vector.shape_cast %34 : vector<1x256x1xbf16> to vector<256x1xbf16>
    %cst_18 = arith.constant dense<0.000000e+00> : vector<32x1xf32>
    %36 = tpu.matmul %33, %35, %cst_18 {dimension_numbers = #tpu.dot_dimension_numbers<[1], [0], [0], [1], [0, 0, 1, 1], [], []>} : vector<32x256xbf16>, vector<256x1xbf16>, vector<32x1xf32> -> vector<32x1xf32>
    %37 = arith.addf %30, %36 : vector<32x1xf32>
    %38 = vector.extract_strided_slice %1 {offsets = [1, 2, 0], sizes = [4, 8, 256], strides = [1, 1, 1]} : vector<6x10x256xf32> to vector<4x8x256xf32>
    %39 = vector.shape_cast %38 : vector<4x8x256xf32> to vector<32x256xf32>
    %40 = arith.truncf %39 : vector<32x256xf32> to vector<32x256xbf16>
    %c5 = arith.constant 5 : index
    %c0_19 = arith.constant 0 : index
    %c0_20 = arith.constant 0 : index
    %41 = vector.load %arg2[%c5, %c0_19, %c0_20] : memref<9x256x1xbf16, #tpu.memory_space<vmem>>, vector<1x256x1xbf16>
    %42 = vector.shape_cast %41 : vector<1x256x1xbf16> to vector<256x1xbf16>
    %cst_21 = arith.constant dense<0.000000e+00> : vector<32x1xf32>
    %43 = tpu.matmul %40, %42, %cst_21 {dimension_numbers = #tpu.dot_dimension_numbers<[1], [0], [0], [1], [0, 0, 1, 1], [], []>} : vector<32x256xbf16>, vector<256x1xbf16>, vector<32x1xf32> -> vector<32x1xf32>
    %44 = arith.addf %37, %43 : vector<32x1xf32>
    %45 = vector.extract_strided_slice %1 {offsets = [2, 0, 0], sizes = [4, 8, 256], strides = [1, 1, 1]} : vector<6x10x256xf32> to vector<4x8x256xf32>
    %46 = vector.shape_cast %45 : vector<4x8x256xf32> to vector<32x256xf32>
    %47 = arith.truncf %46 : vector<32x256xf32> to vector<32x256xbf16>
    %c6 = arith.constant 6 : index
    %c0_22 = arith.constant 0 : index
    %c0_23 = arith.constant 0 : index
    %48 = vector.load %arg2[%c6, %c0_22, %c0_23] : memref<9x256x1xbf16, #tpu.memory_space<vmem>>, vector<1x256x1xbf16>
    %49 = vector.shape_cast %48 : vector<1x256x1xbf16> to vector<256x1xbf16>
    %cst_24 = arith.constant dense<0.000000e+00> : vector<32x1xf32>
    %50 = tpu.matmul %47, %49, %cst_24 {dimension_numbers = #tpu.dot_dimension_numbers<[1], [0], [0], [1], [0, 0, 1, 1], [], []>} : vector<32x256xbf16>, vector<256x1xbf16>, vector<32x1xf32> -> vector<32x1xf32>
    %51 = arith.addf %44, %50 : vector<32x1xf32>
    %52 = vector.extract_strided_slice %1 {offsets = [2, 1, 0], sizes = [4, 8, 256], strides = [1, 1, 1]} : vector<6x10x256xf32> to vector<4x8x256xf32>
    %53 = vector.shape_cast %52 : vector<4x8x256xf32> to vector<32x256xf32>
    %54 = arith.truncf %53 : vector<32x256xf32> to vector<32x256xbf16>
    %c7 = arith.constant 7 : index
    %c0_25 = arith.constant 0 : index
    %c0_26 = arith.constant 0 : index
    %55 = vector.load %arg2[%c7, %c0_25, %c0_26] : memref<9x256x1xbf16, #tpu.memory_space<vmem>>, vector<1x256x1xbf16>
    %56 = vector.shape_cast %55 : vector<1x256x1xbf16> to vector<256x1xbf16>
    %cst_27 = arith.constant dense<0.000000e+00> : vector<32x1xf32>
    %57 = tpu.matmul %54, %56, %cst_27 {dimension_numbers = #tpu.dot_dimension_numbers<[1], [0], [0], [1], [0, 0, 1, 1], [], []>} : vector<32x256xbf16>, vector<256x1xbf16>, vector<32x1xf32> -> vector<32x1xf32>
    %58 = arith.addf %51, %57 : vector<32x1xf32>
    %59 = vector.extract_strided_slice %1 {offsets = [2, 2, 0], sizes = [4, 8, 256], strides = [1, 1, 1]} : vector<6x10x256xf32> to vector<4x8x256xf32>
    %60 = vector.shape_cast %59 : vector<4x8x256xf32> to vector<32x256xf32>
    %61 = arith.truncf %60 : vector<32x256xf32> to vector<32x256xbf16>
    %c8 = arith.constant 8 : index
    %c0_28 = arith.constant 0 : index
    %c0_29 = arith.constant 0 : index
    %62 = vector.load %arg2[%c8, %c0_28, %c0_29] : memref<9x256x1xbf16, #tpu.memory_space<vmem>>, vector<1x256x1xbf16>
    %63 = vector.shape_cast %62 : vector<1x256x1xbf16> to vector<256x1xbf16>
    %cst_30 = arith.constant dense<0.000000e+00> : vector<32x1xf32>
    %64 = tpu.matmul %61, %63, %cst_30 {dimension_numbers = #tpu.dot_dimension_numbers<[1], [0], [0], [1], [0, 0, 1, 1], [], []>} : vector<32x256xbf16>, vector<256x1xbf16>, vector<32x1xf32> -> vector<32x1xf32>
    %65 = arith.addf %58, %64 : vector<32x1xf32>
    %c0_31 = arith.constant 0 : index
    %c0_32 = arith.constant 0 : index
    %66 = vector.load %arg3[%c0_31, %c0_32] : memref<1x1xf32, #tpu.memory_space<vmem>>, vector<1x1xf32>
    %67 = vector.broadcast %66 : vector<1x1xf32> to vector<32x1xf32>
    %68 = arith.addf %65, %67 : vector<32x1xf32>
    %cst_33 = arith.constant 0.000000e+00 : f32
    %69 = vector.broadcast %cst_33 : f32 to vector<32x1xf32>
    %70 = arith.subf %69, %68 : vector<32x1xf32>
    %71 = math.exp %70 : vector<32x1xf32>
    %cst_34 = arith.constant 1.000000e+00 : f32
    %72 = vector.broadcast %cst_34 : f32 to vector<32x1xf32>
    %73 = arith.addf %72, %71 : vector<32x1xf32>
    %cst_35 = arith.constant 1.000000e+00 : f32
    %74 = vector.broadcast %cst_35 : f32 to vector<32x1xf32>
    %75 = arith.divf %74, %73 : vector<32x1xf32>
    %76 = vector.shape_cast %75 : vector<32x1xf32> to vector<1x32x1xf32>
    %c0_36 = arith.constant 0 : index
    %c0_37 = arith.constant 0 : index
    %c0_38 = arith.constant 0 : index
    %77 = vector.load %arg4[%c0_36, %c0_37, %c0_38] : memref<1x32x1xf32, #tpu.memory_space<vmem>>, vector<1x32x1xf32>
    tpu.vector_store %arg4[%c0_36, %c0_37, %c0_38], %76 {strides = array<i32>} : memref<1x32x1xf32, #tpu.memory_space<vmem>>, vector<1x32x1xf32>,
    return
  }
  func.func @transform_0(%arg0: i32) -> (i32, i32, i32, i32) {
    %c0_i32 = arith.constant 0 : i32
    %c0_i32_0 = arith.constant 0 : i32
    %c0_i32_1 = arith.constant 0 : i32
    %c0_i32_2 = arith.constant 0 : i32
    return %arg0, %c0_i32, %c0_i32_0, %c0_i32_1 : i32, i32, i32, i32
  }
  func.func @transform_1(%arg0: i32) -> (i32, i32, i32) {
    %c0_i32 = arith.constant 0 : i32
    %c0_i32_0 = arith.constant 0 : i32
    %c0_i32_1 = arith.constant 0 : i32
    %c0_i32_2 = arith.constant 0 : i32
    return %c0_i32, %c0_i32_0, %c0_i32_1 : i32, i32, i32
  }
  func.func @transform_2(%arg0: i32) -> (i32, i32) {
    %c0_i32 = arith.constant 0 : i32
    %c0_i32_0 = arith.constant 0 : i32
    %c0_i32_1 = arith.constant 0 : i32
    return %c0_i32, %c0_i32_0 : i32, i32
  }
  func.func @transform_3(%arg0: i32) -> (i32, i32, i32) {
    %c0_i32 = arith.constant 0 : i32
    %c0_i32_0 = arith.constant 0 : i32
    %c0_i32_1 = arith.constant 0 : i32
    return %arg0, %c0_i32, %c0_i32_0 : i32, i32, i32
  }
}

</mosaic_0001>

<bundles_post_ra>
// kernel: discriminator_forward.11
= control target key start
LH: loop header
LB: loop body
LE: loop exit
PB: predicated region body
PF: predicated region fallthrough
CT: control target
= control target key end

     0   :  { %s1228_s12 = smov 0   ;;  %s1458_s0 = inlined_call_operand.vmem [shape: f32[2,9,9,128], index: 0, kind: input, shape index: {}]   ;;  %s1459_s1 = inlined_call_operand.vmem [shape: bf16[4,128,64], index: 1, kind: input, shape index: {}]   ;;  %s1460_s2 = inlined_call_operand.vmem [shape: f32[1,64], index: 2, kind: input, shape index: {}]   ;;  %s1461_s3 = inlined_call_operand.vmem [shape: f32[2,64,64], index: 3, kind: output, shape index: {}]  }
   0x1 LB: > { %s899_s13 = sadd.s32 4294967295, %s1206_s12   ;;  %p903_p0 = scmp.ge.s32.totalorder %s1206_s12, 1  ;;  %s1206_s12 = sphi %s1228_s12, %s13_s12  }
   0x2   : > { %p137_p1 = scmp.lt.s32.totalorder %s1206_s12, 3 }
   0x4   : > { %p138_p2 = pnand %p903_p0, %p137_p1 }
   0x5   : > { %v1168_v0 = vld [vmem:[%s1459_s1 + $0x40] sm:$0xff] (!%p138_p2)   ;;  %p161_p3 = scmp.lt.s32.totalorder (!%p138_p2), %s899_s13, 1  ;;  %v1170_v2 = vld [vmem:[%s1459_s1 + $0x48] sm:$0xff] (!%p138_p2)   ;;  %v1172_v4 = vld [vmem:[%s1459_s1 + $0x50] sm:$0xff] (!%p138_p2)   ;;  %vm226_vm0 = vcmask (!%p138_p2), 1046528   ;;  %vm835_vm2 = vcmask (!%p138_p2), 523264  }
   0x6   : > { %141 = sbr.rel (%p138_p2) target bundleno = 302 (0x12e), region = 32  ;;  %v1169_v1 = vld [vmem:[%s1459_s1 + $0x80] sm:$0xff] (!%p138_p2)   ;;  %1039 = vmatprep.subr.bf16.mxu1 (!%p138_p2), %v1168_v0  ;;  %v1171_v3 = vld [vmem:[%s1459_s1 + $0x88] sm:$0xff] (!%p138_p2)   ;;  %v1173_v5 = vld [vmem:[%s1459_s1 + $0x90] sm:$0xff] (!%p138_p2)  }
   0x7   : > { %1087 = vmatprep.subr.bf16.mxu0 (!%p138_p2), %v1169_v1  ;;  %1040 = vmatpush3.bf16.msra.mxu1 (!%p138_p2), %v1168_v0  ;;  %v1174_v6 = vld [vmem:[%s1459_s1 + $0x58] sm:$0xff] (!%p138_p2)   ;;  %v1176_v8 = vld [vmem:[%s1459_s1 + $0x60] sm:$0xff] (!%p138_p2)   ;;  %v1178_v10 = vld [vmem:[%s1459_s1 + $0x68] sm:$0xff] (!%p138_p2)  }
   0x8   : > { %1088 = vmatpush3.bf16.msra.mxu0 (!%p138_p2), %v1169_v1  ;;  %1041 = vmatprep.subr.bf16.mxu1 (!%p138_p2), %v1170_v2  ;;  %v1175_v7 = vld [vmem:[%s1459_s1 + $0x98] sm:$0xff] (!%p138_p2)   ;;  %v1177_v9 = vld [vmem:[%s1459_s1 + $0xa0] sm:$0xff] (!%p138_p2)   ;;  %v1179_v14 = vld [vmem:[%s1459_s1 + $0xa8] sm:$0xff] (!%p138_p2)  }
   0x9   : > { %1089 = vmatprep.subr.bf16.mxu0 (!%p138_p2), %v1171_v3  ;;  %v1180_v23 = vld [vmem:[%s1459_s1 + $0x70] sm:$0xff] (!%p138_p2)   ;;  %v1182_v34 = vld [vmem:[%s1459_s1 + $0x78] sm:$0xff] (!%p138_p2)   ;;  %v1184_v37 = vld [vmem:[%s1459_s1] sm:$0xff] (!%p138_p2)  }
   0xa   : > { %v1181_v27 = vld [vmem:[%s1459_s1 + $0xb0] sm:$0xff] (!%p138_p2)   ;;  %v1183_v35 = vld [vmem:[%s1459_s1 + $0xb8] sm:$0xff] (!%p138_p2)   ;;  %v1185_v40 = vld [vmem:[%s1459_s1 + $0xc0] sm:$0xff] (!%p138_p2)  }
   0xb   : > { %1042 = vmatpush3.bf16.msra.mxu1 (!%p138_p2), %v1170_v2  ;;  %v1186_v43 = vld [vmem:[%s1459_s1 + $0x8] sm:$0xff] (!%p138_p2)   ;;  %v1188_v61 = vld [vmem:[%s1459_s1 + $0x10] sm:$0xff] (!%p138_p2)  }
   0xc   : > { %1090 = vmatpush3.bf16.msra.mxu0 (!%p138_p2), %v1171_v3  ;;  %1043 = vmatprep.subr.bf16.mxu1 (!%p138_p2), %v1172_v4  ;;  %v1187_v45 = vld [vmem:[%s1459_s1 + $0xc8] sm:$0xff] (!%p138_p2)   ;;  %v1189_v3 = vld [vmem:[%s1459_s1 + $0xd0] sm:$0xff] (!%p138_p2)  }
   0xd   : > { %s1463_s13 = smov (!%p161_p3, %s899_s13), 1  ;;  %1091 = vmatprep.subr.bf16.mxu0 %v1173_v5 }
   0xe   : > { %s1159_s30 = smul.u32 144, %s1463_s13  ;;  %s990_s7 = sshll.u32 %s1463_s13, 6 }
   0xf   : > { %1044 = vmatpush3.bf16.msra.mxu1 %v1172_v4  ;;  %s1437_s11 = scalar_lea.vmem %s1461_s3, %s990_s7 }
  0x10   : > { %1092 = vmatpush3.bf16.msra.mxu0 %v1173_v5  ;;  %1045 = vmatprep.subr.bf16.mxu1 %v1174_v6  ;;  %s1272_s10 = scalar_lea.vmem %s1458_s0, %s1159_s30 }
  0x11   : > { %1093 = vmatprep.subr.bf16.mxu0 %v1175_v7  ;;  %v1278_v11 = vld [vmem:[%s1272_s10] sm:$0xff]  ;;  %v173_v12 = vld [vmem:[%s1272_s10 + $0x8] sm:$0x1]  ;;  %v1282_v13 = vld [vmem:[%s1272_s10 + $0x10] sm:$0xff] }
  0x12   : > { %v175_v15 = vld [vmem:[%s1272_s10 + $0x18] sm:$0x1]  ;;  %v227_v16 = vrot.slane %v1278_v11, 1  ;;  %v1290_v17 = vld [vmem:[%s1272_s10 + $0x20] sm:$0xff]  ;;  %v228_v18 = vrot.slane %v173_v12, 1  ;;  %v230_v19 = vrot.slane %v1282_v13, 1 }
  0x13   : > { %1046 = vmatpush3.bf16.msra.mxu1 %v1174_v6  ;;  %v231_v20 = vrot.slane %v175_v15, 1  ;;  %v177_v21 = vld [vmem:[%s1272_s10 + $0x28] sm:$0x1]  ;;  %v506_v22 = vpack.c.bf16 %v1290_v17, %v1282_v13  ;;  %v1304_v26 = vld [vmem:[%s1272_s10 + $0x30] sm:$0xff]  ;;  %v179_v29 = vld [vmem:[%s1272_s10 + $0x38] sm:$0x1] }
  0x14   : > { %1094 = vmatpush3.bf16.msra.mxu0 %v1175_v7  ;;  %1047 = vmatprep.subr.bf16.mxu1 %v1176_v8  ;;  %v229_v24 = vsel %vm226_vm0, %v227_v16, %v228_v18  ;;  %v233_v30 = vrot.slane %v1290_v17, 1  ;;  %v234_v31 = vrot.slane %v177_v21, 1  ;;  %v236_v32 = vrot.slane %v1304_v26, 1  ;;  %v1329_v39 = vld [vmem:[%s1272_s10 + $0x40] sm:$0xff]  ;;  %v181_v46 = vld [vmem:[%s1272_s10 + $0x48] sm:$0x1] }
  0x15   : > { %1095 = vmatprep.subr.bf16.mxu0 %v1177_v9  ;;  %v1301_v25 = vsel %vm226_vm0, %v230_v19, %v231_v20  ;;  %1103 = vmatprep.mubr.bf16.mxu0 %v506_v22  ;;  %v237_v33 = vrot.slane %v179_v29, 1  ;;  %v239_v42 = vrot.slane %v1329_v39, 1  ;;  %v507_v44 = vpack.c.bf16 %v1329_v39, %v1304_v26  ;;  %v1347_v47 = vld [vmem:[%s1272_s10 + $0x50] sm:$0xff]  ;;  %v183_v48 = vld [vmem:[%s1272_s10 + $0x58] sm:$0x1]  ;;  %v1351_v50 = vld [vmem:[%s1272_s10 + $0x60] sm:$0xff] }
  0x16   : > { %v259_v28 = vpack.c.bf16 %v1301_v25, %v229_v24  ;;  %v1320_v36 = vsel %vm226_vm0, %v233_v30, %v234_v31  ;;  %v240_v49 = vrot.slane %v181_v46, 1  ;;  %v242_v51 = vrot.slane %v1347_v47, 1  ;;  %v185_v55 = vld [vmem:[%s1272_s10 + $0x68] sm:$0x1]  ;;  %v1359_v56 = vld [vmem:[%s1272_s10 + $0x70] sm:$0xff]  ;;  %v1376_v2 = vld [vmem:[%s1272_s10 + $0x80] sm:$0xff] }
  0x17   : > { %1048 = vmatpush3.bf16.msra.mxu1 %v1176_v8  ;;  %v1326_v38 = vsel %vm226_vm0, %v236_v32, %v237_v33  ;;  %v243_v52 = vrot.slane %v183_v48, 1  ;;  %v245_v53 = vrot.slane %v1351_v50, 1  ;;  %v508_v54 = vpack.c.bf16 %v1351_v50, %v1347_v47  ;;  %v187_v58 = vld [vmem:[%s1272_s10 + $0x78] sm:$0x1]  ;;  %v1192_v12 = vld [vmem:[%s1459_s1 + $0x20] sm:$0xff]   ;;  %v1196_v15 = vld [vmem:[%s1459_s1 + $0x30] sm:$0xff]  }
  0x18   : > { %1096 = vmatpush3.bf16.msra.mxu0 %v1177_v9  ;;  %1049 = vmatprep.subr.bf16.mxu1 %v1178_v10  ;;  %v260_v41 = vpack.c.bf16 %v1326_v38, %v1320_v36  ;;  %v1362_v57 = vsel %vm226_vm0, %v239_v42, %v240_v49  ;;  %v246_v59 = vrot.slane %v185_v55, 1  ;;  %v248_v60 = vrot.slane %v1359_v56, 1  ;;  %v1190_v7 = vld [vmem:[%s1459_s1 + $0x18] sm:$0xff]   ;;  %v1197_v16 = vld [vmem:[%s1459_s1 + $0xf0] sm:$0xff]   ;;  %v189_v20 = vld [vmem:[%s1272_s10 + $0x88] sm:$0x1] }
  0x19   : > { %1097 = vmatprep.subr.bf16.mxu0 %v1179_v14  ;;  %1055 = vmatprep.mubr.bf16.mxu1 %v259_v28  ;;  %v1370_v62 = vsel %vm226_vm0, %v242_v51, %v243_v52  ;;  %v249_v63 = vrot.slane %v187_v58, 1  ;;  %v509_v6 = vpack.c.bf16 %v1376_v2, %v1359_v56  ;;  %v1191_v8 = vld [vmem:[%s1459_s1 + $0xd8] sm:$0xff]   ;;  %v190_v9 = vpack.c.bf16 %v1282_v13, %v1278_v11  ;;  %v1194_v11 = vld [vmem:[%s1459_s1 + $0x28] sm:$0xff]   ;;  %v987_v31 = vld [vmem:[%s1460_s2] ss:$0 sm:$0xff] }
  0x1a   : > { %v261_v0 = vpack.c.bf16 %v1370_v62, %v1362_v57  ;;  %v247_v1 = vsel %vm226_vm0, %v245_v53, %v246_v59  ;;  %v1195_v13 = vld [vmem:[%s1459_s1 + $0xe8] sm:$0xff]   ;;  %v1198_v18 = vld [vmem:[%s1459_s1 + $0x38] sm:$0xff]   ;;  %v191_v21 = vpack.c.bf16 %v1304_v26, %v1290_v17  ;;  %v655_v22 = vpack.c.bf16 %v1362_v57, %v1326_v38 }
  0x1b   : > { %1050 = vmatpush3.bf16.msra.mxu1 %v1178_v10  ;;  %v250_v4 = vsel %vm226_vm0, %v248_v60, %v249_v63  ;;  %v654_v10 = vpack.c.bf16 %v1320_v36, %v1301_v25  ;;  %v1199_v19 = vld [vmem:[%s1459_s1 + $0xf8] sm:$0xff]   ;;  %v650_v24 = vrot.slane %v1376_v2, 1  ;;  %v656_v25 = vpack.c.bf16 %v247_v1, %v1370_v62 }
  0x1c   : > { %1098 = vmatpush3.bf16.msra.mxu0 %v1179_v14  ;;  %1051 = vmatprep.subr.bf16.mxu1 %v1180_v23  ;;  %v262_v5 = vpack.c.bf16 %v250_v4, %v247_v1  ;;  %v1193_v14 = vld [vmem:[%s1459_s1 + $0xe0] sm:$0xff]   ;;  %v193_v26 = vpack.c.bf16 %v1359_v56, %v1351_v50 }
  0x1d   : > { %1099 = vmatprep.subr.bf16.mxu0 %v1181_v27 }
  0x1f   : > { %1052 = vmatpush3.bf16.msra.mxu1 %v1180_v23  ;;  %v192_v23 = vpack.c.bf16 %v1347_v47, %v1329_v39 }
  0x20   : > { %1100 = vmatpush3.bf16.msra.mxu0 %v1181_v27  ;;  %1053 = vmatprep.subr.bf16.mxu1 %v1182_v34  ;;  %v651_v27 = vrot.slane %v189_v20, 1 }
  0x21   : > { %1101 = vmatprep.subr.bf16.mxu0 %v1183_v35 }
  0x22   : > { %v652_v17 = vsel %vm226_vm0, %v650_v24, %v651_v27 }
  0x23   : > { %1054 = vmatpush3.bf16.msra.mxu1 %v1182_v34  ;;  %v657_v28 = vpack.c.bf16 %v652_v17, %v250_v4 }
  0x24   : > { %1102 = vmatpush3.bf16.msra.mxu0 %v1183_v35  ;;  %1063 = vmatprep.subr.bf16.mxu1 %v1184_v37 }
  0x25   : > { %1111 = vmatprep.subr.bf16.mxu0 %v1185_v40 }
  0x26   : > { %1056 = vmatmul.mubr.bf16.vlgmr.msra.gmra.mrb[0].mxu1 %v260_v41 }
  0x27   : > { %1064 = vmatpush3.bf16.msra.mxu1 %v1184_v37  ;;  %1104 = vmatmul.mubr.bf16.vlgmr.msra.gmra.mrb[0].mxu0 %v507_v44 }
  0x28   : > { %1112 = vmatpush3.bf16.msra.mxu0 %v1185_v40  ;;  %1065 = vmatprep.subr.bf16.mxu1 %v1186_v43 }
  0x29   : > { %1113 = vmatprep.subr.bf16.mxu0 %v1187_v45  ;;  %1107 = vmatprep.mubr.bf16.mxu0 %v508_v54 }
  0x2a   : > { %1059 = vmatprep.mubr.bf16.mxu1 %v261_v0 }
  0x2b   : > { %1066 = vmatpush3.bf16.msra.mxu1 %v1186_v43 }
  0x2c   : > { %1114 = vmatpush3.bf16.msra.mxu0 %v1187_v45  ;;  %1067 = vmatprep.subr.bf16.mxu1 %v1188_v61 }
  0x2d   : > { %1115 = vmatprep.subr.bf16.mxu0 %v1189_v3 }
  0x2e   : > { %1060 = vmatmul.mubr.bf16.gmra.mrb[4].mxu1 %v262_v5 }
  0x2f   : > { %1068 = vmatpush3.bf16.msra.mxu1 %v1188_v61  ;;  %1108 = vmatmul.mubr.bf16.gmra.mrb[4].mxu0 %v509_v6 }
  0x30   : > { %1116 = vmatpush3.bf16.msra.mxu0 %v1189_v3  ;;  %1069 = vmatprep.subr.bf16.mxu1 %v1190_v7 }
  0x31   : > { %1117 = vmatprep.subr.bf16.mxu0 %v1191_v8  ;;  %1079 = vmatprep.mubr.bf16.mxu1 %v190_v9 }
  0x32   : > { %1127 = vmatprep.mubr.bf16.mxu0 %v654_v10 }
  0x33   : > { %1070 = vmatpush3.bf16.msra.mxu1 %v1190_v7 }
  0x34   : > { %1118 = vmatpush3.bf16.msra.mxu0 %v1191_v8  ;;  %1071 = vmatprep.subr.bf16.mxu1 %v1192_v12 }
  0x35   : > { %1119 = vmatprep.subr.bf16.mxu0 %v1193_v14 }
  0x37   : > { %1072 = vmatpush3.bf16.msra.mxu1 %v1192_v12 }
  0x38   : > { %1120 = vmatpush3.bf16.msra.mxu0 %v1193_v14  ;;  %1073 = vmatprep.subr.bf16.mxu1 %v1194_v11 }
  0x39   : > { %1121 = vmatprep.subr.bf16.mxu0 %v1195_v13 }
  0x3b   : > { %1074 = vmatpush3.bf16.msra.mxu1 %v1194_v11 }
  0x3c   : > { %1122 = vmatpush3.bf16.msra.mxu0 %v1195_v13  ;;  %1075 = vmatprep.subr.bf16.mxu1 %v1196_v15 }
  0x3d   : > { %1123 = vmatprep.subr.bf16.mxu0 %v1197_v16 }
  0x3f   : > { %1076 = vmatpush3.bf16.msra.mxu1 %v1196_v15 }
  0x40   : > { %1124 = vmatpush3.bf16.msra.mxu0 %v1197_v16  ;;  %1077 = vmatprep.subr.bf16.mxu1 %v1198_v18 }
  0x41   : > { %1125 = vmatprep.subr.bf16.mxu0 %v1199_v19 }
  0x43   : > { %1078 = vmatpush3.bf16.msra.mxu1 %v1198_v18 }
  0x44   : > { %1126 = vmatpush3.bf16.msra.mxu0 %v1199_v19 }
  0x46   : > { %1080 = vmatmul.mubr.bf16.vlgmr.msra.gmra.mrb[0].mxu1 %v191_v21 }
  0x47   : > { %1128 = vmatmul.mubr.bf16.vlgmr.msra.gmra.mrb[0].mxu0 %v655_v22  ;;  %1083 = vmatprep.mubr.bf16.mxu1 %v192_v23 }
  0x48   : > { %1131 = vmatprep.mubr.bf16.mxu0 %v656_v25 }
  0x4e   : > { %1084 = vmatmul.mubr.bf16.gmra.mrb[4].mxu1 %v193_v26 }
  0x4f   : > { %1132 = vmatmul.mubr.bf16.gmra.mrb[4].mxu0 %v657_v28 }
 0x119   : > { %v1081_v29 = vpop.f32.mrb[0].mxu1 }
 0x11a   : > { %v1129_v30 = vpop.f32.mrb[0].mxu0  ;;  %v475_v32 = vpop.f32.mrb[1].mxu1 }
 0x11b   : > { %v1135_v33 = vadd.f32 %v1129_v30, %v1081_v29  ;;  %v757_v34 = vpop.f32.mrb[1].mxu0  ;;  %v1082_v35 = vpop.f32.mrb[2].mxu1 }
 0x11c   : > { %v1136_v36 = vadd.f32 %v757_v34, %v475_v32  ;;  %v1130_v37 = vpop.f32.mrb[2].mxu0  ;;  %v478_v38 = vpop.f32.mrb[3].mxu1 }
 0x11d   : > { %v805_v39 = vadd.f32 %v1135_v33, %v987_v31  ;;  %v1137_v40 = vadd.f32 %v1130_v37, %v1082_v35  ;;  %v760_v41 = vpop.f32.mrb[3].mxu0 }
 0x11e   : > { %v803_v42 = vadd.f32 %v1136_v36, %v987_v31  ;;  %v1138_v43 = vadd.f32 %v760_v41, %v478_v38 }
 0x11f   : > { %vm813_vm1 = vcmp.gt.f32.partialorder %v805_v39, 0.0  ;;  %v821_v44 = vmul.f32 0.2, %v805_v39  ;;  %v806_v45 = vadd.f32 %v1137_v40, %v987_v31 }
 0x120   : > { %vm811_vm3 = vcmp.gt.f32.partialorder %v803_v42, 0.0  ;;  %v819_v46 = vmul.f32 0.2, %v803_v42  ;;  %v804_v47 = vadd.f32 %v1138_v43, %v987_v31 }
 0x121   : > { %v829_v48 = vsel %vm813_vm1, %v805_v39, %v821_v44  ;;  %vm814_vm4 = vcmp.gt.f32.partialorder %v806_v45, 0.0  ;;  %v822_v49 = vmul.f32 0.2, %v806_v45  ;;  %v1085_v50 = vpop.f32.mrb[4].mxu1 }
 0x122   : > { %838 = vst.msk [vmem:[%s1437_s11 + $0x10] sm:$0xff] %vm835_vm2, %v829_v48  ;;  %v827_v51 = vsel %vm811_vm3, %v803_v42, %v819_v46  ;;  %vm812_vm5 = vcmp.gt.f32.partialorder %v804_v47, 0.0  ;;  %v820_v52 = vmul.f32 0.2, %v804_v47  ;;  %v1133_v53 = vpop.f32.mrb[4].mxu0  ;;  %v491_v54 = vpop.f32.mrb[5].mxu1 }
 0x123   : > { %836 = vst.msk [vmem:[%s1437_s11] sm:$0xff] %vm835_vm2, %v827_v51  ;;  %v830_v55 = vsel %vm814_vm4, %v806_v45, %v822_v49  ;;  %v1139_v56 = vadd.f32 %v1133_v53, %v1085_v50  ;;  %v773_v57 = vpop.f32.mrb[5].mxu0  ;;  %v1086_v58 = vpop.f32.mrb[6].mxu1 }
 0x124   : > { %839 = vst.msk [vmem:[%s1437_s11 + $0x18] sm:$0xff] %vm835_vm2, %v830_v55  ;;  %v828_v59 = vsel %vm812_vm5, %v804_v47, %v820_v52  ;;  %v1140_v60 = vadd.f32 %v773_v57, %v491_v54  ;;  %v1134_v61 = vpop.f32.mrb[6].mxu0  ;;  %v494_v62 = vpop.f32.mrb[7].mxu1 }
 0x125   : > { %837 = vst.msk [vmem:[%s1437_s11 + $0x8] sm:$0xff] %vm835_vm2, %v828_v59  ;;  %v809_v63 = vadd.f32 %v1139_v56, %v987_v31  ;;  %v1141_v0 = vadd.f32 %v1134_v61, %v1086_v58  ;;  %v776_v1 = vpop.f32.mrb[7].mxu0 }
 0x126   : > { %v807_v2 = vadd.f32 %v1140_v60, %v987_v31  ;;  %v1142_v3 = vadd.f32 %v776_v1, %v494_v62 }
 0x127   : > { %vm817_vm6 = vcmp.gt.f32.partialorder %v809_v63, 0.0  ;;  %v825_v4 = vmul.f32 0.2, %v809_v63  ;;  %v810_v5 = vadd.f32 %v1141_v0, %v987_v31 }
 0x128   : > { %vm815_vm7 = vcmp.gt.f32.partialorder %v807_v2, 0.0  ;;  %v823_v6 = vmul.f32 0.2, %v807_v2  ;;  %v808_v7 = vadd.f32 %v1142_v3, %v987_v31 }
 0x129   : > { %v833_v8 = vsel %vm817_vm6, %v809_v63, %v825_v4  ;;  %vm818_vm8 = vcmp.gt.f32.partialorder %v810_v5, 0.0  ;;  %v826_v9 = vmul.f32 0.2, %v810_v5 }
 0x12a   : > { %842 = vst.msk [vmem:[%s1437_s11 + $0x30] sm:$0xff] %vm835_vm2, %v833_v8  ;;  %v831_v10 = vsel %vm815_vm7, %v807_v2, %v823_v6  ;;  %vm816_vm9 = vcmp.gt.f32.partialorder %v808_v7, 0.0  ;;  %v824_v12 = vmul.f32 0.2, %v808_v7 }
 0x12b   : > { %840 = vst.msk [vmem:[%s1437_s11 + $0x20] sm:$0xff] %vm835_vm2, %v831_v10  ;;  %v834_v14 = vsel %vm818_vm8, %v810_v5, %v826_v9 }
 0x12c   : > { %843 = vst.msk [vmem:[%s1437_s11 + $0x38] sm:$0xff] %vm835_vm2, %v834_v14  ;;  %v832_v11 = vsel %vm816_vm9, %v808_v7, %v824_v12 }
 0x12d   : > { %841 = vst.msk [vmem:[%s1437_s11 + $0x28] sm:$0xff] %vm835_vm2, %v832_v11 }
 0x12e PF: > { %s13_s12 = sadd.s32 1, %s1206_s12  }
 0x12f   : > { %p10_p4 = scmp.ge.s32.totalorder %s13_s12, 4  }
 0x131   :  { %12 = sbr.rel (!%p10_p4) target bundleno = 1 (0x1), region = 65 }

// kernel: discriminator_forward.10
= control target key start
LH: loop header
LB: loop body
LE: loop exit
PB: predicated region body
PF: predicated region fallthrough
CT: control target
= control target key end

     0   :  { %s3620_s12 = smov 0   ;;  %s4583_s0 = inlined_call_operand.vmem [shape: f32[2,18,18,8], index: 0, kind: input, shape index: {}]   ;;  %s4584_s1 = inlined_call_operand.vmem [shape: bf16[9,8,32], index: 1, kind: input, shape index: {}]   ;;  %s4585_s2 = inlined_call_operand.vmem [shape: f32[1,32], index: 2, kind: input, shape index: {}]   ;;  %s4586_s3 = inlined_call_operand.vmem [shape: f32[2,256,32], index: 3, kind: output, shape index: {}]  }
   0x1 LB: > { %s2692_s13 = sadd.s32 4294967295, %s3598_s12   ;;  %p2696_p0 = scmp.ge.s32.totalorder %s3598_s12, 1  ;;  %s3598_s12 = sphi %s3620_s12, %s13_s12  }
   0x2   : > { %p137_p1 = scmp.lt.s32.totalorder %s3598_s12, 3 }
   0x4   : > { %p138_p2 = pnand %p2696_p0, %p137_p1 }
   0x6   : > { %141 = sbr.rel (%p138_p2) target bundleno = 532 (0x214), region = 32 }
   0xd   : > { %v2700_v0 = vld [vmem:[%s4584_s1 + $0x4] sm:$0xf]  ;;  %vm471_vm0 = vcmask 1043456   ;;  %v3634_v1 = vld [vmem:[%s4584_s1 + $0x10] sm:$0xf]  ;;  %p161_p3 = scmp.lt.s32.totalorder %s2692_s13, 1 }
   0xe   : > { %4612 = vst [vmem:[#allocation2_spill] sm:$0xff] %v3634_v1  ;;  %3573 = vmatprep.subr.msk.bf16.mxu1 %vm471_vm0, %v2700_v0  ;;  %3577 = vmatprep.subr.msk.bf16.mxu0 %vm471_vm0, %v3634_v1  ;;  %v473_v2 = vsel %vm471_vm0, %v2700_v0, 0  ;;  %v3642_v3 = vsel %vm471_vm0, %v3634_v1, 0  ;;  %v242_v4 = vld [vmem:[%s4584_s1] sm:$0xf]  ;;  %vm291_vm1 = vcmask 1046528  }
   0xf   : > { %4613 = vst [vmem:[#allocation3_spill] sm:$0xff] %v3642_v3  ;;  %3010 = vmatpush3.bf16.msra.mxu1 %v473_v2  ;;  %3146 = vmatpush3.bf16.msra.mxu0 %v3642_v3  ;;  %s4647_s13 = smov (!%p161_p3, %s2692_s13), 1  ;;  %v2784_v5 = vld [vmem:[%s4584_s1 + $0x14] sm:$0xf]  ;;  %vm422_vm2 = vcmask 64512   ;;  %v685_v25 = vsel %vm471_vm0, %v242_v4, 0 }
  0x10   : > { %3574 = vmatprep.subr.msk.bf16.mxu1 %vm471_vm0, %v242_v4  ;;  %3579 = vmatprep.subr.msk.bf16.mxu0 %vm471_vm0, %v2784_v5  ;;  %s3583_s22 = smul.u32 432, %s4647_s13  ;;  %v3731_v39 = vld [vmem:[%s4584_s1 + $0x8] sm:$0xf]  ;;  %v1651_v41 = vsel %vm471_vm0, %v2784_v5, 0  ;;  %v3760_v57 = vld [vmem:[%s4584_s1 + $0x18] sm:$0xf] }
  0x11   : > { %vm848_vm3 = vcmask 1045504   ;;  %s2855_s11 = sshll.u32 %s4647_s13, 8  ;;  %vm2604_vm5 = vcmask 261120  }
  0x12   : > { %s3659_s25 = scalar_lea.vmem %s4583_s0, %s3583_s22  ;;  %s4476_s16 = scalar_lea.vmem %s4586_s3, %s2855_s11 }
  0x13   : > { %v3662_v6 = vld [vmem:[%s3659_s25] sm:$0xff]  ;;  %v3665_v7 = vld [vmem:[%s3659_s25 + $0x8] sm:$0xff]  ;;  %v3668_v8 = vld [vmem:[%s3659_s25 + $0x10] sm:$0x3] }
  0x14   : > { %v292_v9 = vrot.slane %v3662_v6, 1  ;;  %v293_v10 = vrot.slane %v3665_v7, 1  ;;  %v295_v11 = vrot.slane %v3668_v8, 1  ;;  %v3674_v12 = vld [vmem:[%s3659_s25 + $0x18] sm:$0xff]  ;;  %v3677_v13 = vld [vmem:[%s3659_s25 + $0x20] sm:$0xff]  ;;  %v3688_v17 = vld [vmem:[%s3659_s25 + $0x30] sm:$0xff] }
  0x15   : > { %v3680_v14 = vld [vmem:[%s3659_s25 + $0x28] sm:$0x3]  ;;  %v3684_v15 = vpack.c.bf16 %v3677_v13, %v3674_v12  ;;  %v297_v16 = vrot.slane %v3674_v12, 1  ;;  %v298_v20 = vrot.slane %v3677_v13, 1  ;;  %v3695_v22 = vld [vmem:[%s3659_s25 + $0x38] sm:$0xff]  ;;  %v3705_v27 = vld [vmem:[%s3659_s25 + $0x50] sm:$0xff] }
  0x16   : > { %v294_v18 = vsel %vm291_vm1, %v292_v9, %v293_v10  ;;  %v296_v19 = vsel %vm291_vm1, %v293_v10, %v295_v11  ;;  %v300_v21 = vrot.slane %v3680_v14, 1  ;;  %v3698_v23 = vld [vmem:[%s3659_s25 + $0x40] sm:$0x3]  ;;  %v3702_v26 = vld [vmem:[%s3659_s25 + $0x48] sm:$0xff]  ;;  %v302_v30 = vrot.slane %v3688_v17, 1  ;;  %v3726_v38 = vld [vmem:[%s3659_s25 + $0x78] sm:$0xff] }
  0x17   : > { %v404_v24 = vpack.c.bf16 %v296_v19, %v294_v18  ;;  %v299_v28 = vsel %vm291_vm1, %v297_v16, %v298_v20  ;;  %v303_v31 = vrot.slane %v3695_v22, 1  ;;  %v3712_v32 = vld [vmem:[%s3659_s25 + $0x58] sm:$0x3]  ;;  %v3715_v33 = vld [vmem:[%s3659_s25 + $0x60] sm:$0xff]  ;;  %v3718_v34 = vld [vmem:[%s3659_s25 + $0x68] sm:$0xff]  ;;  %v305_v36 = vrot.slane %v3698_v23, 1 }
  0x18   : > { %v301_v29 = vsel %vm291_vm1, %v298_v20, %v300_v21  ;;  %v3723_v37 = vld [vmem:[%s3659_s25 + $0x70] sm:$0x3]  ;;  %v307_v42 = vrot.slane %v3702_v26, 1  ;;  %v308_v43 = vrot.slane %v3705_v27, 1  ;;  %v3738_v44 = vld [vmem:[%s3659_s25 + $0x80] sm:$0xff]  ;;  %v310_v47 = vrot.slane %v3712_v32, 1 }
  0x19   : > { %3011 = vmatprep.mubr.msk.bf16.mxu1 %vm422_vm2, %v404_v24  ;;  %v405_v35 = vpack.c.bf16 %v301_v29, %v299_v28  ;;  %v304_v40 = vsel %vm291_vm1, %v302_v30, %v303_v31  ;;  %v3741_v45 = vld [vmem:[%s3659_s25 + $0x88] sm:$0x3]  ;;  %v306_v46 = vsel %vm291_vm1, %v303_v31, %v305_v36  ;;  %v312_v48 = vrot.slane %v3715_v33, 1  ;;  %v3777_v63 = vld [vmem:[%s3659_s25 + $0x90] sm:$0xff]  ;;  %v3780_v0 = vld [vmem:[%s3659_s25 + $0x98] sm:$0xff] }
  0x1a   : > { %v313_v49 = vrot.slane %v3718_v34, 1  ;;  %v3749_v50 = vpack.c.bf16 %v306_v46, %v304_v40  ;;  %v309_v51 = vsel %vm291_vm1, %v307_v42, %v308_v43  ;;  %v315_v52 = vrot.slane %v3723_v37, 1  ;;  %v3783_v2 = vld [vmem:[%s3659_s25 + $0xa0] sm:$0x3]  ;;  %v3788_v4 = vld [vmem:[%s3659_s25 + $0xa8] sm:$0xff]  ;;  %v3791_v5 = vld [vmem:[%s3659_s25 + $0xb0] sm:$0xff] }
  0x1b   : > { %3147 = vmatprep.mubr.msk.bf16.mxu0 %vm422_vm2, %v405_v35  ;;  %3012 = vmatmul.mubr.msk.bf16.vlgmr.msra.gmra.mrb[0].mxu1 %vm422_vm2, %v405_v35  ;;  %v317_v53 = vrot.slane %v3726_v38, 1  ;;  %v311_v54 = vsel %vm291_vm1, %v308_v43, %v310_v47  ;;  %v318_v55 = vrot.slane %v3738_v44, 1  ;;  %v320_v56 = vrot.slane %v3741_v45, 1  ;;  %v3794_v9 = vld [vmem:[%s3659_s25 + $0xb8] sm:$0x3]  ;;  %v3817_v29 = vld [vmem:[%s3659_s25 + $0xc0] sm:$0xff] }
  0x1c   : > { %3044 = vmatpush3.bf16.msra.mxu1 %v685_v25  ;;  %4614 = vst [vmem:[#allocation4_spill] sm:$0xff] %v3749_v50  ;;  %3148 = vmatmul.mubr.msk.bf16.vlgmr.msra.gmra.mrb[0].mxu0 %vm422_vm2, %v3749_v50  ;;  %v3768_v58 = vpack.c.bf16 %v311_v54, %v309_v51  ;;  %v314_v59 = vsel %vm291_vm1, %v312_v48, %v313_v49  ;;  %v322_v16 = vrot.slane %v3777_v63, 1  ;;  %v323_v18 = vrot.slane %v3780_v0, 1  ;;  %v3820_v30 = vld [vmem:[%s3659_s25 + $0xc8] sm:$0xff]  ;;  %v3825_v36 = vld [vmem:[%s3659_s25 + $0xd0] sm:$0x3] }
  0x1d   : > { %3575 = vmatprep.subr.msk.bf16.mxu1 %vm471_vm0, %v3731_v39  ;;  %3015 = vmatprep.mubr.msk.bf16.mxu1 %vm422_vm2, %v3749_v50  ;;  %v316_v60 = vsel %vm291_vm1, %v313_v49, %v315_v52  ;;  %v319_v61 = vsel %vm291_vm1, %v317_v53, %v318_v55  ;;  %v321_v62 = vsel %vm291_vm1, %v318_v55, %v320_v56  ;;  %v325_v19 = vrot.slane %v3783_v2, 1  ;;  %v3848_v49 = vld [vmem:[%s3659_s25 + $0xe8] sm:$0x3]  ;;  %v3853_v53 = vld [vmem:[%s3659_s25 + $0xf0] sm:$0xff]  ;;  %v3856_v54 = vld [vmem:[%s3659_s25 + $0xf8] sm:$0xff] }
  0x1e   : > { %4615 = vst [vmem:[#allocation5_spill] sm:$0xff] %v3768_v58  ;;  %3180 = vmatpush3.bf16.msra.mxu0 %v1651_v41  ;;  %3151 = vmatprep.mubr.msk.bf16.mxu0 %vm422_vm2, %v3768_v58  ;;  %v3796_v10 = vpack.c.bf16 %v316_v60, %v314_v59  ;;  %v3800_v11 = vpack.c.bf16 %v321_v62, %v319_v61  ;;  %v327_v20 = vrot.slane %v3788_v4, 1  ;;  %v328_v21 = vrot.slane %v3791_v5, 1  ;;  %v3865_v61 = vld [vmem:[%s3659_s25 + $0x100] sm:$0x3] }
  0x1f   : > { %3580 = vmatprep.subr.msk.bf16.mxu0 %vm471_vm0, %v3760_v57  ;;  %v330_v24 = vrot.slane %v3794_v9, 1  ;;  %v324_v25 = vsel %vm291_vm1, %v322_v16, %v323_v18  ;;  %v326_v28 = vsel %vm291_vm1, %v323_v18, %v325_v19  ;;  %v854_v40 = vrot.slane %v3674_v12, 2 }
  0x20   : > { %4616 = vst [vmem:[#allocation6_spill] sm:$0xff] %v3796_v10  ;;  %4617 = vst [vmem:[#allocation7_spill] sm:$0xff] %v3800_v11  ;;  %v329_v31 = vsel %vm291_vm1, %v327_v20, %v328_v21  ;;  %v855_v41 = vrot.slane %v3677_v13, 2  ;;  %v857_v42 = vrot.slane %v3680_v14, 2  ;;  %v3830_v43 = vpack.c.bf16 %v326_v28, %v324_v25  ;;  %v3842_v13 = vld [vmem:[%s3659_s25 + $0xd8] sm:$0xff]  ;;  %v3845_v14 = vld [vmem:[%s3659_s25 + $0xe0] sm:$0xff] }
  0x21   : > { %v331_v35 = vsel %vm291_vm1, %v328_v21, %v330_v24  ;;  %v332_v46 = vrot.slane %v3817_v29, 1  ;;  %v333_v47 = vrot.slane %v3820_v30, 1  ;;  %v335_v12 = vrot.slane %v3825_v36, 1  ;;  %v3881_v28 = vld [vmem:[%s3659_s25 + $0x108] sm:$0xff] }
  0x22   : > { %4618 = vst [vmem:[#allocation8_spill] sm:$0xff] %v3830_v43  ;;  %v3836_v48 = vpack.c.bf16 %v331_v35, %v329_v31  ;;  %v859_v51 = vrot.slane %v3688_v17, 2  ;;  %v860_v52 = vrot.slane %v3695_v22, 2  ;;  %v862_v55 = vrot.slane %v3698_v23, 2  ;;  %v3884_v31 = vld [vmem:[%s3659_s25 + $0x110] sm:$0xff] }
  0x23   : > { %3016 = vmatmul.mubr.msk.bf16.gmra.mrb[4].mxu1 %vm422_vm2, %v3768_v58  ;;  %v334_v56 = vsel %vm291_vm1, %v332_v46, %v333_v47  ;;  %v856_v59 = vsel %vm848_vm3, %v854_v40, %v855_v41  ;;  %v858_v60 = vsel %vm848_vm3, %v855_v41, %v857_v42  ;;  %v336_v62 = vsel %vm291_vm1, %v333_v47, %v335_v12  ;;  %v3887_v35 = vld [vmem:[%s3659_s25 + $0x118] sm:$0x3]  ;;  %v3896_v47 = vld [vmem:[%s3659_s25 + $0x120] sm:$0xff] }
  0x24   : > { %3019 = vmatprep.mubr.msk.bf16.mxu1 %vm422_vm2, %v3796_v10  ;;  %3152 = vmatmul.mubr.msk.bf16.gmra.mrb[4].mxu0 %vm422_vm2, %v3796_v10  ;;  %4619 = vst [vmem:[#allocation9_spill] sm:$0xff] %v3836_v48  ;;  %v337_v23 = vrot.slane %v3842_v13, 1  ;;  %v338_v16 = vrot.slane %v3845_v14, 1  ;;  %v340_v18 = vrot.slane %v3848_v49, 1  ;;  %v342_v19 = vrot.slane %v3853_v53, 1  ;;  %v3936_v10 = vld [vmem:[%s3659_s25 + $0x138] sm:$0xff] }
  0x25   : > { %3155 = vmatprep.mubr.msk.bf16.mxu0 %vm422_vm2, %v3800_v11  ;;  %v343_v20 = vrot.slane %v3856_v54, 1  ;;  %v345_v21 = vrot.slane %v3865_v61, 1  ;;  %v3876_v24 = vpack.c.bf16 %v336_v62, %v334_v56  ;;  %v3878_v25 = vpack.c.bf16 %v858_v60, %v856_v59  ;;  %v3905_v62 = vld [vmem:[%s3659_s25 + $0x128] sm:$0xff] }
  0x26   : > { %v339_v40 = vsel %vm291_vm1, %v337_v23, %v338_v16  ;;  %v341_v41 = vsel %vm291_vm1, %v338_v16, %v340_v18  ;;  %v861_v42 = vsel %vm848_vm3, %v859_v51, %v860_v52  ;;  %v863_v46 = vsel %vm848_vm3, %v860_v52, %v862_v55  ;;  %v3908_v23 = vld [vmem:[%s3659_s25 + $0x130] sm:$0x3] }
  0x27   : > { %4620 = vst [vmem:[#allocation10_spill] sm:$0xff] %v3876_v24  ;;  %v344_v12 = vsel %vm291_vm1, %v342_v19, %v343_v20  ;;  %v864_v56 = vrot.slane %v3702_v26, 2  ;;  %v865_v59 = vrot.slane %v3705_v27, 2  ;;  %v867_v60 = vrot.slane %v3712_v32, 2 }
  0x28   : > { %v346_v51 = vsel %vm291_vm1, %v343_v20, %v345_v21  ;;  %v347_v52 = vrot.slane %v3881_v28, 1  ;;  %v348_v55 = vrot.slane %v3884_v31, 1  ;;  %v350_v16 = vrot.slane %v3887_v35, 1 }
  0x29   : > { %v1853_v32 = vsel %vm471_vm0, %v3760_v57, 0  ;;  %v3920_v18 = vpack.c.bf16 %v341_v41, %v339_v40  ;;  %v352_v19 = vrot.slane %v3896_v47, 1  ;;  %v353_v20 = vrot.slane %v3905_v62, 1 }
  0x2a   : > { %v355_v21 = vrot.slane %v3908_v23, 1  ;;  %v3925_v3 = vpack.c.bf16 %v863_v46, %v861_v42  ;;  %v868_v57 = vsel %vm848_vm3, %v865_v59, %v867_v60  ;;  %v351_v40 = vsel %vm291_vm1, %v348_v55, %v350_v16  ;;  %v3939_v42 = vld [vmem:[%s3659_s25 + $0x140] sm:$0xff] }
  0x2b   : > { %3020 = vmatmul.mubr.msk.bf16.gmra.mrb[8].mxu1 %vm422_vm2, %v3800_v11  ;;  %4621 = vst [vmem:[#allocation11_spill] sm:$0xff] %v3920_v18  ;;  %v869_v41 = vrot.slane %v3715_v33, 2  ;;  %v870_v11 = vrot.slane %v3718_v34, 2  ;;  %v872_v46 = vrot.slane %v3723_v37, 2  ;;  %v3949_v60 = vpack.c.bf16 %v3695_v22, %v3688_v17  ;;  %v3963_v17 = vld [vmem:[%s3659_s25 + $0x150] sm:$0xff]  ;;  %v3966_v22 = vld [vmem:[%s3659_s25 + $0x158] sm:$0xff] }
  0x2c   : > { %3023 = vmatprep.mubr.msk.bf16.mxu1 %vm422_vm2, %v3830_v43  ;;  %3156 = vmatmul.mubr.msk.bf16.gmra.mrb[8].mxu0 %vm422_vm2, %v3830_v43  ;;  %4622 = vst [vmem:[#allocation12_spill] sm:$0xff] %v3925_v3  ;;  %v349_v43 = vsel %vm291_vm1, %v347_v52, %v348_v55  ;;  %v354_v52 = vsel %vm291_vm1, %v352_v19, %v353_v20  ;;  %v877_v37 = vrot.slane %v3741_v45, 2  ;;  %v357_v16 = vrot.slane %v3936_v10, 1 }
  0x2d   : > { %3159 = vmatprep.mubr.msk.bf16.mxu0 %vm422_vm2, %v3836_v48  ;;  %v356_v55 = vsel %vm291_vm1, %v353_v20, %v355_v21  ;;  %v358_v58 = vrot.slane %v3939_v42, 1  ;;  %v871_v19 = vsel %vm848_vm3, %v869_v41, %v870_v11  ;;  %v3977_v45 = vpack.c.bf16 %v3705_v27, %v3702_v26  ;;  %v3982_v21 = vld [vmem:[%s4584_s1 + $0x1c] sm:$0xf] }
  0x2e   : > { %v3992_v41 = vpack.c.bf16 %v3718_v34, %v3715_v33  ;;  %v362_v27 = vrot.slane %v3963_v17, 1  ;;  %v880_v33 = vrot.slane %v3780_v0, 2  ;;  %v4005_v34 = vpack.c.bf16 %v3738_v44, %v3726_v38 }
  0x33   : > { %3024 = vmatmul.mubr.msk.bf16.gmra.mrb[12].mxu1 %vm422_vm2, %v3836_v48  ;;  %v3927_v48 = vpack.c.bf16 %v346_v51, %v344_v12  ;;  %v874_v12 = vrot.slane %v3726_v38, 2  ;;  %v4019_v38 = vld [vmem:[%s3659_s25 + $0x168] sm:$0xff] }
  0x34   : > { %3027 = vmatprep.mubr.msk.bf16.mxu1 %vm422_vm2, %v3876_v24  ;;  %3160 = vmatmul.mubr.msk.bf16.gmra.mrb[12].mxu0 %vm422_vm2, %v3876_v24  ;;  %v866_v24 = vsel %vm848_vm3, %v864_v56, %v865_v59  ;;  %v875_v56 = vrot.slane %v3738_v44, 2  ;;  %v3945_v59 = vld [vmem:[%s3659_s25 + $0x148] sm:$0x3]  ;;  %v4023_v44 = vpack.c.bf16 %v3780_v0, %v3777_v63  ;;  %v852_v0 = vrot.slane %v3668_v8, 2 }
  0x35   : > { %3181 = vmatprep.mubr.msk.bf16.mxu0 %vm422_vm2, %v3878_v25  ;;  %4623 = vst [vmem:[#allocation13_spill] sm:$0xff] %v3927_v48  ;;  %v3953_v51 = vpack.c.bf16 %v868_v57, %v866_v24  ;;  %v3971_v24 = vpack.c.bf16 %v351_v40, %v349_v43  ;;  %v360_v20 = vrot.slane %v3945_v59, 1  ;;  %v873_v57 = vsel %vm848_vm3, %v870_v11, %v872_v46 }
  0x36   : > { %v3987_v43 = vpack.c.bf16 %v356_v55, %v354_v52  ;;  %v876_v40 = vsel %vm848_vm3, %v874_v12, %v875_v56  ;;  %v878_v26 = vsel %vm848_vm3, %v875_v56, %v877_v37  ;;  %v359_v46 = vsel %vm291_vm1, %v357_v16, %v358_v58 }
  0x37   : > { %4624 = vst [vmem:[#allocation14_spill] sm:$0xff] %v3953_v51  ;;  %4625 = vst [vmem:[#allocation15_spill] sm:$0xff] %v3971_v24  ;;  %v879_v12 = vrot.slane %v3777_v63, 2  ;;  %v882_v56 = vrot.slane %v3783_v2, 2  ;;  %v884_v52 = vrot.slane %v3788_v4, 2  ;;  %v885_v55 = vrot.slane %v3791_v5, 2 }
  0x38   : > { %4626 = vst [vmem:[#allocation16_spill] sm:$0xff] %v3987_v43  ;;  %v849_v37 = vrot.slane %v3662_v6, 2  ;;  %v4014_v16 = vpack.c.bf16 %v873_v57, %v871_v19  ;;  %v4016_v50 = vpack.c.bf16 %v878_v26, %v876_v40  ;;  %v4034_v19 = vld [vmem:[%s3659_s25 + $0x178] sm:$0x3]  ;;  %v4038_v57 = vpack.c.bf16 %v3791_v5, %v3788_v4 }
  0x39   : > { %v850_v63 = vrot.slane %v3665_v7, 2  ;;  %v886_v26 = vsel %vm848_vm3, %v884_v52, %v885_v55  ;;  %v4052_v4 = vpack.c.bf16 %v3820_v30, %v3817_v29  ;;  %v4081_v52 = vpack.c.bf16 %v3939_v42, %v3936_v10 }
  0x3a   : > { %4627 = vst [vmem:[#allocation17_spill] sm:$0xff] %v4014_v16  ;;  %4628 = vst [vmem:[#allocation18_spill] sm:$0xff] %v4016_v50 }
  0x3b   : > { %3028 = vmatmul.mubr.msk.bf16.gmra.mrb[16].mxu1 %vm422_vm2, %v3920_v18  ;;  %v3969_v18 = vld [vmem:[%s3659_s25 + $0x160] sm:$0x3] }
  0x3c   : > { %3031 = vmatprep.mubr.msk.bf16.mxu1 %vm422_vm2, %v3927_v48  ;;  %3182 = vmatmul.mubr.msk.bf16.vlgmr.msra.gmra.mrb[0].mxu0 %vm422_vm2, %v3925_v3  ;;  %v363_v48 = vrot.slane %v3966_v22, 1  ;;  %v365_v11 = vrot.slane %v3969_v18, 1  ;;  %v892_v3 = vrot.slane %v3825_v36, 2 }
  0x3d   : > { %3214 = vmatpush3.bf16.msra.mxu0 %v1853_v32  ;;  %3185 = vmatprep.mubr.msk.bf16.mxu0 %vm422_vm2, %v3953_v51  ;;  %v361_v32 = vsel %vm291_vm1, %v358_v58, %v360_v20  ;;  %v887_v20 = vrot.slane %v3794_v9, 2  ;;  %v4031_v51 = vld [vmem:[%s3659_s25 + $0x170] sm:$0xff]  ;;  %v883_v9 = vsel %vm848_vm3, %v880_v33, %v882_v56  ;;  %v4077_v56 = vpack.c.bf16 %v3905_v62, %v3896_v47 }
  0x3e   : > { %3581 = vmatprep.subr.msk.bf16.mxu0 %vm471_vm0, %v3982_v21  ;;  %v364_v58 = vsel %vm291_vm1, %v362_v27, %v363_v48  ;;  %v366_v2 = vsel %vm291_vm1, %v363_v48, %v365_v11  ;;  %v4044_v40 = vpack.c.bf16 %v361_v32, %v359_v46  ;;  %v881_v48 = vsel %vm848_vm3, %v879_v12, %v880_v33 }
  0x3f   : > { %v367_v27 = vrot.slane %v4019_v38, 1  ;;  %v4056_v8 = vpack.c.bf16 %v366_v2, %v364_v58  ;;  %v368_v5 = vrot.slane %v4031_v51, 1  ;;  %v370_v11 = vrot.slane %v4034_v19, 1 }
  0x40   : > { %v4062_v46 = vpack.c.bf16 %v3845_v14, %v3842_v13  ;;  %v888_v12 = vsel %vm848_vm3, %v885_v55, %v887_v20  ;;  %v4069_v33 = vpack.c.bf16 %v3856_v54, %v3853_v53  ;;  %v4073_v32 = vpack.c.bf16 %v3884_v31, %v3881_v28 }
  0x41   : > { %v4085_v58 = vpack.c.bf16 %v3966_v22, %v3963_v17  ;;  %v4089_v55 = vpack.c.bf16 %v4031_v51, %v4019_v38  ;;  %v4092_v2 = vsel %vm848_vm3, %v849_v37, %v850_v63  ;;  %v4095_v20 = vsel %vm848_vm3, %v850_v63, %v852_v0 }
  0x42   : > { %v369_v1 = vsel %vm291_vm1, %v367_v27, %v368_v5  ;;  %v890_v37 = vrot.slane %v3820_v30, 2  ;;  %v371_v63 = vsel %vm291_vm1, %v368_v5, %v370_v11  ;;  %v895_v0 = vrot.slane %v3845_v14, 2 }
  0x43   : > { %3032 = vmatmul.mubr.msk.bf16.gmra.mrb[20].mxu1 %vm422_vm2, %v3971_v24  ;;  %v889_v24 = vrot.slane %v3817_v29, 2  ;;  %v894_v29 = vrot.slane %v3842_v13, 2  ;;  %v4119_v30 = vpack.c.bf16 %v371_v63, %v369_v1  ;;  %v899_v1 = vrot.slane %v3853_v53, 2 }
  0x44   : > { %3035 = vmatprep.mubr.msk.bf16.mxu1 %vm422_vm2, %v3987_v43  ;;  %3186 = vmatmul.mubr.msk.bf16.gmra.mrb[4].mxu0 %vm422_vm2, %v4014_v16  ;;  %v4097_v43 = vpack.c.bf16 %v883_v9, %v881_v48  ;;  %v4104_v16 = vpack.c.bf16 %v888_v12, %v886_v26  ;;  %v897_v48 = vrot.slane %v3848_v49, 2  ;;  %v893_v9 = vsel %vm848_vm3, %v890_v37, %v892_v3 }
  0x45   : > { %3189 = vmatprep.mubr.msk.bf16.mxu0 %vm422_vm2, %v4016_v50  ;;  %v961_v50 = vpack.c.bf16 %v4095_v20, %v4092_v2  ;;  %v891_v36 = vsel %vm848_vm3, %v889_v24, %v890_v37  ;;  %v226_v26 = vpack.c.bf16 %v3665_v7, %v3662_v6  ;;  %v896_v13 = vsel %vm848_vm3, %v894_v29, %v895_v0  ;;  %v4630_v2 = vld [vmem:[#allocation2_spill] sm:$0xff]  ;;  %v4632_v20 = vld [vmem:[#allocation17_spill] sm:$0xff] }
  0x46   : > { %v898_v14 = vsel %vm848_vm3, %v895_v0, %v897_v48  ;;  %v4127_v49 = vpack.c.bf16 %v893_v9, %v891_v36  ;;  %v900_v24 = vrot.slane %v3856_v54, 2  ;;  %v902_v3 = vrot.slane %v3865_v61, 2 }
  0x47   : > { %v4131_v27 = vpack.c.bf16 %v898_v14, %v896_v13  ;;  %v904_v6 = vrot.slane %v3881_v28, 2  ;;  %v905_v7 = vrot.slane %v3884_v31, 2  ;;  %v907_v5 = vrot.slane %v3887_v35, 2  ;;  %v4155_v35 = vld [vmem:[%s4584_s1 + $0xc] sm:$0xf] }
  0x48   : > { %v901_v53 = vsel %vm848_vm3, %v899_v1, %v900_v24  ;;  %v903_v54 = vsel %vm848_vm3, %v900_v24, %v902_v3  ;;  %v1028_v28 = vsel %vm471_vm0, %v3731_v39, 0  ;;  %v909_v37 = vrot.slane %v3896_v47, 2  ;;  %v220_v3 = vld [vmem:[%s3659_s25 + $0x180] sm:$0xff] }
  0x49   : > { %v906_v61 = vsel %vm848_vm3, %v904_v6, %v905_v7  ;;  %v908_v11 = vsel %vm848_vm3, %v905_v7, %v907_v5  ;;  %v4150_v31 = vpack.c.bf16 %v903_v54, %v901_v53  ;;  %v910_v63 = vrot.slane %v3905_v62, 2  ;;  %v222_v6 = vld [vmem:[%s3659_s25 + $0x190] sm:$0x3] }
  0x4a   : > { %v4159_v12 = vpack.c.bf16 %v908_v11, %v906_v61  ;;  %v912_v29 = vrot.slane %v3908_v23, 2  ;;  %v914_v39 = vrot.slane %v3936_v10, 2  ;;  %v915_v0 = vrot.slane %v3939_v42, 2 }
  0x4b   : > { %3036 = vmatmul.mubr.msk.bf16.gmra.mrb[24].mxu1 %vm422_vm2, %v4044_v40  ;;  %v917_v48 = vrot.slane %v3945_v59, 2  ;;  %v911_v47 = vsel %vm848_vm3, %v909_v37, %v910_v63  ;;  %v919_v36 = vrot.slane %v3963_v17, 2  ;;  %v920_v9 = vrot.slane %v3966_v22, 2 }
  0x4c   : > { %3039 = vmatprep.mubr.msk.bf16.mxu1 %vm422_vm2, %v4056_v8  ;;  %3190 = vmatmul.mubr.msk.bf16.gmra.mrb[8].mxu0 %vm422_vm2, %v4097_v43  ;;  %v913_v62 = vsel %vm848_vm3, %v910_v63, %v912_v29  ;;  %v916_v23 = vsel %vm848_vm3, %v914_v39, %v915_v0  ;;  %v924_v13 = vrot.slane %v4019_v38, 2  ;;  %v925_v14 = vrot.slane %v4031_v51, 2  ;;  %v221_v38 = vld [vmem:[%s3659_s25 + $0x188] sm:$0xff] }
  0x4d   : > { %3193 = vmatprep.mubr.msk.bf16.mxu0 %vm422_vm2, %v4104_v16  ;;  %v918_v10 = vsel %vm848_vm3, %v915_v0, %v917_v48  ;;  %v4179_v42 = vpack.c.bf16 %v913_v62, %v911_v47  ;;  %v927_v1 = vrot.slane %v4034_v19, 2  ;;  %v921_v17 = vsel %vm848_vm3, %v919_v36, %v920_v9  ;;  %v2835_v47 = vld [vmem:[%s4584_s1 + $0x20] sm:$0xf]  ;;  %v4629_v62 = vld [vmem:[#allocation12_spill] sm:$0xff] }
  0x4e   : > { %v4183_v59 = vpack.c.bf16 %v918_v10, %v916_v23  ;;  %v1637_v7 = vrot.slane %v220_v3, 2  ;;  %v1638_v5 = vrot.slane %v221_v38, 2  ;;  %v1640_v53 = vrot.slane %v222_v6, 2  ;;  %v223_v23 = vld [vmem:[%s3659_s25 + $0x198] sm:$0xff]  ;;  %v224_v10 = vld [vmem:[%s3659_s25 + $0x1a0] sm:$0xff] }
  0x4f   : > { %v928_v24 = vsel %vm848_vm3, %v925_v14, %v927_v1  ;;  %v1428_v54 = vrot.slane %v220_v3, 1  ;;  %v1429_v61 = vrot.slane %v221_v38, 1  ;;  %v1431_v11 = vrot.slane %v222_v6, 1  ;;  %v4637_v6 = vld [vmem:[#allocation7_spill] sm:$0xff] }
  0x50   : > { %v1641_v37 = vsel %vm848_vm3, %v1638_v5, %v1640_v53  ;;  %v2065_v48 = vsel %vm471_vm0, %v3982_v21, 0  ;;  %v1230_v21 = vsel %vm471_vm0, %v4155_v35, 0  ;;  %v2260_v36 = vrot.slane %v223_v23, 2  ;;  %v4640_v53 = vld [vmem:[#allocation10_spill] sm:$0xff] }
  0x51   : > { %v1430_v63 = vsel %vm291_vm1, %v1428_v54, %v1429_v61  ;;  %v1432_v29 = vsel %vm291_vm1, %v1429_v61, %v1431_v11  ;;  %v4641_v54 = vld [vmem:[#allocation11_spill] sm:$0xff]  ;;  %v4642_v61 = vld [vmem:[#allocation13_spill] sm:$0xff] }
  0x52   : > { %v4220_v39 = vpack.c.bf16 %v1432_v29, %v1430_v63  ;;  %v4643_v11 = vld [vmem:[#allocation3_spill] sm:$0xff] }
  0x53   : > { %3040 = vmatmul.mubr.msk.bf16.gmra.mrb[28].mxu1 %vm422_vm2, %v4119_v30 }
  0x54   : > { %3045 = vmatprep.mubr.msk.bf16.mxu1 %vm422_vm2, %v226_v26  ;;  %3194 = vmatmul.mubr.msk.bf16.gmra.mrb[12].mxu0 %vm422_vm2, %v4127_v49  ;;  %v922_v26 = vrot.slane %v3969_v18, 2  ;;  %v926_v18 = vsel %vm848_vm3, %v924_v13, %v925_v14  ;;  %v1846_v14 = vpack.c.bf16 %v224_v10, %v223_v23 }
  0x55   : > { %3197 = vmatprep.mubr.msk.bf16.mxu0 %vm422_vm2, %v4131_v27  ;;  %v4208_v19 = vpack.c.bf16 %v928_v24, %v926_v18  ;;  %v4634_v18 = vld [vmem:[#allocation4_spill] sm:$0xff]  ;;  %v2274_v24 = vsel %vm471_vm0, %v2835_v47, 0 }
  0x56   : > { %v923_v22 = vsel %vm848_vm3, %v920_v9, %v922_v26  ;;  %v2261_v9 = vrot.slane %v224_v10, 2  ;;  %v225_v26 = vld [vmem:[%s3659_s25 + $0x1a8] sm:$0x3] }
  0x57   : > { %v4204_v51 = vpack.c.bf16 %v923_v22, %v921_v17  ;;  %v2263_v13 = vrot.slane %v225_v26, 2 }
  0x58   : > { %v4308_v1 = vsel %vm848_vm3, %v2260_v36, %v2261_v9 }
  0x59   : > { %v4311_v17 = vsel %vm848_vm3, %v2261_v9, %v2263_v13 }
  0x5a   : > { %v2267_v22 = vpack.c.bf16 %v4311_v17, %v4308_v1 }
  0x5b   : > { %3046 = vmatmul.mubr.msk.bf16.vlgmr.msra.gmra.mrb[0].mxu1 %vm422_vm2, %v3684_v15 }
  0x5c   : > { %3078 = vmatpush3.bf16.msra.mxu1 %v1028_v28  ;;  %3049 = vmatprep.mubr.msk.bf16.mxu1 %vm422_vm2, %v3949_v60  ;;  %v1639_v28 = vsel %vm848_vm3, %v1637_v7, %v1638_v5  ;;  %v4638_v7 = vld [vmem:[#allocation8_spill] sm:$0xff]  ;;  %v4639_v5 = vld [vmem:[#allocation9_spill] sm:$0xff] }
  0x5d   : > { %3576 = vmatprep.subr.msk.bf16.mxu1 %vm471_vm0, %v4155_v35  ;;  %3198 = vmatmul.mubr.msk.bf16.gmra.mrb[16].mxu0 %vm422_vm2, %v4150_v31  ;;  %v4222_v0 = vpack.c.bf16 %v1641_v37, %v1639_v28  ;;  %v4294_v35 = vpack.c.bf16 %v221_v38, %v220_v3  ;;  %v4635_v3 = vld [vmem:[#allocation5_spill] sm:$0xff]  ;;  %v4636_v38 = vld [vmem:[#allocation6_spill] sm:$0xff]  ;;  %v4644_v28 = vld [vmem:[#allocation15_spill] sm:$0xff] }
  0x5e   : > { %3201 = vmatprep.mubr.msk.bf16.mxu0 %vm422_vm2, %v4159_v12  ;;  %v4645_v37 = vld [vmem:[#allocation16_spill] sm:$0xff] }
  0x63   : > { %3050 = vmatmul.mubr.msk.bf16.gmra.mrb[4].mxu1 %vm422_vm2, %v3977_v45 }
  0x64   : > { %3053 = vmatprep.mubr.msk.bf16.mxu1 %vm422_vm2, %v3992_v41 }
  0x65   : > { %3202 = vmatmul.mubr.msk.bf16.gmra.mrb[20].mxu0 %vm422_vm2, %v4179_v42 }
  0x66   : > { %3205 = vmatprep.mubr.msk.bf16.mxu0 %vm422_vm2, %v4183_v59 }
  0x6b   : > { %3054 = vmatmul.mubr.msk.bf16.gmra.mrb[8].mxu1 %vm422_vm2, %v4005_v34 }
  0x6c   : > { %3057 = vmatprep.mubr.msk.bf16.mxu1 %vm422_vm2, %v4023_v44 }
  0x6d   : > { %3206 = vmatmul.mubr.msk.bf16.gmra.mrb[24].mxu0 %vm422_vm2, %v4204_v51 }
  0x6e   : > { %3209 = vmatprep.mubr.msk.bf16.mxu0 %vm422_vm2, %v4208_v19 }
  0x73   : > { %3058 = vmatmul.mubr.msk.bf16.gmra.mrb[12].mxu1 %vm422_vm2, %v4038_v57 }
  0x74   : > { %3061 = vmatprep.mubr.msk.bf16.mxu1 %vm422_vm2, %v4052_v4 }
  0x75   : > { %3210 = vmatmul.mubr.msk.bf16.gmra.mrb[28].mxu0 %vm422_vm2, %v4222_v0 }
  0x76   : > { %3215 = vmatprep.mubr.msk.bf16.mxu0 %vm422_vm2, %v3949_v60 }
  0x7b   : > { %3062 = vmatmul.mubr.msk.bf16.gmra.mrb[16].mxu1 %vm422_vm2, %v4062_v46 }
  0x7c   : > { %3065 = vmatprep.mubr.msk.bf16.mxu1 %vm422_vm2, %v4069_v33 }
  0x7d   : > { %3216 = vmatmul.mubr.msk.bf16.vlgmr.msra.gmra.mrb[0].mxu0 %vm422_vm2, %v3977_v45 }
  0x7e   : > { %3248 = vmatpush3.bf16.msra.mxu0 %v2065_v48  ;;  %3219 = vmatprep.mubr.msk.bf16.mxu0 %vm422_vm2, %v3992_v41 }
  0x7f   : > { %3582 = vmatprep.subr.msk.bf16.mxu0 %vm471_vm0, %v2835_v47 }
  0x83   : > { %3066 = vmatmul.mubr.msk.bf16.gmra.mrb[20].mxu1 %vm422_vm2, %v4073_v32 }
  0x84   : > { %3069 = vmatprep.mubr.msk.bf16.mxu1 %vm422_vm2, %v4077_v56 }
  0x85   : > { %3220 = vmatmul.mubr.msk.bf16.gmra.mrb[4].mxu0 %vm422_vm2, %v4005_v34 }
  0x86   : > { %3223 = vmatprep.mubr.msk.bf16.mxu0 %vm422_vm2, %v4023_v44 }
  0x8b   : > { %3070 = vmatmul.mubr.msk.bf16.gmra.mrb[24].mxu1 %vm422_vm2, %v4081_v52 }
  0x8c   : > { %3073 = vmatprep.mubr.msk.bf16.mxu1 %vm422_vm2, %v4085_v58 }
  0x8d   : > { %3224 = vmatmul.mubr.msk.bf16.gmra.mrb[8].mxu0 %vm422_vm2, %v4038_v57 }
  0x8e   : > { %3227 = vmatprep.mubr.msk.bf16.mxu0 %vm422_vm2, %v4052_v4 }
  0x93   : > { %3074 = vmatmul.mubr.msk.bf16.gmra.mrb[28].mxu1 %vm422_vm2, %v4089_v55 }
  0x94   : > { %3079 = vmatprep.mubr.msk.bf16.mxu1 %vm422_vm2, %v961_v50  ;;  %v4631_v50 = vld [vmem:[#allocation14_spill] sm:$0xff] }
  0x95   : > { %3228 = vmatmul.mubr.msk.bf16.gmra.mrb[12].mxu0 %vm422_vm2, %v4062_v46 }
  0x96   : > { %3231 = vmatprep.mubr.msk.bf16.mxu0 %vm422_vm2, %v4069_v33 }
  0x9b   : > { %3080 = vmatmul.mubr.msk.bf16.vlgmr.msra.gmra.mrb[0].mxu1 %vm422_vm2, %v3878_v25  ;;  %v4633_v25 = vld [vmem:[#allocation18_spill] sm:$0xff] }
  0x9c   : > { %3112 = vmatpush3.bf16.msra.mxu1 %v1230_v21  ;;  %3083 = vmatprep.mubr.msk.bf16.mxu1 %vm422_vm2, %v4629_v62 }
  0x9d   : > { %3578 = vmatprep.subr.msk.bf16.mxu1 %vm471_vm0, %v4630_v2  ;;  %3232 = vmatmul.mubr.msk.bf16.gmra.mrb[16].mxu0 %vm422_vm2, %v4073_v32 }
  0x9e   : > { %3235 = vmatprep.mubr.msk.bf16.mxu0 %vm422_vm2, %v4077_v56 }
  0xa3   : > { %3084 = vmatmul.mubr.msk.bf16.gmra.mrb[4].mxu1 %vm422_vm2, %v4631_v50 }
  0xa4   : > { %3087 = vmatprep.mubr.msk.bf16.mxu1 %vm422_vm2, %v4632_v20 }
  0xa5   : > { %3236 = vmatmul.mubr.msk.bf16.gmra.mrb[20].mxu0 %vm422_vm2, %v4081_v52 }
  0xa6   : > { %3239 = vmatprep.mubr.msk.bf16.mxu0 %vm422_vm2, %v4085_v58 }
  0xab   : > { %3088 = vmatmul.mubr.msk.bf16.gmra.mrb[8].mxu1 %vm422_vm2, %v4633_v25 }
  0xac   : > { %3091 = vmatprep.mubr.msk.bf16.mxu1 %vm422_vm2, %v4097_v43 }
  0xad   : > { %3240 = vmatmul.mubr.msk.bf16.gmra.mrb[24].mxu0 %vm422_vm2, %v4089_v55 }
  0xae   : > { %3243 = vmatprep.mubr.msk.bf16.mxu0 %vm422_vm2, %v4294_v35 }
  0xb3   : > { %3092 = vmatmul.mubr.msk.bf16.gmra.mrb[12].mxu1 %vm422_vm2, %v4104_v16 }
  0xb4   : > { %3095 = vmatprep.mubr.msk.bf16.mxu1 %vm422_vm2, %v4127_v49 }
  0xb5   : > { %3244 = vmatmul.mubr.msk.bf16.gmra.mrb[28].mxu0 %vm422_vm2, %v1846_v14 }
  0xb6   : > { %3249 = vmatprep.mubr.msk.bf16.mxu0 %vm422_vm2, %v4634_v18 }
  0xbb   : > { %3096 = vmatmul.mubr.msk.bf16.gmra.mrb[16].mxu1 %vm422_vm2, %v4131_v27 }
  0xbc   : > { %3099 = vmatprep.mubr.msk.bf16.mxu1 %vm422_vm2, %v4150_v31 }
  0xbd   : > { %3250 = vmatmul.mubr.msk.bf16.vlgmr.msra.gmra.mrb[0].mxu0 %vm422_vm2, %v4635_v3 }
  0xbe   : > { %3282 = vmatpush3.bf16.msra.mxu0 %v2274_v24  ;;  %3253 = vmatprep.mubr.msk.bf16.mxu0 %vm422_vm2, %v4636_v38 }
  0xc3   : > { %3100 = vmatmul.mubr.msk.bf16.gmra.mrb[20].mxu1 %vm422_vm2, %v4159_v12 }
  0xc4   : > { %3103 = vmatprep.mubr.msk.bf16.mxu1 %vm422_vm2, %v4179_v42 }
  0xc5   : > { %3254 = vmatmul.mubr.msk.bf16.gmra.mrb[4].mxu0 %vm422_vm2, %v4637_v6 }
  0xc6   : > { %3257 = vmatprep.mubr.msk.bf16.mxu0 %vm422_vm2, %v4638_v7 }
  0xcb   : > { %3104 = vmatmul.mubr.msk.bf16.gmra.mrb[24].mxu1 %vm422_vm2, %v4183_v59 }
  0xcc   : > { %3107 = vmatprep.mubr.msk.bf16.mxu1 %vm422_vm2, %v4204_v51 }
  0xcd   : > { %3258 = vmatmul.mubr.msk.bf16.gmra.mrb[8].mxu0 %vm422_vm2, %v4639_v5 }
  0xce   : > { %3261 = vmatprep.mubr.msk.bf16.mxu0 %vm422_vm2, %v4640_v53 }
  0xd3   : > { %3108 = vmatmul.mubr.msk.bf16.gmra.mrb[28].mxu1 %vm422_vm2, %v4208_v19 }
  0xd4   : > { %3113 = vmatprep.mubr.msk.bf16.mxu1 %vm422_vm2, %v3684_v15  ;;  %v2051_v15 = vrot.slane %v223_v23, 1 }
  0xd5   : > { %3262 = vmatmul.mubr.msk.bf16.gmra.mrb[12].mxu0 %vm422_vm2, %v4641_v54 }
  0xd6   : > { %3265 = vmatprep.mubr.msk.bf16.mxu0 %vm422_vm2, %v4642_v61 }
  0xdb   : > { %3114 = vmatmul.mubr.msk.bf16.vlgmr.msra.gmra.mrb[0].mxu1 %vm422_vm2, %v3949_v60  ;;  %v2052_v60 = vrot.slane %v224_v10, 1 }
  0xdc   : > { %3316 = vmatpush3.bf16.msra.mxu1 %v4643_v11  ;;  %3117 = vmatprep.mubr.msk.bf16.mxu1 %vm422_vm2, %v3977_v45  ;;  %v2054_v45 = vrot.slane %v225_v26, 1 }
  0xdd   : > { %3266 = vmatmul.mubr.msk.bf16.gmra.mrb[16].mxu0 %vm422_vm2, %v4644_v28 }
  0xde   : > { %3269 = vmatprep.mubr.msk.bf16.mxu0 %vm422_vm2, %v4645_v37 }
  0xe3   : > { %3118 = vmatmul.mubr.msk.bf16.gmra.mrb[4].mxu1 %vm422_vm2, %v3992_v41  ;;  %v2053_v41 = vsel %vm291_vm1, %v2051_v15, %v2052_v60 }
  0xe4   : > { %3121 = vmatprep.mubr.msk.bf16.mxu1 %vm422_vm2, %v4005_v34  ;;  %v2055_v34 = vsel %vm291_vm1, %v2052_v60, %v2054_v45 }
  0xe5   : > { %3270 = vmatmul.mubr.msk.bf16.gmra.mrb[20].mxu0 %vm422_vm2, %v4044_v40  ;;  %v2058_v63 = vpack.c.bf16 %v2055_v34, %v2053_v41 }
  0xe6   : > { %3273 = vmatprep.mubr.msk.bf16.mxu0 %vm422_vm2, %v4056_v8 }
  0xeb   : > { %3122 = vmatmul.mubr.msk.bf16.gmra.mrb[8].mxu1 %vm422_vm2, %v4023_v44 }
  0xec   : > { %3125 = vmatprep.mubr.msk.bf16.mxu1 %vm422_vm2, %v4038_v57 }
  0xed   : > { %3274 = vmatmul.mubr.msk.bf16.gmra.mrb[24].mxu0 %vm422_vm2, %v4119_v30 }
  0xee   : > { %3277 = vmatprep.mubr.msk.bf16.mxu0 %vm422_vm2, %v4220_v39 }
  0xf3   : > { %3126 = vmatmul.mubr.msk.bf16.gmra.mrb[12].mxu1 %vm422_vm2, %v4052_v4 }
  0xf4   : > { %3129 = vmatprep.mubr.msk.bf16.mxu1 %vm422_vm2, %v4062_v46 }
  0xf5   : > { %3278 = vmatmul.mubr.msk.bf16.gmra.mrb[28].mxu0 %vm422_vm2, %v2058_v63 }
  0xf6   : > { %3283 = vmatprep.mubr.msk.bf16.mxu0 %vm422_vm2, %v4629_v62 }
  0xfb   : > { %3130 = vmatmul.mubr.msk.bf16.gmra.mrb[16].mxu1 %vm422_vm2, %v4069_v33 }
  0xfc   : > { %3133 = vmatprep.mubr.msk.bf16.mxu1 %vm422_vm2, %v4073_v32 }
  0xfd   : > { %3284 = vmatmul.mubr.msk.bf16.vlgmr.msra.gmra.mrb[0].mxu0 %vm422_vm2, %v4631_v50 }
  0xfe   : > { %3287 = vmatprep.mubr.msk.bf16.mxu0 %vm422_vm2, %v4632_v20 }
 0x103   : > { %3134 = vmatmul.mubr.msk.bf16.gmra.mrb[20].mxu1 %vm422_vm2, %v4077_v56 }
 0x104   : > { %3137 = vmatprep.mubr.msk.bf16.mxu1 %vm422_vm2, %v4081_v52 }
 0x105   : > { %3288 = vmatmul.mubr.msk.bf16.gmra.mrb[4].mxu0 %vm422_vm2, %v4633_v25 }
 0x106   : > { %3291 = vmatprep.mubr.msk.bf16.mxu0 %vm422_vm2, %v4097_v43 }
 0x10b   : > { %3138 = vmatmul.mubr.msk.bf16.gmra.mrb[24].mxu1 %vm422_vm2, %v4085_v58 }
 0x10c   : > { %3141 = vmatprep.mubr.msk.bf16.mxu1 %vm422_vm2, %v4089_v55 }
 0x10d   : > { %3292 = vmatmul.mubr.msk.bf16.gmra.mrb[8].mxu0 %vm422_vm2, %v4104_v16 }
 0x10e   : > { %3295 = vmatprep.mubr.msk.bf16.mxu0 %vm422_vm2, %v4127_v49 }
 0x113   : > { %3142 = vmatmul.mubr.msk.bf16.gmra.mrb[28].mxu1 %vm422_vm2, %v4294_v35 }
 0x114   : > { %3163 = vmatprep.mubr.msk.bf16.mxu1 %vm422_vm2, %v4641_v54 }
 0x115   : > { %3296 = vmatmul.mubr.msk.bf16.gmra.mrb[12].mxu0 %vm422_vm2, %v4131_v27 }
 0x116   : > { %3299 = vmatprep.mubr.msk.bf16.mxu0 %vm422_vm2, %v4150_v31  ;;  %v4468_v31 = vld [vmem:[%s4585_s2] ss:$0 sm:$0xff] }
 0x11b   : > { %3164 = vmatmul.mubr.msk.bf16.vlgmr.msra.gmra.mrb[16].mxu1 %vm422_vm2, %v4642_v61 }
 0x11c   : > { %3167 = vmatprep.mubr.msk.bf16.mxu1 %vm422_vm2, %v4644_v28 }
 0x11d   : > { %3300 = vmatmul.mubr.msk.bf16.gmra.mrb[16].mxu0 %vm422_vm2, %v4159_v12 }
 0x11e   : > { %3303 = vmatprep.mubr.msk.bf16.mxu0 %vm422_vm2, %v4179_v42 }
 0x123   : > { %3168 = vmatmul.mubr.msk.bf16.gmra.mrb[20].mxu1 %vm422_vm2, %v4645_v37 }
 0x124   : > { %3171 = vmatprep.mubr.msk.bf16.mxu1 %vm422_vm2, %v4044_v40 }
 0x125   : > { %3304 = vmatmul.mubr.msk.bf16.gmra.mrb[20].mxu0 %vm422_vm2, %v4183_v59 }
 0x126   : > { %3307 = vmatprep.mubr.msk.bf16.mxu0 %vm422_vm2, %v4204_v51 }
 0x12b   : > { %3172 = vmatmul.mubr.msk.bf16.gmra.mrb[24].mxu1 %vm422_vm2, %v4056_v8 }
 0x12c   : > { %3175 = vmatprep.mubr.msk.bf16.mxu1 %vm422_vm2, %v4119_v30 }
 0x12d   : > { %3308 = vmatmul.mubr.msk.bf16.gmra.mrb[24].mxu0 %vm422_vm2, %v4208_v19 }
 0x12e   : > { %3311 = vmatprep.mubr.msk.bf16.mxu0 %vm422_vm2, %v4222_v0 }
 0x133   : > { %3176 = vmatmul.mubr.msk.bf16.gmra.mrb[28].mxu1 %vm422_vm2, %v4220_v39 }
 0x135   : > { %3312 = vmatmul.mubr.msk.bf16.gmra.mrb[28].mxu0 %vm422_vm2, %v2267_v22 }
 0x1ae   : > { %v3115_v43 = vpop.f32.mrb[0].mxu1 }
 0x1af   : > { %v1266_v16 = vpop.f32.mrb[1].mxu1 }
 0x1b0   : > { %v3116_v44 = vpop.f32.mrb[2].mxu1 }
 0x1b1   : > { %v1269_v57 = vpop.f32.mrb[3].mxu1 }
 0x1b6   : > { %v3119_v40 = vpop.f32.mrb[4].mxu1 }
 0x1b7   : > { %v1282_v4 = vpop.f32.mrb[5].mxu1 }
 0x1b8   : > { %v3120_v8 = vpop.f32.mrb[6].mxu1 }
 0x1b9   : > { %v1285_v46 = vpop.f32.mrb[7].mxu1 }
 0x1be   : > { %v4449_v33 = vpop.f32.mrb[8].mxu1 }
 0x1bf   : > { %v4451_v32 = vpop.f32.mrb[9].mxu1 }
 0x1c0   : > { %v4453_v56 = vpop.f32.mrb[10].mxu1 }
 0x1c1   : > { %v4455_v52 = vpop.f32.mrb[11].mxu1 }
 0x1c6   : > { %v4457_v58 = vpop.f32.mrb[12].mxu1 }
 0x1c7   : > { %v4459_v55 = vpop.f32.mrb[13].mxu1 }
 0x1c8   : > { %v4461_v30 = vpop.f32.mrb[14].mxu1 }
 0x1c9   : > { %v4463_v49 = vpop.f32.mrb[15].mxu1 }
 0x1d0   : > { %v3285_v27 = vpop.f32.mrb[0].mxu0 }
 0x1d1   : > { %v3317_v12 = vadd.f32 %v3285_v27, %v3115_v43  ;;  %v2310_v42 = vpop.f32.mrb[1].mxu0 }
 0x1d2   : > { %v3318_v59 = vadd.f32 %v2310_v42, %v1266_v16  ;;  %v3286_v51 = vpop.f32.mrb[2].mxu0 }
 0x1d3   : > { %v2478_v19 = vadd.f32 %v3317_v12, %v4468_v31  ;;  %v3319_v29 = vadd.f32 %v3286_v51, %v3116_v44  ;;  %v2313_v39 = vpop.f32.mrb[3].mxu0 }
 0x1d4   : > { %v2476_v0 = vadd.f32 %v3318_v59, %v4468_v31  ;;  %v3320_v48 = vadd.f32 %v2313_v39, %v1269_v57 }
 0x1d5   : > { %vm2510_vm4 = vcmp.gt.f32.partialorder %v2478_v19, 0.0  ;;  %v2542_v47 = vmul.f32 0.2, %v2478_v19  ;;  %v2479_v21 = vadd.f32 %v3319_v29, %v4468_v31 }
 0x1d6   : > { %vm2508_vm6 = vcmp.gt.f32.partialorder %v2476_v0, 0.0  ;;  %v2540_v62 = vmul.f32 0.2, %v2476_v0  ;;  %v2477_v2 = vadd.f32 %v3320_v48, %v4468_v31 }
 0x1d7   : > { %v2574_v50 = vsel %vm2510_vm4, %v2478_v19, %v2542_v47  ;;  %vm2511_vm7 = vcmp.gt.f32.partialorder %v2479_v21, 0.0  ;;  %v2543_v20 = vmul.f32 0.2, %v2479_v21 }
 0x1d8   : > { %2607 = vst.msk [vmem:[%s4476_s16 + $0x10] sm:$0xff] %vm2604_vm5, %v2574_v50  ;;  %v2572_v25 = vsel %vm2508_vm6, %v2476_v0, %v2540_v62  ;;  %vm2509_vm8 = vcmp.gt.f32.partialorder %v2477_v2, 0.0  ;;  %v2541_v35 = vmul.f32 0.2, %v2477_v2  ;;  %v3289_v23 = vpop.f32.mrb[4].mxu0 }
 0x1d9   : > { %2605 = vst.msk [vmem:[%s4476_s16] sm:$0xff] %vm2604_vm5, %v2572_v25  ;;  %v2575_v10 = vsel %vm2511_vm7, %v2479_v21, %v2543_v20  ;;  %v3321_v36 = vadd.f32 %v3289_v23, %v3119_v40  ;;  %v2326_v9 = vpop.f32.mrb[5].mxu0 }
 0x1da   : > { %2608 = vst.msk [vmem:[%s4476_s16 + $0x18] sm:$0xff] %vm2604_vm5, %v2575_v10  ;;  %v2573_v26 = vsel %vm2509_vm8, %v2477_v2, %v2541_v35  ;;  %v3322_v13 = vadd.f32 %v2326_v9, %v1282_v4  ;;  %v3290_v14 = vpop.f32.mrb[6].mxu0 }
 0x1db   : > { %2606 = vst.msk [vmem:[%s4476_s16 + $0x8] sm:$0xff] %vm2604_vm5, %v2573_v26  ;;  %v2482_v1 = vadd.f32 %v3321_v36, %v4468_v31  ;;  %v3323_v17 = vadd.f32 %v3290_v14, %v3120_v8  ;;  %v2329_v22 = vpop.f32.mrb[7].mxu0 }
 0x1dc   : > { %v2480_v18 = vadd.f32 %v3322_v13, %v4468_v31  ;;  %v3324_v24 = vadd.f32 %v2329_v22, %v1285_v46 }
 0x1dd   : > { %vm2514_vm9 = vcmp.gt.f32.partialorder %v2482_v1, 0.0  ;;  %v2546_v3 = vmul.f32 0.2, %v2482_v1  ;;  %v2483_v38 = vadd.f32 %v3323_v17, %v4468_v31 }
 0x1de   : > { %vm2512_vm10 = vcmp.gt.f32.partialorder %v2480_v18, 0.0  ;;  %v2544_v6 = vmul.f32 0.2, %v2480_v18  ;;  %v2481_v7 = vadd.f32 %v3324_v24, %v4468_v31 }
 0x1df   : > { %v2578_v5 = vsel %vm2514_vm9, %v2482_v1, %v2546_v3  ;;  %vm2515_vm11 = vcmp.gt.f32.partialorder %v2483_v38, 0.0  ;;  %v2547_v53 = vmul.f32 0.2, %v2483_v38 }
 0x1e0   : > { %2611 = vst.msk [vmem:[%s4476_s16 + $0x30] sm:$0xff] %vm2604_vm5, %v2578_v5  ;;  %v2576_v54 = vsel %vm2512_vm10, %v2480_v18, %v2544_v6  ;;  %vm2513_vm12 = vcmp.gt.f32.partialorder %v2481_v7, 0.0  ;;  %v2545_v61 = vmul.f32 0.2, %v2481_v7  ;;  %v3293_v11 = vpop.f32.mrb[8].mxu0 }
 0x1e1   : > { %2609 = vst.msk [vmem:[%s4476_s16 + $0x20] sm:$0xff] %vm2604_vm5, %v2576_v54  ;;  %v2579_v28 = vsel %vm2515_vm11, %v2483_v38, %v2547_v53  ;;  %v3325_v37 = vadd.f32 %v3293_v11, %v4449_v33  ;;  %v2342_v15 = vpop.f32.mrb[9].mxu0 }
 0x1e2   : > { %2612 = vst.msk [vmem:[%s4476_s16 + $0x38] sm:$0xff] %vm2604_vm5, %v2579_v28  ;;  %v2577_v60 = vsel %vm2513_vm12, %v2481_v7, %v2545_v61  ;;  %v3326_v45 = vadd.f32 %v2342_v15, %v4451_v32  ;;  %v3294_v41 = vpop.f32.mrb[10].mxu0 }
 0x1e3   : > { %2610 = vst.msk [vmem:[%s4476_s16 + $0x28] sm:$0xff] %vm2604_vm5, %v2577_v60  ;;  %v2486_v34 = vadd.f32 %v3325_v37, %v4468_v31  ;;  %v3327_v63 = vadd.f32 %v3294_v41, %v4453_v56  ;;  %v2345_v43 = vpop.f32.mrb[11].mxu0 }
 0x1e4   : > { %v2484_v16 = vadd.f32 %v3326_v45, %v4468_v31  ;;  %v3328_v44 = vadd.f32 %v2345_v43, %v4455_v52 }
 0x1e5   : > { %vm2518_vm13 = vcmp.gt.f32.partialorder %v2486_v34, 0.0  ;;  %v2550_v57 = vmul.f32 0.2, %v2486_v34  ;;  %v2487_v40 = vadd.f32 %v3327_v63, %v4468_v31 }
 0x1e6   : > { %vm2516_vm14 = vcmp.gt.f32.partialorder %v2484_v16, 0.0  ;;  %v2548_v4 = vmul.f32 0.2, %v2484_v16  ;;  %v2485_v8 = vadd.f32 %v3328_v44, %v4468_v31 }
 0x1e7   : > { %v2582_v46 = vsel %vm2518_vm13, %v2486_v34, %v2550_v57  ;;  %vm2519_vm15 = vcmp.gt.f32.partialorder %v2487_v40, 0.0  ;;  %v2551_v33 = vmul.f32 0.2, %v2487_v40 }
 0x1e8   : > { %2615 = vst.msk [vmem:[%s4476_s16 + $0x50] sm:$0xff] %vm2604_vm5, %v2582_v46  ;;  %v2580_v32 = vsel %vm2516_vm14, %v2484_v16, %v2548_v4  ;;  %vm2517_vm0 = vcmp.gt.f32.partialorder %v2485_v8, 0.0  ;;  %v2549_v56 = vmul.f32 0.2, %v2485_v8  ;;  %v3297_v27 = vpop.f32.mrb[12].mxu0 }
 0x1e9   : > { %2613 = vst.msk [vmem:[%s4476_s16 + $0x40] sm:$0xff] %vm2604_vm5, %v2580_v32  ;;  %v2583_v52 = vsel %vm2519_vm15, %v2487_v40, %v2551_v33  ;;  %v3329_v12 = vadd.f32 %v3297_v27, %v4457_v58  ;;  %v2358_v42 = vpop.f32.mrb[13].mxu0 }
 0x1ea   : > { %2616 = vst.msk [vmem:[%s4476_s16 + $0x58] sm:$0xff] %vm2604_vm5, %v2583_v52  ;;  %v2581_v59 = vsel %vm2517_vm0, %v2485_v8, %v2549_v56  ;;  %v3330_v51 = vadd.f32 %v2358_v42, %v4459_v55  ;;  %v3298_v19 = vpop.f32.mrb[14].mxu0 }
 0x1eb   : > { %2614 = vst.msk [vmem:[%s4476_s16 + $0x48] sm:$0xff] %vm2604_vm5, %v2581_v59  ;;  %v2490_v29 = vadd.f32 %v3329_v12, %v4468_v31  ;;  %v3331_v39 = vadd.f32 %v3298_v19, %v4461_v30  ;;  %v2361_v0 = vpop.f32.mrb[15].mxu0 }
 0x1ec   : > { %v2488_v48 = vadd.f32 %v3330_v51, %v4468_v31  ;;  %v3332_v47 = vadd.f32 %v2361_v0, %v4463_v49 }
 0x1ed   : > { %vm2522_vm1 = vcmp.gt.f32.partialorder %v2490_v29, 0.0  ;;  %v2554_v58 = vmul.f32 0.2, %v2490_v29  ;;  %v2491_v21 = vadd.f32 %v3331_v39, %v4468_v31 }
 0x1ee   : > { %v3165_v62 = vpop.f32.mrb[16].mxu1  ;;  %vm2520_vm2 = vcmp.gt.f32.partialorder %v2488_v48, 0.0  ;;  %v2552_v55 = vmul.f32 0.2, %v2488_v48  ;;  %v2489_v2 = vadd.f32 %v3332_v47, %v4468_v31 }
 0x1ef   : > { %v1542_v50 = vpop.f32.mrb[17].mxu1  ;;  %v2586_v20 = vsel %vm2522_vm1, %v2490_v29, %v2554_v58  ;;  %vm2523_vm3 = vcmp.gt.f32.partialorder %v2491_v21, 0.0  ;;  %v2555_v30 = vmul.f32 0.2, %v2491_v21 }
 0x1f0   : > { %v3166_v25 = vpop.f32.mrb[18].mxu1  ;;  %2619 = vst.msk [vmem:[%s4476_s16 + $0x70] sm:$0xff] %vm2604_vm5, %v2586_v20  ;;  %v2584_v49 = vsel %vm2520_vm2, %v2488_v48, %v2552_v55  ;;  %vm2521_vm4 = vcmp.gt.f32.partialorder %v2489_v2, 0.0  ;;  %v2553_v35 = vmul.f32 0.2, %v2489_v2  ;;  %v3301_v23 = vpop.f32.mrb[16].mxu0 }
 0x1f1   : > { %v1545_v10 = vpop.f32.mrb[19].mxu1  ;;  %2617 = vst.msk [vmem:[%s4476_s16 + $0x60] sm:$0xff] %vm2604_vm5, %v2584_v49  ;;  %v2587_v36 = vsel %vm2523_vm3, %v2491_v21, %v2555_v30  ;;  %v3333_v9 = vadd.f32 %v3301_v23, %v3165_v62  ;;  %v2374_v26 = vpop.f32.mrb[17].mxu0 }
 0x1f2   : > { %2620 = vst.msk [vmem:[%s4476_s16 + $0x78] sm:$0xff] %vm2604_vm5, %v2587_v36  ;;  %v2585_v13 = vsel %vm2521_vm4, %v2489_v2, %v2553_v35  ;;  %v3334_v14 = vadd.f32 %v2374_v26, %v1542_v50  ;;  %v3302_v1 = vpop.f32.mrb[18].mxu0 }
 0x1f3   : > { %2618 = vst.msk [vmem:[%s4476_s16 + $0x68] sm:$0xff] %vm2604_vm5, %v2585_v13  ;;  %v2494_v17 = vadd.f32 %v3333_v9, %v4468_v31  ;;  %v3335_v22 = vadd.f32 %v3302_v1, %v3166_v25  ;;  %v2377_v18 = vpop.f32.mrb[19].mxu0 }
 0x1f4   : > { %v2492_v24 = vadd.f32 %v3334_v14, %v4468_v31  ;;  %v3336_v3 = vadd.f32 %v2377_v18, %v1545_v10 }
 0x1f5   : > { %vm2526_vm6 = vcmp.gt.f32.partialorder %v2494_v17, 0.0  ;;  %v2558_v38 = vmul.f32 0.2, %v2494_v17  ;;  %v2495_v6 = vadd.f32 %v3335_v22, %v4468_v31 }
 0x1f6   : > { %v3169_v7 = vpop.f32.mrb[20].mxu1  ;;  %vm2524_vm7 = vcmp.gt.f32.partialorder %v2492_v24, 0.0  ;;  %v2556_v5 = vmul.f32 0.2, %v2492_v24  ;;  %v2493_v53 = vadd.f32 %v3336_v3, %v4468_v31 }
 0x1f7   : > { %v1558_v54 = vpop.f32.mrb[21].mxu1  ;;  %v2590_v61 = vsel %vm2526_vm6, %v2494_v17, %v2558_v38  ;;  %vm2527_vm8 = vcmp.gt.f32.partialorder %v2495_v6, 0.0  ;;  %v2559_v11 = vmul.f32 0.2, %v2495_v6 }
 0x1f8   : > { %v3170_v28 = vpop.f32.mrb[22].mxu1  ;;  %2623 = vst.msk [vmem:[%s4476_s16 + $0x90] sm:$0xff] %vm2604_vm5, %v2590_v61  ;;  %v2588_v37 = vsel %vm2524_vm7, %v2492_v24, %v2556_v5  ;;  %vm2525_vm9 = vcmp.gt.f32.partialorder %v2493_v53, 0.0  ;;  %v2557_v15 = vmul.f32 0.2, %v2493_v53  ;;  %v3305_v60 = vpop.f32.mrb[20].mxu0 }
 0x1f9   : > { %v1561_v45 = vpop.f32.mrb[23].mxu1  ;;  %2621 = vst.msk [vmem:[%s4476_s16 + $0x80] sm:$0xff] %vm2604_vm5, %v2588_v37  ;;  %v2591_v41 = vsel %vm2527_vm8, %v2495_v6, %v2559_v11  ;;  %v3337_v34 = vadd.f32 %v3305_v60, %v3169_v7  ;;  %v2390_v63 = vpop.f32.mrb[21].mxu0 }
 0x1fa   : > { %2624 = vst.msk [vmem:[%s4476_s16 + $0x98] sm:$0xff] %vm2604_vm5, %v2591_v41  ;;  %v2589_v43 = vsel %vm2525_vm9, %v2493_v53, %v2557_v15  ;;  %v3338_v16 = vadd.f32 %v2390_v63, %v1558_v54  ;;  %v3306_v44 = vpop.f32.mrb[22].mxu0 }
 0x1fb   : > { %2622 = vst.msk [vmem:[%s4476_s16 + $0x88] sm:$0xff] %vm2604_vm5, %v2589_v43  ;;  %v2498_v57 = vadd.f32 %v3337_v34, %v4468_v31  ;;  %v3339_v40 = vadd.f32 %v3306_v44, %v3170_v28  ;;  %v2393_v4 = vpop.f32.mrb[23].mxu0 }
 0x1fc   : > { %v2496_v8 = vadd.f32 %v3338_v16, %v4468_v31  ;;  %v3340_v46 = vadd.f32 %v2393_v4, %v1561_v45 }
 0x1fd   : > { %vm2530_vm10 = vcmp.gt.f32.partialorder %v2498_v57, 0.0  ;;  %v2562_v33 = vmul.f32 0.2, %v2498_v57  ;;  %v2499_v32 = vadd.f32 %v3339_v40, %v4468_v31 }
 0x1fe   : > { %v3173_v56 = vpop.f32.mrb[24].mxu1  ;;  %vm2528_vm11 = vcmp.gt.f32.partialorder %v2496_v8, 0.0  ;;  %v2560_v27 = vmul.f32 0.2, %v2496_v8  ;;  %v2497_v52 = vadd.f32 %v3340_v46, %v4468_v31 }
 0x1ff   : > { %v1574_v12 = vpop.f32.mrb[25].mxu1  ;;  %v2594_v42 = vsel %vm2530_vm10, %v2498_v57, %v2562_v33  ;;  %vm2531_vm12 = vcmp.gt.f32.partialorder %v2499_v32, 0.0  ;;  %v2563_v59 = vmul.f32 0.2, %v2499_v32 }
 0x200   : > { %v3174_v51 = vpop.f32.mrb[26].mxu1  ;;  %2627 = vst.msk [vmem:[%s4476_s16 + $0xb0] sm:$0xff] %vm2604_vm5, %v2594_v42  ;;  %v2592_v19 = vsel %vm2528_vm11, %v2496_v8, %v2560_v27  ;;  %vm2529_vm13 = vcmp.gt.f32.partialorder %v2497_v52, 0.0  ;;  %v2561_v29 = vmul.f32 0.2, %v2497_v52  ;;  %v3309_v39 = vpop.f32.mrb[24].mxu0 }
 0x201   : > { %v1577_v0 = vpop.f32.mrb[27].mxu1  ;;  %2625 = vst.msk [vmem:[%s4476_s16 + $0xa0] sm:$0xff] %vm2604_vm5, %v2592_v19  ;;  %v2595_v48 = vsel %vm2531_vm12, %v2499_v32, %v2563_v59  ;;  %v3341_v47 = vadd.f32 %v3309_v39, %v3173_v56  ;;  %v2406_v58 = vpop.f32.mrb[25].mxu0 }
 0x202   : > { %2628 = vst.msk [vmem:[%s4476_s16 + $0xb8] sm:$0xff] %vm2604_vm5, %v2595_v48  ;;  %v2593_v21 = vsel %vm2529_vm13, %v2497_v52, %v2561_v29  ;;  %v3342_v62 = vadd.f32 %v2406_v58, %v1574_v12  ;;  %v3310_v55 = vpop.f32.mrb[26].mxu0 }
 0x203   : > { %2626 = vst.msk [vmem:[%s4476_s16 + $0xa8] sm:$0xff] %vm2604_vm5, %v2593_v21  ;;  %v2502_v2 = vadd.f32 %v3341_v47, %v4468_v31  ;;  %v3343_v50 = vadd.f32 %v3310_v55, %v3174_v51  ;;  %v2409_v20 = vpop.f32.mrb[27].mxu0 }
 0x204   : > { %v2500_v30 = vadd.f32 %v3342_v62, %v4468_v31  ;;  %v3344_v25 = vadd.f32 %v2409_v20, %v1577_v0 }
 0x205   : > { %vm2534_vm14 = vcmp.gt.f32.partialorder %v2502_v2, 0.0  ;;  %v2566_v49 = vmul.f32 0.2, %v2502_v2  ;;  %v2503_v35 = vadd.f32 %v3343_v50, %v4468_v31 }
 0x206   : > { %v3177_v23 = vpop.f32.mrb[28].mxu1  ;;  %vm2532_vm15 = vcmp.gt.f32.partialorder %v2500_v30, 0.0  ;;  %v2564_v10 = vmul.f32 0.2, %v2500_v30  ;;  %v2501_v36 = vadd.f32 %v3344_v25, %v4468_v31 }
 0x207   : > { %v1590_v9 = vpop.f32.mrb[29].mxu1  ;;  %v2598_v26 = vsel %vm2534_vm14, %v2502_v2, %v2566_v49  ;;  %vm2535_vm0 = vcmp.gt.f32.partialorder %v2503_v35, 0.0  ;;  %v2567_v13 = vmul.f32 0.2, %v2503_v35 }
 0x208   : > { %v3178_v14 = vpop.f32.mrb[30].mxu1  ;;  %2631 = vst.msk [vmem:[%s4476_s16 + $0xd0] sm:$0xff] %vm2604_vm5, %v2598_v26  ;;  %v2596_v1 = vsel %vm2532_vm15, %v2500_v30, %v2564_v10  ;;  %vm2533_vm1 = vcmp.gt.f32.partialorder %v2501_v36, 0.0  ;;  %v2565_v17 = vmul.f32 0.2, %v2501_v36  ;;  %v3313_v22 = vpop.f32.mrb[28].mxu0 }
 0x209   : > { %v1593_v18 = vpop.f32.mrb[31].mxu1  ;;  %2629 = vst.msk [vmem:[%s4476_s16 + $0xc0] sm:$0xff] %vm2604_vm5, %v2596_v1  ;;  %v2599_v24 = vsel %vm2535_vm0, %v2503_v35, %v2567_v13  ;;  %v3345_v3 = vadd.f32 %v3313_v22, %v3177_v23  ;;  %v2422_v38 = vpop.f32.mrb[29].mxu0 }
 0x20a   : > { %2632 = vst.msk [vmem:[%s4476_s16 + $0xd8] sm:$0xff] %vm2604_vm5, %v2599_v24  ;;  %v2597_v6 = vsel %vm2533_vm1, %v2501_v36, %v2565_v17  ;;  %v3346_v7 = vadd.f32 %v2422_v38, %v1590_v9  ;;  %v3314_v5 = vpop.f32.mrb[30].mxu0 }
 0x20b   : > { %2630 = vst.msk [vmem:[%s4476_s16 + $0xc8] sm:$0xff] %vm2604_vm5, %v2597_v6  ;;  %v2506_v53 = vadd.f32 %v3345_v3, %v4468_v31  ;;  %v3347_v54 = vadd.f32 %v3314_v5, %v3178_v14  ;;  %v2425_v61 = vpop.f32.mrb[31].mxu0 }
 0x20c   : > { %v2504_v11 = vadd.f32 %v3346_v7, %v4468_v31  ;;  %v3348_v28 = vadd.f32 %v2425_v61, %v1593_v18 }
 0x20d   : > { %vm2538_vm2 = vcmp.gt.f32.partialorder %v2506_v53, 0.0  ;;  %v2570_v37 = vmul.f32 0.2, %v2506_v53  ;;  %v2507_v15 = vadd.f32 %v3347_v54, %v4468_v31 }
 0x20e   : > { %vm2536_vm3 = vcmp.gt.f32.partialorder %v2504_v11, 0.0  ;;  %v2568_v60 = vmul.f32 0.2, %v2504_v11  ;;  %v2505_v45 = vadd.f32 %v3348_v28, %v4468_v31 }
 0x20f   : > { %v2602_v41 = vsel %vm2538_vm2, %v2506_v53, %v2570_v37  ;;  %vm2539_vm4 = vcmp.gt.f32.partialorder %v2507_v15, 0.0  ;;  %v2571_v34 = vmul.f32 0.2, %v2507_v15 }
 0x210   : > { %2635 = vst.msk [vmem:[%s4476_s16 + $0xf0] sm:$0xff] %vm2604_vm5, %v2602_v41  ;;  %v2600_v63 = vsel %vm2536_vm3, %v2504_v11, %v2568_v60  ;;  %vm2537_vm6 = vcmp.gt.f32.partialorder %v2505_v45, 0.0  ;;  %v2569_v43 = vmul.f32 0.2, %v2505_v45 }
 0x211   : > { %2633 = vst.msk [vmem:[%s4476_s16 + $0xe0] sm:$0xff] %vm2604_vm5, %v2600_v63  ;;  %v2603_v16 = vsel %vm2539_vm4, %v2507_v15, %v2571_v34 }
 0x212   : > { %2636 = vst.msk [vmem:[%s4476_s16 + $0xf8] sm:$0xff] %vm2604_vm5, %v2603_v16  ;;  %v2601_v44 = vsel %vm2537_vm6, %v2505_v45, %v2569_v43 }
 0x213   : > { %2634 = vst.msk [vmem:[%s4476_s16 + $0xe8] sm:$0xff] %vm2604_vm5, %v2601_v44 }
 0x214 PF: > { %s13_s12 = sadd.s32 1, %s3598_s12  }
 0x215   : > { %p10_p4 = scmp.ge.s32.totalorder %s13_s12, 4  }
 0x217   :  { %12 = sbr.rel (!%p10_p4) target bundleno = 1 (0x1), region = 70 }

// kernel: discriminator_forward.13
= control target key start
LH: loop header
LB: loop body
LE: loop exit
PB: predicated region body
PF: predicated region fallthrough
CT: control target
= control target key end

     0   :  { %s399_s6 = smov 0   ;;  %s401_s7 = smov 0   ;;  %s449_s0 = inlined_call_operand.vmem [shape: f32[2,64,128], index: 0, kind: input, shape index: {}]   ;;  %s450_s1 = inlined_call_operand.vmem [shape: f32[2,64,128], index: 1, kind: output, shape index: {}]  }
   0x1   :  { %s403_s8 = smov 0  }
   0x2 LB: > { %s23_s9 = sadd.s32 1, %s383_s7  ;;  %p330_p0 = scmp.ge.s32.totalorder %s387_s8, 1  ;;  %s387_s8 = sphi %s403_s8, %s11_s8   ;;  %s383_s7 = sphi %s401_s7, %s452_s7   ;;  %s379_s6 = sphi %s399_s6, %s451_s6  }
   0x3   : > { %p25_p1 = scmp.ge.s32.totalorder %s23_s9, 2  ;;  %p106_p2 = scmp.lt.s32.totalorder %s387_s8, 3 }
   0x5   : > { %s454_s9 = smov (%p25_p1, %s23_s9), 0  ;;  %p107_p3 = pnand %p330_p0, %p106_p2 }
   0x6   : > { %p132_p4 = scmp.lt.s32.totalorder (!%p107_p3), %s379_s6, 1 }
   0x7   : > { %110 = sbr.rel (%p107_p3) target bundleno = 102 (0x66), region = 24 }
   0xe   : > { %s456_s6 = smov (!%p132_p4, %s379_s6), 1 }
   0xf   : > { %s337_s10 = sshll.u32 %s456_s6, 6 }
  0x10   : > { %s139_s13 = scalar_lea.vmem %s449_s0, %s337_s10  ;;  %s430_s16 = scalar_lea.vmem %s450_s1, %s337_s10 }
  0x11   : > { %v148_v0 = vld [vmem:[%s139_s13] sm:$0xff]  ;;  %v149_v1 = vld [vmem:[%s139_s13 + $0x8] sm:$0xff]  ;;  %v150_v2 = vld [vmem:[%s139_s13 + $0x10] sm:$0xff] }
  0x12   : > { %v156_v3 = vadd.f32 %v149_v1, %v148_v0  ;;  %v151_v4 = vld [vmem:[%s139_s13 + $0x18] sm:$0xff]  ;;  %v152_v6 = vld [vmem:[%s139_s13 + $0x20] sm:$0xff]  ;;  %v153_v8 = vld [vmem:[%s139_s13 + $0x28] sm:$0xff] }
  0x13   : > { %v154_v10 = vld [vmem:[%s139_s13 + $0x30] sm:$0xff]  ;;  %v155_v12 = vld [vmem:[%s139_s13 + $0x38] sm:$0xff] }
  0x14   : > { %v157_v5 = vadd.f32 %v156_v3, %v150_v2 }
  0x16   : > { %v158_v7 = vadd.f32 %v157_v5, %v151_v4 }
  0x18   : > { %v159_v9 = vadd.f32 %v158_v7, %v152_v6 }
  0x1a   : > { %v160_v11 = vadd.f32 %v159_v9, %v153_v8 }
  0x1c   : > { %v161_v13 = vadd.f32 %v160_v11, %v154_v10 }
  0x1e   : > { %v162_v14 = vadd.f32 %v161_v13, %v155_v12 }
  0x20   : > { %v163_v15 = vrot.slane %v162_v14, 4 }
  0x22   : > { %v164_v16 = vadd.f32 %v163_v15, %v162_v14 }
  0x24   : > { %v165_v17 = vrot.slane %v164_v16, 2 }
  0x26   : > { %v166_v18 = vadd.f32 %v165_v17, %v164_v16 }
  0x28   : > { %v167_v19 = vrot.slane %v166_v18, 1 }
  0x2a   : > { %v168_v20 = vadd.f32 %v167_v19, %v166_v18 }
  0x2c   : > { %v170_v21 = vmul.f32 0.015625, %v168_v20 }
  0x2e   : > { %v171_v22 = vsub.f32 %v148_v0, %v170_v21  ;;  %v172_v23 = vsub.f32 %v149_v1, %v170_v21  ;;  %v173_v24 = vsub.f32 %v150_v2, %v170_v21  ;;  %v174_v25 = vsub.f32 %v151_v4, %v170_v21 }
  0x2f   : > { %v175_v26 = vsub.f32 %v152_v6, %v170_v21  ;;  %v176_v30 = vsub.f32 %v153_v8, %v170_v21  ;;  %v177_v33 = vsub.f32 %v154_v10, %v170_v21  ;;  %v178_v36 = vsub.f32 %v155_v12, %v170_v21 }
  0x30   : > { %v179_v27 = vmul.f32 %v171_v22, %v171_v22  ;;  %v180_v28 = vmul.f32 %v172_v23, %v172_v23  ;;  %v181_v29 = vmul.f32 %v173_v24, %v173_v24  ;;  %v182_v31 = vmul.f32 %v174_v25, %v174_v25 }
  0x31   : > { %v183_v34 = vmul.f32 %v175_v26, %v175_v26  ;;  %v184_v37 = vmul.f32 %v176_v30, %v176_v30  ;;  %v185_v39 = vmul.f32 %v177_v33, %v177_v33  ;;  %v186_v41 = vmul.f32 %v178_v36, %v178_v36 }
  0x32   : > { %v187_v32 = vadd.f32 %v180_v28, %v179_v27 }
  0x34   : > { %v188_v35 = vadd.f32 %v187_v32, %v181_v29 }
  0x36   : > { %v189_v38 = vadd.f32 %v188_v35, %v182_v31 }
  0x38   : > { %v190_v40 = vadd.f32 %v189_v38, %v183_v34 }
  0x3a   : > { %v191_v42 = vadd.f32 %v190_v40, %v184_v37 }
  0x3c   : > { %v192_v43 = vadd.f32 %v191_v42, %v185_v39 }
  0x3e   : > { %v193_v44 = vadd.f32 %v192_v43, %v186_v41 }
  0x40   : > { %v194_v45 = vrot.slane %v193_v44, 4 }
  0x42   : > { %v195_v46 = vadd.f32 %v194_v45, %v193_v44 }
  0x44   : > { %v196_v47 = vrot.slane %v195_v46, 2 }
  0x46   : > { %v197_v48 = vadd.f32 %v196_v47, %v195_v46 }
  0x48   : > { %v198_v49 = vrot.slane %v197_v48, 1 }
  0x4a   : > { %v199_v50 = vadd.f32 %v198_v49, %v197_v48 }
  0x4c   : > { %v200_v51 = vmul.f32 0.015625, %v199_v50 }
  0x4e   : > { %v201_v52 = vadd.f32 1e-05, %v200_v51 }
  0x50   : > { %363 = vrsqrt.f32 %v201_v52 }
  0x5a   : > { %v364_v53 = vpop.eup %363 }
  0x5b   : > { %v203_v54 = vmul.f32 %v364_v53, %v171_v22  ;;  %v204_v55 = vmul.f32 %v364_v53, %v172_v23  ;;  %v205_v56 = vmul.f32 %v364_v53, %v173_v24  ;;  %v206_v57 = vmul.f32 %v364_v53, %v174_v25 }
  0x5c   : > { %v207_v58 = vmul.f32 %v364_v53, %v175_v26  ;;  %v208_v59 = vmul.f32 %v364_v53, %v176_v30  ;;  %v209_v60 = vmul.f32 %v364_v53, %v177_v33  ;;  %v210_v61 = vmul.f32 %v364_v53, %v178_v36 }
  0x5d   : > { %vm211_vm0 = vcmp.gt.f32.partialorder %v203_v54, 0.0  ;;  %v219_v62 = vmul.f32 0.2, %v203_v54  ;;  %vm212_vm1 = vcmp.gt.f32.partialorder %v204_v55, 0.0  ;;  %v220_v63 = vmul.f32 0.2, %v204_v55 }
  0x5e   : > { %vm213_vm2 = vcmp.gt.f32.partialorder %v205_v56, 0.0  ;;  %v221_v0 = vmul.f32 0.2, %v205_v56  ;;  %vm214_vm3 = vcmp.gt.f32.partialorder %v206_v57, 0.0  ;;  %v222_v1 = vmul.f32 0.2, %v206_v57 }
  0x5f   : > { %v227_v2 = vsel %vm211_vm0, %v203_v54, %v219_v62  ;;  %v228_v3 = vsel %vm212_vm1, %v204_v55, %v220_v63  ;;  %vm215_vm4 = vcmp.gt.f32.partialorder %v207_v58, 0.0  ;;  %v223_v4 = vmul.f32 0.2, %v207_v58 }
  0x60   : > { %235 = vst [vmem:[%s430_s16] sm:$0xff] %v227_v2  ;;  %236 = vst [vmem:[%s430_s16 + $0x8] sm:$0xff] %v228_v3  ;;  %v229_v5 = vsel %vm213_vm2, %v205_v56, %v221_v0  ;;  %v230_v6 = vsel %vm214_vm3, %v206_v57, %v222_v1  ;;  %vm216_vm5 = vcmp.gt.f32.partialorder %v208_v59, 0.0  ;;  %v224_v7 = vmul.f32 0.2, %v208_v59 }
  0x61   : > { %237 = vst [vmem:[%s430_s16 + $0x10] sm:$0xff] %v229_v5  ;;  %238 = vst [vmem:[%s430_s16 + $0x18] sm:$0xff] %v230_v6  ;;  %v231_v8 = vsel %vm215_vm4, %v207_v58, %v223_v4  ;;  %vm217_vm6 = vcmp.gt.f32.partialorder %v209_v60, 0.0  ;;  %v225_v9 = vmul.f32 0.2, %v209_v60  ;;  %vm218_vm7 = vcmp.gt.f32.partialorder %v210_v61, 0.0 }
  0x62   : > { %239 = vst [vmem:[%s430_s16 + $0x20] sm:$0xff] %v231_v8  ;;  %v232_v10 = vsel %vm216_vm5, %v208_v59, %v224_v7  ;;  %v226_v11 = vmul.f32 0.2, %v210_v61 }
  0x63   : > { %240 = vst [vmem:[%s430_s16 + $0x28] sm:$0xff] %v232_v10  ;;  %v233_v12 = vsel %vm217_vm6, %v209_v60, %v225_v9 }
  0x64   : > { %241 = vst [vmem:[%s430_s16 + $0x30] sm:$0xff] %v233_v12  ;;  %v234_v13 = vsel %vm218_vm7, %v210_v61, %v226_v11 }
  0x65   : > { %242 = vst [vmem:[%s430_s16 + $0x38] sm:$0xff] %v234_v13 }
  0x66 PF: > { %s11_s8 = sadd.s32 1, %s387_s8   ;;  %s451_s6 = smov %s383_s7 }
  0x67   : > { %p8_p5 = scmp.ge.s32.totalorder %s11_s8, 4   ;;  %s452_s7 = smov %s454_s9 }
  0x69   :  { %10 = sbr.rel (!%p8_p5) target bundleno = 2 (0x2), region = 54 }

// kernel: discriminator_forward.12
= control target key start
LH: loop header
LB: loop body
LE: loop exit
PB: predicated region body
PF: predicated region fallthrough
CT: control target
= control target key end

     0   :  { %s1927_s12 = smov 0   ;;  %s2268_s0 = inlined_call_operand.vmem [shape: f32[2,10,10,64], index: 0, kind: input, shape index: {}]   ;;  %s2269_s1 = inlined_call_operand.vmem [shape: bf16[9,64,128], index: 1, kind: input, shape index: {}]   ;;  %s2270_s2 = inlined_call_operand.vmem [shape: f32[1,128], index: 2, kind: input, shape index: {}]   ;;  %s2271_s3 = inlined_call_operand.vmem [shape: f32[2,64,128], index: 3, kind: output, shape index: {}]  }
   0x1 LB: > { %s1418_s13 = sadd.s32 4294967295, %s1905_s12   ;;  %p1422_p0 = scmp.ge.s32.totalorder %s1905_s12, 1  ;;  %s1905_s12 = sphi %s1927_s12, %s13_s12  }
   0x2   : > { %p137_p1 = scmp.lt.s32.totalorder %s1905_s12, 3 }
   0x4   : > { %p138_p2 = pnand %p1422_p0, %p137_p1 }
   0x5   : > { %v1863_v0 = vld [vmem:[%s2269_s1 + $0x20] sm:$0xff] (!%p138_p2)   ;;  %p161_p3 = scmp.lt.s32.totalorder (!%p138_p2), %s1418_s13, 1  ;;  %v1865_v2 = vld [vmem:[%s2269_s1 + $0x28] sm:$0xff] (!%p138_p2)   ;;  %v1867_v4 = vld [vmem:[%s2269_s1 + $0x30] sm:$0xff] (!%p138_p2)   ;;  %vm220_vm0 = vcmask (!%p138_p2), 1046528   ;;  %vm290_vm1 = vcmask (!%p138_p2), 523264  }
   0x6   : > { %141 = sbr.rel (%p138_p2) target bundleno = 310 (0x136), region = 32  ;;  %v1864_v1 = vld [vmem:[%s2269_s1 + $0x80] sm:$0xff] (!%p138_p2)   ;;  %1638 = vmatprep.subr.bf16.mxu1 (!%p138_p2), %v1863_v0  ;;  %v1866_v3 = vld [vmem:[%s2269_s1 + $0x88] sm:$0xff] (!%p138_p2)   ;;  %v1868_v5 = vld [vmem:[%s2269_s1 + $0x90] sm:$0xff] (!%p138_p2)   ;;  %vm469_vm2 = vcmask (!%p138_p2), 1045504  }
   0x7   : > { %1702 = vmatprep.subr.bf16.mxu0 (!%p138_p2), %v1864_v1  ;;  %1639 = vmatpush3.bf16.msra.mxu1 (!%p138_p2), %v1863_v0  ;;  %v1869_v6 = vld [vmem:[%s2269_s1 + $0x38] sm:$0xff] (!%p138_p2)   ;;  %v1871_v32 = vld [vmem:[%s2269_s1] sm:$0xff] (!%p138_p2)   ;;  %v1873_v37 = vld [vmem:[%s2269_s1 + $0x8] sm:$0xff] (!%p138_p2)  }
   0x8   : > { %1703 = vmatpush3.bf16.msra.mxu0 (!%p138_p2), %v1864_v1  ;;  %1640 = vmatprep.subr.bf16.mxu1 (!%p138_p2), %v1865_v2  ;;  %v1870_v10 = vld [vmem:[%s2269_s1 + $0x98] sm:$0xff] (!%p138_p2)   ;;  %v1872_v33 = vld [vmem:[%s2269_s1 + $0xa0] sm:$0xff] (!%p138_p2)   ;;  %v1874_v43 = vld [vmem:[%s2269_s1 + $0xa8] sm:$0xff] (!%p138_p2)  }
   0x9   : > { %1704 = vmatprep.subr.bf16.mxu0 (!%p138_p2), %v1866_v3  ;;  %v1875_v60 = vld [vmem:[%s2269_s1 + $0x10] sm:$0xff] (!%p138_p2)  }
   0xb   : > { %1641 = vmatpush3.bf16.msra.mxu1 (!%p138_p2), %v1865_v2  ;;  %v1876_v2 = vld [vmem:[%s2269_s1 + $0xb0] sm:$0xff] (!%p138_p2)  }
   0xc   : > { %1705 = vmatpush3.bf16.msra.mxu0 (!%p138_p2), %v1866_v3  ;;  %1642 = vmatprep.subr.bf16.mxu1 (!%p138_p2), %v1867_v4 }
   0xd   : > { %s2273_s13 = smov (!%p161_p3, %s1418_s13), 1  ;;  %1706 = vmatprep.subr.bf16.mxu0 %v1868_v5 }
   0xe   : > { %s1854_s24 = smul.u32 160, %s2273_s13  ;;  %s1565_s16 = sshll.u32 %s2273_s13, 6 }
   0xf   : > { %1643 = vmatpush3.bf16.msra.mxu1 %v1867_v4  ;;  %s170_s21 = scalar_lea.vmem %s2271_s3, %s1565_s16 }
  0x10   : > { %s1959_s29 = scalar_lea.vmem %s2268_s0, %s1854_s24  ;;  %1707 = vmatpush3.bf16.msra.mxu0 %v1868_v5  ;;  %1644 = vmatprep.subr.bf16.mxu1 %v1869_v6 }
  0x11   : > { %v1965_v7 = vld [vmem:[%s1959_s29] sm:$0xff]  ;;  %v1968_v8 = vld [vmem:[%s1959_s29 + $0x8] sm:$0x3]  ;;  %v1971_v9 = vld [vmem:[%s1959_s29 + $0x10] sm:$0xff]  ;;  %1708 = vmatprep.subr.bf16.mxu0 %v1870_v10 }
  0x12   : > { %v1977_v11 = vld [vmem:[%s1959_s29 + $0x18] sm:$0x3]  ;;  %v221_v12 = vrot.slane %v1965_v7, 1  ;;  %v222_v13 = vrot.slane %v1968_v8, 1  ;;  %v224_v14 = vrot.slane %v1971_v9, 1  ;;  %v1984_v16 = vld [vmem:[%s1959_s29 + $0x20] sm:$0xff] }
  0x13   : > { %v225_v15 = vrot.slane %v1977_v11, 1  ;;  %v1987_v17 = vld [vmem:[%s1959_s29 + $0x28] sm:$0x3]  ;;  %v1991_v19 = vld [vmem:[%s1959_s29 + $0x30] sm:$0xff]  ;;  %v1994_v20 = vld [vmem:[%s1959_s29 + $0x38] sm:$0x3]  ;;  %1645 = vmatpush3.bf16.msra.mxu1 %v1869_v6 }
  0x14   : > { %v223_v18 = vsel %vm220_vm0, %v221_v12, %v222_v13  ;;  %v1997_v21 = vld [vmem:[%s1959_s29 + $0x40] sm:$0xff]  ;;  %v227_v22 = vrot.slane %v1984_v16, 1  ;;  %v228_v23 = vrot.slane %v1987_v17, 1  ;;  %v2003_v25 = vld [vmem:[%s1959_s29 + $0x48] sm:$0x3]  ;;  %v230_v26 = vrot.slane %v1991_v19, 1  ;;  %1709 = vmatpush3.bf16.msra.mxu0 %v1870_v10  ;;  %1654 = vmatprep.subr.bf16.mxu1 %v1871_v32 }
  0x15   : > { %v226_v24 = vsel %vm220_vm0, %v224_v14, %v225_v15  ;;  %v231_v27 = vrot.slane %v1994_v20, 1  ;;  %v233_v30 = vrot.slane %v1997_v21, 1  ;;  %v234_v31 = vrot.slane %v2003_v25, 1  ;;  %1718 = vmatprep.subr.bf16.mxu0 %v1872_v33  ;;  %v2031_v44 = vld [vmem:[%s1959_s29 + $0x50] sm:$0xff]  ;;  %v2034_v45 = vld [vmem:[%s1959_s29 + $0x58] sm:$0x3] }
  0x16   : > { %v253_v28 = vpack.c.bf16 %v226_v24, %v223_v18  ;;  %v229_v29 = vsel %vm220_vm0, %v227_v22, %v228_v23  ;;  %v474_v34 = vrot.slane %v1977_v11, 2  ;;  %v477_v36 = vrot.slane %v1987_v17, 2  ;;  %v2037_v46 = vld [vmem:[%s1959_s29 + $0x60] sm:$0xff]  ;;  %v2047_v51 = vld [vmem:[%s1959_s29 + $0x68] sm:$0x3]  ;;  %v2051_v53 = vld [vmem:[%s1959_s29 + $0x70] sm:$0xff] }
  0x17   : > { %v232_v35 = vsel %vm220_vm0, %v230_v26, %v231_v27  ;;  %v235_v38 = vsel %vm220_vm0, %v233_v30, %v234_v31  ;;  %v480_v40 = vrot.slane %v1994_v20, 2  ;;  %v752_v41 = vpack.c.bf16 %v229_v29, %v226_v24  ;;  %v2056_v55 = vld [vmem:[%s1959_s29 + $0x78] sm:$0x3]  ;;  %v2066_v61 = vld [vmem:[%s1959_s29 + $0x80] sm:$0xff]  ;;  %v2072_v0 = vld [vmem:[%s1959_s29 + $0x88] sm:$0x3] }
  0x18   : > { %1646 = vmatprep.mubr.msk.bf16.mxu1 %vm290_vm1, %v253_v28  ;;  %v2024_v39 = vpack.c.bf16 %v232_v35, %v229_v29  ;;  %v753_v42 = vpack.c.bf16 %v235_v38, %v232_v35  ;;  %v473_v47 = vrot.slane %v1971_v9, 2  ;;  %v476_v48 = vrot.slane %v1984_v16, 2  ;;  %v1877_v14 = vld [vmem:[%s2269_s1 + $0x18] sm:$0xff]   ;;  %v1879_v30 = vld [vmem:[%s2269_s1 + $0x40] sm:$0xff]   ;;  %v1881_v20 = vld [vmem:[%s2269_s1 + $0x48] sm:$0xff]  }
  0x19   : > { %1710 = vmatprep.mubr.msk.bf16.mxu0 %vm290_vm1, %v752_v41  ;;  %v236_v49 = vrot.slane %v2031_v44, 1  ;;  %v237_v50 = vrot.slane %v2034_v45, 1  ;;  %v239_v52 = vrot.slane %v2037_v46, 1  ;;  %v240_v54 = vrot.slane %v2047_v51, 1  ;;  %v1878_v18 = vld [vmem:[%s2269_s1 + $0xb8] sm:$0xff]   ;;  %v1880_v31 = vld [vmem:[%s2269_s1 + $0xc0] sm:$0xff]  }
  0x1a   : > { %1647 = vmatmul.mubr.msk.bf16.vlgmr.msra.gmra.mrb[0].mxu1 %vm290_vm1, %v2024_v39  ;;  %1711 = vmatmul.mubr.msk.bf16.vlgmr.msra.gmra.mrb[0].mxu0 %vm290_vm1, %v753_v42  ;;  %v242_v56 = vrot.slane %v2051_v53, 1  ;;  %v483_v57 = vrot.slane %v2003_v25, 2  ;;  %v243_v59 = vrot.slane %v2056_v55, 1  ;;  %v748_v1 = vrot.slane %v2066_v61, 1  ;;  %v1882_v41 = vld [vmem:[%s2269_s1 + $0xc8] sm:$0xff]  }
  0x1b   : > { %1655 = vmatpush3.bf16.msra.mxu1 %v1871_v32  ;;  %1719 = vmatpush3.bf16.msra.mxu0 %v1872_v33  ;;  %v238_v58 = vsel %vm220_vm0, %v236_v49, %v237_v50  ;;  %v241_v63 = vsel %vm220_vm0, %v239_v52, %v240_v54  ;;  %v749_v5 = vrot.slane %v2072_v0, 1  ;;  %v479_v6 = vrot.slane %v1991_v19, 2  ;;  %v1885_v54 = vld [vmem:[%s2269_s1 + $0x58] sm:$0xff]  }
  0x1c   : > { %1656 = vmatprep.subr.bf16.mxu1 %v1873_v37  ;;  %1720 = vmatprep.subr.bf16.mxu0 %v1874_v43  ;;  %v2068_v62 = vpack.c.bf16 %v238_v58, %v235_v38  ;;  %v754_v3 = vpack.c.bf16 %v241_v63, %v238_v58  ;;  %v244_v4 = vsel %vm220_vm0, %v242_v56, %v243_v59  ;;  %v482_v15 = vrot.slane %v1997_v21, 2  ;;  %v1888_v58 = vld [vmem:[%s2269_s1 + $0xe0] sm:$0xff]  }
  0x1d   : > { %v2083_v10 = vpack.c.bf16 %v244_v4, %v241_v63  ;;  %v2086_v11 = vsel %vm469_vm2, %v473_v47, %v474_v34  ;;  %v2089_v12 = vsel %vm469_vm2, %v476_v48, %v477_v36  ;;  %v2093_v13 = vsel %vm220_vm0, %v748_v1, %v749_v5  ;;  %v1883_v48 = vld [vmem:[%s2269_s1 + $0x50] sm:$0xff]   ;;  %v1890_v63 = vld [vmem:[%s2269_s1 + $0xe8] sm:$0xff]  }
  0x1e   : > { %1650 = vmatprep.mubr.msk.bf16.mxu1 %vm290_vm1, %v2068_v62  ;;  %1714 = vmatprep.mubr.msk.bf16.mxu0 %vm290_vm1, %v754_v3  ;;  %v755_v17 = vpack.c.bf16 %v2093_v13, %v244_v4  ;;  %v192_v22 = vpack.c.bf16 %v1971_v9, %v1965_v7  ;;  %v878_v23 = vpack.c.bf16 %v2089_v12, %v2086_v11  ;;  %v485_v24 = vrot.slane %v2031_v44, 2  ;;  %v190_v1 = vld [vmem:[%s1959_s29 + $0x90] sm:$0xff] }
  0x1f   : > { %1657 = vmatpush3.bf16.msra.mxu1 %v1873_v37  ;;  %1721 = vmatpush3.bf16.msra.mxu0 %v1874_v43  ;;  %v486_v25 = vrot.slane %v2034_v45, 2  ;;  %v488_v26 = vrot.slane %v2037_v46, 2  ;;  %v489_v27 = vrot.slane %v2047_v51, 2  ;;  %v481_v28 = vsel %vm469_vm2, %v479_v6, %v480_v40  ;;  %v1892_v3 = vld [vmem:[%s2269_s1 + $0xf0] sm:$0xff]   ;;  %v1893_v6 = vld [vmem:[%s2269_s1 + $0x78] sm:$0xff]  }
  0x20   : > { %1658 = vmatprep.subr.bf16.mxu1 %v1875_v60  ;;  %1722 = vmatprep.subr.bf16.mxu0 %v1876_v2  ;;  %v2118_v29 = vsel %vm469_vm2, %v482_v15, %v483_v57  ;;  %v193_v32 = vpack.c.bf16 %v1991_v19, %v1984_v16  ;;  %v491_v33 = vrot.slane %v2051_v53, 2  ;;  %v492_v34 = vrot.slane %v2056_v55, 2  ;;  %v1886_v55 = vld [vmem:[%s2269_s1 + $0xd8] sm:$0xff]   ;;  %v1887_v57 = vld [vmem:[%s2269_s1 + $0x60] sm:$0xff]  }
  0x21   : > { %v879_v35 = vpack.c.bf16 %v2118_v29, %v481_v28  ;;  %v487_v36 = vsel %vm469_vm2, %v485_v24, %v486_v25  ;;  %v490_v37 = vsel %vm469_vm2, %v488_v26, %v489_v27  ;;  %v874_v38 = vrot.slane %v2066_v61, 2  ;;  %v191_v15 = vld [vmem:[%s1959_s29 + $0x98] sm:$0x3] }
  0x22   : > { %1651 = vmatmul.mubr.msk.bf16.gmra.mrb[4].mxu1 %vm290_vm1, %v2083_v10  ;;  %1715 = vmatmul.mubr.msk.bf16.gmra.mrb[4].mxu0 %vm290_vm1, %v755_v17  ;;  %v875_v40 = vrot.slane %v2072_v0, 2  ;;  %v194_v42 = vpack.c.bf16 %v2031_v44, %v1997_v21  ;;  %v470_v43 = vrot.slane %v1965_v7, 2  ;;  %v471_v45 = vrot.slane %v1968_v8, 2  ;;  %v1884_v7 = vld [vmem:[%s2269_s1 + $0xd0] sm:$0xff]  }
  0x23   : > { %1659 = vmatpush3.bf16.msra.mxu1 %v1875_v60  ;;  %1723 = vmatpush3.bf16.msra.mxu0 %v1876_v2  ;;  %v880_v47 = vpack.c.bf16 %v490_v37, %v487_v36  ;;  %v493_v49 = vsel %vm469_vm2, %v491_v33, %v492_v34  ;;  %v195_v8 = vpack.c.bf16 %v2051_v53, %v2037_v46  ;;  %v1889_v60 = vld [vmem:[%s2269_s1 + $0x68] sm:$0xff]   ;;  %v1891_v2 = vld [vmem:[%s2269_s1 + $0x70] sm:$0xff]  }
  0x24   : > { %1660 = vmatprep.subr.bf16.mxu1 %v1877_v14  ;;  %1724 = vmatprep.subr.bf16.mxu0 %v1878_v18  ;;  %v2154_v50 = vsel %vm469_vm2, %v874_v38, %v875_v40  ;;  %v472_v51 = vsel %vm469_vm2, %v470_v43, %v471_v45  ;;  %v2182_v59 = vpack.c.bf16 %v481_v28, %v2089_v12 }
  0x25   : > { %1662 = vmatprep.mubr.msk.bf16.mxu1 %vm290_vm1, %v192_v22  ;;  %1726 = vmatprep.mubr.msk.bf16.mxu0 %vm290_vm1, %v878_v23  ;;  %v881_v52 = vpack.c.bf16 %v2154_v50, %v493_v49  ;;  %v502_v56 = vpack.c.bf16 %v2086_v11, %v472_v51  ;;  %v2192_v0 = vpack.c.bf16 %v487_v36, %v2118_v29  ;;  %v1894_v11 = vld [vmem:[%s2269_s1 + $0xf8] sm:$0xff]  }
  0x26   : > { %v505_v4 = vpack.c.bf16 %v493_v49, %v490_v37  ;;  %v1000_v5 = vpack.c.bf16 %v190_v1, %v2066_v61  ;;  %v624_v12 = vpack.c.bf16 %v1984_v16, %v1971_v9  ;;  %v625_v17 = vpack.c.bf16 %v1997_v21, %v1991_v19  ;;  %v1896_v9 = vld [vmem:[%s2269_s1 + $0x108] sm:$0xff]   ;;  %v1897_v21 = vld [vmem:[%s2269_s1 + $0x110] sm:$0xff]   ;;  %v1898_v23 = vld [vmem:[%s2269_s1 + $0x118] sm:$0xff]  }
  0x27   : > { %1661 = vmatpush3.bf16.msra.mxu1 %v1877_v14  ;;  %1725 = vmatpush3.bf16.msra.mxu0 %v1878_v18  ;;  %v1895_v14 = vld [vmem:[%s2269_s1 + $0x100] sm:$0xff]   ;;  %v1112_v16 = vrot.slane %v190_v1, 1  ;;  %v1113_v18 = vrot.slane %v191_v15, 1  ;;  %v626_v22 = vpack.c.bf16 %v2037_v46, %v2031_v44  ;;  %v1226_v44 = vrot.slane %v190_v1, 2 }
  0x28   : > { %1670 = vmatprep.subr.bf16.mxu1 %v1879_v30  ;;  %1734 = vmatprep.subr.bf16.mxu0 %v1880_v31  ;;  %v1227_v46 = vrot.slane %v191_v15, 2  ;;  %v1562_v37 = vld [vmem:[%s2270_s2] ss:$0 sm:$0xff] }
  0x29   : > { %v1114_v19 = vsel %vm220_vm0, %v1112_v16, %v1113_v18 }
  0x2a   : > { %1663 = vmatmul.mubr.msk.bf16.vlgmr.msra.gmra.mrb[0].mxu1 %vm290_vm1, %v193_v32  ;;  %1727 = vmatmul.mubr.msk.bf16.vlgmr.msra.gmra.mrb[0].mxu0 %vm290_vm1, %v879_v35  ;;  %v1228_v24 = vsel %vm469_vm2, %v1226_v44, %v1227_v46 }
  0x2b   : > { %1671 = vmatpush3.bf16.msra.mxu1 %v1879_v30  ;;  %1735 = vmatpush3.bf16.msra.mxu0 %v1880_v31 }
  0x2c   : > { %1672 = vmatprep.subr.bf16.mxu1 %v1881_v20  ;;  %1736 = vmatprep.subr.bf16.mxu0 %v1882_v41 }
  0x2d   : > { %1666 = vmatprep.mubr.msk.bf16.mxu1 %vm290_vm1, %v194_v42  ;;  %1730 = vmatprep.mubr.msk.bf16.mxu0 %vm290_vm1, %v880_v47 }
  0x2f   : > { %1673 = vmatpush3.bf16.msra.mxu1 %v1881_v20  ;;  %1737 = vmatpush3.bf16.msra.mxu0 %v1882_v41 }
  0x30   : > { %1674 = vmatprep.subr.bf16.mxu1 %v1883_v48  ;;  %1738 = vmatprep.subr.bf16.mxu0 %v1884_v7 }
  0x32   : > { %1667 = vmatmul.mubr.msk.bf16.gmra.mrb[4].mxu1 %vm290_vm1, %v195_v8  ;;  %1731 = vmatmul.mubr.msk.bf16.gmra.mrb[4].mxu0 %vm290_vm1, %v881_v52 }
  0x33   : > { %1675 = vmatpush3.bf16.msra.mxu1 %v1883_v48  ;;  %1739 = vmatpush3.bf16.msra.mxu0 %v1884_v7 }
  0x34   : > { %1676 = vmatprep.subr.bf16.mxu1 %v1885_v54  ;;  %1740 = vmatprep.subr.bf16.mxu0 %v1886_v55 }
  0x35   : > { %1678 = vmatprep.mubr.msk.bf16.mxu1 %vm290_vm1, %v502_v56  ;;  %1742 = vmatprep.mubr.msk.bf16.mxu0 %vm290_vm1, %v193_v32 }
  0x37   : > { %1677 = vmatpush3.bf16.msra.mxu1 %v1885_v54  ;;  %1741 = vmatpush3.bf16.msra.mxu0 %v1886_v55 }
  0x38   : > { %1686 = vmatprep.subr.bf16.mxu1 %v1887_v57  ;;  %1750 = vmatprep.subr.bf16.mxu0 %v1888_v58 }
  0x3a   : > { %1679 = vmatmul.mubr.msk.bf16.vlgmr.msra.gmra.mrb[0].mxu1 %vm290_vm1, %v2182_v59  ;;  %1743 = vmatmul.mubr.msk.bf16.vlgmr.msra.gmra.mrb[0].mxu0 %vm290_vm1, %v194_v42 }
  0x3b   : > { %1687 = vmatpush3.bf16.msra.mxu1 %v1887_v57  ;;  %1751 = vmatpush3.bf16.msra.mxu0 %v1888_v58 }
  0x3c   : > { %1688 = vmatprep.subr.bf16.mxu1 %v1889_v60  ;;  %1752 = vmatprep.subr.bf16.mxu0 %v1890_v63 }
  0x3d   : > { %1682 = vmatprep.mubr.msk.bf16.mxu1 %vm290_vm1, %v2192_v0  ;;  %1746 = vmatprep.mubr.msk.bf16.mxu0 %vm290_vm1, %v195_v8 }
  0x3f   : > { %1689 = vmatpush3.bf16.msra.mxu1 %v1889_v60  ;;  %1753 = vmatpush3.bf16.msra.mxu0 %v1890_v63 }
  0x40   : > { %1690 = vmatprep.subr.bf16.mxu1 %v1891_v2  ;;  %1754 = vmatprep.subr.bf16.mxu0 %v1892_v3 }
  0x42   : > { %1683 = vmatmul.mubr.msk.bf16.gmra.mrb[4].mxu1 %vm290_vm1, %v505_v4  ;;  %1747 = vmatmul.mubr.msk.bf16.gmra.mrb[4].mxu0 %vm290_vm1, %v1000_v5 }
  0x43   : > { %1691 = vmatpush3.bf16.msra.mxu1 %v1891_v2  ;;  %1755 = vmatpush3.bf16.msra.mxu0 %v1892_v3 }
  0x44   : > { %1692 = vmatprep.subr.bf16.mxu1 %v1893_v6  ;;  %1756 = vmatprep.subr.bf16.mxu0 %v1894_v11 }
  0x45   : > { %1694 = vmatprep.mubr.msk.bf16.mxu1 %vm290_vm1, %v624_v12  ;;  %1758 = vmatprep.mubr.msk.bf16.mxu0 %vm290_vm1, %v2024_v39  ;;  %v627_v39 = vpack.c.bf16 %v2066_v61, %v2051_v53  ;;  %v1230_v53 = vpack.c.bf16 %v1228_v24, %v2154_v50 }
  0x47   : > { %1693 = vmatpush3.bf16.msra.mxu1 %v1893_v6  ;;  %1757 = vmatpush3.bf16.msra.mxu0 %v1894_v11 }
  0x48   : > { %1782 = vmatprep.subr.bf16.mxu1 %v1895_v14  ;;  %1766 = vmatprep.subr.bf16.mxu0 %v1895_v14 }
  0x4a   : > { %1695 = vmatmul.mubr.msk.bf16.vlgmr.msra.gmra.mrb[0].mxu1 %vm290_vm1, %v625_v17  ;;  %1759 = vmatmul.mubr.msk.bf16.vlgmr.msra.gmra.mrb[0].mxu0 %vm290_vm1, %v2068_v62  ;;  %v1116_v62 = vpack.c.bf16 %v1114_v19, %v2093_v13 }
  0x4b   : > { %1786 = vmatpush3.bf16.msra.mxu1 %v1895_v14  ;;  %1767 = vmatpush3.bf16.msra.mxu0 %v1895_v14 }
  0x4c   : > { %1783 = vmatprep.subr.bf16.mxu1 %v1896_v9  ;;  %1768 = vmatprep.subr.bf16.mxu0 %v1896_v9 }
  0x4d   : > { %1698 = vmatprep.mubr.msk.bf16.mxu1 %vm290_vm1, %v626_v22  ;;  %1762 = vmatprep.mubr.msk.bf16.mxu0 %vm290_vm1, %v2083_v10 }
  0x4f   : > { %1787 = vmatpush3.bf16.msra.mxu1 %v1896_v9  ;;  %1769 = vmatpush3.bf16.msra.mxu0 %v1896_v9 }
  0x50   : > { %1784 = vmatprep.subr.bf16.mxu1 %v1897_v21  ;;  %1770 = vmatprep.subr.bf16.mxu0 %v1897_v21 }
  0x52   : > { %1699 = vmatmul.mubr.msk.bf16.gmra.mrb[4].mxu1 %vm290_vm1, %v627_v39  ;;  %1763 = vmatmul.mubr.msk.bf16.gmra.mrb[4].mxu0 %vm290_vm1, %v1116_v62 }
  0x53   : > { %1788 = vmatpush3.bf16.msra.mxu1 %v1897_v21  ;;  %1771 = vmatpush3.bf16.msra.mxu0 %v1897_v21 }
  0x54   : > { %1785 = vmatprep.subr.bf16.mxu1 %v1898_v23  ;;  %1772 = vmatprep.subr.bf16.mxu0 %v1898_v23 }
  0x55   : > { %1774 = vmatprep.mubr.msk.bf16.mxu0 %vm290_vm1, %v2182_v59  ;;  %1778 = vmatprep.mubr.msk.bf16.mxu1 %vm290_vm1, %v505_v4 }
  0x57   : > { %1789 = vmatpush3.bf16.msra.mxu1 %v1898_v23  ;;  %1773 = vmatpush3.bf16.msra.mxu0 %v1898_v23 }
  0x5a   : > { %1779 = vmatmul.mubr.msk.bf16.vlgmr.msra.gmra.mrb[8].mxu1 %vm290_vm1, %v1230_v53  ;;  %1775 = vmatmul.mubr.msk.bf16.vlgmr.msra.gmra.mrb[0].mxu0 %vm290_vm1, %v2192_v0 }
 0x11d   : > { %v1696_v61 = vpop.f32.mrb[0].mxu1 }
 0x11e   : > { %v707_v10 = vpop.f32.mrb[1].mxu1 }
 0x11f   : > { %v1697_v13 = vpop.f32.mrb[2].mxu1 }
 0x120   : > { %v710_v25 = vpop.f32.mrb[3].mxu1 }
 0x125   : > { %v1700_v26 = vpop.f32.mrb[4].mxu1  ;;  %v1764_v27 = vpop.f32.mrb[4].mxu0 }
 0x126   : > { %v723_v28 = vpop.f32.mrb[5].mxu1  ;;  %v1794_v29 = vadd.f32 %v1764_v27, %v1700_v26  ;;  %v1203_v30 = vpop.f32.mrb[5].mxu0 }
 0x127   : > { %v1701_v31 = vpop.f32.mrb[6].mxu1  ;;  %v1796_v32 = vadd.f32 %v1203_v30, %v723_v28  ;;  %v1765_v20 = vpop.f32.mrb[6].mxu0 }
 0x128   : > { %v726_v33 = vpop.f32.mrb[7].mxu1  ;;  %v1798_v34 = vadd.f32 %v1765_v20, %v1701_v31  ;;  %v1206_v35 = vpop.f32.mrb[7].mxu0 }
 0x129   : > { %v1800_v36 = vadd.f32 %v1206_v35, %v726_v33 }
 0x12d   : > { %v1780_v38 = vpop.f32.mrb[8].mxu1  ;;  %v1776_v40 = vpop.f32.mrb[0].mxu0 }
 0x12e   : > { %v1795_v41 = vadd.f32 %v1794_v29, %v1780_v38  ;;  %v1317_v42 = vpop.f32.mrb[9].mxu1  ;;  %v1790_v43 = vadd.f32 %v1776_v40, %v1696_v61  ;;  %v1301_v45 = vpop.f32.mrb[1].mxu0 }
 0x12f   : > { %v1797_v47 = vadd.f32 %v1796_v32, %v1317_v42  ;;  %v1781_v48 = vpop.f32.mrb[10].mxu1  ;;  %v1791_v50 = vadd.f32 %v1301_v45, %v707_v10  ;;  %v1777_v7 = vpop.f32.mrb[2].mxu0 }
 0x130   : > { %v1353_v49 = vadd.f32 %v1795_v41, %v1562_v37  ;;  %v1799_v8 = vadd.f32 %v1798_v34, %v1781_v48  ;;  %v1320_v51 = vpop.f32.mrb[11].mxu1  ;;  %v1349_v52 = vadd.f32 %v1790_v43, %v1562_v37  ;;  %v1792_v55 = vadd.f32 %v1777_v7, %v1697_v13  ;;  %v1304_v56 = vpop.f32.mrb[3].mxu0 }
 0x131   : > { %v1351_v54 = vadd.f32 %v1797_v47, %v1562_v37  ;;  %v1801_v57 = vadd.f32 %v1800_v36, %v1320_v51  ;;  %v1347_v58 = vadd.f32 %v1791_v50, %v1562_v37  ;;  %v1793_v60 = vadd.f32 %v1304_v56, %v710_v25 }
 0x132   : > { %1361 = vst [vmem:[%s170_s21 + $0x30] sm:$0xff] %v1353_v49  ;;  %v1354_v59 = vadd.f32 %v1799_v8, %v1562_v37  ;;  %1357 = vst [vmem:[%s170_s21 + $0x10] sm:$0xff] %v1349_v52  ;;  %v1350_v63 = vadd.f32 %v1792_v55, %v1562_v37 }
 0x133   : > { %1359 = vst [vmem:[%s170_s21 + $0x20] sm:$0xff] %v1351_v54  ;;  %v1352_v0 = vadd.f32 %v1801_v57, %v1562_v37  ;;  %1355 = vst [vmem:[%s170_s21] sm:$0xff] %v1347_v58  ;;  %v1348_v1 = vadd.f32 %v1793_v60, %v1562_v37 }
 0x134   : > { %1362 = vst [vmem:[%s170_s21 + $0x38] sm:$0xff] %v1354_v59  ;;  %1358 = vst [vmem:[%s170_s21 + $0x18] sm:$0xff] %v1350_v63 }
 0x135   : > { %1360 = vst [vmem:[%s170_s21 + $0x28] sm:$0xff] %v1352_v0  ;;  %1356 = vst [vmem:[%s170_s21 + $0x8] sm:$0xff] %v1348_v1 }
 0x136 PF: > { %s13_s12 = sadd.s32 1, %s1905_s12  }
 0x137   : > { %p10_p4 = scmp.ge.s32.totalorder %s13_s12, 4  }
 0x139   :  { %12 = sbr.rel (!%p10_p4) target bundleno = 1 (0x1), region = 70 }

// kernel: discriminator_forward.14
= control target key start
LH: loop header
LB: loop body
LE: loop exit
PB: predicated region body
PF: predicated region fallthrough
CT: control target
= control target key end

     0   :  { %s2595_s12 = smov 0   ;;  %s3215_s0 = inlined_call_operand.vmem [shape: f32[2,5,9,512], index: 0, kind: input, shape index: {}]   ;;  %s3216_s1 = inlined_call_operand.vmem [shape: bf16[4,512,128], index: 1, kind: input, shape index: {}]   ;;  %s3217_s2 = inlined_call_operand.vmem [shape: f32[1,128], index: 2, kind: input, shape index: {}]   ;;  %s3218_s3 = inlined_call_operand.vmem [shape: f32[2,32,128], index: 3, kind: output, shape index: {}]  }
   0x1 LB: > { %s1874_s13 = sadd.s32 4294967295, %s2573_s12   ;;  %p1878_p0 = scmp.ge.s32.totalorder %s2573_s12, 1  ;;  %s2573_s12 = sphi %s2595_s12, %s13_s12  }
   0x2   : > { %p137_p1 = scmp.lt.s32.totalorder %s2573_s12, 3 }
   0x4   : > { %p138_p2 = pnand %p1878_p0, %p137_p1 }
   0x5   : > { %v2439_v0 = vld [vmem:[%s3216_s1 + $0x140] sm:$0xff] (!%p138_p2)   ;;  %v2443_v4 = vld [vmem:[%s3216_s1 + $0x148] sm:$0xff] (!%p138_p2)   ;;  %v2447_v8 = vld [vmem:[%s3216_s1 + $0x150] sm:$0xff] (!%p138_p2)   ;;  %p161_p3 = scmp.lt.s32.totalorder (!%p138_p2), %s1874_s13, 1  ;;  %vm316_vm0 = vcmask (!%p138_p2), 1046528  }
   0x6   : > { %141 = sbr.rel (%p138_p2) target bundleno = 373 (0x175), region = 32  ;;  %v2440_v1 = vld [vmem:[%s3216_s1 + $0x1c0] sm:$0xff] (!%p138_p2)   ;;  %2206 = vmatprep.subr.bf16.mxu0 (!%p138_p2), %v2439_v0  ;;  %v2444_v5 = vld [vmem:[%s3216_s1 + $0x1c8] sm:$0xff] (!%p138_p2)   ;;  %v2448_v9 = vld [vmem:[%s3216_s1 + $0x1d0] sm:$0xff] (!%p138_p2)  }
   0x7   : > { %v2441_v2 = vld [vmem:[%s3216_s1 + $0x100] sm:$0xff] (!%p138_p2)   ;;  %2234 = vmatprep.subr.bf16.mxu1 (!%p138_p2), %v2440_v1  ;;  %v2445_v6 = vld [vmem:[%s3216_s1 + $0x108] sm:$0xff] (!%p138_p2)   ;;  %v2449_v10 = vld [vmem:[%s3216_s1 + $0x110] sm:$0xff] (!%p138_p2)  }
   0x8   : > { %v2442_v3 = vld [vmem:[%s3216_s1 + $0x180] sm:$0xff] (!%p138_p2)   ;;  %2207 = vmatpush3.bf16.msra.mxu0 (!%p138_p2), %v2441_v2  ;;  %v2446_v7 = vld [vmem:[%s3216_s1 + $0x188] sm:$0xff] (!%p138_p2)   ;;  %v2450_v11 = vld [vmem:[%s3216_s1 + $0x190] sm:$0xff] (!%p138_p2)  }
   0x9   : > { %2235 = vmatpush3.bf16.msra.mxu1 (!%p138_p2), %v2442_v3  ;;  %2208 = vmatprep.subr.bf16.mxu0 (!%p138_p2), %v2443_v4  ;;  %v2451_v12 = vld [vmem:[%s3216_s1 + $0x158] sm:$0xff] (!%p138_p2)   ;;  %v2455_v16 = vld [vmem:[%s3216_s1 + $0x160] sm:$0xff] (!%p138_p2)   ;;  %v2459_v20 = vld [vmem:[%s3216_s1 + $0x168] sm:$0xff] (!%p138_p2)  }
   0xa   : > { %2236 = vmatprep.subr.bf16.mxu1 (!%p138_p2), %v2444_v5  ;;  %v2452_v13 = vld [vmem:[%s3216_s1 + $0x1d8] sm:$0xff] (!%p138_p2)   ;;  %v2456_v17 = vld [vmem:[%s3216_s1 + $0x1e0] sm:$0xff] (!%p138_p2)   ;;  %v2460_v21 = vld [vmem:[%s3216_s1 + $0x1e8] sm:$0xff] (!%p138_p2)  }
   0xb   : > { %v2453_v14 = vld [vmem:[%s3216_s1 + $0x118] sm:$0xff] (!%p138_p2)   ;;  %v2457_v18 = vld [vmem:[%s3216_s1 + $0x120] sm:$0xff] (!%p138_p2)   ;;  %v2461_v22 = vld [vmem:[%s3216_s1 + $0x128] sm:$0xff] (!%p138_p2)  }
   0xc   : > { %2209 = vmatpush3.bf16.msra.mxu0 (!%p138_p2), %v2445_v6  ;;  %v2454_v15 = vld [vmem:[%s3216_s1 + $0x198] sm:$0xff] (!%p138_p2)   ;;  %v2458_v19 = vld [vmem:[%s3216_s1 + $0x1a0] sm:$0xff] (!%p138_p2)   ;;  %v2462_v23 = vld [vmem:[%s3216_s1 + $0x1a8] sm:$0xff] (!%p138_p2)  }
   0xd   : > { %2237 = vmatpush3.bf16.msra.mxu1 %v2446_v7  ;;  %2210 = vmatprep.subr.bf16.mxu0 %v2447_v8  ;;  %s3220_s13 = smov (!%p161_p3, %s1874_s13), 1  ;;  %v2463_v24 = vld [vmem:[%s3216_s1 + $0x170] sm:$0xff]   ;;  %v2467_v28 = vld [vmem:[%s3216_s1 + $0x178] sm:$0xff]   ;;  %v2471_v2 = vld [vmem:[%s3216_s1 + $0x40] sm:$0xff]  }
   0xe   : > { %2238 = vmatprep.subr.bf16.mxu1 %v2448_v9  ;;  %v2464_v25 = vld [vmem:[%s3216_s1 + $0x1f0] sm:$0xff]   ;;  %s2430_s16 = smul.u32 320, %s3220_s13  ;;  %v2468_v29 = vld [vmem:[%s3216_s1 + $0x1f8] sm:$0xff]   ;;  %v2472_v3 = vld [vmem:[%s3216_s1 + $0xc0] sm:$0xff]   ;;  %s2205_s6 = sshll.u32 %s3220_s13, 5 }
   0xf   : > { %v2465_v26 = vld [vmem:[%s3216_s1 + $0x130] sm:$0xff]   ;;  %v2469_v30 = vld [vmem:[%s3216_s1 + $0x138] sm:$0xff]   ;;  %v2473_v6 = vld [vmem:[%s3216_s1] sm:$0xff]   ;;  %s170_s9 = scalar_lea.vmem %s3218_s3, %s2205_s6 }
  0x10   : > { %2211 = vmatpush3.bf16.msra.mxu0 %v2449_v10  ;;  %v2466_v27 = vld [vmem:[%s3216_s1 + $0x1b0] sm:$0xff]   ;;  %s2703_s27 = scalar_lea.vmem %s3215_s0, %s2430_s16  ;;  %v2470_v31 = vld [vmem:[%s3216_s1 + $0x1b8] sm:$0xff]  }
  0x11   : > { %2239 = vmatpush3.bf16.msra.mxu1 %v2450_v11  ;;  %2212 = vmatprep.subr.bf16.mxu0 %v2451_v12  ;;  %v2712_v32 = vld [vmem:[%s2703_s27 + $0x8] sm:$0xff]  ;;  %v2722_v40 = vld [vmem:[%s2703_s27 + $0x18] sm:$0xff]  ;;  %v2735_v48 = vld [vmem:[%s2703_s27] sm:$0xff] }
  0x12   : > { %2240 = vmatprep.subr.bf16.mxu1 %v2452_v13  ;;  %v177_v33 = vld [vmem:[%s2703_s27 + $0x28] sm:$0x1]  ;;  %v320_v36 = vrot.slane %v2712_v32, 1  ;;  %v2725_v41 = vld [vmem:[%s2703_s27 + $0x58] sm:$0xff]  ;;  %v326_v46 = vrot.slane %v2722_v40, 1  ;;  %v2738_v49 = vld [vmem:[%s2703_s27 + $0x40] sm:$0xff] }
  0x13   : > { %v2716_v34 = vld [vmem:[%s2703_s27 + $0x48] sm:$0xff]  ;;  %v321_v37 = vrot.slane %v177_v33, 1  ;;  %v179_v42 = vld [vmem:[%s2703_s27 + $0x38] sm:$0x1]  ;;  %v338_v51 = vrot.slane %v2725_v41, 1  ;;  %v2746_v56 = vld [vmem:[%s2703_s27 + $0x10] sm:$0xff] }
  0x14   : > { %2213 = vmatpush3.bf16.msra.mxu0 %v2453_v14  ;;  %v185_v35 = vld [vmem:[%s2703_s27 + $0x68] sm:$0x1]  ;;  %v332_v38 = vrot.slane %v2716_v34, 1  ;;  %v187_v43 = vld [vmem:[%s2703_s27 + $0x78] sm:$0x1]  ;;  %v327_v47 = vrot.slane %v179_v42, 1 }
  0x15   : > { %2241 = vmatpush3.bf16.msra.mxu1 %v2454_v15  ;;  %2214 = vmatprep.subr.bf16.mxu0 %v2455_v16  ;;  %v333_v39 = vrot.slane %v185_v35, 1  ;;  %v322_v44 = vsel %vm316_vm0, %v320_v36, %v321_v37  ;;  %v339_v52 = vrot.slane %v187_v43, 1  ;;  %v176_v53 = vld [vmem:[%s2703_s27 + $0x20] sm:$0x1]  ;;  %v178_v57 = vld [vmem:[%s2703_s27 + $0x30] sm:$0x1] }
  0x16   : > { %2242 = vmatprep.subr.bf16.mxu1 %v2456_v17  ;;  %v184_v54 = vld [vmem:[%s2703_s27 + $0x60] sm:$0x1]  ;;  %v328_v55 = vsel %vm316_vm0, %v326_v46, %v327_v47  ;;  %v2750_v58 = vld [vmem:[%s2703_s27 + $0x50] sm:$0xff]  ;;  %v317_v60 = vrot.slane %v2735_v48, 1  ;;  %v318_v61 = vrot.slane %v176_v53, 1  ;;  %v329_v0 = vrot.slane %v2738_v49, 1 }
  0x17   : > { %v2731_v45 = vsel %vm316_vm0, %v332_v38, %v333_v39  ;;  %v2753_v59 = vsel %vm316_vm0, %v338_v51, %v339_v52  ;;  %v186_v62 = vld [vmem:[%s2703_s27 + $0x70] sm:$0x1]  ;;  %v330_v1 = vrot.slane %v184_v54, 1  ;;  %v323_v5 = vrot.slane %v2746_v56, 1  ;;  %v2474_v11 = vld [vmem:[%s3216_s1 + $0x80] sm:$0xff]   ;;  %v2475_v15 = vld [vmem:[%s3216_s1 + $0x48] sm:$0xff]  }
  0x18   : > { %2215 = vmatpush3.bf16.msra.mxu0 %v2457_v18  ;;  %v382_v50 = vpack.c.bf16 %v2731_v45, %v322_v44  ;;  %v384_v63 = vpack.c.bf16 %v2753_v59, %v328_v55  ;;  %v319_v4 = vsel %vm316_vm0, %v317_v60, %v318_v61  ;;  %v324_v8 = vrot.slane %v178_v57, 1  ;;  %v2476_v17 = vld [vmem:[%s3216_s1 + $0xc8] sm:$0xff]   ;;  %v2487_v33 = vld [vmem:[%s3216_s1 + $0x60] sm:$0xff]   ;;  %v2852_v51 = vld [vmem:[%s2703_s27 + $0xd8] sm:$0xff] }
  0x19   : > { %2243 = vmatpush3.bf16.msra.mxu1 %v2458_v19  ;;  %2216 = vmatprep.subr.bf16.mxu0 %v2459_v20  ;;  %v2771_v7 = vsel %vm316_vm0, %v329_v0, %v330_v1  ;;  %v335_v9 = vrot.slane %v2750_v58, 1  ;;  %v336_v10 = vrot.slane %v186_v62, 1  ;;  %v2477_v18 = vld [vmem:[%s3216_s1 + $0x8] sm:$0xff]   ;;  %v2479_v20 = vld [vmem:[%s3216_s1 + $0x50] sm:$0xff]   ;;  %v2488_v36 = vld [vmem:[%s3216_s1 + $0xe0] sm:$0xff]   ;;  %v362_v57 = vrot.slane %v2852_v51, 1 }
  0x1a   : > { %2244 = vmatprep.subr.bf16.mxu1 %v2460_v21  ;;  %678 = vmatprep.mubr.bf16.mxu0 %v382_v50  ;;  %v381_v12 = vpack.c.bf16 %v2771_v7, %v319_v4  ;;  %v325_v13 = vsel %vm316_vm0, %v323_v5, %v324_v8  ;;  %v2478_v19 = vld [vmem:[%s3216_s1 + $0x88] sm:$0xff]   ;;  %v2480_v21 = vld [vmem:[%s3216_s1 + $0xd0] sm:$0xff]   ;;  %v2489_v38 = vld [vmem:[%s3216_s1 + $0x20] sm:$0xff]  }
  0x1b   : > { %727 = vmatprep.mubr.bf16.mxu1 %v384_v63  ;;  %v2780_v14 = vsel %vm316_vm0, %v335_v9, %v336_v10  ;;  %v2490_v42 = vld [vmem:[%s3216_s1 + $0xa0] sm:$0xff]   ;;  %v2491_v44 = vld [vmem:[%s3216_s1 + $0x68] sm:$0xff]   ;;  %v203_v55 = vld [vmem:[%s2703_s27 + $0xf8] sm:$0x1] }
  0x1c   : > { %2217 = vmatpush3.bf16.msra.mxu0 %v2461_v22  ;;  %v383_v16 = vpack.c.bf16 %v2780_v14, %v325_v13  ;;  %v2481_v22 = vld [vmem:[%s3216_s1 + $0x10] sm:$0xff]   ;;  %v2492_v46 = vld [vmem:[%s3216_s1 + $0xe8] sm:$0xff]   ;;  %v363_v62 = vrot.slane %v203_v55, 1  ;;  %v2873_v1 = vld [vmem:[%s2703_s27 + $0x80] sm:$0xff] }
  0x1d   : > { %2245 = vmatpush3.bf16.msra.mxu1 %v2462_v23  ;;  %2218 = vmatprep.subr.bf16.mxu0 %v2463_v24  ;;  %v2482_v23 = vld [vmem:[%s3216_s1 + $0x90] sm:$0xff]   ;;  %v2808_v24 = vld [vmem:[%s2703_s27 + $0x88] sm:$0xff]  ;;  %v192_v4 = vld [vmem:[%s2703_s27 + $0xa0] sm:$0x1]  ;;  %v341_v8 = vrot.slane %v2873_v1, 1 }
  0x1e   : > { %2246 = vmatprep.subr.bf16.mxu1 %v2464_v25  ;;  %v2483_v25 = vld [vmem:[%s3216_s1 + $0x58] sm:$0xff]   ;;  %v344_v35 = vrot.slane %v2808_v24, 1  ;;  %v2848_v47 = vld [vmem:[%s2703_s27 + $0xc8] sm:$0xff]  ;;  %v2882_v5 = vld [vmem:[%s2703_s27 + $0xc0] sm:$0xff]  ;;  %v342_v10 = vrot.slane %v192_v4, 1 }
  0x1f   : > { %v201_v50 = vld [vmem:[%s2703_s27 + $0xe8] sm:$0x1]  ;;  %v356_v53 = vrot.slane %v2848_v47, 1  ;;  %v2890_v13 = vld [vmem:[%s2703_s27 + $0x90] sm:$0xff]  ;;  %v2506_v55 = vld [vmem:[%s3216_s1 + $0x280] sm:$0xff]  }
  0x20   : > { %2219 = vmatpush3.bf16.msra.mxu0 %v2465_v26  ;;  %v193_v26 = vld [vmem:[%s2703_s27 + $0xa8] sm:$0x1]  ;;  %v357_v54 = vrot.slane %v201_v50, 1  ;;  %v217_v50 = vpack.c.bf16 %v2848_v47, %v2808_v24  ;;  %v2511_v4 = vld [vmem:[%s3216_s1 + $0x250] sm:$0xff]  }
  0x21   : > { %2247 = vmatpush3.bf16.msra.mxu1 %v2466_v27  ;;  %2220 = vmatprep.subr.bf16.mxu0 %v2467_v28  ;;  %v2484_v27 = vld [vmem:[%s3216_s1 + $0xd8] sm:$0xff]   ;;  %v345_v37 = vrot.slane %v193_v26, 1  ;;  %v2493_v60 = vld [vmem:[%s3216_s1 + $0x28] sm:$0xff]  }
  0x22   : > { %2248 = vmatprep.subr.bf16.mxu1 %v2468_v29  ;;  %v2818_v28 = vld [vmem:[%s2703_s27 + $0x98] sm:$0xff]  ;;  %v2494_v63 = vld [vmem:[%s3216_s1 + $0xa8] sm:$0xff]   ;;  %v2870_v0 = vsel %vm316_vm0, %v356_v53, %v357_v54  ;;  %v214_v53 = vpack.c.bf16 %v2750_v58, %v2746_v56  ;;  %v2505_v54 = vld [vmem:[%s3216_s1 + $0x200] sm:$0xff]  }
  0x23   : > { %v2485_v29 = vld [vmem:[%s3216_s1 + $0x18] sm:$0xff]   ;;  %v350_v39 = vrot.slane %v2818_v28, 1  ;;  %v2855_v52 = vsel %vm316_vm0, %v344_v35, %v345_v37  ;;  %v2497_v35 = vld [vmem:[%s3216_s1 + $0x30] sm:$0xff]   ;;  %v2507_v56 = vld [vmem:[%s3216_s1 + $0x248] sm:$0xff]  }
  0x24   : > { %2221 = vmatpush3.bf16.msra.mxu0 %v2469_v30  ;;  %v195_v30 = vld [vmem:[%s2703_s27 + $0xb8] sm:$0x1]  ;;  %v2498_v37 = vld [vmem:[%s3216_s1 + $0xb0] sm:$0xff]  }
  0x25   : > { %2249 = vmatpush3.bf16.msra.mxu1 %v2470_v31  ;;  %2262 = vmatprep.subr.bf16.mxu0 %v2471_v2  ;;  %v2486_v31 = vld [vmem:[%s3216_s1 + $0x98] sm:$0xff]   ;;  %v351_v43 = vrot.slane %v195_v30, 1  ;;  %v386_v2 = vpack.c.bf16 %v2870_v0, %v2855_v52 }
  0x26   : > { %2290 = vmatprep.subr.bf16.mxu1 %v2472_v3  ;;  %v2878_v3 = vsel %vm316_vm0, %v362_v57, %v363_v62  ;;  %v219_v57 = vpack.c.bf16 %v2852_v51, %v2818_v28  ;;  %v2509_v62 = vld [vmem:[%s3216_s1 + $0x208] sm:$0xff]  }
  0x27   : > { %679 = vmatmul.mubr.bf16.vlgmr.msra.gmra.mrb[0].mxu0 %v381_v12  ;;  %v2864_v61 = vsel %vm316_vm0, %v350_v39, %v351_v43  ;;  %v2499_v39 = vld [vmem:[%s3216_s1 + $0x78] sm:$0xff]  }
  0x28   : > { %2263 = vmatpush3.bf16.msra.mxu0 %v2473_v6  ;;  %728 = vmatmul.mubr.bf16.vlgmr.msra.gmra.mrb[0].mxu1 %v383_v16  ;;  %v200_v6 = vld [vmem:[%s2703_s27 + $0xe0] sm:$0x1]  ;;  %v388_v9 = vpack.c.bf16 %v2878_v3, %v2864_v61  ;;  %v2894_v16 = vld [vmem:[%s2703_s27 + $0xd0] sm:$0xff]  ;;  %v2501_v43 = vld [vmem:[%s3216_s1 + $0x38] sm:$0xff]  }
  0x29   : > { %2264 = vmatprep.subr.bf16.mxu0 %v2475_v15  ;;  %2291 = vmatpush3.bf16.msra.mxu1 %v2474_v11  ;;  %v353_v11 = vrot.slane %v2882_v5, 1  ;;  %v354_v12 = vrot.slane %v200_v6, 1  ;;  %v194_v15 = vld [vmem:[%s2703_s27 + $0xb0] sm:$0x1]  ;;  %v1035_v6 = vpack.c.bf16 %v2808_v24, %v2716_v34  ;;  %v2515_v24 = vld [vmem:[%s3216_s1 + $0x258] sm:$0xff]  }
  0x2a   : > { %2292 = vmatprep.subr.bf16.mxu1 %v2476_v17  ;;  %686 = vmatprep.mubr.bf16.mxu0 %v386_v2  ;;  %v202_v17 = vld [vmem:[%s2703_s27 + $0xf0] sm:$0x1]  ;;  %v216_v2 = vpack.c.bf16 %v2882_v5, %v2873_v1 }
  0x2b   : > { %735 = vmatprep.mubr.bf16.mxu1 %v388_v9  ;;  %v360_v26 = vrot.slane %v202_v17, 1  ;;  %v218_v9 = vpack.c.bf16 %v2894_v16, %v2890_v13  ;;  %v2520_v17 = vld [vmem:[%s3216_s1 + $0x2e0] sm:$0xff]  }
  0x2c   : > { %2265 = vmatpush3.bf16.msra.mxu0 %v2477_v18  ;;  %v347_v18 = vrot.slane %v2890_v13, 1 }
  0x2d   : > { %2266 = vmatprep.subr.bf16.mxu0 %v2479_v20  ;;  %2293 = vmatpush3.bf16.msra.mxu1 %v2478_v19  ;;  %v348_v19 = vrot.slane %v194_v15, 1  ;;  %v2495_v20 = vld [vmem:[%s3216_s1 + $0x70] sm:$0xff]   ;;  %v2517_v15 = vld [vmem:[%s3216_s1 + $0x218] sm:$0xff]  }
  0x2e   : > { %2294 = vmatprep.subr.bf16.mxu1 %v2480_v21  ;;  %v213_v21 = vpack.c.bf16 %v2716_v34, %v2712_v32  ;;  %v2496_v32 = vld [vmem:[%s3216_s1 + $0xf0] sm:$0xff]   ;;  %v1037_v34 = vpack.c.bf16 %v2818_v28, %v2725_v41  ;;  %v2519_v28 = vld [vmem:[%s3216_s1 + $0x260] sm:$0xff]  }
  0x2f   : > { %v2915_v30 = vsel %vm316_vm0, %v347_v18, %v348_v19  ;;  %v2521_v18 = vld [vmem:[%s3216_s1 + $0x220] sm:$0xff]  }
  0x30   : > { %2267 = vmatpush3.bf16.msra.mxu0 %v2481_v22  ;;  %v2904_v22 = vsel %vm316_vm0, %v341_v8, %v342_v10  ;;  %v2512_v8 = vld [vmem:[%s3216_s1 + $0x2d0] sm:$0xff]   ;;  %v2522_v19 = vld [vmem:[%s3216_s1 + $0x2a0] sm:$0xff]  }
  0x31   : > { %2268 = vmatprep.subr.bf16.mxu0 %v2483_v25  ;;  %2295 = vmatpush3.bf16.msra.mxu1 %v2482_v23  ;;  %v2907_v23 = vsel %vm316_vm0, %v353_v11, %v354_v12  ;;  %v359_v25 = vrot.slane %v2894_v16, 1  ;;  %v2513_v10 = vld [vmem:[%s3216_s1 + $0x210] sm:$0xff]   ;;  %v2516_v12 = vld [vmem:[%s3216_s1 + $0x2d8] sm:$0xff]  }
  0x32   : > { %2296 = vmatprep.subr.bf16.mxu1 %v2484_v27  ;;  %v385_v27 = vpack.c.bf16 %v2907_v23, %v2904_v22  ;;  %v2514_v11 = vld [vmem:[%s3216_s1 + $0x290] sm:$0xff]  }
  0x34   : > { %2269 = vmatpush3.bf16.msra.mxu0 %v2485_v29  ;;  %v1425_v29 = vpack.c.bf16 %v2904_v22, %v2771_v7 }
  0x35   : > { %2270 = vmatprep.subr.bf16.mxu0 %v2487_v33  ;;  %2297 = vmatpush3.bf16.msra.mxu1 %v2486_v31  ;;  %v2921_v31 = vsel %vm316_vm0, %v359_v25, %v360_v26  ;;  %v1427_v33 = vpack.c.bf16 %v2915_v30, %v2780_v14  ;;  %v2525_v25 = vld [vmem:[%s3216_s1 + $0x228] sm:$0xff]  }
  0x36   : > { %2298 = vmatprep.subr.bf16.mxu1 %v2488_v36  ;;  %687 = vmatmul.mubr.bf16.gmra.mrb[4].mxu0 %v385_v27  ;;  %v387_v36 = vpack.c.bf16 %v2921_v31, %v2915_v30  ;;  %v2526_v26 = vld [vmem:[%s3216_s1 + $0x2a8] sm:$0xff]   ;;  %v2527_v27 = vld [vmem:[%s3216_s1 + $0x270] sm:$0xff]  }
  0x37   : > { %968 = vmatprep.mubr.bf16.mxu0 %v213_v21  ;;  %v2524_v21 = vld [vmem:[%s3216_s1 + $0x2e8] sm:$0xff]  }
  0x38   : > { %2271 = vmatpush3.bf16.msra.mxu0 %v2489_v38  ;;  %v215_v38 = vpack.c.bf16 %v2725_v41, %v2722_v40  ;;  %736 = vmatmul.mubr.bf16.gmra.mrb[4].mxu1 %v387_v36  ;;  %v212_v40 = vpack.c.bf16 %v2738_v49, %v2735_v48  ;;  %v2504_v48 = vld [vmem:[%s3216_s1 + $0x2c0] sm:$0xff]   ;;  %v2518_v41 = vld [vmem:[%s3216_s1 + $0x298] sm:$0xff]   ;;  %v2530_v36 = vld [vmem:[%s3216_s1 + $0x2b0] sm:$0xff]  }
  0x39   : > { %2272 = vmatprep.subr.bf16.mxu0 %v2491_v44  ;;  %2299 = vmatpush3.bf16.msra.mxu1 %v2490_v42  ;;  %v2500_v42 = vld [vmem:[%s3216_s1 + $0xf8] sm:$0xff]  }
  0x3a   : > { %2300 = vmatprep.subr.bf16.mxu1 %v2492_v46  ;;  %v2502_v44 = vld [vmem:[%s3216_s1 + $0xb8] sm:$0xff]   ;;  %1017 = vmatprep.mubr.bf16.mxu1 %v215_v38  ;;  %v2503_v46 = vld [vmem:[%s3216_s1 + $0x240] sm:$0xff]  }
  0x3b   : > { %v2532_v38 = vld [vmem:[%s3216_s1 + $0x2f8] sm:$0xff]  }
  0x3c   : > { %2273 = vmatpush3.bf16.msra.mxu0 %v2493_v60  ;;  %v2508_v60 = vld [vmem:[%s3216_s1 + $0x2c8] sm:$0xff]  }
  0x3d   : > { %2301 = vmatpush3.bf16.msra.mxu1 %v2494_v63  ;;  %2274 = vmatprep.subr.bf16.mxu0 %v2495_v20  ;;  %v2510_v63 = vld [vmem:[%s3216_s1 + $0x288] sm:$0xff]  }
  0x3e   : > { %2302 = vmatprep.subr.bf16.mxu1 %v2496_v32  ;;  %v2523_v20 = vld [vmem:[%s3216_s1 + $0x268] sm:$0xff]   ;;  %v2528_v32 = vld [vmem:[%s3216_s1 + $0x2f0] sm:$0xff]  }
  0x40   : > { %2275 = vmatpush3.bf16.msra.mxu0 %v2497_v35  ;;  %v2529_v35 = vld [vmem:[%s3216_s1 + $0x230] sm:$0xff]  }
  0x41   : > { %2303 = vmatpush3.bf16.msra.mxu1 %v2498_v37  ;;  %2276 = vmatprep.subr.bf16.mxu0 %v2499_v39  ;;  %v2531_v37 = vld [vmem:[%s3216_s1 + $0x278] sm:$0xff]  }
  0x42   : > { %2304 = vmatprep.subr.bf16.mxu1 %v2500_v42  ;;  %v2533_v39 = vld [vmem:[%s3216_s1 + $0x238] sm:$0xff]  }
  0x43   : > { %v2534_v42 = vld [vmem:[%s3216_s1 + $0x2b8] sm:$0xff]  }
  0x44   : > { %2277 = vmatpush3.bf16.msra.mxu0 %v2501_v43  ;;  %v1034_v43 = vpack.c.bf16 %v2873_v1, %v2738_v49  ;;  %v2537_v49 = vld [vmem:[%s3216_s1 + $0x300] sm:$0xff]  }
  0x45   : > { %2305 = vmatpush3.bf16.msra.mxu1 %v2502_v44  ;;  %2318 = vmatprep.subr.bf16.mxu0 %v2503_v46  ;;  %v1036_v44 = vpack.c.bf16 %v2890_v13, %v2750_v58  ;;  %v2536_v46 = vld [vmem:[%s3216_s1 + $0x3c0] sm:$0xff]   ;;  %v2539_v58 = vld [vmem:[%s3216_s1 + $0x348] sm:$0xff]  }
  0x46   : > { %2346 = vmatprep.subr.bf16.mxu1 %v2504_v48  ;;  %v2538_v1 = vld [vmem:[%s3216_s1 + $0x380] sm:$0xff]   ;;  %v2540_v13 = vld [vmem:[%s3216_s1 + $0x3c8] sm:$0xff]  }
  0x47   : > { %969 = vmatmul.mubr.bf16.vlgmr.msra.gmra.mrb[8].mxu0 %v212_v40  ;;  %v2535_v40 = vld [vmem:[%s3216_s1 + $0x340] sm:$0xff]   ;;  %v3088_v48 = vld [vmem:[%s2703_s27 + $0x108] sm:$0xff] }
  0x48   : > { %2319 = vmatpush3.bf16.msra.mxu0 %v2505_v54  ;;  %976 = vmatprep.mubr.bf16.mxu0 %v217_v50  ;;  %v2541_v50 = vld [vmem:[%s3216_s1 + $0x308] sm:$0xff]   ;;  %v3091_v54 = vld [vmem:[%s2703_s27 + $0x118] sm:$0xff] }
  0x49   : > { %1018 = vmatmul.mubr.bf16.vlgmr.msra.gmra.mrb[8].mxu1 %v214_v53  ;;  %2320 = vmatprep.subr.bf16.mxu0 %v2507_v56  ;;  %v2542_v53 = vld [vmem:[%s3216_s1 + $0x388] sm:$0xff]   ;;  %v1041_v56 = vpack.c.bf16 %v3091_v54, %v2852_v51  ;;  %v2544_v51 = vld [vmem:[%s3216_s1 + $0x3d0] sm:$0xff]  }
  0x4a   : > { %2347 = vmatpush3.bf16.msra.mxu1 %v2506_v55  ;;  %1025 = vmatprep.mubr.bf16.mxu1 %v219_v57  ;;  %v3094_v55 = vld [vmem:[%s2703_s27 + $0x100] sm:$0xff]  ;;  %v1039_v57 = vpack.c.bf16 %v3088_v48, %v2848_v47  ;;  %v1428_v47 = vpack.c.bf16 %v2864_v61, %v2753_v59  ;;  %v2547_v59 = vld [vmem:[%s3216_s1 + $0x358] sm:$0xff]  }
  0x4b   : > { %2348 = vmatprep.subr.bf16.mxu1 %v2508_v60  ;;  %v3101_v60 = vld [vmem:[%s2703_s27 + $0x110] sm:$0xff]  ;;  %v2548_v61 = vld [vmem:[%s3216_s1 + $0x3d8] sm:$0xff]  }
  0x4c   : > { %2321 = vmatpush3.bf16.msra.mxu0 %v2509_v62  ;;  %v2543_v62 = vld [vmem:[%s3216_s1 + $0x350] sm:$0xff]  }
  0x4d   : > { %2322 = vmatprep.subr.bf16.mxu0 %v2511_v4  ;;  %v1040_v4 = vpack.c.bf16 %v3101_v60, %v2894_v16  ;;  %v2550_v16 = vld [vmem:[%s3216_s1 + $0x398] sm:$0xff]  }
  0x4e   : > { %2349 = vmatpush3.bf16.msra.mxu1 %v2510_v63  ;;  %v1426_v63 = vpack.c.bf16 %v2855_v52, %v2731_v45  ;;  %v2545_v45 = vld [vmem:[%s3216_s1 + $0x310] sm:$0xff]  }
  0x4f   : > { %977 = vmatmul.mubr.bf16.gmra.mrb[12].mxu0 %v216_v2  ;;  %2350 = vmatprep.subr.bf16.mxu1 %v2512_v8  ;;  %v1038_v2 = vpack.c.bf16 %v3094_v55, %v2882_v5  ;;  %v2546_v52 = vld [vmem:[%s3216_s1 + $0x390] sm:$0xff]   ;;  %v2549_v5 = vld [vmem:[%s3216_s1 + $0x318] sm:$0xff]   ;;  %v2552_v8 = vld [vmem:[%s3216_s1 + $0x3e0] sm:$0xff]  }
  0x50   : > { %2323 = vmatpush3.bf16.msra.mxu0 %v2513_v10  ;;  %1331 = vmatprep.mubr.bf16.mxu0 %v1035_v6  ;;  %v2551_v6 = vld [vmem:[%s3216_s1 + $0x360] sm:$0xff]  }
  0x51   : > { %1026 = vmatmul.mubr.bf16.gmra.mrb[12].mxu1 %v218_v9  ;;  %2324 = vmatprep.subr.bf16.mxu0 %v2515_v24  ;;  %v2553_v9 = vld [vmem:[%s3216_s1 + $0x320] sm:$0xff]   ;;  %v2557_v24 = vld [vmem:[%s3216_s1 + $0x328] sm:$0xff]  }
  0x52   : > { %2351 = vmatpush3.bf16.msra.mxu1 %v2514_v11  ;;  %1380 = vmatprep.mubr.bf16.mxu1 %v1037_v34  ;;  %v2554_v10 = vld [vmem:[%s3216_s1 + $0x3a0] sm:$0xff]   ;;  %v2555_v11 = vld [vmem:[%s3216_s1 + $0x368] sm:$0xff]  }
  0x53   : > { %2352 = vmatprep.subr.bf16.mxu1 %v2516_v12  ;;  %v2556_v34 = vld [vmem:[%s3216_s1 + $0x3e8] sm:$0xff]  }
  0x54   : > { %2325 = vmatpush3.bf16.msra.mxu0 %v2517_v15  ;;  %v2558_v12 = vld [vmem:[%s3216_s1 + $0x3a8] sm:$0xff]   ;;  %v2559_v15 = vld [vmem:[%s3216_s1 + $0x370] sm:$0xff]  }
  0x55   : > { %2326 = vmatprep.subr.bf16.mxu0 %v2519_v28  ;;  %v2561_v28 = vld [vmem:[%s3216_s1 + $0x330] sm:$0xff]  }
  0x56   : > { %2353 = vmatpush3.bf16.msra.mxu1 %v2518_v41  ;;  %v2560_v41 = vld [vmem:[%s3216_s1 + $0x3f0] sm:$0xff]  }
  0x57   : > { %2354 = vmatprep.subr.bf16.mxu1 %v2520_v17  ;;  %v2562_v17 = vld [vmem:[%s3216_s1 + $0x3b0] sm:$0xff]  }
  0x58   : > { %2327 = vmatpush3.bf16.msra.mxu0 %v2521_v18  ;;  %v2563_v18 = vld [vmem:[%s3216_s1 + $0x378] sm:$0xff]  }
  0x59   : > { %2328 = vmatprep.subr.bf16.mxu0 %v2523_v20  ;;  %v1412_v20 = vrot.slane %v3088_v48, 1 }
  0x5a   : > { %2355 = vmatpush3.bf16.msra.mxu1 %v2522_v19  ;;  %v2564_v19 = vld [vmem:[%s3216_s1 + $0x3f8] sm:$0xff]  }
  0x5b   : > { %2356 = vmatprep.subr.bf16.mxu1 %v2524_v21  ;;  %v2565_v21 = vld [vmem:[%s3216_s1 + $0x338] sm:$0xff]  }
  0x5c   : > { %2329 = vmatpush3.bf16.msra.mxu0 %v2525_v25  ;;  %v1418_v25 = vrot.slane %v3091_v54, 1 }
  0x5d   : > { %2330 = vmatprep.subr.bf16.mxu0 %v2527_v27  ;;  %v209_v27 = vld [vmem:[%s2703_s27 + $0x128] sm:$0x1] }
  0x5e   : > { %2357 = vmatpush3.bf16.msra.mxu1 %v2526_v26  ;;  %v2566_v26 = vld [vmem:[%s3216_s1 + $0x3b8] sm:$0xff]  }
  0x5f   : > { %2358 = vmatprep.subr.bf16.mxu1 %v2528_v32  ;;  %v1409_v32 = vrot.slane %v3094_v55, 1 }
  0x60   : > { %2331 = vmatpush3.bf16.msra.mxu0 %v2529_v35  ;;  %v1413_v35 = vrot.slane %v209_v27, 1 }
  0x61   : > { %2332 = vmatprep.subr.bf16.mxu0 %v2531_v37  ;;  %v208_v37 = vld [vmem:[%s2703_s27 + $0x120] sm:$0x1] }
  0x62   : > { %2359 = vmatpush3.bf16.msra.mxu1 %v2530_v36  ;;  %v211_v36 = vld [vmem:[%s2703_s27 + $0x138] sm:$0x1] }
  0x63   : > { %2360 = vmatprep.subr.bf16.mxu1 %v2532_v38  ;;  %v1415_v38 = vrot.slane %v3101_v60, 1 }
  0x64   : > { %2333 = vmatpush3.bf16.msra.mxu0 %v2533_v39  ;;  %v1419_v39 = vrot.slane %v211_v36, 1 }
  0x65   : > { %2374 = vmatprep.subr.bf16.mxu0 %v2535_v40  ;;  %v1414_v40 = vsel %vm316_vm0, %v1412_v20, %v1413_v35 }
  0x66   : > { %2361 = vmatpush3.bf16.msra.mxu1 %v2534_v42  ;;  %v1410_v42 = vrot.slane %v208_v37, 1 }
  0x67   : > { %1332 = vmatmul.mubr.bf16.vlgmr.msra.gmra.mrb[16].mxu0 %v1034_v43  ;;  %2402 = vmatprep.subr.bf16.mxu1 %v2536_v46  ;;  %v210_v43 = vld [vmem:[%s2703_s27 + $0x130] sm:$0x1]  ;;  %v1430_v46 = vpack.c.bf16 %v1414_v40, %v2870_v0 }
  0x68   : > { %2375 = vmatpush3.bf16.msra.mxu0 %v2537_v49  ;;  %1339 = vmatprep.mubr.bf16.mxu0 %v1039_v57  ;;  %v1420_v49 = vsel %vm316_vm0, %v1418_v25, %v1419_v39 }
  0x69   : > { %1381 = vmatmul.mubr.bf16.vlgmr.msra.gmra.mrb[16].mxu1 %v1036_v44  ;;  %2376 = vmatprep.subr.bf16.mxu0 %v2539_v58  ;;  %v1416_v44 = vrot.slane %v210_v43, 1  ;;  %v1411_v58 = vsel %vm316_vm0, %v1409_v32, %v1410_v42 }
  0x6a   : > { %2403 = vmatpush3.bf16.msra.mxu1 %v2538_v1  ;;  %1388 = vmatprep.mubr.bf16.mxu1 %v1041_v56  ;;  %v1432_v1 = vpack.c.bf16 %v1420_v49, %v2878_v3 }
  0x6b   : > { %2404 = vmatprep.subr.bf16.mxu1 %v2540_v13  ;;  %v1417_v13 = vsel %vm316_vm0, %v1415_v38, %v1416_v44 }
  0x6c   : > { %2377 = vmatpush3.bf16.msra.mxu0 %v2541_v50  ;;  %v1429_v50 = vpack.c.bf16 %v1411_v58, %v2907_v23  ;;  %v1431_v7 = vpack.c.bf16 %v1417_v13, %v2921_v31 }
  0x6d   : > { %2378 = vmatprep.subr.bf16.mxu0 %v2543_v62 }
  0x6e   : > { %2405 = vmatpush3.bf16.msra.mxu1 %v2542_v53 }
  0x6f   : > { %1340 = vmatmul.mubr.bf16.gmra.mrb[20].mxu0 %v1038_v2  ;;  %2406 = vmatprep.subr.bf16.mxu1 %v2544_v51 }
  0x70   : > { %2379 = vmatpush3.bf16.msra.mxu0 %v2545_v45  ;;  %1722 = vmatprep.mubr.bf16.mxu0 %v1426_v63 }
  0x71   : > { %1389 = vmatmul.mubr.bf16.gmra.mrb[20].mxu1 %v1040_v4  ;;  %2380 = vmatprep.subr.bf16.mxu0 %v2547_v59 }
  0x72   : > { %2407 = vmatpush3.bf16.msra.mxu1 %v2546_v52  ;;  %1771 = vmatprep.mubr.bf16.mxu1 %v1428_v47 }
  0x73   : > { %2408 = vmatprep.subr.bf16.mxu1 %v2548_v61 }
  0x74   : > { %2381 = vmatpush3.bf16.msra.mxu0 %v2549_v5 }
  0x75   : > { %2382 = vmatprep.subr.bf16.mxu0 %v2551_v6 }
  0x76   : > { %2409 = vmatpush3.bf16.msra.mxu1 %v2550_v16 }
  0x77   : > { %2410 = vmatprep.subr.bf16.mxu1 %v2552_v8 }
  0x78   : > { %2383 = vmatpush3.bf16.msra.mxu0 %v2553_v9 }
  0x79   : > { %2384 = vmatprep.subr.bf16.mxu0 %v2555_v11 }
  0x7a   : > { %2411 = vmatpush3.bf16.msra.mxu1 %v2554_v10 }
  0x7b   : > { %2412 = vmatprep.subr.bf16.mxu1 %v2556_v34 }
  0x7c   : > { %2385 = vmatpush3.bf16.msra.mxu0 %v2557_v24 }
  0x7d   : > { %2386 = vmatprep.subr.bf16.mxu0 %v2559_v15 }
  0x7e   : > { %2413 = vmatpush3.bf16.msra.mxu1 %v2558_v12 }
  0x7f   : > { %2414 = vmatprep.subr.bf16.mxu1 %v2560_v41 }
  0x80   : > { %2387 = vmatpush3.bf16.msra.mxu0 %v2561_v28 }
  0x81   : > { %2388 = vmatprep.subr.bf16.mxu0 %v2563_v18 }
  0x82   : > { %2415 = vmatpush3.bf16.msra.mxu1 %v2562_v17 }
  0x83   : > { %2416 = vmatprep.subr.bf16.mxu1 %v2564_v19 }
  0x84   : > { %2389 = vmatpush3.bf16.msra.mxu0 %v2565_v21 }
  0x86   : > { %2417 = vmatpush3.bf16.msra.mxu1 %v2566_v26 }
  0x87   : > { %1723 = vmatmul.mubr.bf16.vlgmr.msra.gmra.mrb[24].mxu0 %v1425_v29 }
  0x88   : > { %1730 = vmatprep.mubr.bf16.mxu0 %v1430_v46 }
  0x89   : > { %1772 = vmatmul.mubr.bf16.vlgmr.msra.gmra.mrb[24].mxu1 %v1427_v33 }
  0x8a   : > { %1779 = vmatprep.mubr.bf16.mxu1 %v1432_v1 }
  0x8f   : > { %1731 = vmatmul.mubr.bf16.gmra.mrb[28].mxu0 %v1429_v50 }
  0x91   : > { %1780 = vmatmul.mubr.bf16.gmra.mrb[28].mxu1 %v1431_v7 }
  0xfa   : > { %v2222_v0 = vpop.f32.mrb[0].mxu0 }
  0xfb   : > { %v2223_v22 = vpop.f32.mrb[1].mxu0  ;;  %v2250_v29 = vpop.f32.mrb[0].mxu1 }
  0xfc   : > { %v2224_v53 = vadd.f32 %v2223_v22, %v2222_v0  ;;  %v2225_v14 = vpop.f32.mrb[2].mxu0  ;;  %v2251_v30 = vpop.f32.mrb[1].mxu1 }
  0xfd   : > { %v2226_v33 = vpop.f32.mrb[3].mxu0  ;;  %v2252_v3 = vadd.f32 %v2251_v30, %v2250_v29  ;;  %v2253_v48 = vpop.f32.mrb[2].mxu1 }
  0xfe   : > { %v2227_v54 = vadd.f32 %v2226_v33, %v2225_v14  ;;  %v2254_v55 = vpop.f32.mrb[3].mxu1 }
  0xff   : > { %v730_v57 = vadd.f32 %v2252_v3, %v2224_v53  ;;  %v2255_v56 = vadd.f32 %v2254_v55, %v2253_v48 }
 0x101   : > { %v733_v60 = vadd.f32 %v2255_v56, %v2227_v54 }
 0x109   : > { %v2228_v62 = vpop.f32.mrb[4].mxu0 }
 0x10a   : > { %v2229_v23 = vpop.f32.mrb[5].mxu0 }
 0x10b   : > { %v2256_v63 = vpop.f32.mrb[4].mxu1  ;;  %v2230_v31 = vadd.f32 %v2229_v23, %v2228_v62  ;;  %v2231_v2 = vpop.f32.mrb[6].mxu0 }
 0x10c   : > { %v2257_v4 = vpop.f32.mrb[5].mxu1  ;;  %v2232_v47 = vpop.f32.mrb[7].mxu0 }
 0x10d   : > { %v2258_v51 = vadd.f32 %v2257_v4, %v2256_v63  ;;  %v2259_v45 = vpop.f32.mrb[6].mxu1  ;;  %v2233_v52 = vadd.f32 %v2232_v47, %v2231_v2 }
 0x10e   : > { %v2260_v59 = vpop.f32.mrb[7].mxu1 }
 0x10f   : > { %v738_v61 = vadd.f32 %v2258_v51, %v2230_v31  ;;  %v2261_v5 = vadd.f32 %v2260_v59, %v2259_v45 }
 0x111   : > { %v741_v16 = vadd.f32 %v2261_v5, %v2233_v52 }
 0x11a   : > { %v2278_v6 = vpop.f32.mrb[8].mxu0 }
 0x11b   : > { %v2279_v8 = vpop.f32.mrb[9].mxu0 }
 0x11c   : > { %v2306_v9 = vpop.f32.mrb[8].mxu1  ;;  %v2280_v10 = vadd.f32 %v2279_v8, %v2278_v6  ;;  %v2281_v11 = vpop.f32.mrb[10].mxu0 }
 0x11d   : > { %v2307_v34 = vpop.f32.mrb[9].mxu1  ;;  %v2282_v24 = vpop.f32.mrb[11].mxu0 }
 0x11e   : > { %v971_v12 = vadd.f32 %v2280_v10, %v730_v57  ;;  %v2308_v15 = vadd.f32 %v2307_v34, %v2306_v9  ;;  %v2309_v41 = vpop.f32.mrb[10].mxu1  ;;  %v2283_v28 = vadd.f32 %v2282_v24, %v2281_v11 }
 0x11f   : > { %v2310_v17 = vpop.f32.mrb[11].mxu1 }
 0x120   : > { %v1020_v18 = vadd.f32 %v2308_v15, %v971_v12  ;;  %v974_v19 = vadd.f32 %v2283_v28, %v733_v60  ;;  %v2311_v20 = vadd.f32 %v2310_v17, %v2309_v41 }
 0x122   : > { %v1023_v21 = vadd.f32 %v2311_v20, %v974_v19  ;;  %v2284_v25 = vpop.f32.mrb[12].mxu0  ;;  %v2202_v19 = vld [vmem:[%s3217_s2] ss:$0 sm:$0xff] }
 0x123   : > { %v2285_v26 = vpop.f32.mrb[13].mxu0 }
 0x124   : > { %v2286_v27 = vadd.f32 %v2285_v26, %v2284_v25  ;;  %v2287_v32 = vpop.f32.mrb[14].mxu0  ;;  %v2312_v35 = vpop.f32.mrb[12].mxu1 }
 0x125   : > { %v2288_v36 = vpop.f32.mrb[15].mxu0  ;;  %v2313_v37 = vpop.f32.mrb[13].mxu1 }
 0x126   : > { %v979_v38 = vadd.f32 %v2286_v27, %v738_v61  ;;  %v2289_v39 = vadd.f32 %v2288_v36, %v2287_v32  ;;  %v2314_v42 = vadd.f32 %v2313_v37, %v2312_v35  ;;  %v2315_v43 = vpop.f32.mrb[14].mxu1 }
 0x127   : > { %v2316_v40 = vpop.f32.mrb[15].mxu1 }
 0x128   : > { %v982_v44 = vadd.f32 %v2289_v39, %v741_v16  ;;  %v1028_v46 = vadd.f32 %v2314_v42, %v979_v38  ;;  %v2317_v49 = vadd.f32 %v2316_v40, %v2315_v43 }
 0x12a   : > { %v1031_v1 = vadd.f32 %v2317_v49, %v982_v44 }
 0x13a   : > { %v2334_v58 = vpop.f32.mrb[16].mxu0 }
 0x13b   : > { %v2335_v13 = vpop.f32.mrb[17].mxu0 }
 0x13c   : > { %v2362_v50 = vpop.f32.mrb[16].mxu1  ;;  %v2336_v7 = vadd.f32 %v2335_v13, %v2334_v58  ;;  %v2337_v0 = vpop.f32.mrb[18].mxu0 }
 0x13d   : > { %v2363_v22 = vpop.f32.mrb[17].mxu1  ;;  %v2338_v29 = vpop.f32.mrb[19].mxu0 }
 0x13e   : > { %v2364_v53 = vadd.f32 %v2363_v22, %v2362_v50  ;;  %v2365_v14 = vpop.f32.mrb[18].mxu1  ;;  %v2339_v30 = vadd.f32 %v2338_v29, %v2337_v0 }
 0x13f   : > { %v2366_v33 = vpop.f32.mrb[19].mxu1 }
 0x140   : > { %v1383_v3 = vadd.f32 %v2364_v53, %v2336_v7  ;;  %v2367_v48 = vadd.f32 %v2366_v33, %v2365_v14 }
 0x142   : > { %v1397_v54 = vadd.f32 %v1383_v3, %v1020_v18  ;;  %v1386_v55 = vadd.f32 %v2367_v48, %v2339_v30  ;;  %v2340_v57 = vpop.f32.mrb[20].mxu0 }
 0x143   : > { %v2341_v62 = vpop.f32.mrb[21].mxu0 }
 0x144   : > { %v1398_v56 = vadd.f32 %v1386_v55, %v1023_v21  ;;  %v2368_v60 = vpop.f32.mrb[20].mxu1  ;;  %v2342_v23 = vadd.f32 %v2341_v62, %v2340_v57  ;;  %v2343_v31 = vpop.f32.mrb[22].mxu0 }
 0x145   : > { %v2369_v63 = vpop.f32.mrb[21].mxu1  ;;  %v2344_v47 = vpop.f32.mrb[23].mxu0 }
 0x146   : > { %v2370_v2 = vadd.f32 %v2369_v63, %v2368_v60  ;;  %v2371_v4 = vpop.f32.mrb[22].mxu1  ;;  %v2345_v51 = vadd.f32 %v2344_v47, %v2343_v31 }
 0x147   : > { %v2372_v45 = vpop.f32.mrb[23].mxu1 }
 0x148   : > { %v1391_v52 = vadd.f32 %v2370_v2, %v2342_v23  ;;  %v2373_v59 = vadd.f32 %v2372_v45, %v2371_v4 }
 0x14a   : > { %v1399_v61 = vadd.f32 %v1391_v52, %v1028_v46  ;;  %v1394_v5 = vadd.f32 %v2373_v59, %v2345_v51 }
 0x14c   : > { %v1400_v16 = vadd.f32 %v1394_v5, %v1031_v1 }
 0x15a   : > { %v2390_v6 = vpop.f32.mrb[24].mxu0 }
 0x15b   : > { %v2391_v9 = vpop.f32.mrb[25].mxu0 }
 0x15c   : > { %v2418_v8 = vpop.f32.mrb[24].mxu1  ;;  %v2392_v10 = vadd.f32 %v2391_v9, %v2390_v6  ;;  %v2393_v34 = vpop.f32.mrb[26].mxu0 }
 0x15d   : > { %v2419_v11 = vpop.f32.mrb[25].mxu1  ;;  %v2394_v15 = vpop.f32.mrb[27].mxu0 }
 0x15e   : > { %v2420_v24 = vadd.f32 %v2419_v11, %v2418_v8  ;;  %v2421_v12 = vpop.f32.mrb[26].mxu1  ;;  %v2395_v41 = vadd.f32 %v2394_v15, %v2393_v34 }
 0x15f   : > { %v2422_v28 = vpop.f32.mrb[27].mxu1 }
 0x160   : > { %v1774_v17 = vadd.f32 %v2420_v24, %v2392_v10  ;;  %v2423_v18 = vadd.f32 %v2422_v28, %v2421_v12 }
 0x162   : > { %v1788_v20 = vadd.f32 %v1774_v17, %v1397_v54  ;;  %v1777_v21 = vadd.f32 %v2423_v18, %v2395_v41  ;;  %v2396_v25 = vpop.f32.mrb[28].mxu0 }
 0x163   : > { %v2397_v35 = vpop.f32.mrb[29].mxu0 }
 0x164   : > { %v1799_v26 = vadd.f32 %v2202_v19, %v1788_v20  ;;  %v1789_v27 = vadd.f32 %v1777_v21, %v1398_v56  ;;  %v2424_v32 = vpop.f32.mrb[28].mxu1  ;;  %v2398_v36 = vadd.f32 %v2397_v35, %v2396_v25  ;;  %v2399_v38 = vpop.f32.mrb[30].mxu0 }
 0x165   : > { %v2425_v37 = vpop.f32.mrb[29].mxu1  ;;  %v2400_v44 = vpop.f32.mrb[31].mxu0 }
 0x166   : > { %vm1803_vm1 = vcmp.gt.f32.partialorder %v1799_v26, 0.0  ;;  %v1807_v39 = vmul.f32 0.2, %v1799_v26  ;;  %v1800_v42 = vadd.f32 %v2202_v19, %v1789_v27  ;;  %v2426_v43 = vadd.f32 %v2425_v37, %v2424_v32  ;;  %v2427_v40 = vpop.f32.mrb[30].mxu1 }
 0x167   : > { %v2401_v46 = vadd.f32 %v2400_v44, %v2399_v38  ;;  %v2428_v49 = vpop.f32.mrb[31].mxu1 }
 0x168   : > { %v1811_v1 = vsel %vm1803_vm1, %v1799_v26, %v1807_v39  ;;  %vm1804_vm2 = vcmp.gt.f32.partialorder %v1800_v42, 0.0  ;;  %v1808_v58 = vmul.f32 0.2, %v1800_v42  ;;  %v1782_v13 = vadd.f32 %v2426_v43, %v2398_v36 }
 0x169   : > { %1815 = vst [vmem:[%s170_s9] sm:$0xff] %v1811_v1  ;;  %v2429_v50 = vadd.f32 %v2428_v49, %v2427_v40 }
 0x16a   : > { %v1812_v7 = vsel %vm1804_vm2, %v1800_v42, %v1808_v58  ;;  %v1790_v0 = vadd.f32 %v1782_v13, %v1399_v61 }
 0x16b   : > { %1816 = vst [vmem:[%s170_s9 + $0x8] sm:$0xff] %v1812_v7  ;;  %v1785_v22 = vadd.f32 %v2429_v50, %v2401_v46 }
 0x16c   : > { %v1801_v29 = vadd.f32 %v2202_v19, %v1790_v0 }
 0x16d   : > { %v1791_v53 = vadd.f32 %v1785_v22, %v1400_v16 }
 0x16e   : > { %vm1805_vm3 = vcmp.gt.f32.partialorder %v1801_v29, 0.0  ;;  %v1809_v14 = vmul.f32 0.2, %v1801_v29 }
 0x16f   : > { %v1802_v30 = vadd.f32 %v2202_v19, %v1791_v53 }
 0x170   : > { %v1813_v33 = vsel %vm1805_vm3, %v1801_v29, %v1809_v14 }
 0x171   : > { %1817 = vst [vmem:[%s170_s9 + $0x10] sm:$0xff] %v1813_v33  ;;  %vm1806_vm4 = vcmp.gt.f32.partialorder %v1802_v30, 0.0  ;;  %v1810_v3 = vmul.f32 0.2, %v1802_v30 }
 0x173   : > { %v1814_v48 = vsel %vm1806_vm4, %v1802_v30, %v1810_v3 }
 0x174   : > { %1818 = vst [vmem:[%s170_s9 + $0x18] sm:$0xff] %v1814_v48 }
 0x175 PF: > { %s13_s12 = sadd.s32 1, %s2573_s12  }
 0x176   : > { %p10_p4 = scmp.ge.s32.totalorder %s13_s12, 4  }
 0x178   :  { %12 = sbr.rel (!%p10_p4) target bundleno = 1 (0x1), region = 65 }

// kernel: discriminator_forward.16
= control target key start
LH: loop header
LB: loop body
LE: loop exit
PB: predicated region body
PF: predicated region fallthrough
CT: control target
= control target key end

     0   :  { %s460_s6 = smov 0   ;;  %s462_s7 = smov 0   ;;  %s560_s0 = inlined_call_operand.vmem [shape: f32[2,16,256], index: 0, kind: input, shape index: {}]   ;;  %s561_s1 = inlined_call_operand.vmem [shape: f32[2,16,256], index: 1, kind: output, shape index: {}]  }
   0x1   :  { %s464_s8 = smov 0   ;;  %s466_s9 = smov 0  }
   0x2   :  { %s468_s10 = smov 0   ;;  %s470_s11 = smov 0  }
   0x3   :  { %s472_s12 = smov 0  }
   0x4 LB: > { %s20_s13 = sadd.s32 1, %s440_s10  ;;  %s23_s14 = sadd.s32 1, %s444_s11  ;;  %s448_s12 = sphi %s472_s12, %s11_s12   ;;  %s444_s11 = sphi %s470_s11, %s568_s11   ;;  %s440_s10 = sphi %s468_s10, %s567_s10   ;;  %s436_s9 = sphi %s466_s9, %s566_s9   ;;  %s432_s8 = sphi %s464_s8, %s565_s8   ;;  %s428_s7 = sphi %s462_s7, %s564_s7   ;;  %s424_s6 = sphi %s460_s6, %s563_s6  }
   0x5   : > { %p21_p0 = scmp.ge.s32.totalorder %s20_s13, 2  ;;  %s321_s15 = sadd.s32 4294967295, %s448_s12  }
   0x6   : > { %p39_p1 = scmp.ne.s32.totalorder %s428_s7, %s424_s6  ;;  %p40_p2 = scmp.eq.s32.totalorder %s448_s12, 0 }
   0x7   : > { %s570_s13 = smov (%p21_p0, %s20_s13), 0  ;;  %s572_s14 = smov (!%p21_p0, %s23_s14), %s444_s11 }
   0x8   : > { %p25_p3 = scmp.ge.s32.totalorder %s572_s14, 2  ;;  %p71_p4 = scmp.eq.s32.totalorder %s321_s15, 3 }
   0x9   : > { %s28_s16 = ssub.s32 %s440_s10, %s570_s13  ;;  %p41_p5 = por %p40_p2, %p39_p1 }
   0xa   : > { %s574_s14 = smov (%p25_p3, %s572_s14), 0  ;;  %p508_p6 = por %p71_p4, %p39_p1 }
   0xb   : > { %s27_s18 = ssub.s32 %s444_s11, %s574_s14  ;;  %s32_s20 = sadd.s32 1, %s428_s7 }
   0xc   : > { %s29_s19 = sor.u32 %s28_s16, %s27_s18  ;;  %p324_p8 = scmp.ge.s32.totalorder %s448_s12, 4 }
   0xd   : > { %p30_p7 = scmp.eq.s32.totalorder %s29_s19, 0 }
   0xe   : > { %93 = sbr.rel (%p324_p8) target bundleno = 28 (0x1c), region = 16 }
   0xf   : > { %s516_s21 = scalar_select %p30_p7, %s428_s7, %s32_s20  }
  0x15   : > { %96 = sbr.rel (!%p41_p5) target bundleno = 28 (0x1c), region = 20  ;;  %s98_s22 = sand.u32 (%p41_p5), 1, %s428_s7  }
  0x16   : > { %s326_s23 = sshll.u32 (%p41_p5), %s444_s11, 2  ;;  %s325_s24 = sshll.u32 (%p41_p5), %s98_s22, 4 }
  0x17   : > { %s102_s25 = sadd.s32 (%p41_p5), %s440_s10, %s326_s23  ;;  %s100_s30 = scalar_lea.vmem (%p41_p5), [#allocation2], %s325_s24 }
  0x18   : > { %s327_s26 = sshll.u32 (%p41_p5), %s102_s25, 3 }
  0x19   : > { %s104_s29 = scalar_lea.vmem (%p41_p5), %s560_s0, %s327_s26 }
  0x1a   : > { %v134_v0 = vld [vmem:[%s104_s29] sm:$0xff] (%p41_p5)  ;;  %v136_v1 = vld [vmem:[%s104_s29 + $0x10] sm:$0xff] (%p41_p5) }
  0x1b   : > { %135 = vst [vmem:[%s100_s30] sm:$0xff] (%p41_p5), %v134_v0  ;;  %137 = vst [vmem:[%s100_s30 + $0x8] sm:$0xff] (%p41_p5), %v136_v1 }
  0x1c PF: > { %p328_p9 = scmp.ge.s32.totalorder %s448_s12, 1  ;;  %p142_p10 = scmp.lt.s32.totalorder %s448_s12, 5 }
  0x1e   : > { %p143_p11 = pnand %p328_p9, %p142_p10 }
  0x1f   : > { %s149_s2 = sand.u32 (!%p143_p11), 1, %s424_s6  }
  0x20   : > { %146 = sbr.rel (%p143_p11) target bundleno = 98 (0x62), region = 58  ;;  %s528_s3 = sshll.u32 (!%p143_p11), %s149_s2, 4 }
  0x21   : > { %s151_s4 = scalar_lea.vmem (!%p143_p11), [#allocation2], %s528_s3  ;;  %s166_s5 = scalar_lea.vmem (!%p143_p11), [#allocation3], %s528_s3 }
  0x22   : > { %v167_v2 = vld [vmem:[%s151_s4] sm:$0xff] (!%p143_p11)  ;;  %v168_v3 = vld [vmem:[%s151_s4 + $0x8] sm:$0xff] (!%p143_p11) }
  0x23   : > { %v169_v4 = vadd.f32 (!%p143_p11), %v168_v3, %v167_v2 }
  0x25   : > { %v170_v5 = vrot.slane (!%p143_p11), %v169_v4, 4 }
  0x27   : > { %v171_v6 = vadd.f32 %v170_v5, %v169_v4  ;;  %s332_s6 = sshll.u32 (%p508_p6), %s436_s9, 2 }
  0x28   : > { %s210_s15 = sadd.s32 (%p508_p6), %s432_s8, %s332_s6 }
  0x29   : > { %v172_v7 = vrot.slane %v171_v6, 2  ;;  %s333_s16 = sshll.u32 (%p508_p6), %s210_s15, 3 }
  0x2a   : > { %s212_s20 = scalar_lea.vmem (%p508_p6), %s561_s1, %s333_s16 }
  0x2b   : > { %v173_v8 = vadd.f32 %v172_v7, %v171_v6 }
  0x2d   : > { %v174_v9 = vrot.slane %v173_v8, 1 }
  0x2f   : > { %v175_v10 = vadd.f32 %v174_v9, %v173_v8 }
  0x31   : > { %v177_v11 = vmul.f32 0.0625, %v175_v10 }
  0x33   : > { %v178_v12 = vsub.f32 %v167_v2, %v177_v11  ;;  %v179_v13 = vsub.f32 %v168_v3, %v177_v11 }
  0x35   : > { %v180_v14 = vmul.f32 %v178_v12, %v178_v12  ;;  %v181_v15 = vmul.f32 %v179_v13, %v179_v13 }
  0x37   : > { %v182_v16 = vadd.f32 %v181_v15, %v180_v14 }
  0x39   : > { %v183_v17 = vrot.slane %v182_v16, 4 }
  0x3b   : > { %v184_v18 = vadd.f32 %v183_v17, %v182_v16 }
  0x3d   : > { %v185_v19 = vrot.slane %v184_v18, 2 }
  0x3f   : > { %v186_v20 = vadd.f32 %v185_v19, %v184_v18 }
  0x41   : > { %v187_v21 = vrot.slane %v186_v20, 1 }
  0x43   : > { %v188_v22 = vadd.f32 %v187_v21, %v186_v20 }
  0x45   : > { %v189_v23 = vmul.f32 0.0625, %v188_v22 }
  0x47   : > { %v190_v24 = vadd.f32 1e-05, %v189_v23 }
  0x49   : > { %392 = vrsqrt.f32 %v190_v24 }
  0x53   : > { %v393_v25 = vpop.eup %392  ;;  %208 = sbr.rel (!%p508_p6) target bundleno = 98 (0x62), region = 66 }
  0x54   : > { %v192_v26 = vmul.f32 %v393_v25, %v178_v12  ;;  %v193_v27 = vmul.f32 %v393_v25, %v179_v13 }
  0x56   : > { %vm194_vm0 = vcmp.gt.f32.partialorder %v192_v26, 0.0  ;;  %v196_v28 = vmul.f32 0.2, %v192_v26  ;;  %vm195_vm1 = vcmp.gt.f32.partialorder %v193_v27, 0.0  ;;  %v197_v29 = vmul.f32 0.2, %v193_v27 }
  0x58   : > { %v198_v30 = vsel %vm194_vm0, %v192_v26, %v196_v28  ;;  %v199_v31 = vsel %vm195_vm1, %v193_v27, %v197_v29 }
  0x59   : > { %200 = vst [vmem:[%s166_s5] sm:$0xff] %v198_v30  ;;  %201 = vst [vmem:[%s166_s5 + $0x8] sm:$0xff] %v199_v31 }
  0x60   : > { %v242_v32 = vld [vmem:[%s166_s5] sm:$0xff]  ;;  %v244_v33 = vld [vmem:[%s166_s5 + $0x8] sm:$0xff] }
  0x61   : > { %243 = vst [vmem:[%s212_s20] sm:$0xff] %v242_v32  ;;  %245 = vst [vmem:[%s212_s20 + $0x10] sm:$0xff] %v244_v33 }
  0x62 PF: > { %s11_s12 = sadd.s32 1, %s448_s12   ;;  %s563_s6 = smov %s428_s7 }
  0x63   : > { %p8_p12 = scmp.ge.s32.totalorder %s11_s12, 6   ;;  %s564_s7 = smov %s516_s21 }
  0x64   : > { %s565_s8 = smov %s440_s10  ;;  %s566_s9 = smov %s444_s11 }
  0x65   : > { %s567_s10 = smov %s570_s13  ;;  %s568_s11 = smov %s574_s14 }
  0x66   :  { %10 = sbr.rel (!%p8_p12) target bundleno = 4 (0x4), region = 135 }

// kernel: discriminator_forward.15
= control target key start
LH: loop header
LB: loop body
LE: loop exit
PB: predicated region body
PF: predicated region fallthrough
CT: control target
= control target key end

     0   :  { %s2367_s12 = smov 0   ;;  %s2974_s0 = inlined_call_operand.vmem [shape: f32[2,6,10,128], index: 0, kind: input, shape index: {}]   ;;  %s2975_s1 = inlined_call_operand.vmem [shape: bf16[9,128,256], index: 1, kind: input, shape index: {}]   ;;  %s2976_s2 = inlined_call_operand.vmem [shape: f32[1,256], index: 2, kind: input, shape index: {}]   ;;  %s2977_s3 = inlined_call_operand.vmem [shape: f32[2,32,256], index: 3, kind: output, shape index: {}]  }
   0x1 LB: > { %s1749_s13 = sadd.s32 4294967295, %s2344_s12   ;;  %p1753_p0 = scmp.ge.s32.totalorder %s2344_s12, 1  ;;  %s2344_s12 = sphi %s2367_s12, %s13_s12  }
   0x2   : > { %p137_p1 = scmp.lt.s32.totalorder %s2344_s12, 3 }
   0x4   : > { %p138_p2 = pnand %p1753_p0, %p137_p1 }
   0x5   : > { %v2122_v0 = vld [vmem:[%s2975_s1 + $0x84] ss:$8 sps:$4 sm:$0xff] (!%p138_p2)   ;;  %v2346_v2 = vmov (!%p138_p2), 0   ;;  %v2126_v3 = vld [vmem:[%s2975_s1 + $0x80] ss:$8 sps:$4 sm:$0xff] (!%p138_p2)   ;;  %p161_p3 = scmp.lt.s32.totalorder (!%p138_p2), %s1749_s13, 1 }
   0x6   : > { %141 = sbr.rel (%p138_p2) target bundleno = 387 (0x183), region = 32  ;;  %v2124_v1 = vld [vmem:[%s2975_s1 + $0x204] ss:$8 sps:$4 sm:$0xff] (!%p138_p2)   ;;  %358 = vmatprep.mubr.bf16.mxu1 (!%p138_p2), %v2346_v2  ;;  %986 = vmatprep.mubr.bf16.mxu0 (!%p138_p2), %v2346_v2  ;;  %v2127_v4 = vld [vmem:[%s2975_s1 + $0x200] ss:$8 sps:$4 sm:$0xff] (!%p138_p2)   ;;  %vm210_vm0 = vcmask (!%p138_p2), 1046528  }
   0x7   : > { %326 = vmatprep.subr.bf16.mxu1 (!%p138_p2), %v2122_v0  ;;  %954 = vmatprep.subr.bf16.mxu0 (!%p138_p2), %v2124_v1  ;;  %v2128_v5 = vld [vmem:[%s2975_s1 + $0x94] ss:$8 sps:$4 sm:$0xff] (!%p138_p2)   ;;  %v2132_v7 = vld [vmem:[%s2975_s1 + $0x90] ss:$8 sps:$4 sm:$0xff] (!%p138_p2)   ;;  %v2134_v9 = vld [vmem:[%s2975_s1 + $0xa4] ss:$8 sps:$4 sm:$0xff] (!%p138_p2)  }
   0x8   : > { %327 = vmatpush1.bf16.msra.mxu1 (!%p138_p2), %v2126_v3  ;;  %955 = vmatpush1.bf16.msra.mxu0 (!%p138_p2), %v2127_v4  ;;  %v2130_v6 = vld [vmem:[%s2975_s1 + $0x214] ss:$8 sps:$4 sm:$0xff] (!%p138_p2)   ;;  %v2133_v8 = vld [vmem:[%s2975_s1 + $0x210] ss:$8 sps:$4 sm:$0xff] (!%p138_p2)   ;;  %v2136_v10 = vld [vmem:[%s2975_s1 + $0x224] ss:$8 sps:$4 sm:$0xff] (!%p138_p2)  }
   0x9   : > { %328 = vmatprep.subr.bf16.mxu1 (!%p138_p2), %v2128_v5  ;;  %956 = vmatprep.subr.bf16.mxu0 (!%p138_p2), %v2130_v6  ;;  %v2138_v11 = vld [vmem:[%s2975_s1 + $0xa0] ss:$8 sps:$4 sm:$0xff] (!%p138_p2)   ;;  %v2140_v13 = vld [vmem:[%s2975_s1 + $0xb4] ss:$8 sps:$4 sm:$0xff] (!%p138_p2)   ;;  %v2144_v15 = vld [vmem:[%s2975_s1 + $0xb0] ss:$8 sps:$4 sm:$0xff] (!%p138_p2)  }
   0xa   : > { %v2139_v12 = vld [vmem:[%s2975_s1 + $0x220] ss:$8 sps:$4 sm:$0xff] (!%p138_p2)   ;;  %v2142_v14 = vld [vmem:[%s2975_s1 + $0x234] ss:$8 sps:$4 sm:$0xff] (!%p138_p2)   ;;  %v2145_v16 = vld [vmem:[%s2975_s1 + $0x230] ss:$8 sps:$4 sm:$0xff] (!%p138_p2)  }
   0xb   : > { %v2146_v17 = vld [vmem:[%s2975_s1 + $0xc4] ss:$8 sps:$4 sm:$0xff] (!%p138_p2)   ;;  %v2150_v19 = vld [vmem:[%s2975_s1 + $0xc0] ss:$8 sps:$4 sm:$0xff] (!%p138_p2)   ;;  %v2152_v21 = vld [vmem:[%s2975_s1 + $0xd4] ss:$8 sps:$4 sm:$0xff] (!%p138_p2)  }
   0xc   : > { %329 = vmatpush1.bf16.msra.mxu1 (!%p138_p2), %v2132_v7  ;;  %957 = vmatpush1.bf16.msra.mxu0 (!%p138_p2), %v2133_v8  ;;  %v2148_v18 = vld [vmem:[%s2975_s1 + $0x244] ss:$8 sps:$4 sm:$0xff] (!%p138_p2)   ;;  %v2151_v20 = vld [vmem:[%s2975_s1 + $0x240] ss:$8 sps:$4 sm:$0xff] (!%p138_p2)   ;;  %v2154_v22 = vld [vmem:[%s2975_s1 + $0x254] ss:$8 sps:$4 sm:$0xff] (!%p138_p2)  }
   0xd   : > { %330 = vmatprep.subr.bf16.mxu1 %v2134_v9  ;;  %958 = vmatprep.subr.bf16.mxu0 %v2136_v10  ;;  %s2979_s13 = smov (!%p161_p3, %s1749_s13), 1  ;;  %v2156_v23 = vld [vmem:[%s2975_s1 + $0xd0] ss:$8 sps:$4 sm:$0xff]   ;;  %v2158_v25 = vld [vmem:[%s2975_s1 + $0xe4] ss:$8 sps:$4 sm:$0xff]   ;;  %vm512_vm1 = vcmask 1045504  }
   0xe   : > { %s2112_s6 = smul.u32 96, %s2979_s13  ;;  %v2157_v24 = vld [vmem:[%s2975_s1 + $0x250] ss:$8 sps:$4 sm:$0xff]   ;;  %v2160_v26 = vld [vmem:[%s2975_s1 + $0x264] ss:$8 sps:$4 sm:$0xff]   ;;  %s2031_s9 = sshll.u32 %s2979_s13, 6 }
   0xf   : > { %v2162_v27 = vld [vmem:[%s2975_s1 + $0xe0] ss:$8 sps:$4 sm:$0xff]   ;;  %v2164_v29 = vld [vmem:[%s2975_s1 + $0xf4] ss:$8 sps:$4 sm:$0xff]   ;;  %v2168_v46 = vld [vmem:[%s2975_s1 + $0xf0] ss:$8 sps:$4 sm:$0xff]   ;;  %s170_s14 = scalar_lea.vmem %s2977_s3, %s2031_s9 }
  0x10   : > { %331 = vmatpush1.bf16.msra.mxu1 %v2138_v11  ;;  %959 = vmatpush1.bf16.msra.mxu0 %v2139_v12  ;;  %s2465_s19 = scalar_lea.vmem %s2974_s0, %s2112_s6  ;;  %v2163_v28 = vld [vmem:[%s2975_s1 + $0x260] ss:$8 sps:$4 sm:$0xff]   ;;  %v2166_v30 = vld [vmem:[%s2975_s1 + $0x274] ss:$8 sps:$4 sm:$0xff]   ;;  %v2169_v47 = vld [vmem:[%s2975_s1 + $0x270] ss:$8 sps:$4 sm:$0xff]  }
  0x11   : > { %332 = vmatprep.subr.bf16.mxu1 %v2140_v13  ;;  %960 = vmatprep.subr.bf16.mxu0 %v2142_v14  ;;  %v2480_v31 = vld [vmem:[%s2465_s19] sm:$0xff]  ;;  %v173_v32 = vld [vmem:[%s2465_s19 + $0x8] sm:$0x3]  ;;  %v2484_v33 = vld [vmem:[%s2465_s19 + $0x10] sm:$0xff] }
  0x12   : > { %v2487_v34 = vld [vmem:[%s2465_s19 + $0x18] sm:$0x3]  ;;  %v211_v35 = vrot.slane %v2480_v31, 1  ;;  %v212_v36 = vrot.slane %v173_v32, 1  ;;  %v214_v37 = vrot.slane %v2484_v33, 1  ;;  %v513_v38 = vrot.slane %v2480_v31, 2 }
  0x13   : > { %v215_v39 = vrot.slane %v2487_v34, 1  ;;  %v514_v40 = vrot.slane %v173_v32, 2  ;;  %v2494_v41 = vld [vmem:[%s2465_s19 + $0x20] sm:$0xff]  ;;  %v2497_v42 = vld [vmem:[%s2465_s19 + $0x28] sm:$0x3]  ;;  %v2566_v7 = vld [vmem:[%s2465_s19 + $0x30] sm:$0xff] }
  0x14   : > { %333 = vmatpush1.bf16.msra.mxu1 %v2144_v15  ;;  %961 = vmatpush1.bf16.msra.mxu0 %v2145_v16  ;;  %v213_v43 = vsel %vm210_vm0, %v211_v35, %v212_v36  ;;  %v217_v44 = vrot.slane %v2494_v41, 1  ;;  %v218_v45 = vrot.slane %v2497_v42, 1  ;;  %v689_v50 = vpack.c.bf16 %v2494_v41, %v2484_v33  ;;  %v2172_v51 = vld [vmem:[%s2975_s1 + $0x4] ss:$8 sps:$4 sm:$0xff]   ;;  %v2170_v54 = vld [vmem:[%s2975_s1] ss:$8 sps:$4 sm:$0xff]  }
  0x15   : > { %334 = vmatprep.subr.bf16.mxu1 %v2146_v17  ;;  %962 = vmatprep.subr.bf16.mxu0 %v2148_v18  ;;  %v216_v48 = vsel %vm210_vm0, %v214_v37, %v215_v39  ;;  %v2510_v49 = vsel %vm512_vm1, %v513_v38, %v514_v40  ;;  %v2175_v52 = vld [vmem:[%s2975_s1 + $0x284] ss:$8 sps:$4 sm:$0xff]   ;;  %v2173_v57 = vld [vmem:[%s2975_s1 + $0x280] ss:$8 sps:$4 sm:$0xff]   ;;  %v2178_v58 = vld [vmem:[%s2975_s1 + $0x14] ss:$8 sps:$4 sm:$0xff]  }
  0x16   : > { %v219_v53 = vsel %vm210_vm0, %v217_v44, %v218_v45  ;;  %v227_v55 = vpack.c.bf16 %v216_v48, %v213_v43  ;;  %v2181_v59 = vld [vmem:[%s2975_s1 + $0x294] ss:$8 sps:$4 sm:$0xff]   ;;  %v2176_v60 = vld [vmem:[%s2975_s1 + $0x10] ss:$8 sps:$4 sm:$0xff]   ;;  %v2184_v62 = vld [vmem:[%s2975_s1 + $0x24] ss:$8 sps:$4 sm:$0xff]  }
  0x17   : > { %v855_v56 = vpack.c.bf16 %v219_v53, %v216_v48  ;;  %v2179_v61 = vld [vmem:[%s2975_s1 + $0x290] ss:$8 sps:$4 sm:$0xff]   ;;  %v2187_v63 = vld [vmem:[%s2975_s1 + $0x2a4] ss:$8 sps:$4 sm:$0xff]   ;;  %v2182_v0 = vld [vmem:[%s2975_s1 + $0x20] ss:$8 sps:$4 sm:$0xff]  }
  0x18   : > { %335 = vmatpush1.bf16.msra.mxu1 %v2150_v19  ;;  %963 = vmatpush1.bf16.msra.mxu0 %v2151_v20  ;;  %v2185_v1 = vld [vmem:[%s2975_s1 + $0x2a0] ss:$8 sps:$4 sm:$0xff]   ;;  %v2190_v3 = vld [vmem:[%s2975_s1 + $0x34] ss:$8 sps:$4 sm:$0xff]   ;;  %v2188_v5 = vld [vmem:[%s2975_s1 + $0x30] ss:$8 sps:$4 sm:$0xff]  }
  0x19   : > { %336 = vmatprep.subr.bf16.mxu1 %v2152_v21  ;;  %964 = vmatprep.subr.bf16.mxu0 %v2154_v22  ;;  %v2193_v4 = vld [vmem:[%s2975_s1 + $0x2b4] ss:$8 sps:$4 sm:$0xff]   ;;  %v2191_v6 = vld [vmem:[%s2975_s1 + $0x2b0] ss:$8 sps:$4 sm:$0xff]   ;;  %v2572_v9 = vld [vmem:[%s2465_s19 + $0x40] sm:$0xff]  ;;  %v220_v10 = vrot.slane %v2566_v7, 1 }
  0x1a   : > { %v2569_v8 = vld [vmem:[%s2465_s19 + $0x38] sm:$0x3]  ;;  %v2577_v12 = vld [vmem:[%s2465_s19 + $0x48] sm:$0x3]  ;;  %v851_v13 = vrot.slane %v2572_v9, 1  ;;  %v690_v17 = vpack.c.bf16 %v2572_v9, %v2566_v7  ;;  %v520_v32 = vrot.slane %v2497_v42, 2 }
  0x1b   : > { %v221_v11 = vrot.slane %v2569_v8, 1  ;;  %v2196_v14 = vld [vmem:[%s2975_s1 + $0x44] ss:$8 sps:$4 sm:$0xff]   ;;  %v852_v16 = vrot.slane %v2577_v12, 1  ;;  %v2194_v21 = vld [vmem:[%s2975_s1 + $0x40] ss:$8 sps:$4 sm:$0xff]  }
  0x1c   : > { %337 = vmatpush1.bf16.msra.mxu1 %v2156_v23  ;;  %965 = vmatpush1.bf16.msra.mxu0 %v2157_v24  ;;  %v2199_v15 = vld [vmem:[%s2975_s1 + $0x2c4] ss:$8 sps:$4 sm:$0xff]   ;;  %v2197_v22 = vld [vmem:[%s2975_s1 + $0x2c0] ss:$8 sps:$4 sm:$0xff]   ;;  %v2202_v24 = vld [vmem:[%s2975_s1 + $0x54] ss:$8 sps:$4 sm:$0xff]  }
  0x1d   : > { %338 = vmatprep.subr.bf16.mxu1 %v2158_v25  ;;  %966 = vmatprep.subr.bf16.mxu0 %v2160_v26  ;;  %v222_v18 = vsel %vm210_vm0, %v220_v10, %v221_v11  ;;  %v2593_v20 = vsel %vm210_vm0, %v851_v13, %v852_v16  ;;  %v2205_v25 = vld [vmem:[%s2975_s1 + $0x2d4] ss:$8 sps:$4 sm:$0xff]   ;;  %v2200_v26 = vld [vmem:[%s2975_s1 + $0x50] ss:$8 sps:$4 sm:$0xff]   ;;  %v516_v35 = vrot.slane %v2484_v33, 2  ;;  %v519_v38 = vrot.slane %v2494_v41, 2 }
  0x1e   : > { %v2590_v19 = vpack.c.bf16 %v222_v18, %v219_v53  ;;  %v856_v23 = vpack.c.bf16 %v2593_v20, %v222_v18  ;;  %v2206_v36 = vld [vmem:[%s2975_s1 + $0x60] ss:$8 sps:$4 sm:$0xff]   ;;  %v2217_v39 = vld [vmem:[%s2975_s1 + $0x2f4] ss:$8 sps:$4 sm:$0xff]   ;;  %v2212_v40 = vld [vmem:[%s2975_s1 + $0x70] ss:$8 sps:$4 sm:$0xff]   ;;  %v2716_v13 = vpack.c.bf16 %v2566_v7, %v2494_v41 }
  0x1f   : > { %v2209_v37 = vld [vmem:[%s2975_s1 + $0x2e0] ss:$8 sps:$4 sm:$0xff]   ;;  %v2215_v42 = vld [vmem:[%s2975_s1 + $0x2f0] ss:$8 sps:$4 sm:$0xff]   ;;  %v2649_v44 = vsel %vm512_vm1, %v519_v38, %v520_v32  ;;  %v2220_v45 = vld [vmem:[%s2975_s1 + $0x104] ss:$8 sps:$4 sm:$0xff]  }
  0x20   : > { %339 = vmatpush1.bf16.msra.mxu1 %v2162_v27  ;;  %967 = vmatpush1.bf16.msra.mxu0 %v2163_v28  ;;  %v2203_v27 = vld [vmem:[%s2975_s1 + $0x2d0] ss:$8 sps:$4 sm:$0xff]   ;;  %v2208_v28 = vld [vmem:[%s2975_s1 + $0x64] ss:$8 sps:$4 sm:$0xff]   ;;  %v1015_v53 = vrot.slane %v2572_v9, 2 }
  0x21   : > { %340 = vmatprep.subr.bf16.mxu1 %v2164_v29  ;;  %968 = vmatprep.subr.bf16.mxu0 %v2166_v30  ;;  %v2211_v29 = vld [vmem:[%s2975_s1 + $0x2e4] ss:$8 sps:$4 sm:$0xff]   ;;  %v517_v30 = vrot.slane %v2487_v34, 2  ;;  %v2214_v34 = vld [vmem:[%s2975_s1 + $0x74] ss:$8 sps:$4 sm:$0xff]  }
  0x22   : > { %v2230_v11 = vld [vmem:[%s2975_s1 + $0x120] ss:$8 sps:$4 sm:$0xff]   ;;  %v2238_v16 = vld [vmem:[%s2975_s1 + $0x134] ss:$8 sps:$4 sm:$0xff]   ;;  %v2251_v32 = vld [vmem:[%s2975_s1 + $0x350] ss:$8 sps:$4 sm:$0xff]  }
  0x23   : > { %v2646_v43 = vsel %vm512_vm1, %v516_v35, %v517_v30  ;;  %v2248_v30 = vld [vmem:[%s2975_s1 + $0x150] ss:$8 sps:$4 sm:$0xff]   ;;  %v2256_v35 = vld [vmem:[%s2975_s1 + $0x164] ss:$8 sps:$4 sm:$0xff]   ;;  %v2257_v38 = vld [vmem:[%s2975_s1 + $0x360] ss:$8 sps:$4 sm:$0xff]  }
  0x24   : > { %341 = vmatpush1.bf16.msra.mxu1 %v2168_v46  ;;  %969 = vmatpush1.bf16.msra.mxu0 %v2169_v47  ;;  %v2223_v46 = vld [vmem:[%s2975_s1 + $0x304] ss:$8 sps:$4 sm:$0xff]   ;;  %v184_v47 = vpack.c.bf16 %v2484_v33, %v2480_v31  ;;  %v1019_v48 = vpack.c.bf16 %v2649_v44, %v2646_v43  ;;  %v1016_v31 = vrot.slane %v2577_v12, 2  ;;  %v2233_v12 = vld [vmem:[%s2975_s1 + $0x320] ss:$8 sps:$4 sm:$0xff]  }
  0x25   : > { %459 = vmatprep.subr.bf16.mxu1 %v2172_v51  ;;  %1118 = vmatprep.subr.bf16.mxu0 %v2175_v52  ;;  %v522_v51 = vrot.slane %v2566_v7, 2  ;;  %v523_v52 = vrot.slane %v2569_v8, 2  ;;  %v2320_v33 = vld [vmem:[%s2975_s1 + $0x420] ss:$8 sps:$4 sm:$0xff]   ;;  %v2325_v41 = vld [vmem:[%s2975_s1 + $0x434] ss:$8 sps:$4 sm:$0xff]  }
  0x26   : > { %v2326_v7 = vld [vmem:[%s2975_s1 + $0x440] ss:$8 sps:$4 sm:$0xff]  }
  0x27   : > { %359 = vmatmul.mubr.bf16.vlgmr.msra.gmra.mrb[0].mxu1 %v227_v55  ;;  %987 = vmatmul.mubr.bf16.vlgmr.msra.gmra.mrb[0].mxu0 %v855_v56  ;;  %v2221_v55 = vld [vmem:[%s2975_s1 + $0x300] ss:$8 sps:$4 sm:$0xff]   ;;  %v2226_v56 = vld [vmem:[%s2975_s1 + $0x114] ss:$8 sps:$4 sm:$0xff]  }
  0x28   : > { %460 = vmatpush1.bf16.msra.mxu1 %v2170_v54  ;;  %1119 = vmatpush1.bf16.msra.mxu0 %v2173_v57  ;;  %v2218_v54 = vld [vmem:[%s2975_s1 + $0x100] ss:$8 sps:$4 sm:$0xff]   ;;  %v2229_v57 = vld [vmem:[%s2975_s1 + $0x314] ss:$8 sps:$4 sm:$0xff]  }
  0x29   : > { %461 = vmatprep.subr.bf16.mxu1 %v2178_v58  ;;  %1120 = vmatprep.subr.bf16.mxu0 %v2181_v59  ;;  %v2678_v58 = vld [vmem:[%s2465_s19 + $0x50] sm:$0xff]  ;;  %v183_v59 = vld [vmem:[%s2465_s19 + $0x58] sm:$0x3] }
  0x2a   : > { %368 = vmatprep.mubr.bf16.mxu1 %v2346_v2  ;;  %996 = vmatprep.mubr.bf16.mxu0 %v2346_v2  ;;  %v1341_v8 = vrot.slane %v183_v59, 1 }
  0x2c   : > { %462 = vmatpush1.bf16.msra.mxu1 %v2176_v60  ;;  %1121 = vmatpush1.bf16.msra.mxu0 %v2179_v61  ;;  %v2224_v60 = vld [vmem:[%s2975_s1 + $0x110] ss:$8 sps:$4 sm:$0xff]   ;;  %v1503_v61 = vrot.slane %v2678_v58, 2 }
  0x2d   : > { %463 = vmatprep.subr.bf16.mxu1 %v2184_v62  ;;  %1122 = vmatprep.subr.bf16.mxu0 %v2187_v63  ;;  %v1504_v62 = vrot.slane %v183_v59, 2  ;;  %v2227_v63 = vld [vmem:[%s2975_s1 + $0x310] ss:$8 sps:$4 sm:$0xff]   ;;  %v2281_v59 = vld [vmem:[%s2975_s1 + $0x3a0] ss:$8 sps:$4 sm:$0xff]  }
  0x2f   : > { %369 = vmatmul.mubr.bf16.gmra.mrb[4].mxu1 %v2590_v19  ;;  %997 = vmatmul.mubr.bf16.gmra.mrb[4].mxu0 %v856_v23  ;;  %v2239_v23 = vld [vmem:[%s2975_s1 + $0x330] ss:$8 sps:$4 sm:$0xff]  }
  0x30   : > { %464 = vmatpush1.bf16.msra.mxu1 %v2182_v0  ;;  %1123 = vmatpush1.bf16.msra.mxu0 %v2185_v1  ;;  %v2232_v0 = vld [vmem:[%s2975_s1 + $0x124] ss:$8 sps:$4 sm:$0xff]   ;;  %v2692_v1 = vsel %vm512_vm1, %v522_v51, %v523_v52  ;;  %v529_v51 = vpack.c.bf16 %v2646_v43, %v2510_v49  ;;  %v2274_v52 = vld [vmem:[%s2975_s1 + $0x194] ss:$8 sps:$4 sm:$0xff]   ;;  %v2275_v49 = vld [vmem:[%s2975_s1 + $0x390] ss:$8 sps:$4 sm:$0xff]  }
  0x31   : > { %465 = vmatprep.subr.bf16.mxu1 %v2190_v3  ;;  %1124 = vmatprep.subr.bf16.mxu0 %v2193_v4  ;;  %v2695_v3 = vsel %vm512_vm1, %v1015_v53, %v1016_v31  ;;  %v1340_v4 = vrot.slane %v2678_v58, 1  ;;  %v2277_v53 = vld [vmem:[%s2975_s1 + $0x394] ss:$8 sps:$4 sm:$0xff]   ;;  %v2280_v43 = vld [vmem:[%s2975_s1 + $0x1a4] ss:$8 sps:$4 sm:$0xff]   ;;  %v2825_v31 = vpack.c.bf16 %v2692_v1, %v2649_v44 }
  0x32   : > { %491 = vmatprep.mubr.bf16.mxu1 %v2346_v2  ;;  %1150 = vmatprep.mubr.bf16.mxu0 %v2346_v2  ;;  %v2286_v44 = vld [vmem:[%s2975_s1 + $0x1b4] ss:$8 sps:$4 sm:$0xff]  }
  0x34   : > { %466 = vmatpush1.bf16.msra.mxu1 %v2188_v5  ;;  %1125 = vmatpush1.bf16.msra.mxu0 %v2191_v6  ;;  %v2235_v5 = vld [vmem:[%s2975_s1 + $0x324] ss:$8 sps:$4 sm:$0xff]   ;;  %v2702_v6 = vsel %vm512_vm1, %v1503_v61, %v1504_v62  ;;  %v2287_v61 = vld [vmem:[%s2975_s1 + $0x3b0] ss:$8 sps:$4 sm:$0xff]  }
  0x35   : > { %467 = vmatprep.subr.bf16.mxu1 %v2196_v14  ;;  %1126 = vmatprep.subr.bf16.mxu0 %v2199_v15  ;;  %v1507_v10 = vpack.c.bf16 %v2702_v6, %v2695_v3  ;;  %v1020_v14 = vpack.c.bf16 %v2695_v3, %v2692_v1  ;;  %v2721_v15 = vsel %vm210_vm0, %v1340_v4, %v1341_v8  ;;  %v2292_v62 = vld [vmem:[%s2975_s1 + $0x1c4] ss:$8 sps:$4 sm:$0xff]   ;;  %v2293_v1 = vld [vmem:[%s2975_s1 + $0x3c0] ss:$8 sps:$4 sm:$0xff]   ;;  %v2298_v4 = vld [vmem:[%s2975_s1 + $0x1d4] ss:$8 sps:$4 sm:$0xff]  }
  0x36   : > { %v1344_v18 = vpack.c.bf16 %v2721_v15, %v2593_v20  ;;  %v2296_v8 = vld [vmem:[%s2975_s1 + $0x1d0] ss:$8 sps:$4 sm:$0xff]   ;;  %v2332_v20 = vld [vmem:[%s2975_s1 + $0x460] ss:$8 sps:$4 sm:$0xff]   ;;  %v2337_v15 = vld [vmem:[%s2975_s1 + $0x474] ss:$8 sps:$4 sm:$0xff]  }
  0x38   : > { %468 = vmatpush1.bf16.msra.mxu1 %v2194_v21  ;;  %1127 = vmatpush1.bf16.msra.mxu0 %v2197_v22  ;;  %v2241_v21 = vld [vmem:[%s2975_s1 + $0x334] ss:$8 sps:$4 sm:$0xff]   ;;  %v2236_v22 = vld [vmem:[%s2975_s1 + $0x130] ss:$8 sps:$4 sm:$0xff]  }
  0x39   : > { %469 = vmatprep.subr.bf16.mxu1 %v2202_v24  ;;  %1128 = vmatprep.subr.bf16.mxu0 %v2205_v25  ;;  %v2244_v24 = vld [vmem:[%s2975_s1 + $0x144] ss:$8 sps:$4 sm:$0xff]  }
  0x3a   : > { %v2247_v25 = vld [vmem:[%s2975_s1 + $0x344] ss:$8 sps:$4 sm:$0xff]  }
  0x3c   : > { %470 = vmatpush1.bf16.msra.mxu1 %v2200_v26  ;;  %1129 = vmatpush1.bf16.msra.mxu0 %v2203_v27  ;;  %v2242_v26 = vld [vmem:[%s2975_s1 + $0x140] ss:$8 sps:$4 sm:$0xff]  }
  0x3d   : > { %471 = vmatprep.subr.bf16.mxu1 %v2208_v28  ;;  %1130 = vmatprep.subr.bf16.mxu0 %v2211_v29  ;;  %v2245_v27 = vld [vmem:[%s2975_s1 + $0x340] ss:$8 sps:$4 sm:$0xff]   ;;  %v2250_v28 = vld [vmem:[%s2975_s1 + $0x154] ss:$8 sps:$4 sm:$0xff]  }
  0x3e   : > { %v2253_v29 = vld [vmem:[%s2975_s1 + $0x354] ss:$8 sps:$4 sm:$0xff]  }
  0x40   : > { %472 = vmatpush1.bf16.msra.mxu1 %v2206_v36  ;;  %1131 = vmatpush1.bf16.msra.mxu0 %v2209_v37  ;;  %v2259_v36 = vld [vmem:[%s2975_s1 + $0x364] ss:$8 sps:$4 sm:$0xff]   ;;  %v2254_v37 = vld [vmem:[%s2975_s1 + $0x160] ss:$8 sps:$4 sm:$0xff]  }
  0x41   : > { %473 = vmatprep.subr.bf16.mxu1 %v2214_v34  ;;  %1132 = vmatprep.subr.bf16.mxu0 %v2217_v39  ;;  %v2262_v34 = vld [vmem:[%s2975_s1 + $0x174] ss:$8 sps:$4 sm:$0xff]  }
  0x42   : > { %v2265_v39 = vld [vmem:[%s2975_s1 + $0x374] ss:$8 sps:$4 sm:$0xff]  }
  0x44   : > { %474 = vmatpush1.bf16.msra.mxu1 %v2212_v40  ;;  %1133 = vmatpush1.bf16.msra.mxu0 %v2215_v42  ;;  %v2260_v40 = vld [vmem:[%s2975_s1 + $0x170] ss:$8 sps:$4 sm:$0xff]  }
  0x45   : > { %628 = vmatprep.subr.bf16.mxu1 %v2220_v45  ;;  %1277 = vmatprep.subr.bf16.mxu0 %v2223_v46  ;;  %v2263_v42 = vld [vmem:[%s2975_s1 + $0x370] ss:$8 sps:$4 sm:$0xff]   ;;  %v2268_v45 = vld [vmem:[%s2975_s1 + $0x184] ss:$8 sps:$4 sm:$0xff]  }
  0x46   : > { %v2271_v46 = vld [vmem:[%s2975_s1 + $0x384] ss:$8 sps:$4 sm:$0xff]  }
  0x47   : > { %492 = vmatmul.mubr.bf16.vlgmr.msra.gmra.mrb[0].mxu1 %v184_v47  ;;  %1151 = vmatmul.mubr.bf16.vlgmr.msra.gmra.mrb[0].mxu0 %v1019_v48  ;;  %v2266_v47 = vld [vmem:[%s2975_s1 + $0x180] ss:$8 sps:$4 sm:$0xff]  }
  0x48   : > { %629 = vmatpush1.bf16.msra.mxu1 %v2218_v54  ;;  %1278 = vmatpush1.bf16.msra.mxu0 %v2221_v55  ;;  %v2269_v48 = vld [vmem:[%s2975_s1 + $0x380] ss:$8 sps:$4 sm:$0xff]   ;;  %v2272_v54 = vld [vmem:[%s2975_s1 + $0x190] ss:$8 sps:$4 sm:$0xff]   ;;  %v2283_v55 = vld [vmem:[%s2975_s1 + $0x3a4] ss:$8 sps:$4 sm:$0xff]  }
  0x49   : > { %630 = vmatprep.subr.bf16.mxu1 %v2226_v56  ;;  %1279 = vmatprep.subr.bf16.mxu0 %v2229_v57  ;;  %v1179_v56 = vpack.c.bf16 %v2678_v58, %v2572_v9  ;;  %v2278_v57 = vld [vmem:[%s2975_s1 + $0x1a0] ss:$8 sps:$4 sm:$0xff]   ;;  %v2289_v58 = vld [vmem:[%s2975_s1 + $0x3b4] ss:$8 sps:$4 sm:$0xff]  }
  0x4a   : > { %501 = vmatprep.mubr.bf16.mxu1 %v2346_v2  ;;  %1160 = vmatprep.mubr.bf16.mxu0 %v2346_v2  ;;  %v2331_v9 = vld [vmem:[%s2975_s1 + $0x454] ss:$8 sps:$4 sm:$0xff]  }
  0x4c   : > { %631 = vmatpush1.bf16.msra.mxu1 %v2224_v60  ;;  %1280 = vmatpush1.bf16.msra.mxu0 %v2227_v63  ;;  %v2284_v60 = vld [vmem:[%s2975_s1 + $0x1b0] ss:$8 sps:$4 sm:$0xff]   ;;  %v2295_v63 = vld [vmem:[%s2975_s1 + $0x3c4] ss:$8 sps:$4 sm:$0xff]  }
  0x4d   : > { %632 = vmatprep.subr.bf16.mxu1 %v2232_v0  ;;  %1281 = vmatprep.subr.bf16.mxu0 %v2235_v5  ;;  %v2290_v0 = vld [vmem:[%s2975_s1 + $0x1c0] ss:$8 sps:$4 sm:$0xff]   ;;  %v2301_v5 = vld [vmem:[%s2975_s1 + $0x3d4] ss:$8 sps:$4 sm:$0xff]  }
  0x4f   : > { %502 = vmatmul.mubr.bf16.gmra.mrb[4].mxu1 %v2716_v13  ;;  %1161 = vmatmul.mubr.bf16.gmra.mrb[4].mxu0 %v1020_v14  ;;  %v2302_v14 = vld [vmem:[%s2975_s1 + $0x1e0] ss:$8 sps:$4 sm:$0xff]  }
  0x50   : > { %633 = vmatpush1.bf16.msra.mxu1 %v2230_v11  ;;  %1282 = vmatpush1.bf16.msra.mxu0 %v2233_v12  ;;  %v2299_v11 = vld [vmem:[%s2975_s1 + $0x3d0] ss:$8 sps:$4 sm:$0xff]   ;;  %v2304_v12 = vld [vmem:[%s2975_s1 + $0x1e4] ss:$8 sps:$4 sm:$0xff]  }
  0x51   : > { %634 = vmatprep.subr.bf16.mxu1 %v2238_v16  ;;  %1283 = vmatprep.subr.bf16.mxu0 %v2241_v21  ;;  %v2305_v16 = vld [vmem:[%s2975_s1 + $0x3e0] ss:$8 sps:$4 sm:$0xff]   ;;  %v2310_v21 = vld [vmem:[%s2975_s1 + $0x1f4] ss:$8 sps:$4 sm:$0xff]  }
  0x52   : > { %660 = vmatprep.mubr.bf16.mxu1 %v2346_v2  ;;  %1309 = vmatprep.mubr.bf16.mxu0 %v2346_v2 }
  0x54   : > { %635 = vmatpush1.bf16.msra.mxu1 %v2236_v22  ;;  %1284 = vmatpush1.bf16.msra.mxu0 %v2239_v23  ;;  %v2313_v22 = vld [vmem:[%s2975_s1 + $0x3f4] ss:$8 sps:$4 sm:$0xff]   ;;  %v2308_v23 = vld [vmem:[%s2975_s1 + $0x1f0] ss:$8 sps:$4 sm:$0xff]  }
  0x55   : > { %636 = vmatprep.subr.bf16.mxu1 %v2244_v24  ;;  %1285 = vmatprep.subr.bf16.mxu0 %v2247_v25  ;;  %v2311_v24 = vld [vmem:[%s2975_s1 + $0x3f0] ss:$8 sps:$4 sm:$0xff]   ;;  %v2316_v25 = vld [vmem:[%s2975_s1 + $0x404] ss:$8 sps:$4 sm:$0xff]  }
  0x58   : > { %637 = vmatpush1.bf16.msra.mxu1 %v2242_v26  ;;  %1286 = vmatpush1.bf16.msra.mxu0 %v2245_v27  ;;  %v2314_v26 = vld [vmem:[%s2975_s1 + $0x400] ss:$8 sps:$4 sm:$0xff]   ;;  %v2319_v27 = vld [vmem:[%s2975_s1 + $0x414] ss:$8 sps:$4 sm:$0xff]  }
  0x59   : > { %638 = vmatprep.subr.bf16.mxu1 %v2250_v28  ;;  %1287 = vmatprep.subr.bf16.mxu0 %v2253_v29  ;;  %v2317_v28 = vld [vmem:[%s2975_s1 + $0x410] ss:$8 sps:$4 sm:$0xff]   ;;  %v2322_v29 = vld [vmem:[%s2975_s1 + $0x424] ss:$8 sps:$4 sm:$0xff]  }
  0x5c   : > { %639 = vmatpush1.bf16.msra.mxu1 %v2248_v30  ;;  %1288 = vmatpush1.bf16.msra.mxu0 %v2251_v32 }
  0x5d   : > { %640 = vmatprep.subr.bf16.mxu1 %v2256_v35  ;;  %1289 = vmatprep.subr.bf16.mxu0 %v2259_v36 }
  0x60   : > { %641 = vmatpush1.bf16.msra.mxu1 %v2254_v37  ;;  %1290 = vmatpush1.bf16.msra.mxu0 %v2257_v38 }
  0x61   : > { %642 = vmatprep.subr.bf16.mxu1 %v2262_v34  ;;  %1291 = vmatprep.subr.bf16.mxu0 %v2265_v39 }
  0x64   : > { %643 = vmatpush1.bf16.msra.mxu1 %v2260_v40  ;;  %1292 = vmatpush1.bf16.msra.mxu0 %v2263_v42 }
  0x65   : > { %788 = vmatprep.subr.bf16.mxu1 %v2268_v45  ;;  %1442 = vmatprep.subr.bf16.mxu0 %v2271_v46 }
  0x67   : > { %661 = vmatmul.mubr.bf16.vlgmr.msra.gmra.mrb[0].mxu1 %v529_v51  ;;  %1310 = vmatmul.mubr.bf16.vlgmr.msra.gmra.mrb[0].mxu0 %v2716_v13  ;;  %v2307_v13 = vld [vmem:[%s2975_s1 + $0x3e4] ss:$8 sps:$4 sm:$0xff]  }
  0x68   : > { %789 = vmatpush1.bf16.msra.mxu1 %v2266_v47  ;;  %1443 = vmatpush1.bf16.msra.mxu0 %v2269_v48 }
  0x69   : > { %790 = vmatprep.subr.bf16.mxu1 %v2274_v52  ;;  %1444 = vmatprep.subr.bf16.mxu0 %v2277_v53  ;;  %v1668_v53 = vlaneseq }
  0x6a   : > { %670 = vmatprep.mubr.bf16.mxu1 %v2346_v2  ;;  %1319 = vmatprep.mubr.bf16.mxu0 %v2346_v2 }
  0x6b   : > { %v1669_v3 = vshrl.u32 %v1668_v53, 7 }
  0x6c   : > { %791 = vmatpush1.bf16.msra.mxu1 %v2272_v54  ;;  %1445 = vmatpush1.bf16.msra.mxu0 %v2275_v49 }
  0x6d   : > { %792 = vmatprep.subr.bf16.mxu1 %v2280_v43  ;;  %1446 = vmatprep.subr.bf16.mxu0 %v2283_v55  ;;  %v1670_v6 = vsub.s32 0, %v1669_v3  ;;  %v1674_v54 = vsub.s32 1, %v1669_v3 }
  0x6f   : > { %671 = vmatmul.mubr.bf16.gmra.mrb[4].mxu1 %v2825_v31  ;;  %1320 = vmatmul.mubr.bf16.gmra.mrb[4].mxu0 %v1179_v56 }
  0x70   : > { %793 = vmatpush1.bf16.msra.mxu1 %v2278_v57  ;;  %1447 = vmatpush1.bf16.msra.mxu0 %v2281_v59 }
  0x71   : > { %794 = vmatprep.subr.bf16.mxu1 %v2286_v44  ;;  %1448 = vmatprep.subr.bf16.mxu0 %v2289_v58 }
  0x72   : > { %820 = vmatprep.mubr.bf16.mxu1 %v2346_v2  ;;  %1474 = vmatprep.mubr.bf16.mxu0 %v2346_v2 }
  0x74   : > { %795 = vmatpush1.bf16.msra.mxu1 %v2284_v60  ;;  %1449 = vmatpush1.bf16.msra.mxu0 %v2287_v61 }
  0x75   : > { %796 = vmatprep.subr.bf16.mxu1 %v2292_v62  ;;  %1450 = vmatprep.subr.bf16.mxu0 %v2295_v63 }
  0x78   : > { %797 = vmatpush1.bf16.msra.mxu1 %v2290_v0  ;;  %1451 = vmatpush1.bf16.msra.mxu0 %v2293_v1 }
  0x79   : > { %798 = vmatprep.subr.bf16.mxu1 %v2298_v4  ;;  %1452 = vmatprep.subr.bf16.mxu0 %v2301_v5 }
  0x7c   : > { %799 = vmatpush1.bf16.msra.mxu1 %v2296_v8  ;;  %1453 = vmatpush1.bf16.msra.mxu0 %v2299_v11 }
  0x7d   : > { %800 = vmatprep.subr.bf16.mxu1 %v2304_v12  ;;  %1454 = vmatprep.subr.bf16.mxu0 %v2307_v13 }
  0x80   : > { %801 = vmatpush1.bf16.msra.mxu1 %v2302_v14  ;;  %1455 = vmatpush1.bf16.msra.mxu0 %v2305_v16 }
  0x81   : > { %802 = vmatprep.subr.bf16.mxu1 %v2310_v21  ;;  %1456 = vmatprep.subr.bf16.mxu0 %v2313_v22 }
  0x84   : > { %803 = vmatpush1.bf16.msra.mxu1 %v2308_v23  ;;  %1457 = vmatpush1.bf16.msra.mxu0 %v2311_v24 }
  0x85   : > { %1605 = vmatprep.subr.bf16.mxu0 %v2316_v25  ;;  %2032 = vmatprep.subr.bf16.mxu1 %v2316_v25 }
  0x87   : > { %821 = vmatmul.mubr.bf16.vlgmr.msra.gmra.mrb[0].mxu1 %v689_v50  ;;  %1475 = vmatmul.mubr.bf16.vlgmr.msra.gmra.mrb[0].mxu0 %v2590_v19  ;;  %v2323_v50 = vld [vmem:[%s2975_s1 + $0x430] ss:$8 sps:$4 sm:$0xff]   ;;  %v2328_v19 = vld [vmem:[%s2975_s1 + $0x444] ss:$8 sps:$4 sm:$0xff]  }
  0x88   : > { %1606 = vmatpush1.bf16.msra.mxu0 %v2314_v26  ;;  %2040 = vmatpush1.bf16.msra.mxu1 %v2314_v26 }
  0x89   : > { %1607 = vmatprep.subr.bf16.mxu0 %v2319_v27  ;;  %2033 = vmatprep.subr.bf16.mxu1 %v2319_v27 }
  0x8a   : > { %830 = vmatprep.mubr.bf16.mxu1 %v2346_v2  ;;  %1484 = vmatprep.mubr.bf16.mxu0 %v2346_v2 }
  0x8c   : > { %1608 = vmatpush1.bf16.msra.mxu0 %v2317_v28  ;;  %2041 = vmatpush1.bf16.msra.mxu1 %v2317_v28 }
  0x8d   : > { %1609 = vmatprep.subr.bf16.mxu0 %v2322_v29  ;;  %2034 = vmatprep.subr.bf16.mxu1 %v2322_v29 }
  0x8f   : > { %831 = vmatmul.mubr.bf16.gmra.mrb[4].mxu1 %v690_v17  ;;  %1485 = vmatmul.mubr.bf16.gmra.mrb[4].mxu0 %v1344_v18  ;;  %v2329_v17 = vld [vmem:[%s2975_s1 + $0x450] ss:$8 sps:$4 sm:$0xff]  }
  0x90   : > { %1610 = vmatpush1.bf16.msra.mxu0 %v2320_v33  ;;  %2042 = vmatpush1.bf16.msra.mxu1 %v2320_v33  ;;  %v2335_v18 = vld [vmem:[%s2975_s1 + $0x470] ss:$8 sps:$4 sm:$0xff]  }
  0x91   : > { %1611 = vmatprep.subr.bf16.mxu0 %v2325_v41  ;;  %2035 = vmatprep.subr.bf16.mxu1 %v2325_v41 }
  0x92   : > { %1637 = vmatprep.mubr.bf16.mxu0 %v2346_v2  ;;  %1647 = vmatprep.mubr.bf16.mxu1 %v2346_v2  ;;  %v2334_v2 = vld [vmem:[%s2975_s1 + $0x464] ss:$8 sps:$4 sm:$0xff]  }
  0x94   : > { %1612 = vmatpush1.bf16.msra.mxu0 %v2323_v50  ;;  %2043 = vmatpush1.bf16.msra.mxu1 %v2323_v50 }
  0x95   : > { %1613 = vmatprep.subr.bf16.mxu0 %v2328_v19  ;;  %2036 = vmatprep.subr.bf16.mxu1 %v2328_v19 }
  0x98   : > { %1614 = vmatpush1.bf16.msra.mxu0 %v2326_v7  ;;  %2044 = vmatpush1.bf16.msra.mxu1 %v2326_v7 }
  0x99   : > { %1615 = vmatprep.subr.bf16.mxu0 %v2331_v9  ;;  %2037 = vmatprep.subr.bf16.mxu1 %v2331_v9 }
  0x9c   : > { %1616 = vmatpush1.bf16.msra.mxu0 %v2329_v17  ;;  %2045 = vmatpush1.bf16.msra.mxu1 %v2329_v17 }
  0x9d   : > { %1617 = vmatprep.subr.bf16.mxu0 %v2334_v2  ;;  %2038 = vmatprep.subr.bf16.mxu1 %v2334_v2 }
  0xa0   : > { %1618 = vmatpush1.bf16.msra.mxu0 %v2332_v20  ;;  %2046 = vmatpush1.bf16.msra.mxu1 %v2332_v20 }
  0xa1   : > { %1619 = vmatprep.subr.bf16.mxu0 %v2337_v15  ;;  %2039 = vmatprep.subr.bf16.mxu1 %v2337_v15 }
  0xa4   : > { %1620 = vmatpush1.bf16.msra.mxu0 %v2335_v18  ;;  %2047 = vmatpush1.bf16.msra.mxu1 %v2335_v18 }
  0xa7   : > { %1638 = vmatmul.mubr.bf16.vlgmr.msra.gmra.mrb[0].mxu0 %v2825_v31  ;;  %1648 = vmatmul.mubr.bf16.vlgmr.msra.gmra.mrb[8].mxu1 %v1507_v10  ;;  %v1666_v10 = vld [vmem:[%s2976_s2] sm:$0x3] }
  0xa8   : > { %v1671_v49 = vrot.slane %v1666_v10, %v1670_v6  ;;  %v1675_v31 = vrot.slane %v1666_v10, %v1674_v54 }
 0x15a   : > { %v822_v30 = vpop.f32.mrb[0].mxu1 }
 0x15b   : > { %v824_v32 = vpop.f32.mrb[1].mxu1 }
 0x15c   : > { %v826_v35 = vpop.f32.mrb[2].mxu1 }
 0x15d   : > { %v828_v36 = vpop.f32.mrb[3].mxu1 }
 0x162   : > { %v832_v37 = vpop.f32.mrb[4].mxu1  ;;  %v1486_v38 = vpop.f32.mrb[4].mxu0 }
 0x163   : > { %v2052_v34 = vadd.f32 %v1486_v38, %v832_v37  ;;  %v834_v39 = vpop.f32.mrb[5].mxu1  ;;  %v1488_v40 = vpop.f32.mrb[5].mxu0 }
 0x164   : > { %v2054_v42 = vadd.f32 %v1488_v40, %v834_v39  ;;  %v836_v45 = vpop.f32.mrb[6].mxu1  ;;  %v1490_v46 = vpop.f32.mrb[6].mxu0 }
 0x165   : > { %v2056_v47 = vadd.f32 %v1490_v46, %v836_v45  ;;  %v838_v48 = vpop.f32.mrb[7].mxu1  ;;  %v1492_v51 = vpop.f32.mrb[7].mxu0 }
 0x166   : > { %v2058_v52 = vadd.f32 %v1492_v51, %v838_v48 }
 0x17a   : > { %v1639_v43 = vpop.f32.mrb[0].mxu0  ;;  %v1649_v55 = vpop.f32.mrb[8].mxu1 }
 0x17b   : > { %v2048_v56 = vadd.f32 %v1639_v43, %v822_v30  ;;  %v2053_v57 = vadd.f32 %v2052_v34, %v1649_v55  ;;  %v1641_v59 = vpop.f32.mrb[1].mxu0  ;;  %v1651_v44 = vpop.f32.mrb[9].mxu1 }
 0x17c   : > { %v2049_v58 = vadd.f32 %v1641_v59, %v824_v32  ;;  %v2055_v60 = vadd.f32 %v2054_v42, %v1651_v44  ;;  %v1643_v61 = vpop.f32.mrb[2].mxu0  ;;  %v1653_v62 = vpop.f32.mrb[10].mxu1 }
 0x17d   : > { %v1678_v63 = vadd.f32 %v2048_v56, %v1671_v49  ;;  %v1682_v0 = vadd.f32 %v2053_v57, %v1671_v49  ;;  %v2050_v1 = vadd.f32 %v1643_v61, %v826_v35  ;;  %v2057_v4 = vadd.f32 %v2056_v47, %v1653_v62  ;;  %v1645_v5 = vpop.f32.mrb[3].mxu0  ;;  %v1655_v8 = vpop.f32.mrb[11].mxu1 }
 0x17e   : > { %v1679_v11 = vadd.f32 %v2049_v58, %v1675_v31  ;;  %v1683_v12 = vadd.f32 %v2055_v60, %v1675_v31  ;;  %v2051_v13 = vadd.f32 %v1645_v5, %v828_v36  ;;  %v2059_v14 = vadd.f32 %v2058_v52, %v1655_v8 }
 0x17f   : > { %1686 = vst [vmem:[%s170_s14] sm:$0xff] %v1678_v63  ;;  %1690 = vst [vmem:[%s170_s14 + $0x20] sm:$0xff] %v1682_v0  ;;  %v1680_v16 = vadd.f32 %v2050_v1, %v1671_v49  ;;  %v1684_v21 = vadd.f32 %v2057_v4, %v1671_v49 }
 0x180   : > { %1687 = vst [vmem:[%s170_s14 + $0x8] sm:$0xff] %v1679_v11  ;;  %1691 = vst [vmem:[%s170_s14 + $0x28] sm:$0xff] %v1683_v12  ;;  %v1681_v22 = vadd.f32 %v2051_v13, %v1675_v31  ;;  %v1685_v23 = vadd.f32 %v2059_v14, %v1675_v31 }
 0x181   : > { %1688 = vst [vmem:[%s170_s14 + $0x10] sm:$0xff] %v1680_v16  ;;  %1692 = vst [vmem:[%s170_s14 + $0x30] sm:$0xff] %v1684_v21 }
 0x182   : > { %1689 = vst [vmem:[%s170_s14 + $0x18] sm:$0xff] %v1681_v22  ;;  %1693 = vst [vmem:[%s170_s14 + $0x38] sm:$0xff] %v1685_v23 }
 0x183 PF: > { %s13_s12 = sadd.s32 1, %s2344_s12  }
 0x184   : > { %p10_p4 = scmp.ge.s32.totalorder %s13_s12, 4  }
 0x186   :  { %12 = sbr.rel (!%p10_p4) target bundleno = 1 (0x1), region = 70 }

// kernel: discriminator_forward.17
= control target key start
LH: loop header
LB: loop body
LE: loop exit
PB: predicated region body
PF: predicated region fallthrough
CT: control target
= control target key end

     0   :  { %s3825_s12 = smov 0   ;;  %s4960_s0 = inlined_call_operand.vmem [shape: f32[2,6,10,256], index: 0, kind: input, shape index: {}]   ;;  %s4961_s1 = inlined_call_operand.vmem [shape: bf16[9,256,256], index: 1, kind: input, shape index: {}]   ;;  %s4962_s2 = inlined_call_operand.vmem [shape: f32[1,256], index: 2, kind: input, shape index: {}]   ;;  %s4963_s3 = inlined_call_operand.vmem [shape: f32[2,32,256], index: 3, kind: output, shape index: {}]  }
   0x1 LB: > { %s2699_s13 = sadd.s32 4294967295, %s3803_s12   ;;  %p2703_p0 = scmp.ge.s32.totalorder %s3803_s12, 1  ;;  %s3803_s12 = sphi %s3825_s12, %s13_s12  }
   0x2   : > { %p137_p1 = scmp.lt.s32.totalorder %s3803_s12, 3 }
   0x4   : > { %p138_p2 = pnand %p2703_p0, %p137_p1 }
   0x5   : > { %v3359_v0 = vld [vmem:[%s4961_s1 + $0x104] ss:$8 sps:$4 sm:$0xff] (!%p138_p2)   ;;  %v3363_v2 = vld [vmem:[%s4961_s1 + $0x100] ss:$8 sps:$4 sm:$0xff] (!%p138_p2)   ;;  %v3365_v4 = vld [vmem:[%s4961_s1 + $0x114] ss:$8 sps:$4 sm:$0xff] (!%p138_p2)  }
   0x6   : > { %141 = sbr.rel (%p138_p2) target bundleno = 547 (0x223), region = 32  ;;  %v3361_v1 = vld [vmem:[%s4961_s1 + $0x404] ss:$8 sps:$4 sm:$0xff] (!%p138_p2)   ;;  %477 = vmatprep.subr.bf16.mxu1 (!%p138_p2), %v3359_v0  ;;  %v3364_v3 = vld [vmem:[%s4961_s1 + $0x400] ss:$8 sps:$4 sm:$0xff] (!%p138_p2)   ;;  %p161_p3 = scmp.lt.s32.totalorder (!%p138_p2), %s2699_s13, 1 }
   0x7   : > { %1501 = vmatprep.subr.bf16.mxu0 (!%p138_p2), %v3361_v1  ;;  %478 = vmatpush1.bf16.msra.mxu1 (!%p138_p2), %v3363_v2  ;;  %v3367_v5 = vld [vmem:[%s4961_s1 + $0x414] ss:$8 sps:$4 sm:$0xff] (!%p138_p2)   ;;  %v3369_v6 = vld [vmem:[%s4961_s1 + $0x110] ss:$8 sps:$4 sm:$0xff] (!%p138_p2)   ;;  %v3371_v8 = vld [vmem:[%s4961_s1 + $0x124] ss:$8 sps:$4 sm:$0xff] (!%p138_p2)  }
   0x8   : > { %1502 = vmatpush1.bf16.msra.mxu0 (!%p138_p2), %v3364_v3  ;;  %479 = vmatprep.subr.bf16.mxu1 (!%p138_p2), %v3365_v4  ;;  %v3370_v7 = vld [vmem:[%s4961_s1 + $0x410] ss:$8 sps:$4 sm:$0xff] (!%p138_p2)   ;;  %v3373_v9 = vld [vmem:[%s4961_s1 + $0x424] ss:$8 sps:$4 sm:$0xff] (!%p138_p2)   ;;  %v3375_v10 = vld [vmem:[%s4961_s1 + $0x120] ss:$8 sps:$4 sm:$0xff] (!%p138_p2)  }
   0x9   : > { %1503 = vmatprep.subr.bf16.mxu0 (!%p138_p2), %v3367_v5  ;;  %v3376_v11 = vld [vmem:[%s4961_s1 + $0x420] ss:$8 sps:$4 sm:$0xff] (!%p138_p2)   ;;  %v3377_v12 = vld [vmem:[%s4961_s1 + $0x134] ss:$8 sps:$4 sm:$0xff] (!%p138_p2)   ;;  %v3381_v14 = vld [vmem:[%s4961_s1 + $0x130] ss:$8 sps:$4 sm:$0xff] (!%p138_p2)  }
   0xa   : > { %v3379_v13 = vld [vmem:[%s4961_s1 + $0x434] ss:$8 sps:$4 sm:$0xff] (!%p138_p2)   ;;  %v3382_v15 = vld [vmem:[%s4961_s1 + $0x430] ss:$8 sps:$4 sm:$0xff] (!%p138_p2)   ;;  %v3383_v16 = vld [vmem:[%s4961_s1 + $0x144] ss:$8 sps:$4 sm:$0xff] (!%p138_p2)  }
   0xb   : > { %480 = vmatpush1.bf16.msra.mxu1 (!%p138_p2), %v3369_v6  ;;  %v3385_v17 = vld [vmem:[%s4961_s1 + $0x444] ss:$8 sps:$4 sm:$0xff] (!%p138_p2)   ;;  %v3387_v18 = vld [vmem:[%s4961_s1 + $0x140] ss:$8 sps:$4 sm:$0xff] (!%p138_p2)   ;;  %v3389_v20 = vld [vmem:[%s4961_s1 + $0x154] ss:$8 sps:$4 sm:$0xff] (!%p138_p2)  }
   0xc   : > { %1504 = vmatpush1.bf16.msra.mxu0 (!%p138_p2), %v3370_v7  ;;  %481 = vmatprep.subr.bf16.mxu1 (!%p138_p2), %v3371_v8  ;;  %v3388_v19 = vld [vmem:[%s4961_s1 + $0x440] ss:$8 sps:$4 sm:$0xff] (!%p138_p2)   ;;  %v3391_v21 = vld [vmem:[%s4961_s1 + $0x454] ss:$8 sps:$4 sm:$0xff] (!%p138_p2)   ;;  %v3393_v22 = vld [vmem:[%s4961_s1 + $0x150] ss:$8 sps:$4 sm:$0xff] (!%p138_p2)  }
   0xd   : > { %1505 = vmatprep.subr.bf16.mxu0 %v3373_v9  ;;  %v3394_v23 = vld [vmem:[%s4961_s1 + $0x450] ss:$8 sps:$4 sm:$0xff]   ;;  %v3395_v24 = vld [vmem:[%s4961_s1 + $0x164] ss:$8 sps:$4 sm:$0xff]   ;;  %v3399_v26 = vld [vmem:[%s4961_s1 + $0x160] ss:$8 sps:$4 sm:$0xff]  }
   0xe   : > { %v3397_v25 = vld [vmem:[%s4961_s1 + $0x464] ss:$8 sps:$4 sm:$0xff]   ;;  %v3400_v27 = vld [vmem:[%s4961_s1 + $0x460] ss:$8 sps:$4 sm:$0xff]   ;;  %v3401_v28 = vld [vmem:[%s4961_s1 + $0x174] ss:$8 sps:$4 sm:$0xff]  }
   0xf   : > { %482 = vmatpush1.bf16.msra.mxu1 %v3375_v10  ;;  %v3403_v29 = vld [vmem:[%s4961_s1 + $0x474] ss:$8 sps:$4 sm:$0xff]   ;;  %v3405_v30 = vld [vmem:[%s4961_s1 + $0x170] ss:$8 sps:$4 sm:$0xff]   ;;  %v3407_v32 = vld [vmem:[%s4961_s1 + $0x184] ss:$8 sps:$4 sm:$0xff]  }
  0x10   : > { %1506 = vmatpush1.bf16.msra.mxu0 %v3376_v11  ;;  %483 = vmatprep.subr.bf16.mxu1 %v3377_v12  ;;  %v3406_v31 = vld [vmem:[%s4961_s1 + $0x470] ss:$8 sps:$4 sm:$0xff]   ;;  %v3409_v33 = vld [vmem:[%s4961_s1 + $0x484] ss:$8 sps:$4 sm:$0xff]   ;;  %v3411_v34 = vld [vmem:[%s4961_s1 + $0x180] ss:$8 sps:$4 sm:$0xff]  }
  0x11   : > { %1507 = vmatprep.subr.bf16.mxu0 %v3379_v13  ;;  %v3412_v35 = vld [vmem:[%s4961_s1 + $0x480] ss:$8 sps:$4 sm:$0xff]   ;;  %s4965_s13 = smov (!%p161_p3, %s2699_s13), 1  ;;  %v3413_v36 = vld [vmem:[%s4961_s1 + $0x194] ss:$8 sps:$4 sm:$0xff]   ;;  %vm247_vm0 = vcmask 1046528  }
  0x12   : > { %v3415_v37 = vld [vmem:[%s4961_s1 + $0x494] ss:$8 sps:$4 sm:$0xff]   ;;  %v3417_v38 = vld [vmem:[%s4961_s1 + $0x190] ss:$8 sps:$4 sm:$0xff]   ;;  %s3350_s17 = smul.u32 192, %s4965_s13  ;;  %vm743_vm1 = vcmask 1045504  }
  0x13   : > { %484 = vmatpush1.bf16.msra.mxu1 %v3381_v14  ;;  %v3418_v39 = vld [vmem:[%s4961_s1 + $0x490] ss:$8 sps:$4 sm:$0xff]   ;;  %v3419_v40 = vld [vmem:[%s4961_s1 + $0x1a4] ss:$8 sps:$4 sm:$0xff]   ;;  %v3423_v42 = vld [vmem:[%s4961_s1 + $0x1a0] ss:$8 sps:$4 sm:$0xff]  }
  0x14   : > { %1508 = vmatpush1.bf16.msra.mxu0 %v3382_v15  ;;  %485 = vmatprep.subr.bf16.mxu1 %v3383_v16  ;;  %v3421_v41 = vld [vmem:[%s4961_s1 + $0x4a4] ss:$8 sps:$4 sm:$0xff]   ;;  %v3424_v43 = vld [vmem:[%s4961_s1 + $0x4a0] ss:$8 sps:$4 sm:$0xff]   ;;  %s3975_s30 = scalar_lea.vmem %s4960_s0, %s3350_s17  ;;  %v3425_v44 = vld [vmem:[%s4961_s1 + $0x1b4] ss:$8 sps:$4 sm:$0xff]  }
  0x15   : > { %1509 = vmatprep.subr.bf16.mxu0 %v3385_v17  ;;  %v3427_v45 = vld [vmem:[%s4961_s1 + $0x4b4] ss:$8 sps:$4 sm:$0xff]   ;;  %v3429_v46 = vld [vmem:[%s4961_s1 + $0x1b0] ss:$8 sps:$4 sm:$0xff]   ;;  %v3990_v48 = vld [vmem:[%s3975_s30 + $0x8] sm:$0xff]  ;;  %s3253_s11 = sshll.u32 %s4965_s13, 6 }
  0x16   : > { %v3430_v47 = vld [vmem:[%s4961_s1 + $0x4b0] ss:$8 sps:$4 sm:$0xff]   ;;  %v3996_v50 = vld [vmem:[%s3975_s30 + $0x28] sm:$0xff]  ;;  %v251_v52 = vrot.slane %v3990_v48, 1  ;;  %v3437_v3 = vld [vmem:[%s4961_s1 + $0x1d4] ss:$8 sps:$4 sm:$0xff]   ;;  %s170_s16 = scalar_lea.vmem %s4963_s3, %s3253_s11 }
  0x17   : > { %486 = vmatpush1.bf16.msra.mxu1 %v3387_v18  ;;  %v3993_v49 = vld [vmem:[%s3975_s30 + $0x18] sm:$0x3]  ;;  %v257_v54 = vrot.slane %v3996_v50, 1  ;;  %v3431_v56 = vld [vmem:[%s4961_s1 + $0x1c4] ss:$8 sps:$4 sm:$0xff]  }
  0x18   : > { %1510 = vmatpush1.bf16.msra.mxu0 %v3388_v19  ;;  %487 = vmatprep.subr.bf16.mxu1 %v3389_v20  ;;  %v3999_v51 = vld [vmem:[%s3975_s30 + $0x38] sm:$0x3]  ;;  %v252_v53 = vrot.slane %v3993_v49, 1  ;;  %v3433_v57 = vld [vmem:[%s4961_s1 + $0x4c4] ss:$8 sps:$4 sm:$0xff]  }
  0x19   : > { %1511 = vmatprep.subr.bf16.mxu0 %v3391_v21  ;;  %v258_v55 = vrot.slane %v3999_v51, 1  ;;  %v4012_v58 = vld [vmem:[%s3975_s30 + $0x48] sm:$0xff]  ;;  %v4017_v61 = vld [vmem:[%s3975_s30 + $0x58] sm:$0x3]  ;;  %v3439_v4 = vld [vmem:[%s4961_s1 + $0x4d4] ss:$8 sps:$4 sm:$0xff]  }
  0x1a   : > { %v253_v59 = vsel %vm247_vm0, %v251_v52, %v252_v53  ;;  %v263_v62 = vrot.slane %v4012_v58, 1  ;;  %v264_v0 = vrot.slane %v4017_v61, 1  ;;  %v3435_v1 = vld [vmem:[%s4961_s1 + $0x1c0] ss:$8 sps:$4 sm:$0xff]   ;;  %v3441_v6 = vld [vmem:[%s4961_s1 + $0x1d0] ss:$8 sps:$4 sm:$0xff]  }
  0x1b   : > { %488 = vmatpush1.bf16.msra.mxu1 %v3393_v22  ;;  %v259_v60 = vsel %vm247_vm0, %v257_v54, %v258_v55  ;;  %v3436_v2 = vld [vmem:[%s4961_s1 + $0x4c0] ss:$8 sps:$4 sm:$0xff]   ;;  %v3442_v7 = vld [vmem:[%s4961_s1 + $0x4d0] ss:$8 sps:$4 sm:$0xff]   ;;  %v3443_v10 = vld [vmem:[%s4961_s1 + $0x1e4] ss:$8 sps:$4 sm:$0xff]  }
  0x1c   : > { %1512 = vmatpush1.bf16.msra.mxu0 %v3394_v23  ;;  %489 = vmatprep.subr.bf16.mxu1 %v3395_v24  ;;  %v281_v63 = vpack.c.bf16 %v259_v60, %v253_v59  ;;  %v4034_v5 = vsel %vm247_vm0, %v263_v62, %v264_v0  ;;  %v4044_v9 = vld [vmem:[%s3975_s30] sm:$0xff]  ;;  %v177_v11 = vld [vmem:[%s3975_s30 + $0x30] sm:$0x3]  ;;  %v4070_v21 = vld [vmem:[%s3975_s30 + $0x68] sm:$0xff] }
  0x1d   : > { %1513 = vmatprep.subr.bf16.mxu0 %v3397_v25  ;;  %v1305_v8 = vpack.c.bf16 %v4034_v5, %v259_v60  ;;  %v4051_v12 = vld [vmem:[%s3975_s30 + $0x10] sm:$0x3]  ;;  %v4054_v13 = vld [vmem:[%s3975_s30 + $0x20] sm:$0xff]  ;;  %v751_v14 = vrot.slane %v177_v11, 2  ;;  %v248_v23 = vrot.slane %v4044_v9, 1 }
  0x1e   : > { %509 = vmatprep.mubr.bf16.mxu1 %v281_v63  ;;  %v181_v15 = vld [vmem:[%s3975_s30 + $0x50] sm:$0x3]  ;;  %v3445_v16 = vld [vmem:[%s4961_s1 + $0x4e4] ss:$8 sps:$4 sm:$0xff]   ;;  %v3447_v19 = vld [vmem:[%s4961_s1 + $0x1e0] ss:$8 sps:$4 sm:$0xff]  }
  0x1f   : > { %490 = vmatpush1.bf16.msra.mxu1 %v3399_v26  ;;  %v4061_v17 = vld [vmem:[%s3975_s30 + $0x40] sm:$0xff]  ;;  %v757_v18 = vrot.slane %v181_v15, 2  ;;  %1533 = vmatprep.mubr.bf16.mxu0 %v1305_v8  ;;  %v750_v22 = vrot.slane %v4054_v13, 2  ;;  %v249_v24 = vrot.slane %v4051_v12, 1  ;;  %v254_v25 = vrot.slane %v4054_v13, 1 }
  0x20   : > { %1514 = vmatpush1.bf16.msra.mxu0 %v3400_v27  ;;  %491 = vmatprep.subr.bf16.mxu1 %v3401_v28  ;;  %v3448_v20 = vld [vmem:[%s4961_s1 + $0x4e0] ss:$8 sps:$4 sm:$0xff]   ;;  %v756_v26 = vrot.slane %v4061_v17, 2  ;;  %v4078_v27 = vld [vmem:[%s3975_s30 + $0x78] sm:$0x3]  ;;  %v255_v28 = vrot.slane %v177_v11, 1 }
  0x21   : > { %1515 = vmatprep.subr.bf16.mxu0 %v3403_v29  ;;  %v260_v29 = vrot.slane %v4061_v17, 1  ;;  %v3455_v55 = vld [vmem:[%s4961_s1] ss:$8 sps:$4 sm:$0xff]   ;;  %v3463_v59 = vld [vmem:[%s4961_s1 + $0x14] ss:$8 sps:$4 sm:$0xff]  }
  0x22   : > { %v3466_v60 = vld [vmem:[%s4961_s1 + $0x514] ss:$8 sps:$4 sm:$0xff]   ;;  %v3476_v11 = vld [vmem:[%s4961_s1 + $0x530] ss:$8 sps:$4 sm:$0xff]  }
  0x23   : > { %492 = vmatpush1.bf16.msra.mxu1 %v3405_v30  ;;  %v261_v30 = vrot.slane %v181_v15, 1  ;;  %v3478_v8 = vld [vmem:[%s4961_s1 + $0x534] ss:$8 sps:$4 sm:$0xff]   ;;  %v3479_v15 = vld [vmem:[%s4961_s1 + $0x40] ss:$8 sps:$4 sm:$0xff]  }
  0x24   : > { %1516 = vmatpush1.bf16.msra.mxu0 %v3406_v31  ;;  %493 = vmatprep.subr.bf16.mxu1 %v3407_v32  ;;  %v4082_v31 = vsel %vm743_vm1, %v750_v22, %v751_v14  ;;  %v3449_v32 = vld [vmem:[%s4961_s1 + $0x1f4] ss:$8 sps:$4 sm:$0xff]   ;;  %v3484_v14 = vld [vmem:[%s4961_s1 + $0x544] ss:$8 sps:$4 sm:$0xff]   ;;  %v3488_v22 = vld [vmem:[%s4961_s1 + $0x550] ss:$8 sps:$4 sm:$0xff]  }
  0x25   : > { %1517 = vmatprep.subr.bf16.mxu0 %v3409_v33  ;;  %v3451_v33 = vld [vmem:[%s4961_s1 + $0x4f4] ss:$8 sps:$4 sm:$0xff]  }
  0x27   : > { %494 = vmatpush1.bf16.msra.mxu1 %v3411_v34  ;;  %v4091_v34 = vsel %vm743_vm1, %v756_v26, %v757_v18  ;;  %v3487_v18 = vld [vmem:[%s4961_s1 + $0x54] ss:$8 sps:$4 sm:$0xff]   ;;  %v760_v26 = vrot.slane %v4017_v61, 2 }
  0x28   : > { %1518 = vmatpush1.bf16.msra.mxu0 %v3412_v35  ;;  %495 = vmatprep.subr.bf16.mxu1 %v3413_v36  ;;  %v1570_v35 = vpack.c.bf16 %v4091_v34, %v4082_v31  ;;  %v3453_v36 = vld [vmem:[%s4961_s1 + $0x1f0] ss:$8 sps:$4 sm:$0xff]   ;;  %v3499_v61 = vld [vmem:[%s4961_s1 + $0x74] ss:$8 sps:$4 sm:$0xff]  }
  0x29   : > { %1519 = vmatprep.subr.bf16.mxu0 %v3415_v37  ;;  %v269_v37 = vrot.slane %v4070_v21, 1 }
  0x2b   : > { %496 = vmatpush1.bf16.msra.mxu1 %v3417_v38  ;;  %v270_v38 = vrot.slane %v4078_v27, 1 }
  0x2c   : > { %1520 = vmatpush1.bf16.msra.mxu0 %v3418_v39  ;;  %497 = vmatprep.subr.bf16.mxu1 %v3419_v40  ;;  %v3454_v39 = vld [vmem:[%s4961_s1 + $0x4f0] ss:$8 sps:$4 sm:$0xff]   ;;  %v748_v40 = vrot.slane %v3993_v49, 2  ;;  %v747_v49 = vrot.slane %v3990_v48, 2 }
  0x2d   : > { %1521 = vmatprep.subr.bf16.mxu0 %v3421_v41  ;;  %v3457_v41 = vld [vmem:[%s4961_s1 + $0x4] ss:$8 sps:$4 sm:$0xff]   ;;  %v4119_v52 = vsel %vm247_vm0, %v269_v37, %v270_v38  ;;  %v3502_v38 = vld [vmem:[%s4961_s1 + $0x574] ss:$8 sps:$4 sm:$0xff]  }
  0x2e   : > { %v4142_v63 = vpack.c.bf16 %v4119_v52, %v4034_v5  ;;  %v3467_v5 = vld [vmem:[%s4961_s1 + $0x20] ss:$8 sps:$4 sm:$0xff]  }
  0x2f   : > { %498 = vmatpush1.bf16.msra.mxu1 %v3423_v42  ;;  %v250_v42 = vsel %vm247_vm0, %v248_v23, %v249_v24  ;;  %v754_v23 = vrot.slane %v3999_v51, 2  ;;  %v3493_v24 = vld [vmem:[%s4961_s1 + $0x64] ss:$8 sps:$4 sm:$0xff]   ;;  %v753_v51 = vrot.slane %v3996_v50, 2 }
  0x30   : > { %1522 = vmatpush1.bf16.msra.mxu0 %v3424_v43  ;;  %499 = vmatprep.subr.bf16.mxu1 %v3425_v44  ;;  %v256_v43 = vsel %vm247_vm0, %v254_v25, %v255_v28  ;;  %v4110_v44 = vsel %vm247_vm0, %v260_v29, %v261_v30  ;;  %v3496_v25 = vld [vmem:[%s4961_s1 + $0x564] ss:$8 sps:$4 sm:$0xff]   ;;  %v3491_v28 = vld [vmem:[%s4961_s1 + $0x60] ss:$8 sps:$4 sm:$0xff]  }
  0x31   : > { %1523 = vmatprep.subr.bf16.mxu0 %v3427_v45  ;;  %v3460_v45 = vld [vmem:[%s4961_s1 + $0x504] ss:$8 sps:$4 sm:$0xff]   ;;  %v280_v53 = vpack.c.bf16 %v256_v43, %v250_v42  ;;  %v1304_v54 = vpack.c.bf16 %v4110_v44, %v256_v43  ;;  %v3494_v29 = vld [vmem:[%s4961_s1 + $0x560] ss:$8 sps:$4 sm:$0xff]  }
  0x32   : > { %v4217_v30 = vld [vmem:[%s3975_s30 + $0x88] sm:$0xff] }
  0x33   : > { %500 = vmatpush1.bf16.msra.mxu1 %v3429_v46  ;;  %v744_v46 = vrot.slane %v4044_v9, 2 }
  0x34   : > { %1524 = vmatpush1.bf16.msra.mxu0 %v3430_v47  ;;  %501 = vmatprep.subr.bf16.mxu1 %v3431_v56  ;;  %v745_v47 = vrot.slane %v4051_v12, 2  ;;  %v3458_v56 = vld [vmem:[%s4961_s1 + $0x500] ss:$8 sps:$4 sm:$0xff]   ;;  %v3481_v12 = vld [vmem:[%s4961_s1 + $0x44] ss:$8 sps:$4 sm:$0xff]  }
  0x35   : > { %1525 = vmatprep.subr.bf16.mxu0 %v3433_v57  ;;  %v4129_v57 = vsel %vm743_vm1, %v747_v49, %v748_v40  ;;  %v4235_v40 = vld [vmem:[%s3975_s30 + $0x70] sm:$0x3] }
  0x36   : > { %v4138_v62 = vsel %vm743_vm1, %v744_v46, %v745_v47  ;;  %v267_v43 = vrot.slane %v4235_v40, 1  ;;  %v4246_v46 = vld [vmem:[%s3975_s30 + $0x90] sm:$0x3] }
  0x37   : > { %502 = vmatpush1.bf16.msra.mxu1 %v3435_v1  ;;  %v776_v0 = vpack.c.bf16 %v4082_v31, %v4138_v62  ;;  %v3461_v1 = vld [vmem:[%s4961_s1 + $0x10] ss:$8 sps:$4 sm:$0xff]   ;;  %v3661_v31 = vld [vmem:[%s4961_s1 + $0x324] ss:$8 sps:$4 sm:$0xff]  }
  0x38   : > { %1526 = vmatpush1.bf16.msra.mxu0 %v3436_v2  ;;  %503 = vmatprep.subr.bf16.mxu1 %v3437_v3  ;;  %v3464_v2 = vld [vmem:[%s4961_s1 + $0x510] ss:$8 sps:$4 sm:$0xff]   ;;  %v3469_v3 = vld [vmem:[%s4961_s1 + $0x24] ss:$8 sps:$4 sm:$0xff]  }
  0x39   : > { %1527 = vmatprep.subr.bf16.mxu0 %v3439_v4  ;;  %v3472_v4 = vld [vmem:[%s4961_s1 + $0x524] ss:$8 sps:$4 sm:$0xff]   ;;  %v3497_v47 = vld [vmem:[%s4961_s1 + $0x70] ss:$8 sps:$4 sm:$0xff]  }
  0x3a   : > { %v3664_v62 = vld [vmem:[%s4961_s1 + $0x724] ss:$8 sps:$4 sm:$0xff]  }
  0x3b   : > { %504 = vmatpush1.bf16.msra.mxu1 %v3441_v6  ;;  %v3470_v6 = vld [vmem:[%s4961_s1 + $0x520] ss:$8 sps:$4 sm:$0xff]  }
  0x3c   : > { %1528 = vmatpush1.bf16.msra.mxu0 %v3442_v7  ;;  %505 = vmatprep.subr.bf16.mxu1 %v3443_v10  ;;  %v3475_v7 = vld [vmem:[%s4961_s1 + $0x34] ss:$8 sps:$4 sm:$0xff]   ;;  %v3473_v10 = vld [vmem:[%s4961_s1 + $0x30] ss:$8 sps:$4 sm:$0xff]  }
  0x3d   : > { %1529 = vmatprep.subr.bf16.mxu0 %v3445_v16  ;;  %v3482_v16 = vld [vmem:[%s4961_s1 + $0x540] ss:$8 sps:$4 sm:$0xff]  }
  0x3f   : > { %506 = vmatpush1.bf16.msra.mxu1 %v3447_v19  ;;  %v3490_v19 = vld [vmem:[%s4961_s1 + $0x554] ss:$8 sps:$4 sm:$0xff]  }
  0x40   : > { %1530 = vmatpush1.bf16.msra.mxu0 %v3448_v20  ;;  %507 = vmatprep.subr.bf16.mxu1 %v3449_v32  ;;  %v3485_v20 = vld [vmem:[%s4961_s1 + $0x50] ss:$8 sps:$4 sm:$0xff]  }
  0x41   : > { %1531 = vmatprep.subr.bf16.mxu0 %v3451_v33  ;;  %v4220_v32 = vld [vmem:[%s3975_s30 + $0x98] sm:$0x3]  ;;  %v759_v33 = vrot.slane %v4012_v58, 2 }
  0x42   : > { %v1300_v37 = vrot.slane %v4220_v32, 1 }
  0x43   : > { %508 = vmatpush1.bf16.msra.mxu1 %v3453_v36  ;;  %v1299_v36 = vrot.slane %v4217_v30, 1 }
  0x44   : > { %1532 = vmatpush1.bf16.msra.mxu0 %v3454_v39  ;;  %690 = vmatprep.subr.bf16.mxu1 %v3457_v41  ;;  %v4232_v39 = vld [vmem:[%s3975_s30 + $0x60] sm:$0xff] }
  0x45   : > { %1767 = vmatprep.subr.bf16.mxu0 %v3460_v45  ;;  %v4238_v41 = vsel %vm247_vm0, %v1299_v36, %v1300_v37  ;;  %v266_v42 = vrot.slane %v4232_v39, 1  ;;  %v4243_v45 = vld [vmem:[%s3975_s30 + $0x80] sm:$0xff]  ;;  %v762_v36 = vrot.slane %v4232_v39, 2  ;;  %v763_v37 = vrot.slane %v4235_v40, 2 }
  0x46   : > { %510 = vmatmul.mubr.bf16.vlgmr.msra.gmra.mrb[0].mxu1 %v280_v53  ;;  %v1307_v49 = vpack.c.bf16 %v4238_v41, %v4119_v52  ;;  %v1296_v53 = vrot.slane %v4243_v45, 1  ;;  %v4266_v52 = vsel %vm743_vm1, %v759_v33, %v760_v26  ;;  %v3535_v26 = vld [vmem:[%s4961_s1 + $0xd4] ss:$8 sps:$4 sm:$0xff]   ;;  %v3536_v33 = vld [vmem:[%s4961_s1 + $0x5d0] ss:$8 sps:$4 sm:$0xff]  }
  0x47   : > { %1534 = vmatmul.mubr.bf16.vlgmr.msra.gmra.mrb[0].mxu0 %v1304_v54  ;;  %691 = vmatpush1.bf16.msra.mxu1 %v3455_v55  ;;  %v1297_v54 = vrot.slane %v4246_v46, 1  ;;  %v3500_v55 = vld [vmem:[%s4961_s1 + $0x570] ss:$8 sps:$4 sm:$0xff]   ;;  %v3542_v40 = vld [vmem:[%s4961_s1 + $0x5e0] ss:$8 sps:$4 sm:$0xff]  }
  0x48   : > { %1768 = vmatpush1.bf16.msra.mxu0 %v3458_v56  ;;  %692 = vmatprep.subr.bf16.mxu1 %v3463_v59  ;;  %v3505_v56 = vld [vmem:[%s4961_s1 + $0x84] ss:$8 sps:$4 sm:$0xff]   ;;  %v268_v59 = vsel %vm247_vm0, %v266_v42, %v267_v43 }
  0x49   : > { %1769 = vmatprep.subr.bf16.mxu0 %v3466_v60  ;;  %519 = vmatprep.mubr.bf16.mxu1 %v4142_v63  ;;  %v4263_v60 = vsel %vm743_vm1, %v753_v51, %v754_v23  ;;  %v3532_v23 = vld [vmem:[%s4961_s1 + $0x5c4] ss:$8 sps:$4 sm:$0xff]   ;;  %v3533_v51 = vld [vmem:[%s4961_s1 + $0xd0] ss:$8 sps:$4 sm:$0xff]  }
  0x4a   : > { %1543 = vmatprep.mubr.bf16.mxu0 %v1307_v49  ;;  %v3544_v42 = vld [vmem:[%s4961_s1 + $0x5e4] ss:$8 sps:$4 sm:$0xff]   ;;  %v3547_v49 = vld [vmem:[%s4961_s1 + $0xf4] ss:$8 sps:$4 sm:$0xff]  }
  0x4b   : > { %693 = vmatpush1.bf16.msra.mxu1 %v3461_v1  ;;  %v3508_v1 = vld [vmem:[%s4961_s1 + $0x584] ss:$8 sps:$4 sm:$0xff]  }
  0x4c   : > { %1770 = vmatpush1.bf16.msra.mxu0 %v3464_v2  ;;  %694 = vmatprep.subr.bf16.mxu1 %v3469_v3  ;;  %v4272_v2 = vpack.c.bf16 %v268_v59, %v4110_v44  ;;  %v4275_v3 = vsel %vm247_vm0, %v1296_v53, %v1297_v54  ;;  %v1571_v44 = vpack.c.bf16 %v4266_v52, %v4263_v60 }
  0x4d   : > { %1771 = vmatprep.subr.bf16.mxu0 %v3472_v4  ;;  %v1306_v4 = vpack.c.bf16 %v4275_v3, %v268_v59  ;;  %v3545_v59 = vld [vmem:[%s4961_s1 + $0xf0] ss:$8 sps:$4 sm:$0xff]  }
  0x4e   : > { %520 = vmatmul.mubr.bf16.gmra.mrb[4].mxu1 %v4272_v2 }
  0x4f   : > { %695 = vmatpush1.bf16.msra.mxu1 %v3467_v5  ;;  %v196_v5 = vpack.c.bf16 %v3996_v50, %v3990_v48  ;;  %v3514_v48 = vld [vmem:[%s4961_s1 + $0x594] ss:$8 sps:$4 sm:$0xff]   ;;  %1544 = vmatmul.mubr.bf16.gmra.mrb[4].mxu0 %v1306_v4  ;;  %v3509_v50 = vld [vmem:[%s4961_s1 + $0x90] ss:$8 sps:$4 sm:$0xff]   ;;  %v3553_v4 = vld [vmem:[%s4961_s1 + $0x204] ss:$8 sps:$4 sm:$0xff]  }
  0x50   : > { %1772 = vmatpush1.bf16.msra.mxu0 %v3470_v6  ;;  %696 = vmatprep.subr.bf16.mxu1 %v3475_v7  ;;  %v3503_v6 = vld [vmem:[%s4961_s1 + $0x80] ss:$8 sps:$4 sm:$0xff]  }
  0x51   : > { %1773 = vmatprep.subr.bf16.mxu0 %v3478_v8  ;;  %v3506_v7 = vld [vmem:[%s4961_s1 + $0x580] ss:$8 sps:$4 sm:$0xff]   ;;  %v3511_v8 = vld [vmem:[%s4961_s1 + $0x94] ss:$8 sps:$4 sm:$0xff]   ;;  %722 = vmatprep.mubr.bf16.mxu1 %v196_v5  ;;  %v3556_v5 = vld [vmem:[%s4961_s1 + $0x604] ss:$8 sps:$4 sm:$0xff]  }
  0x52   : > { %1799 = vmatprep.mubr.bf16.mxu0 %v1571_v44 }
  0x53   : > { %697 = vmatpush1.bf16.msra.mxu1 %v3473_v10  ;;  %v3512_v10 = vld [vmem:[%s4961_s1 + $0x590] ss:$8 sps:$4 sm:$0xff]  }
  0x54   : > { %1774 = vmatpush1.bf16.msra.mxu0 %v3476_v11  ;;  %698 = vmatprep.subr.bf16.mxu1 %v3481_v12  ;;  %v3517_v11 = vld [vmem:[%s4961_s1 + $0xa4] ss:$8 sps:$4 sm:$0xff]  }
  0x55   : > { %1775 = vmatprep.subr.bf16.mxu0 %v3484_v14  ;;  %v3520_v12 = vld [vmem:[%s4961_s1 + $0x5a4] ss:$8 sps:$4 sm:$0xff]   ;;  %v3515_v14 = vld [vmem:[%s4961_s1 + $0xa0] ss:$8 sps:$4 sm:$0xff]  }
  0x57   : > { %699 = vmatpush1.bf16.msra.mxu1 %v3479_v15  ;;  %v3518_v15 = vld [vmem:[%s4961_s1 + $0x5a0] ss:$8 sps:$4 sm:$0xff]  }
  0x58   : > { %1776 = vmatpush1.bf16.msra.mxu0 %v3482_v16  ;;  %700 = vmatprep.subr.bf16.mxu1 %v3487_v18  ;;  %v3523_v16 = vld [vmem:[%s4961_s1 + $0xb4] ss:$8 sps:$4 sm:$0xff]  }
  0x59   : > { %1777 = vmatprep.subr.bf16.mxu0 %v3490_v19  ;;  %v3526_v18 = vld [vmem:[%s4961_s1 + $0x5b4] ss:$8 sps:$4 sm:$0xff]   ;;  %v3521_v19 = vld [vmem:[%s4961_s1 + $0xb0] ss:$8 sps:$4 sm:$0xff]  }
  0x5b   : > { %701 = vmatpush1.bf16.msra.mxu1 %v3485_v20  ;;  %v3524_v20 = vld [vmem:[%s4961_s1 + $0x5b0] ss:$8 sps:$4 sm:$0xff]  }
  0x5c   : > { %1778 = vmatpush1.bf16.msra.mxu0 %v3488_v22  ;;  %702 = vmatprep.subr.bf16.mxu1 %v3493_v24  ;;  %v3529_v22 = vld [vmem:[%s4961_s1 + $0xc4] ss:$8 sps:$4 sm:$0xff]   ;;  %v3527_v24 = vld [vmem:[%s4961_s1 + $0xc0] ss:$8 sps:$4 sm:$0xff]  }
  0x5d   : > { %1779 = vmatprep.subr.bf16.mxu0 %v3496_v25  ;;  %v3530_v25 = vld [vmem:[%s4961_s1 + $0x5c0] ss:$8 sps:$4 sm:$0xff]  }
  0x5f   : > { %703 = vmatpush1.bf16.msra.mxu1 %v3491_v28  ;;  %v3538_v28 = vld [vmem:[%s4961_s1 + $0x5d4] ss:$8 sps:$4 sm:$0xff]  }
  0x60   : > { %1780 = vmatpush1.bf16.msra.mxu0 %v3494_v29  ;;  %704 = vmatprep.subr.bf16.mxu1 %v3499_v61  ;;  %v765_v29 = vrot.slane %v4070_v21, 2  ;;  %v766_v61 = vrot.slane %v4078_v27, 2  ;;  %v3539_v27 = vld [vmem:[%s4961_s1 + $0xe0] ss:$8 sps:$4 sm:$0xff]  }
  0x61   : > { %1781 = vmatprep.subr.bf16.mxu0 %v3502_v38  ;;  %v3541_v38 = vld [vmem:[%s4961_s1 + $0xe4] ss:$8 sps:$4 sm:$0xff]  }
  0x62   : > { %v767_v43 = vsel %vm743_vm1, %v765_v29, %v766_v61  ;;  %v3577_v29 = vld [vmem:[%s4961_s1 + $0x244] ss:$8 sps:$4 sm:$0xff]   ;;  %v3583_v61 = vld [vmem:[%s4961_s1 + $0x254] ss:$8 sps:$4 sm:$0xff]  }
  0x63   : > { %705 = vmatpush1.bf16.msra.mxu1 %v3497_v47  ;;  %v4367_v47 = vsel %vm743_vm1, %v762_v36, %v763_v37  ;;  %v4373_v53 = vpack.c.bf16 %v767_v43, %v4266_v52  ;;  %v3548_v52 = vld [vmem:[%s4961_s1 + $0x5f0] ss:$8 sps:$4 sm:$0xff]   ;;  %v3586_v36 = vld [vmem:[%s4961_s1 + $0x654] ss:$8 sps:$4 sm:$0xff]  }
  0x64   : > { %1782 = vmatpush1.bf16.msra.mxu0 %v3500_v55  ;;  %706 = vmatprep.subr.bf16.mxu1 %v3505_v56  ;;  %v4377_v54 = vpack.c.bf16 %v4367_v47, %v4091_v34  ;;  %v3550_v55 = vld [vmem:[%s4961_s1 + $0x5f4] ss:$8 sps:$4 sm:$0xff]   ;;  %v1565_v56 = vrot.slane %v4217_v30, 2  ;;  %v3568_v34 = vld [vmem:[%s4961_s1 + $0x624] ss:$8 sps:$4 sm:$0xff]  }
  0x65   : > { %1783 = vmatprep.subr.bf16.mxu0 %v3508_v1  ;;  %v1566_v1 = vrot.slane %v4220_v32, 2  ;;  %v3554_v32 = vld [vmem:[%s4961_s1 + $0x600] ss:$8 sps:$4 sm:$0xff]   ;;  %v3581_v37 = vld [vmem:[%s4961_s1 + $0x250] ss:$8 sps:$4 sm:$0xff]  }
  0x67   : > { %707 = vmatpush1.bf16.msra.mxu1 %v3503_v6  ;;  %v3551_v6 = vld [vmem:[%s4961_s1 + $0x200] ss:$8 sps:$4 sm:$0xff]   ;;  %v4405_v44 = vsel %vm743_vm1, %v1565_v56, %v1566_v1  ;;  %v3596_v56 = vld [vmem:[%s4961_s1 + $0x670] ss:$8 sps:$4 sm:$0xff]  }
  0x68   : > { %1784 = vmatpush1.bf16.msra.mxu0 %v3506_v7  ;;  %708 = vmatprep.subr.bf16.mxu1 %v3511_v8  ;;  %v195_v7 = vpack.c.bf16 %v4054_v13, %v4044_v9  ;;  %v3559_v8 = vld [vmem:[%s4961_s1 + $0x214] ss:$8 sps:$4 sm:$0xff]   ;;  %v198_v13 = vpack.c.bf16 %v4070_v21, %v4012_v58  ;;  %v3565_v58 = vld [vmem:[%s4961_s1 + $0x224] ss:$8 sps:$4 sm:$0xff]   ;;  %v3599_v1 = vld [vmem:[%s4961_s1 + $0x280] ss:$8 sps:$4 sm:$0xff]  }
  0x69   : > { %1785 = vmatprep.subr.bf16.mxu0 %v3514_v48  ;;  %v1562_v48 = vrot.slane %v4243_v45, 2  ;;  %v3562_v9 = vld [vmem:[%s4961_s1 + $0x614] ss:$8 sps:$4 sm:$0xff]  }
  0x6b   : > { %709 = vmatpush1.bf16.msra.mxu1 %v3509_v50  ;;  %v1563_v50 = vrot.slane %v4246_v46, 2  ;;  %v3557_v46 = vld [vmem:[%s4961_s1 + $0x210] ss:$8 sps:$4 sm:$0xff]  }
  0x6c   : > { %1786 = vmatpush1.bf16.msra.mxu0 %v3512_v10  ;;  %710 = vmatprep.subr.bf16.mxu1 %v3517_v11  ;;  %v1573_v10 = vpack.c.bf16 %v4405_v44, %v767_v43  ;;  %v3560_v11 = vld [vmem:[%s4961_s1 + $0x610] ss:$8 sps:$4 sm:$0xff]   ;;  %v3590_v43 = vld [vmem:[%s4961_s1 + $0x660] ss:$8 sps:$4 sm:$0xff]  }
  0x6d   : > { %1787 = vmatprep.subr.bf16.mxu0 %v3520_v12  ;;  %v4431_v21 = vsel %vm743_vm1, %v1562_v48, %v1563_v50  ;;  %v4440_v12 = vld [vmem:[%s3975_s30 + $0xb0] sm:$0x3]  ;;  %v3616_v48 = vld [vmem:[%s4961_s1 + $0x6a4] ss:$8 sps:$4 sm:$0xff]   ;;  %v3611_v50 = vld [vmem:[%s4961_s1 + $0x2a0] ss:$8 sps:$4 sm:$0xff]  }
  0x6f   : > { %711 = vmatpush1.bf16.msra.mxu1 %v3515_v14 }
  0x70   : > { %1788 = vmatpush1.bf16.msra.mxu0 %v3518_v15  ;;  %712 = vmatprep.subr.bf16.mxu1 %v3523_v16  ;;  %v2353_v15 = vrot.slane %v4440_v12, 2  ;;  %v4446_v16 = vpack.c.bf16 %v4232_v39, %v4061_v17  ;;  %v1036_v17 = vpack.c.bf16 %v4243_v45, %v4232_v39  ;;  %v3755_v39 = vld [vmem:[%s4961_s1 + $0x840] ss:$8 sps:$4 sm:$0xff]  }
  0x71   : > { %1789 = vmatprep.subr.bf16.mxu0 %v3526_v18  ;;  %v1572_v18 = vpack.c.bf16 %v4431_v21, %v4367_v47  ;;  %v3595_v47 = vld [vmem:[%s4961_s1 + $0x274] ss:$8 sps:$4 sm:$0xff]  }
  0x73   : > { %713 = vmatpush1.bf16.msra.mxu1 %v3521_v19  ;;  %v3563_v19 = vld [vmem:[%s4961_s1 + $0x220] ss:$8 sps:$4 sm:$0xff]  }
  0x74   : > { %1790 = vmatpush1.bf16.msra.mxu0 %v3524_v20  ;;  %714 = vmatprep.subr.bf16.mxu1 %v3529_v22  ;;  %v3566_v20 = vld [vmem:[%s4961_s1 + $0x620] ss:$8 sps:$4 sm:$0xff]  }
  0x75   : > { %1791 = vmatprep.subr.bf16.mxu0 %v3532_v23  ;;  %v3571_v23 = vld [vmem:[%s4961_s1 + $0x234] ss:$8 sps:$4 sm:$0xff]  }
  0x77   : > { %715 = vmatpush1.bf16.msra.mxu1 %v3527_v24  ;;  %v3574_v24 = vld [vmem:[%s4961_s1 + $0x634] ss:$8 sps:$4 sm:$0xff]  }
  0x78   : > { %1792 = vmatpush1.bf16.msra.mxu0 %v3530_v25  ;;  %716 = vmatprep.subr.bf16.mxu1 %v3535_v26  ;;  %v777_v26 = vpack.c.bf16 %v4263_v60, %v4129_v57  ;;  %v3580_v57 = vld [vmem:[%s4961_s1 + $0x644] ss:$8 sps:$4 sm:$0xff]   ;;  %v3575_v60 = vld [vmem:[%s4961_s1 + $0x240] ss:$8 sps:$4 sm:$0xff]  }
  0x79   : > { %1793 = vmatprep.subr.bf16.mxu0 %v3538_v28  ;;  %v3569_v28 = vld [vmem:[%s4961_s1 + $0x230] ss:$8 sps:$4 sm:$0xff]  }
  0x7b   : > { %717 = vmatpush1.bf16.msra.mxu1 %v3533_v51  ;;  %v3572_v51 = vld [vmem:[%s4961_s1 + $0x630] ss:$8 sps:$4 sm:$0xff]  }
  0x7c   : > { %1794 = vmatpush1.bf16.msra.mxu0 %v3536_v33  ;;  %718 = vmatprep.subr.bf16.mxu1 %v3541_v38  ;;  %v3578_v33 = vld [vmem:[%s4961_s1 + $0x640] ss:$8 sps:$4 sm:$0xff]   ;;  %v3584_v38 = vld [vmem:[%s4961_s1 + $0x650] ss:$8 sps:$4 sm:$0xff]  }
  0x7d   : > { %1795 = vmatprep.subr.bf16.mxu0 %v3544_v42  ;;  %v3589_v42 = vld [vmem:[%s4961_s1 + $0x264] ss:$8 sps:$4 sm:$0xff]  }
  0x7f   : > { %719 = vmatpush1.bf16.msra.mxu1 %v3539_v27  ;;  %v3592_v27 = vld [vmem:[%s4961_s1 + $0x664] ss:$8 sps:$4 sm:$0xff]  }
  0x80   : > { %1796 = vmatpush1.bf16.msra.mxu0 %v3542_v40  ;;  %720 = vmatprep.subr.bf16.mxu1 %v3547_v49  ;;  %v3587_v40 = vld [vmem:[%s4961_s1 + $0x260] ss:$8 sps:$4 sm:$0xff]   ;;  %v3598_v49 = vld [vmem:[%s4961_s1 + $0x674] ss:$8 sps:$4 sm:$0xff]  }
  0x81   : > { %1797 = vmatprep.subr.bf16.mxu0 %v3550_v55  ;;  %v3593_v55 = vld [vmem:[%s4961_s1 + $0x270] ss:$8 sps:$4 sm:$0xff]  }
  0x83   : > { %721 = vmatpush1.bf16.msra.mxu1 %v3545_v59  ;;  %v3601_v59 = vld [vmem:[%s4961_s1 + $0x284] ss:$8 sps:$4 sm:$0xff]  }
  0x84   : > { %1798 = vmatpush1.bf16.msra.mxu0 %v3548_v52  ;;  %973 = vmatprep.subr.bf16.mxu1 %v3553_v4  ;;  %v3604_v52 = vld [vmem:[%s4961_s1 + $0x684] ss:$8 sps:$4 sm:$0xff]   ;;  %v3602_v4 = vld [vmem:[%s4961_s1 + $0x680] ss:$8 sps:$4 sm:$0xff]  }
  0x85   : > { %2023 = vmatprep.subr.bf16.mxu0 %v3556_v5  ;;  %v3607_v5 = vld [vmem:[%s4961_s1 + $0x294] ss:$8 sps:$4 sm:$0xff]  }
  0x86   : > { %723 = vmatmul.mubr.bf16.vlgmr.msra.gmra.mrb[0].mxu1 %v195_v7  ;;  %v3608_v7 = vld [vmem:[%s4961_s1 + $0x690] ss:$8 sps:$4 sm:$0xff]  }
  0x87   : > { %1800 = vmatmul.mubr.bf16.vlgmr.msra.gmra.mrb[0].mxu0 %v1570_v35  ;;  %974 = vmatpush1.bf16.msra.mxu1 %v3551_v6  ;;  %v4437_v35 = vld [vmem:[%s3975_s30 + $0xa0] sm:$0xff]  ;;  %v3610_v6 = vld [vmem:[%s4961_s1 + $0x694] ss:$8 sps:$4 sm:$0xff]  }
  0x88   : > { %2024 = vmatpush1.bf16.msra.mxu0 %v3554_v32  ;;  %975 = vmatprep.subr.bf16.mxu1 %v3559_v8  ;;  %v2352_v14 = vrot.slane %v4437_v35, 2  ;;  %v3605_v32 = vld [vmem:[%s4961_s1 + $0x290] ss:$8 sps:$4 sm:$0xff]   ;;  %v3613_v8 = vld [vmem:[%s4961_s1 + $0x2a4] ss:$8 sps:$4 sm:$0xff]  }
  0x89   : > { %2025 = vmatprep.subr.bf16.mxu0 %v3562_v9  ;;  %732 = vmatprep.mubr.bf16.mxu1 %v198_v13  ;;  %v3614_v9 = vld [vmem:[%s4961_s1 + $0x6a0] ss:$8 sps:$4 sm:$0xff]  }
  0x8a   : > { %1809 = vmatprep.mubr.bf16.mxu0 %v1573_v10  ;;  %v4457_v22 = vsel %vm743_vm1, %v2352_v14, %v2353_v15  ;;  %v3622_v10 = vld [vmem:[%s4961_s1 + $0x6b4] ss:$8 sps:$4 sm:$0xff]   ;;  %v3623_v14 = vld [vmem:[%s4961_s1 + $0x2c0] ss:$8 sps:$4 sm:$0xff]  }
  0x8b   : > { %976 = vmatpush1.bf16.msra.mxu1 %v3557_v46  ;;  %v2360_v25 = vpack.c.bf16 %v4457_v22, %v4431_v21  ;;  %v3617_v46 = vld [vmem:[%s4961_s1 + $0x2b0] ss:$8 sps:$4 sm:$0xff]   ;;  %v3626_v15 = vld [vmem:[%s4961_s1 + $0x6c0] ss:$8 sps:$4 sm:$0xff]  }
  0x8c   : > { %2026 = vmatpush1.bf16.msra.mxu0 %v3560_v11  ;;  %977 = vmatprep.subr.bf16.mxu1 %v3565_v58  ;;  %v3620_v11 = vld [vmem:[%s4961_s1 + $0x6b0] ss:$8 sps:$4 sm:$0xff]   ;;  %v3625_v58 = vld [vmem:[%s4961_s1 + $0x2c4] ss:$8 sps:$4 sm:$0xff]  }
  0x8d   : > { %2027 = vmatprep.subr.bf16.mxu0 %v3568_v34  ;;  %v3628_v34 = vld [vmem:[%s4961_s1 + $0x6c4] ss:$8 sps:$4 sm:$0xff]  }
  0x8e   : > { %733 = vmatmul.mubr.bf16.gmra.mrb[4].mxu1 %v4446_v16 }
  0x8f   : > { %1810 = vmatmul.mubr.bf16.gmra.mrb[4].mxu0 %v1572_v18  ;;  %978 = vmatpush1.bf16.msra.mxu1 %v3563_v19  ;;  %v3631_v18 = vld [vmem:[%s4961_s1 + $0x2d4] ss:$8 sps:$4 sm:$0xff]  }
  0x90   : > { %2028 = vmatpush1.bf16.msra.mxu0 %v3566_v20  ;;  %979 = vmatprep.subr.bf16.mxu1 %v3571_v23  ;;  %v3634_v19 = vld [vmem:[%s4961_s1 + $0x6d4] ss:$8 sps:$4 sm:$0xff]   ;;  %v3629_v20 = vld [vmem:[%s4961_s1 + $0x2d0] ss:$8 sps:$4 sm:$0xff]  }
  0x91   : > { %2029 = vmatprep.subr.bf16.mxu0 %v3574_v24  ;;  %1005 = vmatprep.mubr.bf16.mxu1 %v777_v26  ;;  %v3632_v23 = vld [vmem:[%s4961_s1 + $0x6d0] ss:$8 sps:$4 sm:$0xff]   ;;  %v3637_v24 = vld [vmem:[%s4961_s1 + $0x2e4] ss:$8 sps:$4 sm:$0xff]  }
  0x92   : > { %2055 = vmatprep.mubr.bf16.mxu0 %v198_v13  ;;  %v3619_v13 = vld [vmem:[%s4961_s1 + $0x2b4] ss:$8 sps:$4 sm:$0xff]   ;;  %v3640_v26 = vld [vmem:[%s4961_s1 + $0x6e4] ss:$8 sps:$4 sm:$0xff]  }
  0x93   : > { %980 = vmatpush1.bf16.msra.mxu1 %v3569_v28  ;;  %v3635_v28 = vld [vmem:[%s4961_s1 + $0x2e0] ss:$8 sps:$4 sm:$0xff]  }
  0x94   : > { %2030 = vmatpush1.bf16.msra.mxu0 %v3572_v51  ;;  %981 = vmatprep.subr.bf16.mxu1 %v3577_v29  ;;  %v3638_v51 = vld [vmem:[%s4961_s1 + $0x6e0] ss:$8 sps:$4 sm:$0xff]   ;;  %v3643_v29 = vld [vmem:[%s4961_s1 + $0x2f4] ss:$8 sps:$4 sm:$0xff]  }
  0x95   : > { %2031 = vmatprep.subr.bf16.mxu0 %v3580_v57  ;;  %v3646_v57 = vld [vmem:[%s4961_s1 + $0x6f4] ss:$8 sps:$4 sm:$0xff]  }
  0x97   : > { %982 = vmatpush1.bf16.msra.mxu1 %v3575_v60  ;;  %v3641_v60 = vld [vmem:[%s4961_s1 + $0x2f0] ss:$8 sps:$4 sm:$0xff]  }
  0x98   : > { %2032 = vmatpush1.bf16.msra.mxu0 %v3578_v33  ;;  %983 = vmatprep.subr.bf16.mxu1 %v3583_v61  ;;  %v3644_v33 = vld [vmem:[%s4961_s1 + $0x6f0] ss:$8 sps:$4 sm:$0xff]   ;;  %v3649_v61 = vld [vmem:[%s4961_s1 + $0x304] ss:$8 sps:$4 sm:$0xff]  }
  0x99   : > { %2033 = vmatprep.subr.bf16.mxu0 %v3586_v36  ;;  %v3652_v36 = vld [vmem:[%s4961_s1 + $0x704] ss:$8 sps:$4 sm:$0xff]  }
  0x9b   : > { %984 = vmatpush1.bf16.msra.mxu1 %v3581_v37  ;;  %v3647_v37 = vld [vmem:[%s4961_s1 + $0x300] ss:$8 sps:$4 sm:$0xff]  }
  0x9c   : > { %2034 = vmatpush1.bf16.msra.mxu0 %v3584_v38  ;;  %985 = vmatprep.subr.bf16.mxu1 %v3589_v42  ;;  %v4632_v38 = vld [vmem:[%s3975_s30 + $0xa8] sm:$0xff] }
  0x9d   : > { %2035 = vmatprep.subr.bf16.mxu0 %v3592_v27  ;;  %v3650_v42 = vld [vmem:[%s4961_s1 + $0x700] ss:$8 sps:$4 sm:$0xff]   ;;  %v3655_v27 = vld [vmem:[%s4961_s1 + $0x314] ss:$8 sps:$4 sm:$0xff]  }
  0x9f   : > { %986 = vmatpush1.bf16.msra.mxu1 %v3587_v40  ;;  %v3658_v40 = vld [vmem:[%s4961_s1 + $0x714] ss:$8 sps:$4 sm:$0xff]  }
  0xa0   : > { %2036 = vmatpush1.bf16.msra.mxu0 %v3590_v43  ;;  %987 = vmatprep.subr.bf16.mxu1 %v3595_v47  ;;  %v1829_v43 = vpack.c.bf16 %v4632_v38, %v4217_v30  ;;  %v3653_v47 = vld [vmem:[%s4961_s1 + $0x310] ss:$8 sps:$4 sm:$0xff]   ;;  %v1828_v30 = vpack.c.bf16 %v4437_v35, %v4243_v45  ;;  %v3760_v45 = vld [vmem:[%s4961_s1 + $0x854] ss:$8 sps:$4 sm:$0xff]  }
  0xa1   : > { %2037 = vmatprep.subr.bf16.mxu0 %v3598_v49  ;;  %v3656_v49 = vld [vmem:[%s4961_s1 + $0x710] ss:$8 sps:$4 sm:$0xff]  }
  0xa3   : > { %988 = vmatpush1.bf16.msra.mxu1 %v3593_v55  ;;  %v3667_v55 = vld [vmem:[%s4961_s1 + $0x334] ss:$8 sps:$4 sm:$0xff]  }
  0xa4   : > { %2038 = vmatpush1.bf16.msra.mxu0 %v3596_v56  ;;  %989 = vmatprep.subr.bf16.mxu1 %v3601_v59  ;;  %v3670_v56 = vld [vmem:[%s4961_s1 + $0x734] ss:$8 sps:$4 sm:$0xff]   ;;  %v3791_v59 = vld [vmem:[%s3975_s30 + $0x28] sm:$0xff] }
  0xa5   : > { %2039 = vmatprep.subr.bf16.mxu0 %v3604_v52  ;;  %v3792_v52 = vld [vmem:[%s3975_s30 + $0x48] sm:$0xff] }
  0xa7   : > { %990 = vmatpush1.bf16.msra.mxu1 %v3599_v1  ;;  %v1035_v1 = vpack.c.bf16 %v3792_v52, %v3791_v59  ;;  %v194_v59 = vld [vmem:[%s3975_s30 + $0xb8] sm:$0x3]  ;;  %v3739_v52 = vld [vmem:[%s4961_s1 + $0x3f4] ss:$8 sps:$4 sm:$0xff]  }
  0xa8   : > { %2040 = vmatpush1.bf16.msra.mxu0 %v3602_v4  ;;  %991 = vmatprep.subr.bf16.mxu1 %v3607_v5  ;;  %v3665_v4 = vld [vmem:[%s4961_s1 + $0x330] ss:$8 sps:$4 sm:$0xff]  }
  0xa9   : > { %2041 = vmatprep.subr.bf16.mxu0 %v3610_v6  ;;  %v3668_v5 = vld [vmem:[%s4961_s1 + $0x730] ss:$8 sps:$4 sm:$0xff]   ;;  %v3673_v6 = vld [vmem:[%s4961_s1 + $0x344] ss:$8 sps:$4 sm:$0xff]  }
  0xab   : > { %992 = vmatpush1.bf16.msra.mxu1 %v3605_v32  ;;  %v3676_v32 = vld [vmem:[%s4961_s1 + $0x744] ss:$8 sps:$4 sm:$0xff]  }
  0xac   : > { %2042 = vmatpush1.bf16.msra.mxu0 %v3608_v7  ;;  %993 = vmatprep.subr.bf16.mxu1 %v3613_v8  ;;  %v3671_v7 = vld [vmem:[%s4961_s1 + $0x340] ss:$8 sps:$4 sm:$0xff]  }
  0xad   : > { %2043 = vmatprep.subr.bf16.mxu0 %v3616_v48  ;;  %v3674_v8 = vld [vmem:[%s4961_s1 + $0x740] ss:$8 sps:$4 sm:$0xff]   ;;  %v3679_v48 = vld [vmem:[%s4961_s1 + $0x354] ss:$8 sps:$4 sm:$0xff]  }
  0xaf   : > { %994 = vmatpush1.bf16.msra.mxu1 %v3611_v50  ;;  %v3677_v50 = vld [vmem:[%s4961_s1 + $0x350] ss:$8 sps:$4 sm:$0xff]  }
  0xb0   : > { %2044 = vmatpush1.bf16.msra.mxu0 %v3614_v9  ;;  %995 = vmatprep.subr.bf16.mxu1 %v3619_v13  ;;  %v3680_v9 = vld [vmem:[%s4961_s1 + $0x750] ss:$8 sps:$4 sm:$0xff]   ;;  %v3685_v13 = vld [vmem:[%s4961_s1 + $0x364] ss:$8 sps:$4 sm:$0xff]  }
  0xb1   : > { %2045 = vmatprep.subr.bf16.mxu0 %v3622_v10  ;;  %v3688_v10 = vld [vmem:[%s4961_s1 + $0x764] ss:$8 sps:$4 sm:$0xff]  }
  0xb3   : > { %996 = vmatpush1.bf16.msra.mxu1 %v3617_v46  ;;  %v3683_v46 = vld [vmem:[%s4961_s1 + $0x360] ss:$8 sps:$4 sm:$0xff]  }
  0xb4   : > { %2046 = vmatpush1.bf16.msra.mxu0 %v3620_v11  ;;  %997 = vmatprep.subr.bf16.mxu1 %v3625_v58  ;;  %v3686_v11 = vld [vmem:[%s4961_s1 + $0x760] ss:$8 sps:$4 sm:$0xff]   ;;  %v3691_v58 = vld [vmem:[%s4961_s1 + $0x374] ss:$8 sps:$4 sm:$0xff]  }
  0xb5   : > { %2047 = vmatprep.subr.bf16.mxu0 %v3628_v34  ;;  %v3694_v34 = vld [vmem:[%s4961_s1 + $0x774] ss:$8 sps:$4 sm:$0xff]  }
  0xb7   : > { %998 = vmatpush1.bf16.msra.mxu1 %v3623_v14  ;;  %v3689_v14 = vld [vmem:[%s4961_s1 + $0x370] ss:$8 sps:$4 sm:$0xff]  }
  0xb8   : > { %2048 = vmatpush1.bf16.msra.mxu0 %v3626_v15  ;;  %999 = vmatprep.subr.bf16.mxu1 %v3631_v18  ;;  %v3692_v15 = vld [vmem:[%s4961_s1 + $0x770] ss:$8 sps:$4 sm:$0xff]   ;;  %v3697_v18 = vld [vmem:[%s4961_s1 + $0x384] ss:$8 sps:$4 sm:$0xff]  }
  0xb9   : > { %2049 = vmatprep.subr.bf16.mxu0 %v3634_v19  ;;  %v3700_v19 = vld [vmem:[%s4961_s1 + $0x784] ss:$8 sps:$4 sm:$0xff]  }
  0xbb   : > { %1000 = vmatpush1.bf16.msra.mxu1 %v3629_v20  ;;  %v3695_v20 = vld [vmem:[%s4961_s1 + $0x380] ss:$8 sps:$4 sm:$0xff]  }
  0xbc   : > { %2050 = vmatpush1.bf16.msra.mxu0 %v3632_v23  ;;  %1001 = vmatprep.subr.bf16.mxu1 %v3637_v24  ;;  %v3698_v23 = vld [vmem:[%s4961_s1 + $0x780] ss:$8 sps:$4 sm:$0xff]   ;;  %v3703_v24 = vld [vmem:[%s4961_s1 + $0x394] ss:$8 sps:$4 sm:$0xff]  }
  0xbd   : > { %2051 = vmatprep.subr.bf16.mxu0 %v3640_v26  ;;  %v3706_v26 = vld [vmem:[%s4961_s1 + $0x794] ss:$8 sps:$4 sm:$0xff]  }
  0xbf   : > { %1002 = vmatpush1.bf16.msra.mxu1 %v3635_v28  ;;  %v3701_v28 = vld [vmem:[%s4961_s1 + $0x390] ss:$8 sps:$4 sm:$0xff]  }
  0xc0   : > { %2052 = vmatpush1.bf16.msra.mxu0 %v3638_v51  ;;  %1003 = vmatprep.subr.bf16.mxu1 %v3643_v29  ;;  %v3704_v51 = vld [vmem:[%s4961_s1 + $0x790] ss:$8 sps:$4 sm:$0xff]   ;;  %v3709_v29 = vld [vmem:[%s4961_s1 + $0x3a4] ss:$8 sps:$4 sm:$0xff]  }
  0xc1   : > { %2053 = vmatprep.subr.bf16.mxu0 %v3646_v57  ;;  %v3712_v57 = vld [vmem:[%s4961_s1 + $0x7a4] ss:$8 sps:$4 sm:$0xff]  }
  0xc3   : > { %1004 = vmatpush1.bf16.msra.mxu1 %v3641_v60  ;;  %v3707_v60 = vld [vmem:[%s4961_s1 + $0x3a0] ss:$8 sps:$4 sm:$0xff]  }
  0xc4   : > { %2054 = vmatpush1.bf16.msra.mxu0 %v3644_v33  ;;  %1231 = vmatprep.subr.bf16.mxu1 %v3649_v61  ;;  %v3710_v33 = vld [vmem:[%s4961_s1 + $0x7a0] ss:$8 sps:$4 sm:$0xff]   ;;  %v3715_v61 = vld [vmem:[%s4961_s1 + $0x3b4] ss:$8 sps:$4 sm:$0xff]  }
  0xc5   : > { %2291 = vmatprep.subr.bf16.mxu0 %v3652_v36  ;;  %v3718_v36 = vld [vmem:[%s4961_s1 + $0x7b4] ss:$8 sps:$4 sm:$0xff]  }
  0xc6   : > { %1006 = vmatmul.mubr.bf16.vlgmr.msra.gmra.mrb[0].mxu1 %v776_v0  ;;  %v3659_v0 = vld [vmem:[%s4961_s1 + $0x320] ss:$8 sps:$4 sm:$0xff]  }
  0xc7   : > { %2056 = vmatmul.mubr.bf16.vlgmr.msra.gmra.mrb[0].mxu0 %v4446_v16  ;;  %1232 = vmatpush1.bf16.msra.mxu1 %v3647_v37  ;;  %v3662_v16 = vld [vmem:[%s4961_s1 + $0x720] ss:$8 sps:$4 sm:$0xff]   ;;  %v3713_v37 = vld [vmem:[%s4961_s1 + $0x3b0] ss:$8 sps:$4 sm:$0xff]  }
  0xc8   : > { %2292 = vmatpush1.bf16.msra.mxu0 %v3650_v42  ;;  %1233 = vmatprep.subr.bf16.mxu1 %v3655_v27  ;;  %v3716_v42 = vld [vmem:[%s4961_s1 + $0x7b0] ss:$8 sps:$4 sm:$0xff]   ;;  %v3721_v27 = vld [vmem:[%s4961_s1 + $0x3c4] ss:$8 sps:$4 sm:$0xff]  }
  0xc9   : > { %2293 = vmatprep.subr.bf16.mxu0 %v3658_v40  ;;  %1015 = vmatprep.mubr.bf16.mxu1 %v4373_v53  ;;  %v3724_v40 = vld [vmem:[%s4961_s1 + $0x7c4] ss:$8 sps:$4 sm:$0xff]  }
  0xca   : > { %2065 = vmatprep.mubr.bf16.mxu0 %v1829_v43  ;;  %v3719_v43 = vld [vmem:[%s4961_s1 + $0x3c0] ss:$8 sps:$4 sm:$0xff]  }
  0xcb   : > { %1234 = vmatpush1.bf16.msra.mxu1 %v3653_v47  ;;  %v3722_v47 = vld [vmem:[%s4961_s1 + $0x7c0] ss:$8 sps:$4 sm:$0xff]  }
  0xcc   : > { %2294 = vmatpush1.bf16.msra.mxu0 %v3656_v49  ;;  %1235 = vmatprep.subr.bf16.mxu1 %v3661_v31  ;;  %v3727_v49 = vld [vmem:[%s4961_s1 + $0x3d4] ss:$8 sps:$4 sm:$0xff]  }
  0xcd   : > { %2295 = vmatprep.subr.bf16.mxu0 %v3664_v62  ;;  %v3730_v31 = vld [vmem:[%s4961_s1 + $0x7d4] ss:$8 sps:$4 sm:$0xff]   ;;  %v3725_v62 = vld [vmem:[%s4961_s1 + $0x3d0] ss:$8 sps:$4 sm:$0xff]  }
  0xce   : > { %1016 = vmatmul.mubr.bf16.gmra.mrb[4].mxu1 %v4377_v54 }
  0xcf   : > { %2066 = vmatmul.mubr.bf16.gmra.mrb[4].mxu0 %v1828_v30  ;;  %1236 = vmatpush1.bf16.msra.mxu1 %v3659_v0  ;;  %v3728_v0 = vld [vmem:[%s4961_s1 + $0x7d0] ss:$8 sps:$4 sm:$0xff]   ;;  %v3733_v30 = vld [vmem:[%s4961_s1 + $0x3e4] ss:$8 sps:$4 sm:$0xff]  }
  0xd0   : > { %2296 = vmatpush1.bf16.msra.mxu0 %v3662_v16  ;;  %1237 = vmatprep.subr.bf16.mxu1 %v3667_v55  ;;  %v3736_v16 = vld [vmem:[%s4961_s1 + $0x7e4] ss:$8 sps:$4 sm:$0xff]   ;;  %v3731_v55 = vld [vmem:[%s4961_s1 + $0x3e0] ss:$8 sps:$4 sm:$0xff]  }
  0xd1   : > { %2297 = vmatprep.subr.bf16.mxu0 %v3670_v56  ;;  %1263 = vmatprep.mubr.bf16.mxu1 %v1035_v1  ;;  %v3734_v56 = vld [vmem:[%s4961_s1 + $0x7e0] ss:$8 sps:$4 sm:$0xff]   ;;  %v3742_v1 = vld [vmem:[%s4961_s1 + $0x7f4] ss:$8 sps:$4 sm:$0xff]  }
  0xd2   : > { %2323 = vmatprep.mubr.bf16.mxu0 %v4142_v63  ;;  %v3682_v63 = vld [vmem:[%s4961_s1 + $0x754] ss:$8 sps:$4 sm:$0xff]  }
  0xd3   : > { %1238 = vmatpush1.bf16.msra.mxu1 %v3665_v4  ;;  %v2091_v4 = vrot.slane %v4632_v38, 1 }
  0xd4   : > { %2298 = vmatpush1.bf16.msra.mxu0 %v3668_v5  ;;  %1239 = vmatprep.subr.bf16.mxu1 %v3673_v6  ;;  %v2092_v5 = vrot.slane %v194_v59, 1  ;;  %v3737_v6 = vld [vmem:[%s4961_s1 + $0x3f0] ss:$8 sps:$4 sm:$0xff]  }
  0xd5   : > { %2299 = vmatprep.subr.bf16.mxu0 %v3676_v32  ;;  %v3740_v32 = vld [vmem:[%s4961_s1 + $0x7f0] ss:$8 sps:$4 sm:$0xff]  }
  0xd7   : > { %1240 = vmatpush1.bf16.msra.mxu1 %v3671_v7  ;;  %v3745_v7 = vld [vmem:[%s4961_s1 + $0x804] ss:$8 sps:$4 sm:$0xff]  }
  0xd8   : > { %2300 = vmatpush1.bf16.msra.mxu0 %v3674_v8  ;;  %1241 = vmatprep.subr.bf16.mxu1 %v3679_v48  ;;  %v3793_v8 = vld [vmem:[%s3975_s30 + $0x20] sm:$0xff] }
  0xd9   : > { %2301 = vmatprep.subr.bf16.mxu0 %v3682_v63  ;;  %v3794_v48 = vld [vmem:[%s3975_s30 + $0x40] sm:$0xff] }
  0xda   : > { %v1034_v63 = vpack.c.bf16 %v3794_v48, %v3793_v8 }
  0xdb   : > { %1242 = vmatpush1.bf16.msra.mxu1 %v3677_v50  ;;  %v2093_v50 = vsel %vm247_vm0, %v2091_v4, %v2092_v5 }
  0xdc   : > { %2302 = vmatpush1.bf16.msra.mxu0 %v3680_v9  ;;  %1243 = vmatprep.subr.bf16.mxu1 %v3685_v13  ;;  %v3743_v9 = vld [vmem:[%s4961_s1 + $0x800] ss:$8 sps:$4 sm:$0xff]   ;;  %v2088_v13 = vrot.slane %v4437_v35, 1  ;;  %v3746_v35 = vld [vmem:[%s4961_s1 + $0x810] ss:$8 sps:$4 sm:$0xff]  }
  0xdd   : > { %2303 = vmatprep.subr.bf16.mxu0 %v3688_v10  ;;  %v2089_v10 = vrot.slane %v4440_v12, 1 }
  0xdf   : > { %1244 = vmatpush1.bf16.msra.mxu1 %v3683_v46  ;;  %v3748_v46 = vld [vmem:[%s4961_s1 + $0x814] ss:$8 sps:$4 sm:$0xff]   ;;  %v2090_v12 = vsel %vm247_vm0, %v2088_v13, %v2089_v10 }
  0xe0   : > { %2304 = vmatpush1.bf16.msra.mxu0 %v3686_v11  ;;  %1245 = vmatprep.subr.bf16.mxu1 %v3691_v58  ;;  %v3795_v11 = vld [vmem:[%s3975_s30 + $0x68] sm:$0xff] }
  0xe1   : > { %2305 = vmatprep.subr.bf16.mxu0 %v3694_v34  ;;  %v3796_v58 = vld [vmem:[%s3975_s30 + $0x88] sm:$0xff] }
  0xe2   : > { %v1037_v34 = vpack.c.bf16 %v3796_v58, %v3795_v11 }
  0xe3   : > { %1246 = vmatpush1.bf16.msra.mxu1 %v3689_v14  ;;  %v2097_v14 = vpack.c.bf16 %v2093_v50, %v4238_v41  ;;  %v3751_v41 = vld [vmem:[%s4961_s1 + $0x824] ss:$8 sps:$4 sm:$0xff]  }
  0xe4   : > { %2306 = vmatpush1.bf16.msra.mxu0 %v3692_v15  ;;  %1247 = vmatprep.subr.bf16.mxu1 %v3697_v18  ;;  %v2355_v15 = vrot.slane %v4632_v38, 2  ;;  %v2356_v18 = vrot.slane %v194_v59, 2  ;;  %v2096_v38 = vpack.c.bf16 %v2090_v12, %v4275_v3  ;;  %v3752_v3 = vld [vmem:[%s4961_s1 + $0x830] ss:$8 sps:$4 sm:$0xff]  }
  0xe5   : > { %2307 = vmatprep.subr.bf16.mxu0 %v3700_v19  ;;  %v3749_v19 = vld [vmem:[%s4961_s1 + $0x820] ss:$8 sps:$4 sm:$0xff]  }
  0xe7   : > { %1248 = vmatpush1.bf16.msra.mxu1 %v3695_v20  ;;  %v3754_v20 = vld [vmem:[%s4961_s1 + $0x834] ss:$8 sps:$4 sm:$0xff]  }
  0xe8   : > { %2308 = vmatpush1.bf16.msra.mxu0 %v3698_v23  ;;  %1249 = vmatprep.subr.bf16.mxu1 %v3703_v24  ;;  %v3757_v24 = vld [vmem:[%s4961_s1 + $0x844] ss:$8 sps:$4 sm:$0xff]  }
  0xe9   : > { %2309 = vmatprep.subr.bf16.mxu0 %v3706_v26  ;;  %v3766_v26 = vld [vmem:[%s4961_s1 + $0x874] ss:$8 sps:$4 sm:$0xff]  }
  0xeb   : > { %1250 = vmatpush1.bf16.msra.mxu1 %v3701_v28  ;;  %v3764_v28 = vld [vmem:[%s4961_s1 + $0x870] ss:$8 sps:$4 sm:$0xff]  }
  0xec   : > { %2310 = vmatpush1.bf16.msra.mxu0 %v3704_v51  ;;  %1251 = vmatprep.subr.bf16.mxu1 %v3709_v29  ;;  %v3769_v51 = vld [vmem:[%s4961_s1 + $0x884] ss:$8 sps:$4 sm:$0xff]   ;;  %v3767_v29 = vld [vmem:[%s4961_s1 + $0x880] ss:$8 sps:$4 sm:$0xff]  }
  0xed   : > { %2311 = vmatprep.subr.bf16.mxu0 %v3712_v57  ;;  %v3772_v57 = vld [vmem:[%s4961_s1 + $0x894] ss:$8 sps:$4 sm:$0xff]  }
  0xef   : > { %1252 = vmatpush1.bf16.msra.mxu1 %v3707_v60  ;;  %v3770_v60 = vld [vmem:[%s4961_s1 + $0x890] ss:$8 sps:$4 sm:$0xff]  }
  0xf0   : > { %2312 = vmatpush1.bf16.msra.mxu0 %v3710_v33  ;;  %1253 = vmatprep.subr.bf16.mxu1 %v3715_v61  ;;  %v3775_v33 = vld [vmem:[%s4961_s1 + $0x8a4] ss:$8 sps:$4 sm:$0xff]   ;;  %v3773_v61 = vld [vmem:[%s4961_s1 + $0x8a0] ss:$8 sps:$4 sm:$0xff]  }
  0xf1   : > { %2313 = vmatprep.subr.bf16.mxu0 %v3718_v36  ;;  %v3778_v36 = vld [vmem:[%s4961_s1 + $0x8b4] ss:$8 sps:$4 sm:$0xff]  }
  0xf3   : > { %1254 = vmatpush1.bf16.msra.mxu1 %v3713_v37  ;;  %v3776_v37 = vld [vmem:[%s4961_s1 + $0x8b0] ss:$8 sps:$4 sm:$0xff]  }
  0xf4   : > { %2314 = vmatpush1.bf16.msra.mxu0 %v3716_v42  ;;  %1255 = vmatprep.subr.bf16.mxu1 %v3721_v27  ;;  %v3781_v42 = vld [vmem:[%s4961_s1 + $0x8c4] ss:$8 sps:$4 sm:$0xff]   ;;  %v3779_v27 = vld [vmem:[%s4961_s1 + $0x8c0] ss:$8 sps:$4 sm:$0xff]  }
  0xf5   : > { %2315 = vmatprep.subr.bf16.mxu0 %v3724_v40  ;;  %v3784_v40 = vld [vmem:[%s4961_s1 + $0x8d4] ss:$8 sps:$4 sm:$0xff]  }
  0xf7   : > { %1256 = vmatpush1.bf16.msra.mxu1 %v3719_v43  ;;  %v3782_v43 = vld [vmem:[%s4961_s1 + $0x8d0] ss:$8 sps:$4 sm:$0xff]  }
  0xf8   : > { %2316 = vmatpush1.bf16.msra.mxu0 %v3722_v47  ;;  %1257 = vmatprep.subr.bf16.mxu1 %v3727_v49  ;;  %v3787_v47 = vld [vmem:[%s4961_s1 + $0x8e4] ss:$8 sps:$4 sm:$0xff]   ;;  %v3785_v49 = vld [vmem:[%s4961_s1 + $0x8e0] ss:$8 sps:$4 sm:$0xff]  }
  0xf9   : > { %2317 = vmatprep.subr.bf16.mxu0 %v3730_v31  ;;  %v3790_v31 = vld [vmem:[%s4961_s1 + $0x8f4] ss:$8 sps:$4 sm:$0xff]  }
  0xfb   : > { %1258 = vmatpush1.bf16.msra.mxu1 %v3725_v62  ;;  %v3788_v62 = vld [vmem:[%s4961_s1 + $0x8f0] ss:$8 sps:$4 sm:$0xff]  }
  0xfc   : > { %2318 = vmatpush1.bf16.msra.mxu0 %v3728_v0  ;;  %1259 = vmatprep.subr.bf16.mxu1 %v3733_v30 }
  0xfd   : > { %2319 = vmatprep.subr.bf16.mxu0 %v3736_v16 }
  0xff   : > { %1260 = vmatpush1.bf16.msra.mxu1 %v3731_v55 }
 0x100   : > { %2320 = vmatpush1.bf16.msra.mxu0 %v3734_v56  ;;  %1261 = vmatprep.subr.bf16.mxu1 %v3739_v52 }
 0x101   : > { %2321 = vmatprep.subr.bf16.mxu0 %v3742_v1 }
 0x103   : > { %1262 = vmatpush1.bf16.msra.mxu1 %v3737_v6 }
 0x104   : > { %2322 = vmatpush1.bf16.msra.mxu0 %v3740_v32  ;;  %3254 = vmatprep.subr.bf16.mxu1 %v3745_v7 }
 0x105   : > { %2555 = vmatprep.subr.bf16.mxu0 %v3745_v7 }
 0x106   : > { %1264 = vmatmul.mubr.bf16.vlgmr.msra.gmra.mrb[0].mxu1 %v1034_v63  ;;  %v2618_v63 = vlaneseq }
 0x107   : > { %2324 = vmatmul.mubr.bf16.vlgmr.msra.gmra.mrb[0].mxu0 %v4272_v2  ;;  %3270 = vmatpush1.bf16.msra.mxu1 %v3743_v9  ;;  %v2357_v2 = vsel %vm743_vm1, %v2355_v15, %v2356_v18 }
 0x108   : > { %2556 = vmatpush1.bf16.msra.mxu0 %v3743_v9  ;;  %3255 = vmatprep.subr.bf16.mxu1 %v3748_v46  ;;  %v2361_v23 = vpack.c.bf16 %v2357_v2, %v4405_v44  ;;  %v3758_v44 = vld [vmem:[%s4961_s1 + $0x850] ss:$8 sps:$4 sm:$0xff]   ;;  %v2619_v21 = vshrl.u32 %v2618_v63, 7 }
 0x109   : > { %2557 = vmatprep.subr.bf16.mxu0 %v3748_v46  ;;  %1273 = vmatprep.mubr.bf16.mxu1 %v1037_v34 }
 0x10a   : > { %2333 = vmatprep.mubr.bf16.mxu0 %v2097_v14  ;;  %v2620_v22 = vsub.s32 0, %v2619_v21  ;;  %v2624_v50 = vsub.s32 1, %v2619_v21 }
 0x10b   : > { %3271 = vmatpush1.bf16.msra.mxu1 %v3746_v35 }
 0x10c   : > { %2558 = vmatpush1.bf16.msra.mxu0 %v3746_v35  ;;  %3256 = vmatprep.subr.bf16.mxu1 %v3751_v41 }
 0x10d   : > { %2559 = vmatprep.subr.bf16.mxu0 %v3751_v41 }
 0x10e   : > { %1274 = vmatmul.mubr.bf16.gmra.mrb[4].mxu1 %v1036_v17  ;;  %v3761_v17 = vld [vmem:[%s4961_s1 + $0x860] ss:$8 sps:$4 sm:$0xff]  }
 0x10f   : > { %2334 = vmatmul.mubr.bf16.gmra.mrb[4].mxu0 %v2096_v38  ;;  %3272 = vmatpush1.bf16.msra.mxu1 %v3749_v19 }
 0x110   : > { %2560 = vmatpush1.bf16.msra.mxu0 %v3749_v19  ;;  %3257 = vmatprep.subr.bf16.mxu1 %v3754_v20 }
 0x111   : > { %2561 = vmatprep.subr.bf16.mxu0 %v3754_v20  ;;  %2587 = vmatprep.mubr.bf16.mxu0 %v4373_v53  ;;  %v3763_v53 = vld [vmem:[%s4961_s1 + $0x864] ss:$8 sps:$4 sm:$0xff]  }
 0x112   : > { %2597 = vmatprep.mubr.bf16.mxu1 %v2361_v23 }
 0x113   : > { %3273 = vmatpush1.bf16.msra.mxu1 %v3752_v3 }
 0x114   : > { %2562 = vmatpush1.bf16.msra.mxu0 %v3752_v3  ;;  %3258 = vmatprep.subr.bf16.mxu1 %v3757_v24 }
 0x115   : > { %2563 = vmatprep.subr.bf16.mxu0 %v3757_v24 }
 0x117   : > { %3274 = vmatpush1.bf16.msra.mxu1 %v3755_v39 }
 0x118   : > { %2564 = vmatpush1.bf16.msra.mxu0 %v3755_v39  ;;  %3259 = vmatprep.subr.bf16.mxu1 %v3760_v45 }
 0x119   : > { %2565 = vmatprep.subr.bf16.mxu0 %v3760_v45 }
 0x11b   : > { %3275 = vmatpush1.bf16.msra.mxu1 %v3758_v44 }
 0x11c   : > { %2566 = vmatpush1.bf16.msra.mxu0 %v3758_v44  ;;  %3260 = vmatprep.subr.bf16.mxu1 %v3763_v53 }
 0x11d   : > { %2567 = vmatprep.subr.bf16.mxu0 %v3763_v53 }
 0x11f   : > { %3276 = vmatpush1.bf16.msra.mxu1 %v3761_v17 }
 0x120   : > { %2568 = vmatpush1.bf16.msra.mxu0 %v3761_v17  ;;  %3261 = vmatprep.subr.bf16.mxu1 %v3766_v26 }
 0x121   : > { %2569 = vmatprep.subr.bf16.mxu0 %v3766_v26 }
 0x123   : > { %3277 = vmatpush1.bf16.msra.mxu1 %v3764_v28 }
 0x124   : > { %2570 = vmatpush1.bf16.msra.mxu0 %v3764_v28  ;;  %3262 = vmatprep.subr.bf16.mxu1 %v3769_v51 }
 0x125   : > { %2571 = vmatprep.subr.bf16.mxu0 %v3769_v51 }
 0x127   : > { %3278 = vmatpush1.bf16.msra.mxu1 %v3767_v29 }
 0x128   : > { %2572 = vmatpush1.bf16.msra.mxu0 %v3767_v29  ;;  %3263 = vmatprep.subr.bf16.mxu1 %v3772_v57 }
 0x129   : > { %2573 = vmatprep.subr.bf16.mxu0 %v3772_v57 }
 0x12b   : > { %3279 = vmatpush1.bf16.msra.mxu1 %v3770_v60 }
 0x12c   : > { %2574 = vmatpush1.bf16.msra.mxu0 %v3770_v60  ;;  %3264 = vmatprep.subr.bf16.mxu1 %v3775_v33 }
 0x12d   : > { %2575 = vmatprep.subr.bf16.mxu0 %v3775_v33 }
 0x12f   : > { %3280 = vmatpush1.bf16.msra.mxu1 %v3773_v61 }
 0x130   : > { %2576 = vmatpush1.bf16.msra.mxu0 %v3773_v61  ;;  %3265 = vmatprep.subr.bf16.mxu1 %v3778_v36 }
 0x131   : > { %2577 = vmatprep.subr.bf16.mxu0 %v3778_v36 }
 0x133   : > { %3281 = vmatpush1.bf16.msra.mxu1 %v3776_v37 }
 0x134   : > { %2578 = vmatpush1.bf16.msra.mxu0 %v3776_v37  ;;  %3266 = vmatprep.subr.bf16.mxu1 %v3781_v42 }
 0x135   : > { %2579 = vmatprep.subr.bf16.mxu0 %v3781_v42 }
 0x137   : > { %3282 = vmatpush1.bf16.msra.mxu1 %v3779_v27 }
 0x138   : > { %2580 = vmatpush1.bf16.msra.mxu0 %v3779_v27  ;;  %3267 = vmatprep.subr.bf16.mxu1 %v3784_v40 }
 0x139   : > { %2581 = vmatprep.subr.bf16.mxu0 %v3784_v40 }
 0x13b   : > { %3283 = vmatpush1.bf16.msra.mxu1 %v3782_v43 }
 0x13c   : > { %2582 = vmatpush1.bf16.msra.mxu0 %v3782_v43  ;;  %3268 = vmatprep.subr.bf16.mxu1 %v3787_v47 }
 0x13d   : > { %2583 = vmatprep.subr.bf16.mxu0 %v3787_v47 }
 0x13f   : > { %3284 = vmatpush1.bf16.msra.mxu1 %v3785_v49 }
 0x140   : > { %2584 = vmatpush1.bf16.msra.mxu0 %v3785_v49  ;;  %3269 = vmatprep.subr.bf16.mxu1 %v3790_v31 }
 0x141   : > { %2585 = vmatprep.subr.bf16.mxu0 %v3790_v31 }
 0x143   : > { %3285 = vmatpush1.bf16.msra.mxu1 %v3788_v62 }
 0x144   : > { %2586 = vmatpush1.bf16.msra.mxu0 %v3788_v62 }
 0x146   : > { %2598 = vmatmul.mubr.bf16.vlgmr.msra.gmra.mrb[8].mxu1 %v2360_v25  ;;  %v2616_v25 = vld [vmem:[%s4962_s2] sm:$0x3] }
 0x147   : > { %2588 = vmatmul.mubr.bf16.vlgmr.msra.gmra.mrb[0].mxu0 %v4377_v54  ;;  %v2621_v9 = vrot.slane %v2616_v25, %v2620_v22  ;;  %v2625_v46 = vrot.slane %v2616_v25, %v2624_v50 }
 0x1d9   : > { %v1265_v0 = vpop.f32.mrb[0].mxu1 }
 0x1da   : > { %v1267_v30 = vpop.f32.mrb[1].mxu1 }
 0x1db   : > { %v1269_v16 = vpop.f32.mrb[2].mxu1 }
 0x1dc   : > { %v1271_v55 = vpop.f32.mrb[3].mxu1 }
 0x1e1   : > { %v1275_v56 = vpop.f32.mrb[4].mxu1 }
 0x1e2   : > { %v2335_v59 = vpop.f32.mrb[4].mxu0  ;;  %v1277_v1 = vpop.f32.mrb[5].mxu1 }
 0x1e3   : > { %v3290_v52 = vadd.f32 %v2335_v59, %v1275_v56  ;;  %v2337_v4 = vpop.f32.mrb[5].mxu0  ;;  %v1279_v6 = vpop.f32.mrb[6].mxu1 }
 0x1e4   : > { %v3292_v5 = vadd.f32 %v2337_v4, %v1277_v1  ;;  %v2339_v32 = vpop.f32.mrb[6].mxu0  ;;  %v1281_v8 = vpop.f32.mrb[7].mxu1 }
 0x1e5   : > { %v3294_v7 = vadd.f32 %v2339_v32, %v1279_v6  ;;  %v2341_v54 = vpop.f32.mrb[7].mxu0 }
 0x1e6   : > { %v3296_v48 = vadd.f32 %v2341_v54, %v1281_v8 }
 0x219   : > { %v2599_v10 = vpop.f32.mrb[8].mxu1 }
 0x21a   : > { %v2589_v13 = vpop.f32.mrb[0].mxu0  ;;  %v3291_v58 = vadd.f32 %v3290_v52, %v2599_v10  ;;  %v2601_v14 = vpop.f32.mrb[9].mxu1 }
 0x21b   : > { %v3286_v11 = vadd.f32 %v2589_v13, %v1265_v0  ;;  %v2591_v34 = vpop.f32.mrb[1].mxu0  ;;  %v3293_v18 = vadd.f32 %v3292_v5, %v2601_v14  ;;  %v2603_v12 = vpop.f32.mrb[10].mxu1 }
 0x21c   : > { %v3287_v15 = vadd.f32 %v2591_v34, %v1267_v30  ;;  %v2593_v35 = vpop.f32.mrb[2].mxu0  ;;  %v2632_v38 = vadd.f32 %v3291_v58, %v2621_v9  ;;  %v3295_v19 = vadd.f32 %v3294_v7, %v2603_v12  ;;  %v2605_v23 = vpop.f32.mrb[11].mxu1 }
 0x21d   : > { %v2628_v41 = vadd.f32 %v3286_v11, %v2621_v9  ;;  %v3288_v2 = vadd.f32 %v2593_v35, %v1269_v16  ;;  %v2595_v20 = vpop.f32.mrb[3].mxu0  ;;  %v2633_v24 = vadd.f32 %v3293_v18, %v2625_v46  ;;  %v3297_v45 = vadd.f32 %v3296_v48, %v2605_v23 }
 0x21e   : > { %v2629_v3 = vadd.f32 %v3287_v15, %v2625_v46  ;;  %v3289_v39 = vadd.f32 %v2595_v20, %v1271_v55  ;;  %2640 = vst [vmem:[%s170_s16 + $0x20] sm:$0xff] %v2632_v38  ;;  %v2634_v53 = vadd.f32 %v3295_v19, %v2621_v9 }
 0x21f   : > { %2636 = vst [vmem:[%s170_s16] sm:$0xff] %v2628_v41  ;;  %v2630_v44 = vadd.f32 %v3288_v2, %v2621_v9  ;;  %2641 = vst [vmem:[%s170_s16 + $0x28] sm:$0xff] %v2633_v24  ;;  %v2635_v26 = vadd.f32 %v3297_v45, %v2625_v46 }
 0x220   : > { %2637 = vst [vmem:[%s170_s16 + $0x8] sm:$0xff] %v2629_v3  ;;  %v2631_v17 = vadd.f32 %v3289_v39, %v2625_v46  ;;  %2642 = vst [vmem:[%s170_s16 + $0x30] sm:$0xff] %v2634_v53 }
 0x221   : > { %2638 = vst [vmem:[%s170_s16 + $0x10] sm:$0xff] %v2630_v44  ;;  %2643 = vst [vmem:[%s170_s16 + $0x38] sm:$0xff] %v2635_v26 }
 0x222   : > { %2639 = vst [vmem:[%s170_s16 + $0x18] sm:$0xff] %v2631_v17 }
 0x223 PF: > { %s13_s12 = sadd.s32 1, %s3803_s12  }
 0x224   : > { %p10_p4 = scmp.ge.s32.totalorder %s13_s12, 4  }
 0x226   :  { %12 = sbr.rel (!%p10_p4) target bundleno = 1 (0x1), region = 70 }

// kernel: discriminator_forward.19
= control target key start
LH: loop header
LB: loop body
LE: loop exit
PB: predicated region body
PF: predicated region fallthrough
CT: control target
= control target key end

     0   :  { %s2954_s14 = smov 0   ;;  %s3644_s0 = inlined_call_operand.vmem [shape: f32[2,6,10,256], index: 0, kind: input, shape index: {}]   ;;  %s3645_s1 = inlined_call_operand.vmem [shape: bf16[9,256,1], index: 1, kind: input, shape index: {}]   ;;  %s3646_s2 = inlined_call_operand.<no memory space> [shape: f32[1,1], index: 2, kind: input, shape index: {}]   ;;  %s3647_s3 = inlined_call_operand.vmem [shape: f32[2,32,1], index: 3, kind: output, shape index: {}]  }
   0x1   :  { %v8_v0 = vstv %s3646_s2 }
   0x2   :  { %9 = vst [vmem:[#allocation2] sm:$0x1] %v8_v0 }
   0x3 LB: > { %s2074_s15 = sadd.s32 4294967295, %s2929_s14   ;;  %p2078_p0 = scmp.ge.s32.totalorder %s2929_s14, 1  ;;  %s2929_s14 = sphi %s2954_s14, %s15_s14  }
   0x4   : > { %p139_p1 = scmp.lt.s32.totalorder %s2929_s14, 3 }
   0x6   : > { %p140_p2 = pnand %p2078_p0, %p139_p1 }
   0x7   : > { %v2763_v1 = vld [vmem:[%s3645_s1 + $0xc0] sm:$0xff] (!%p140_p2)   ;;  %v2767_v5 = vld [vmem:[%s3645_s1 + $0xc8] sm:$0xff] (!%p140_p2)   ;;  %v2771_v9 = vld [vmem:[%s3645_s1 + $0xd0] sm:$0xff] (!%p140_p2)   ;;  %p163_p3 = scmp.lt.s32.totalorder (!%p140_p2), %s2074_s15, 1  ;;  %vm250_vm0 = vcmask (!%p140_p2), 1046528   ;;  %vm610_vm1 = vcmask (!%p140_p2), 1045504  }
   0x8   : > { %143 = sbr.rel (%p140_p2) target bundleno = 420 (0x1a4), region = 32  ;;  %v2764_v2 = vld [vmem:[%s3645_s1 + $0x40] sm:$0xff] (!%p140_p2)   ;;  %2486 = vmatprep.subr.bf16.mxu0 (!%p140_p2), %v2763_v1  ;;  %v2768_v6 = vld [vmem:[%s3645_s1 + $0x48] sm:$0xff] (!%p140_p2)   ;;  %v2772_v10 = vld [vmem:[%s3645_s1 + $0x50] sm:$0xff] (!%p140_p2)   ;;  %vm2014_vm2 = vcmask (!%p140_p2), 7168  }
   0x9   : > { %v2765_v3 = vld [vmem:[%s3645_s1 + $0x80] sm:$0xff] (!%p140_p2)   ;;  %2514 = vmatprep.subr.bf16.mxu1 (!%p140_p2), %v2764_v2  ;;  %v2769_v7 = vld [vmem:[%s3645_s1 + $0x88] sm:$0xff] (!%p140_p2)   ;;  %v2773_v11 = vld [vmem:[%s3645_s1 + $0x90] sm:$0xff] (!%p140_p2)  }
   0xa   : > { %v2766_v4 = vld [vmem:[%s3645_s1] sm:$0xff] (!%p140_p2)   ;;  %2487 = vmatpush3.bf16.msra.mxu0 (!%p140_p2), %v2765_v3  ;;  %v2770_v8 = vld [vmem:[%s3645_s1 + $0x8] sm:$0xff] (!%p140_p2)   ;;  %v2774_v12 = vld [vmem:[%s3645_s1 + $0x10] sm:$0xff] (!%p140_p2)  }
   0xb   : > { %2515 = vmatpush3.bf16.msra.mxu1 (!%p140_p2), %v2766_v4  ;;  %2488 = vmatprep.subr.bf16.mxu0 (!%p140_p2), %v2767_v5  ;;  %v2775_v13 = vld [vmem:[%s3645_s1 + $0xd8] sm:$0xff] (!%p140_p2)   ;;  %v2779_v17 = vld [vmem:[%s3645_s1 + $0xe0] sm:$0xff] (!%p140_p2)   ;;  %v2783_v21 = vld [vmem:[%s3645_s1 + $0xe8] sm:$0xff] (!%p140_p2)  }
   0xc   : > { %2516 = vmatprep.subr.bf16.mxu1 (!%p140_p2), %v2768_v6  ;;  %v2776_v14 = vld [vmem:[%s3645_s1 + $0x58] sm:$0xff] (!%p140_p2)   ;;  %v2780_v18 = vld [vmem:[%s3645_s1 + $0x60] sm:$0xff] (!%p140_p2)   ;;  %v2784_v22 = vld [vmem:[%s3645_s1 + $0x68] sm:$0xff] (!%p140_p2)  }
   0xd   : > { %v2777_v15 = vld [vmem:[%s3645_s1 + $0x98] sm:$0xff] (!%p140_p2)   ;;  %v2781_v19 = vld [vmem:[%s3645_s1 + $0xa0] sm:$0xff] (!%p140_p2)   ;;  %v2785_v23 = vld [vmem:[%s3645_s1 + $0xa8] sm:$0xff] (!%p140_p2)  }
   0xe   : > { %2489 = vmatpush3.bf16.msra.mxu0 (!%p140_p2), %v2769_v7  ;;  %v2778_v16 = vld [vmem:[%s3645_s1 + $0x18] sm:$0xff] (!%p140_p2)   ;;  %v2782_v20 = vld [vmem:[%s3645_s1 + $0x20] sm:$0xff] (!%p140_p2)   ;;  %v2786_v24 = vld [vmem:[%s3645_s1 + $0x28] sm:$0xff] (!%p140_p2)  }
   0xf   : > { %2517 = vmatpush3.bf16.msra.mxu1 %v2770_v8  ;;  %2490 = vmatprep.subr.bf16.mxu0 %v2771_v9  ;;  %s3649_s15 = smov (!%p163_p3, %s2074_s15), 1  ;;  %v2787_v25 = vld [vmem:[%s3645_s1 + $0xf0] sm:$0xff]   ;;  %v2791_v29 = vld [vmem:[%s3645_s1 + $0xf8] sm:$0xff]   ;;  %v2795_v53 = vld [vmem:[%s3645_s1 + $0x140] sm:$0xff]  }
  0x10   : > { %2518 = vmatprep.subr.bf16.mxu1 %v2772_v10  ;;  %v2788_v26 = vld [vmem:[%s3645_s1 + $0x70] sm:$0xff]   ;;  %s2754_s16 = smul.u32 192, %s3649_s15  ;;  %v2792_v30 = vld [vmem:[%s3645_s1 + $0x78] sm:$0xff]   ;;  %v2796_v54 = vld [vmem:[%s3645_s1 + $0x1c0] sm:$0xff]   ;;  %s2485_s29 = sshll.u32 %s3649_s15, 5 }
  0x11   : > { %v2789_v27 = vld [vmem:[%s3645_s1 + $0xb0] sm:$0xff]   ;;  %v2793_v31 = vld [vmem:[%s3645_s1 + $0xb8] sm:$0xff]   ;;  %v2797_v58 = vld [vmem:[%s3645_s1 + $0x100] sm:$0xff]   ;;  %s172_s5 = scalar_lea.vmem %s3647_s3, %s2485_s29 }
  0x12   : > { %2491 = vmatpush3.bf16.msra.mxu0 %v2773_v11  ;;  %v2790_v28 = vld [vmem:[%s3645_s1 + $0x30] sm:$0xff]   ;;  %s3062_s26 = scalar_lea.vmem %s3644_s0, %s2754_s16  ;;  %v2794_v32 = vld [vmem:[%s3645_s1 + $0x38] sm:$0xff]   ;;  %v2798_v60 = vld [vmem:[%s3645_s1 + $0x180] sm:$0xff]  }
  0x13   : > { %2519 = vmatpush3.bf16.msra.mxu1 %v2774_v12  ;;  %2492 = vmatprep.subr.bf16.mxu0 %v2775_v13  ;;  %v3071_v33 = vld [vmem:[%s3062_s26 + $0x8] sm:$0xff]  ;;  %v3074_v34 = vld [vmem:[%s3062_s26 + $0x18] sm:$0x3]  ;;  %v3089_v42 = vld [vmem:[%s3062_s26] sm:$0xff] }
  0x14   : > { %2520 = vmatprep.subr.bf16.mxu1 %v2776_v14  ;;  %v3077_v35 = vld [vmem:[%s3062_s26 + $0x28] sm:$0xff]  ;;  %v3080_v36 = vld [vmem:[%s3062_s26 + $0x38] sm:$0x3]  ;;  %v254_v37 = vrot.slane %v3071_v33, 1  ;;  %v255_v39 = vrot.slane %v3074_v34, 1  ;;  %v3092_v43 = vld [vmem:[%s3062_s26 + $0x20] sm:$0xff] }
  0x15   : > { %v199_v38 = vpack.c.bf16 %v3077_v35, %v3071_v33  ;;  %v260_v40 = vrot.slane %v3077_v35, 1  ;;  %v261_v41 = vrot.slane %v3080_v36, 1  ;;  %v3095_v44 = vld [vmem:[%s3062_s26 + $0x10] sm:$0x3]  ;;  %v251_v45 = vrot.slane %v3089_v42, 1  ;;  %v2799_v61 = vld [vmem:[%s3645_s1 + $0x148] sm:$0xff]  }
  0x16   : > { %2493 = vmatpush3.bf16.msra.mxu0 %v2777_v15  ;;  %v256_v46 = vsel %vm250_vm0, %v254_v37, %v255_v39  ;;  %v3103_v48 = vld [vmem:[%s3062_s26 + $0x30] sm:$0x3]  ;;  %v252_v49 = vrot.slane %v3095_v44, 1  ;;  %v257_v50 = vrot.slane %v3092_v43, 1  ;;  %v198_v57 = vpack.c.bf16 %v3092_v43, %v3089_v42  ;;  %v2800_v62 = vld [vmem:[%s3645_s1 + $0x1c8] sm:$0xff]   ;;  %v2807_v7 = vld [vmem:[%s3645_s1 + $0x158] sm:$0xff]  }
  0x17   : > { %2521 = vmatpush3.bf16.msra.mxu1 %v2778_v16  ;;  %2494 = vmatprep.subr.bf16.mxu0 %v2779_v17  ;;  %v3100_v47 = vsel %vm250_vm0, %v260_v40, %v261_v41  ;;  %v258_v52 = vrot.slane %v3103_v48, 1  ;;  %v2801_v63 = vld [vmem:[%s3645_s1 + $0x108] sm:$0xff]   ;;  %v2803_v2 = vld [vmem:[%s3645_s1 + $0x150] sm:$0xff]   ;;  %v3147_v3 = vld [vmem:[%s3062_s26 + $0x58] sm:$0x3]  ;;  %v615_v12 = vrot.slane %v3074_v34, 2 }
  0x18   : > { %2522 = vmatprep.subr.bf16.mxu1 %v2780_v18  ;;  %593 = vmatprep.mubr.bf16.mxu1 %v199_v38  ;;  %v284_v51 = vpack.c.bf16 %v3100_v47, %v256_v46  ;;  %v253_v55 = vsel %vm250_vm0, %v251_v45, %v252_v49  ;;  %v2802_v0 = vld [vmem:[%s3645_s1 + $0x188] sm:$0xff]   ;;  %v2804_v4 = vld [vmem:[%s3645_s1 + $0x1d0] sm:$0xff]   ;;  %v2808_v9 = vld [vmem:[%s3645_s1 + $0x1d8] sm:$0xff]   ;;  %v267_v10 = vrot.slane %v3147_v3, 1  ;;  %v621_v14 = vrot.slane %v3080_v36, 2 }
  0x19   : > { %v3117_v56 = vsel %vm250_vm0, %v257_v50, %v258_v52  ;;  %v3141_v1 = vld [vmem:[%s3062_s26 + $0x48] sm:$0xff]  ;;  %v2805_v5 = vld [vmem:[%s3645_s1 + $0x110] sm:$0xff]   ;;  %v2809_v11 = vld [vmem:[%s3645_s1 + $0x118] sm:$0xff]   ;;  %v611_v16 = vrot.slane %v3089_v42, 2  ;;  %v612_v18 = vrot.slane %v3095_v44, 2 }
  0x1a   : > { %2495 = vmatpush3.bf16.msra.mxu0 %v2781_v19  ;;  %448 = vmatprep.mubr.bf16.mxu0 %v284_v51  ;;  %v283_v59 = vpack.c.bf16 %v3117_v56, %v253_v55  ;;  %v2806_v6 = vld [vmem:[%s3645_s1 + $0x190] sm:$0xff]   ;;  %v266_v8 = vrot.slane %v3141_v1, 1  ;;  %v2810_v13 = vld [vmem:[%s3645_s1 + $0x198] sm:$0xff]   ;;  %v2811_v15 = vld [vmem:[%s3645_s1 + $0x160] sm:$0xff]   ;;  %v830_v37 = vpack.c.bf16 %v3141_v1, %v3077_v35  ;;  %v626_v38 = vrot.slane %v3141_v1, 2 }
  0x1b   : > { %2523 = vmatpush3.bf16.msra.mxu1 %v2782_v20  ;;  %2496 = vmatprep.subr.bf16.mxu0 %v2783_v21  ;;  %v2812_v17 = vld [vmem:[%s3645_s1 + $0x1e0] sm:$0xff]   ;;  %v618_v20 = vrot.slane %v3103_v48, 2  ;;  %v2818_v34 = vld [vmem:[%s3645_s1 + $0x1a8] sm:$0xff]   ;;  %v3227_v40 = vld [vmem:[%s3062_s26 + $0x50] sm:$0x3] }
  0x1c   : > { %2524 = vmatprep.subr.bf16.mxu1 %v2784_v22  ;;  %v2813_v19 = vld [vmem:[%s3645_s1 + $0x120] sm:$0xff]   ;;  %v2815_v22 = vld [vmem:[%s3645_s1 + $0x168] sm:$0xff]   ;;  %v3233_v45 = vld [vmem:[%s3062_s26 + $0x70] sm:$0x3]  ;;  %v264_v50 = vrot.slane %v3227_v40, 1 }
  0x1d   : > { %v2814_v21 = vld [vmem:[%s3645_s1 + $0x1a0] sm:$0xff]   ;;  %v270_v52 = vrot.slane %v3233_v45, 1  ;;  %v2826_v44 = vld [vmem:[%s3645_s1 + $0x1b8] sm:$0xff]  }
  0x1e   : > { %2497 = vmatpush3.bf16.msra.mxu0 %v2785_v23  ;;  %v614_v23 = vrot.slane %v3071_v33, 2  ;;  %v2817_v33 = vld [vmem:[%s3645_s1 + $0x128] sm:$0xff]   ;;  %v3217_v36 = vld [vmem:[%s3062_s26 + $0x40] sm:$0xff] }
  0x1f   : > { %2525 = vmatpush3.bf16.msra.mxu1 %v2786_v24  ;;  %2498 = vmatprep.subr.bf16.mxu0 %v2787_v25  ;;  %v2816_v24 = vld [vmem:[%s3645_s1 + $0x1e8] sm:$0xff]   ;;  %v620_v25 = vrot.slane %v3077_v35, 2  ;;  %v3230_v41 = vld [vmem:[%s3062_s26 + $0x60] sm:$0xff]  ;;  %v263_v46 = vrot.slane %v3217_v36, 1 }
  0x20   : > { %2526 = vmatprep.subr.bf16.mxu1 %v2788_v26  ;;  %v3198_v26 = vld [vmem:[%s3062_s26 + $0x68] sm:$0xff]  ;;  %v616_v48 = vsel %vm610_vm1, %v614_v23, %v615_v12  ;;  %v269_v51 = vrot.slane %v3230_v41, 1  ;;  %v2827_v12 = vld [vmem:[%s3645_s1 + $0x240] sm:$0xff]  }
  0x21   : > { %v3238_v35 = vsel %vm610_vm1, %v620_v25, %v621_v14  ;;  %v3256_v55 = vsel %vm250_vm0, %v263_v46, %v264_v50  ;;  %v2828_v14 = vld [vmem:[%s3645_s1 + $0x2c0] sm:$0xff]   ;;  %v2834_v23 = vld [vmem:[%s3645_s1 + $0x288] sm:$0xff]   ;;  %v2835_v25 = vld [vmem:[%s3645_s1 + $0x250] sm:$0xff]  }
  0x22   : > { %2499 = vmatpush3.bf16.msra.mxu0 %v2789_v27  ;;  %v189_v27 = vld [vmem:[%s3062_s26 + $0x78] sm:$0x3]  ;;  %v2845_v46 = vld [vmem:[%s3645_s1 + $0x220] sm:$0xff]   ;;  %v2848_v50 = vld [vmem:[%s3645_s1 + $0x2e8] sm:$0xff]  }
  0x23   : > { %2527 = vmatpush3.bf16.msra.mxu1 %v2790_v28  ;;  %2500 = vmatprep.subr.bf16.mxu0 %v2791_v29  ;;  %v617_v28 = vrot.slane %v3092_v43, 2  ;;  %v3203_v29 = vsel %vm250_vm0, %v266_v8, %v267_v10 }
  0x24   : > { %2528 = vmatprep.subr.bf16.mxu1 %v2792_v30  ;;  %v272_v30 = vrot.slane %v3198_v26, 1 }
  0x26   : > { %2501 = vmatpush3.bf16.msra.mxu0 %v2793_v31  ;;  %v273_v31 = vrot.slane %v189_v27, 1 }
  0x27   : > { %2529 = vmatpush3.bf16.msra.mxu1 %v2794_v32  ;;  %2542 = vmatprep.subr.bf16.mxu0 %v2795_v53  ;;  %v3208_v32 = vpack.c.bf16 %v3198_v26, %v3141_v1  ;;  %v2819_v53 = vld [vmem:[%s3645_s1 + $0x170] sm:$0xff]   ;;  %v633_v1 = vrot.slane %v189_v27, 2 }
  0x28   : > { %2570 = vmatprep.subr.bf16.mxu1 %v2796_v54  ;;  %v3223_v39 = vsel %vm250_vm0, %v272_v30, %v273_v31  ;;  %v3252_v54 = vpack.c.bf16 %v3230_v41, %v3217_v36  ;;  %v2836_v27 = vld [vmem:[%s3645_s1 + $0x2d0] sm:$0xff]  }
  0x29   : > { %449 = vmatmul.mubr.bf16.vlgmr.msra.gmra.mrb[0].mxu0 %v283_v59  ;;  %v3242_v49 = vpack.c.bf16 %v3223_v39, %v3203_v29  ;;  %v627_v59 = vrot.slane %v3147_v3, 2  ;;  %v2824_v3 = vld [vmem:[%s3645_s1 + $0x1f8] sm:$0xff]   ;;  %v2837_v31 = vld [vmem:[%s3645_s1 + $0x210] sm:$0xff]  }
  0x2a   : > { %594 = vmatmul.mubr.bf16.vlgmr.msra.gmra.mrb[0].mxu1 %v198_v57  ;;  %2543 = vmatpush3.bf16.msra.mxu0 %v2797_v58  ;;  %v3259_v57 = vsel %vm250_vm0, %v269_v51, %v270_v52  ;;  %v2820_v58 = vld [vmem:[%s3645_s1 + $0x1f0] sm:$0xff]   ;;  %v2849_v51 = vld [vmem:[%s3645_s1 + $0x228] sm:$0xff]  }
  0x2b   : > { %2571 = vmatpush3.bf16.msra.mxu1 %v2798_v60  ;;  %2544 = vmatprep.subr.bf16.mxu0 %v2799_v61  ;;  %v3267_v60 = vpack.c.bf16 %v3259_v57, %v3256_v55  ;;  %v2821_v61 = vld [vmem:[%s3645_s1 + $0x130] sm:$0xff]   ;;  %v628_v42 = vsel %vm610_vm1, %v626_v38, %v627_v59  ;;  %v2850_v52 = vld [vmem:[%s3645_s1 + $0x2a8] sm:$0xff]  }
  0x2c   : > { %2572 = vmatprep.subr.bf16.mxu1 %v2800_v62  ;;  %601 = vmatprep.mubr.bf16.mxu1 %v3208_v32  ;;  %v644_v62 = vpack.c.bf16 %v3238_v35, %v616_v48  ;;  %v1222_v38 = vpack.c.bf16 %v628_v42, %v3238_v35  ;;  %v2846_v48 = vld [vmem:[%s3645_s1 + $0x2a0] sm:$0xff]   ;;  %v2847_v35 = vld [vmem:[%s3645_s1 + $0x268] sm:$0xff]   ;;  %v2853_v59 = vld [vmem:[%s3645_s1 + $0x230] sm:$0xff]  }
  0x2d   : > { %456 = vmatprep.mubr.bf16.mxu0 %v3242_v49 }
  0x2e   : > { %2545 = vmatpush3.bf16.msra.mxu0 %v2801_v63  ;;  %v632_v63 = vrot.slane %v3198_v26, 2 }
  0x2f   : > { %2573 = vmatpush3.bf16.msra.mxu1 %v2802_v0  ;;  %2546 = vmatprep.subr.bf16.mxu0 %v2803_v2  ;;  %v2822_v0 = vld [vmem:[%s3645_s1 + $0x1b0] sm:$0xff]   ;;  %v2823_v2 = vld [vmem:[%s3645_s1 + $0x178] sm:$0xff]  }
  0x30   : > { %2574 = vmatprep.subr.bf16.mxu1 %v2804_v4  ;;  %v613_v4 = vsel %vm610_vm1, %v611_v16, %v612_v18  ;;  %v3302_v8 = vsel %vm610_vm1, %v632_v63, %v633_v1  ;;  %v2829_v16 = vld [vmem:[%s3645_s1 + $0x200] sm:$0xff]   ;;  %v2831_v18 = vld [vmem:[%s3645_s1 + $0x248] sm:$0xff]   ;;  %v2856_v63 = vld [vmem:[%s3645_s1 + $0x2f8] sm:$0xff]  }
  0x31   : > { %457 = vmatmul.mubr.bf16.gmra.mrb[4].mxu0 %v3267_v60  ;;  %v2858_v1 = vld [vmem:[%s3645_s1 + $0x2b8] sm:$0xff]  }
  0x32   : > { %2547 = vmatpush3.bf16.msra.mxu0 %v2805_v5  ;;  %602 = vmatmul.mubr.bf16.gmra.mrb[4].mxu1 %v3252_v54  ;;  %v3291_v5 = vsel %vm610_vm1, %v617_v28, %v618_v20  ;;  %v3355_v28 = vld [vmem:[%s3062_s26 + $0x88] sm:$0xff] }
  0x33   : > { %2575 = vmatpush3.bf16.msra.mxu1 %v2806_v6  ;;  %2548 = vmatprep.subr.bf16.mxu0 %v2807_v7  ;;  %v2825_v6 = vld [vmem:[%s3645_s1 + $0x138] sm:$0xff]   ;;  %v623_v7 = vrot.slane %v3217_v36, 2  ;;  %v643_v10 = vpack.c.bf16 %v3291_v5, %v613_v4  ;;  %v832_v30 = vpack.c.bf16 %v3355_v28, %v3198_v26  ;;  %v2859_v4 = vld [vmem:[%s3645_s1 + $0x340] sm:$0xff]  }
  0x34   : > { %2576 = vmatprep.subr.bf16.mxu1 %v2808_v9  ;;  %994 = vmatprep.mubr.bf16.mxu1 %v830_v37  ;;  %v624_v9 = vrot.slane %v3227_v40, 2  ;;  %v2839_v37 = vld [vmem:[%s3645_s1 + $0x258] sm:$0xff]  }
  0x35   : > { %808 = vmatprep.mubr.bf16.mxu0 %v644_v62  ;;  %v2842_v40 = vld [vmem:[%s3645_s1 + $0x298] sm:$0xff]  }
  0x36   : > { %2549 = vmatpush3.bf16.msra.mxu0 %v2809_v11  ;;  %v829_v11 = vpack.c.bf16 %v3217_v36, %v3092_v43  ;;  %v3320_v43 = vpack.c.bf16 %v3302_v8, %v628_v42  ;;  %v3332_v20 = vsel %vm610_vm1, %v623_v7, %v624_v9  ;;  %v3368_v36 = vld [vmem:[%s3062_s26 + $0x80] sm:$0xff]  ;;  %v2855_v62 = vld [vmem:[%s3645_s1 + $0x278] sm:$0xff]   ;;  %v1216_v42 = vrot.slane %v3355_v28, 2  ;;  %v2865_v9 = vld [vmem:[%s3645_s1 + $0x308] sm:$0xff]  }
  0x37   : > { %2577 = vmatpush3.bf16.msra.mxu1 %v2810_v13  ;;  %2550 = vmatprep.subr.bf16.mxu0 %v2811_v15  ;;  %v629_v13 = vrot.slane %v3230_v41, 2  ;;  %v630_v15 = vrot.slane %v3233_v45, 2  ;;  %v831_v26 = vpack.c.bf16 %v3368_v36, %v3230_v41  ;;  %v2843_v41 = vld [vmem:[%s3645_s1 + $0x260] sm:$0xff]  }
  0x38   : > { %2578 = vmatprep.subr.bf16.mxu1 %v2812_v17  ;;  %v2830_v17 = vld [vmem:[%s3645_s1 + $0x280] sm:$0xff]  }
  0x39   : > { %v2844_v45 = vld [vmem:[%s3645_s1 + $0x2e0] sm:$0xff]  }
  0x3a   : > { %2551 = vmatpush3.bf16.msra.mxu0 %v2813_v19  ;;  %v2832_v19 = vld [vmem:[%s3645_s1 + $0x2c8] sm:$0xff]   ;;  %v2861_v7 = vld [vmem:[%s3645_s1 + $0x300] sm:$0xff]  }
  0x3b   : > { %2579 = vmatpush3.bf16.msra.mxu1 %v2814_v21  ;;  %2552 = vmatprep.subr.bf16.mxu0 %v2815_v22  ;;  %v3335_v21 = vsel %vm610_vm1, %v629_v13, %v630_v15  ;;  %v2833_v22 = vld [vmem:[%s3645_s1 + $0x208] sm:$0xff]   ;;  %v193_v13 = vld [vmem:[%s3062_s26 + $0x98] sm:$0x3] }
  0x3c   : > { %2580 = vmatprep.subr.bf16.mxu1 %v2816_v24  ;;  %v3346_v24 = vpack.c.bf16 %v3335_v21, %v3332_v20  ;;  %v1023_v15 = vrot.slane %v193_v13, 1 }
  0x3e   : > { %2553 = vmatpush3.bf16.msra.mxu0 %v2817_v33  ;;  %v1028_v33 = vpack.c.bf16 %v3203_v29, %v3100_v47  ;;  %v2840_v47 = vld [vmem:[%s3645_s1 + $0x2d8] sm:$0xff]  }
  0x3f   : > { %2581 = vmatpush3.bf16.msra.mxu1 %v2818_v34  ;;  %2554 = vmatprep.subr.bf16.mxu0 %v2819_v53  ;;  %v2838_v34 = vld [vmem:[%s3645_s1 + $0x290] sm:$0xff]   ;;  %v2841_v29 = vld [vmem:[%s3645_s1 + $0x218] sm:$0xff]  }
  0x40   : > { %2582 = vmatprep.subr.bf16.mxu1 %v2820_v58  ;;  %v2851_v53 = vld [vmem:[%s3645_s1 + $0x270] sm:$0xff]  }
  0x41   : > { %v2852_v58 = vld [vmem:[%s3645_s1 + $0x2f0] sm:$0xff]  }
  0x42   : > { %2555 = vmatpush3.bf16.msra.mxu0 %v2821_v61  ;;  %v2854_v61 = vld [vmem:[%s3645_s1 + $0x2b0] sm:$0xff]  }
  0x43   : > { %2583 = vmatpush3.bf16.msra.mxu1 %v2822_v0  ;;  %2556 = vmatprep.subr.bf16.mxu0 %v2823_v2  ;;  %v2857_v0 = vld [vmem:[%s3645_s1 + $0x238] sm:$0xff]   ;;  %v1027_v2 = vpack.c.bf16 %v3256_v55, %v3117_v56  ;;  %v2862_v56 = vld [vmem:[%s3645_s1 + $0x380] sm:$0xff]   ;;  %v2863_v55 = vld [vmem:[%s3645_s1 + $0x348] sm:$0xff]  }
  0x44   : > { %2584 = vmatprep.subr.bf16.mxu1 %v2824_v3  ;;  %v1221_v3 = vpack.c.bf16 %v3332_v20, %v3291_v5  ;;  %v1022_v5 = vrot.slane %v3355_v28, 1  ;;  %v2869_v20 = vld [vmem:[%s3645_s1 + $0x310] sm:$0xff]  }
  0x46   : > { %2557 = vmatpush3.bf16.msra.mxu0 %v2825_v6  ;;  %v2860_v6 = vld [vmem:[%s3645_s1 + $0x3c0] sm:$0xff]  }
  0x47   : > { %2585 = vmatpush3.bf16.msra.mxu1 %v2826_v44  ;;  %2598 = vmatprep.subr.bf16.mxu0 %v2827_v12  ;;  %v2864_v44 = vld [vmem:[%s3645_s1 + $0x3c8] sm:$0xff]   ;;  %v1213_v12 = vrot.slane %v3368_v36, 2 }
  0x48   : > { %2626 = vmatprep.subr.bf16.mxu1 %v2828_v14  ;;  %v192_v14 = vld [vmem:[%s3062_s26 + $0x90] sm:$0x3] }
  0x49   : > { %809 = vmatmul.mubr.bf16.vlgmr.msra.gmra.mrb[8].mxu0 %v643_v10  ;;  %v1019_v10 = vrot.slane %v3368_v36, 1 }
  0x4a   : > { %995 = vmatmul.mubr.bf16.vlgmr.msra.gmra.mrb[8].mxu1 %v829_v11  ;;  %2599 = vmatpush3.bf16.msra.mxu0 %v2829_v16  ;;  %v2866_v11 = vld [vmem:[%s3645_s1 + $0x388] sm:$0xff]   ;;  %v1020_v16 = vrot.slane %v192_v14, 1 }
  0x4b   : > { %2627 = vmatpush3.bf16.msra.mxu1 %v2830_v17  ;;  %2600 = vmatprep.subr.bf16.mxu0 %v2831_v18  ;;  %v2867_v17 = vld [vmem:[%s3645_s1 + $0x350] sm:$0xff]  }
  0x4c   : > { %816 = vmatprep.mubr.bf16.mxu0 %v3320_v43  ;;  %2628 = vmatprep.subr.bf16.mxu1 %v2832_v19  ;;  %v2868_v18 = vld [vmem:[%s3645_s1 + $0x3d0] sm:$0xff]   ;;  %v1217_v19 = vrot.slane %v193_v13, 2 }
  0x4d   : > { %1002 = vmatprep.mubr.bf16.mxu1 %v832_v30 }
  0x4e   : > { %2601 = vmatpush3.bf16.msra.mxu0 %v2833_v22  ;;  %v3478_v22 = vsel %vm250_vm0, %v1022_v5, %v1023_v15  ;;  %v3488_v30 = vsel %vm610_vm1, %v1216_v42, %v1217_v19  ;;  %v197_v5 = vld [vmem:[%s3062_s26 + $0xb8] sm:$0x3]  ;;  %v2899_v15 = vld [vmem:[%s3645_s1 + $0x460] sm:$0xff]   ;;  %v2904_v19 = vld [vmem:[%s3645_s1 + $0x430] sm:$0xff]  }
  0x4f   : > { %2629 = vmatpush3.bf16.msra.mxu1 %v2834_v23  ;;  %2602 = vmatprep.subr.bf16.mxu0 %v2835_v25  ;;  %v3481_v23 = vsel %vm250_vm0, %v1019_v10, %v1020_v16  ;;  %v1030_v25 = vpack.c.bf16 %v3478_v22, %v3223_v39  ;;  %v1791_v42 = vrot.slane %v197_v5, 2  ;;  %v2900_v16 = vld [vmem:[%s3645_s1 + $0x420] sm:$0xff]  }
  0x50   : > { %2630 = vmatprep.subr.bf16.mxu1 %v2836_v27  ;;  %v1029_v27 = vpack.c.bf16 %v3481_v23, %v3259_v57  ;;  %v2872_v57 = vld [vmem:[%s3645_s1 + $0x3d8] sm:$0xff]  }
  0x51   : > { %817 = vmatmul.mubr.bf16.gmra.mrb[12].mxu0 %v3346_v24 }
  0x52   : > { %2603 = vmatpush3.bf16.msra.mxu0 %v2837_v31  ;;  %1003 = vmatmul.mubr.bf16.gmra.mrb[12].mxu1 %v831_v26  ;;  %v2870_v31 = vld [vmem:[%s3645_s1 + $0x390] sm:$0xff]   ;;  %v2871_v26 = vld [vmem:[%s3645_s1 + $0x358] sm:$0xff]  }
  0x53   : > { %2631 = vmatpush3.bf16.msra.mxu1 %v2838_v34  ;;  %2604 = vmatprep.subr.bf16.mxu0 %v2839_v37  ;;  %v1224_v34 = vpack.c.bf16 %v3488_v30, %v3302_v8  ;;  %v2873_v8 = vld [vmem:[%s3645_s1 + $0x318] sm:$0xff]  }
  0x54   : > { %2632 = vmatprep.subr.bf16.mxu1 %v2840_v47  ;;  %1192 = vmatprep.mubr.bf16.mxu0 %v1028_v33  ;;  %v1214_v33 = vrot.slane %v192_v14, 2  ;;  %v2875_v47 = vld [vmem:[%s3645_s1 + $0x360] sm:$0xff]   ;;  %v2898_v14 = vld [vmem:[%s3645_s1 + $0x418] sm:$0xff]  }
  0x55   : > { %1386 = vmatprep.mubr.bf16.mxu1 %v1222_v38  ;;  %v2874_v38 = vld [vmem:[%s3645_s1 + $0x398] sm:$0xff]  }
  0x56   : > { %2605 = vmatpush3.bf16.msra.mxu0 %v2841_v29  ;;  %v3499_v39 = vsel %vm610_vm1, %v1213_v12, %v1214_v33  ;;  %v2877_v29 = vld [vmem:[%s3645_s1 + $0x320] sm:$0xff]   ;;  %v2897_v12 = vld [vmem:[%s3645_s1 + $0x458] sm:$0xff]  }
  0x57   : > { %2633 = vmatpush3.bf16.msra.mxu1 %v2842_v40  ;;  %2606 = vmatprep.subr.bf16.mxu0 %v2843_v41  ;;  %v1223_v37 = vpack.c.bf16 %v3499_v39, %v3335_v21  ;;  %v2876_v21 = vld [vmem:[%s3645_s1 + $0x3e0] sm:$0xff]   ;;  %v2880_v40 = vld [vmem:[%s3645_s1 + $0x3e8] sm:$0xff]  }
  0x58   : > { %2634 = vmatprep.subr.bf16.mxu1 %v2844_v45  ;;  %v2881_v41 = vld [vmem:[%s3645_s1 + $0x328] sm:$0xff]  }
  0x59   : > { %v2882_v45 = vld [vmem:[%s3645_s1 + $0x3a8] sm:$0xff]  }
  0x5a   : > { %2607 = vmatpush3.bf16.msra.mxu0 %v2845_v46  ;;  %v2883_v46 = vld [vmem:[%s3645_s1 + $0x370] sm:$0xff]  }
  0x5b   : > { %2635 = vmatpush3.bf16.msra.mxu1 %v2846_v48  ;;  %2608 = vmatprep.subr.bf16.mxu0 %v2847_v35  ;;  %v2884_v48 = vld [vmem:[%s3645_s1 + $0x3f0] sm:$0xff]  }
  0x5c   : > { %2636 = vmatprep.subr.bf16.mxu1 %v2848_v50  ;;  %v2885_v35 = vld [vmem:[%s3645_s1 + $0x330] sm:$0xff]   ;;  %v3548_v50 = vld [vmem:[%s3062_s26 + $0xa0] sm:$0xff] }
  0x5e   : > { %2609 = vmatpush3.bf16.msra.mxu0 %v2849_v51  ;;  %v2886_v51 = vld [vmem:[%s3645_s1 + $0x3b0] sm:$0xff]  }
  0x5f   : > { %2637 = vmatpush3.bf16.msra.mxu1 %v2850_v52  ;;  %2610 = vmatprep.subr.bf16.mxu0 %v2851_v53  ;;  %v3554_v52 = vld [vmem:[%s3062_s26 + $0xb0] sm:$0x3]  ;;  %v2887_v53 = vld [vmem:[%s3645_s1 + $0x378] sm:$0xff]  }
  0x60   : > { %2638 = vmatprep.subr.bf16.mxu1 %v2852_v58  ;;  %v2888_v58 = vld [vmem:[%s3645_s1 + $0x3f8] sm:$0xff]  }
  0x62   : > { %2611 = vmatpush3.bf16.msra.mxu0 %v2853_v59  ;;  %v2889_v59 = vld [vmem:[%s3645_s1 + $0x338] sm:$0xff]  }
  0x63   : > { %2639 = vmatpush3.bf16.msra.mxu1 %v2854_v61  ;;  %2612 = vmatprep.subr.bf16.mxu0 %v2855_v62  ;;  %v2890_v61 = vld [vmem:[%s3645_s1 + $0x3b8] sm:$0xff]   ;;  %v2891_v62 = vld [vmem:[%s3645_s1 + $0x440] sm:$0xff]  }
  0x64   : > { %2640 = vmatprep.subr.bf16.mxu1 %v2856_v63  ;;  %v1595_v63 = vrot.slane %v3548_v50, 1 }
  0x66   : > { %2613 = vmatpush3.bf16.msra.mxu0 %v2857_v0  ;;  %v2892_v0 = vld [vmem:[%s3645_s1 + $0x400] sm:$0xff]  }
  0x67   : > { %2641 = vmatpush3.bf16.msra.mxu1 %v2858_v1  ;;  %2654 = vmatprep.subr.bf16.mxu0 %v2859_v4  ;;  %v1596_v1 = vrot.slane %v3554_v52, 1  ;;  %v2894_v4 = vld [vmem:[%s3645_s1 + $0x408] sm:$0xff]  }
  0x68   : > { %2682 = vmatprep.subr.bf16.mxu1 %v2860_v6 }
  0x69   : > { %1193 = vmatmul.mubr.bf16.vlgmr.msra.gmra.mrb[16].mxu0 %v1027_v2  ;;  %v2893_v2 = vld [vmem:[%s3645_s1 + $0x448] sm:$0xff]  }
  0x6a   : > { %1387 = vmatmul.mubr.bf16.vlgmr.msra.gmra.mrb[16].mxu1 %v1221_v3  ;;  %2655 = vmatpush3.bf16.msra.mxu0 %v2861_v7  ;;  %v195_v3 = vld [vmem:[%s3062_s26 + $0xa8] sm:$0xff] }
  0x6b   : > { %2683 = vmatpush3.bf16.msra.mxu1 %v2862_v56  ;;  %2656 = vmatprep.subr.bf16.mxu0 %v2863_v55  ;;  %v1408_v6 = vpack.c.bf16 %v195_v3, %v3355_v28  ;;  %v1598_v7 = vrot.slane %v195_v3, 1  ;;  %v1790_v56 = vrot.slane %v195_v3, 2  ;;  %v2895_v55 = vld [vmem:[%s3645_s1 + $0x450] sm:$0xff]  }
  0x6c   : > { %2684 = vmatprep.subr.bf16.mxu1 %v2864_v44  ;;  %1200 = vmatprep.mubr.bf16.mxu0 %v1030_v25  ;;  %v1407_v44 = vpack.c.bf16 %v3548_v50, %v3368_v36  ;;  %v2906_v25 = vld [vmem:[%s3645_s1 + $0x438] sm:$0xff]  }
  0x6d   : > { %1394 = vmatprep.mubr.bf16.mxu1 %v1224_v34  ;;  %v1792_v36 = vsel %vm610_vm1, %v1790_v56, %v1791_v42 }
  0x6e   : > { %2657 = vmatpush3.bf16.msra.mxu0 %v2865_v9  ;;  %v2896_v9 = vld [vmem:[%s3645_s1 + $0x410] sm:$0xff]   ;;  %v1796_v13 = vpack.c.bf16 %v1792_v36, %v3488_v30 }
  0x6f   : > { %2685 = vmatpush3.bf16.msra.mxu1 %v2866_v11  ;;  %2658 = vmatprep.subr.bf16.mxu0 %v2867_v17  ;;  %v2901_v17 = vld [vmem:[%s3645_s1 + $0x468] sm:$0xff]  }
  0x70   : > { %2686 = vmatprep.subr.bf16.mxu1 %v2868_v18  ;;  %v2902_v18 = vld [vmem:[%s3645_s1 + $0x428] sm:$0xff]  }
  0x71   : > { %1201 = vmatmul.mubr.bf16.gmra.mrb[20].mxu0 %v1029_v27 }
  0x72   : > { %2659 = vmatpush3.bf16.msra.mxu0 %v2869_v20  ;;  %1395 = vmatmul.mubr.bf16.gmra.mrb[20].mxu1 %v1223_v37  ;;  %v1787_v20 = vrot.slane %v3548_v50, 2 }
  0x73   : > { %2687 = vmatpush3.bf16.msra.mxu1 %v2870_v31  ;;  %2660 = vmatprep.subr.bf16.mxu0 %v2871_v26 }
  0x74   : > { %2688 = vmatprep.subr.bf16.mxu1 %v2872_v57  ;;  %1570 = vmatprep.mubr.bf16.mxu0 %v3208_v32  ;;  %v2878_v32 = vld [vmem:[%s3645_s1 + $0x3a0] sm:$0xff]  }
  0x75   : > { %1766 = vmatprep.mubr.bf16.mxu1 %v3242_v49  ;;  %v2879_v49 = vld [vmem:[%s3645_s1 + $0x368] sm:$0xff]  }
  0x76   : > { %2661 = vmatpush3.bf16.msra.mxu0 %v2873_v8 }
  0x77   : > { %2689 = vmatpush3.bf16.msra.mxu1 %v2874_v38  ;;  %2662 = vmatprep.subr.bf16.mxu0 %v2875_v47 }
  0x78   : > { %2690 = vmatprep.subr.bf16.mxu1 %v2876_v21 }
  0x7a   : > { %2663 = vmatpush3.bf16.msra.mxu0 %v2877_v29 }
  0x7b   : > { %2691 = vmatpush3.bf16.msra.mxu1 %v2878_v32  ;;  %2664 = vmatprep.subr.bf16.mxu0 %v2879_v49 }
  0x7c   : > { %2692 = vmatprep.subr.bf16.mxu1 %v2880_v40 }
  0x7e   : > { %2665 = vmatpush3.bf16.msra.mxu0 %v2881_v41 }
  0x7f   : > { %2693 = vmatpush3.bf16.msra.mxu1 %v2882_v45  ;;  %2666 = vmatprep.subr.bf16.mxu0 %v2883_v46 }
  0x80   : > { %2694 = vmatprep.subr.bf16.mxu1 %v2884_v48 }
  0x82   : > { %2667 = vmatpush3.bf16.msra.mxu0 %v2885_v35 }
  0x83   : > { %2695 = vmatpush3.bf16.msra.mxu1 %v2886_v51  ;;  %2668 = vmatprep.subr.bf16.mxu0 %v2887_v53 }
  0x84   : > { %2696 = vmatprep.subr.bf16.mxu1 %v2888_v58 }
  0x86   : > { %2669 = vmatpush3.bf16.msra.mxu0 %v2889_v59 }
  0x87   : > { %2697 = vmatpush3.bf16.msra.mxu1 %v2890_v61  ;;  %2710 = vmatprep.subr.bf16.mxu0 %v2891_v62 }
  0x88   : > { %2738 = vmatprep.subr.bf16.mxu1 %v2891_v62 }
  0x89   : > { %1571 = vmatmul.mubr.bf16.vlgmr.msra.gmra.mrb[24].mxu0 %v3252_v54  ;;  %v1597_v54 = vsel %vm250_vm0, %v1595_v63, %v1596_v1 }
  0x8a   : > { %1767 = vmatmul.mubr.bf16.vlgmr.msra.gmra.mrb[24].mxu1 %v3267_v60  ;;  %2711 = vmatpush3.bf16.msra.mxu0 %v2892_v0  ;;  %v1599_v60 = vrot.slane %v197_v5, 1  ;;  %v1603_v10 = vpack.c.bf16 %v1597_v54, %v3481_v23  ;;  %v2905_v23 = vld [vmem:[%s3645_s1 + $0x478] sm:$0xff]  }
  0x8b   : > { %2746 = vmatpush3.bf16.msra.mxu1 %v2892_v0  ;;  %2712 = vmatprep.subr.bf16.mxu0 %v2893_v2 }
  0x8c   : > { %2739 = vmatprep.subr.bf16.mxu1 %v2893_v2  ;;  %1578 = vmatprep.mubr.bf16.mxu0 %v1408_v6  ;;  %v1600_v28 = vsel %vm250_vm0, %v1598_v7, %v1599_v60 }
  0x8d   : > { %v1604_v11 = vpack.c.bf16 %v1600_v28, %v3478_v22  ;;  %v1788_v22 = vrot.slane %v3554_v52, 2 }
  0x8e   : > { %2713 = vmatpush3.bf16.msra.mxu0 %v2894_v4 }
  0x8f   : > { %2747 = vmatpush3.bf16.msra.mxu1 %v2894_v4  ;;  %2714 = vmatprep.subr.bf16.mxu0 %v2895_v55  ;;  %v1789_v27 = vsel %vm610_vm1, %v1787_v20, %v1788_v22 }
  0x90   : > { %2740 = vmatprep.subr.bf16.mxu1 %v2895_v55  ;;  %1774 = vmatprep.mubr.bf16.mxu1 %v1604_v11  ;;  %v1795_v30 = vpack.c.bf16 %v1789_v27, %v3499_v39 }
  0x91   : > { %1579 = vmatmul.mubr.bf16.gmra.mrb[28].mxu0 %v1407_v44 }
  0x92   : > { %2715 = vmatpush3.bf16.msra.mxu0 %v2896_v9  ;;  %1775 = vmatmul.mubr.bf16.gmra.mrb[28].mxu1 %v1603_v10 }
  0x93   : > { %2748 = vmatpush3.bf16.msra.mxu1 %v2896_v9  ;;  %2716 = vmatprep.subr.bf16.mxu0 %v2897_v12 }
  0x94   : > { %2741 = vmatprep.subr.bf16.mxu1 %v2897_v12  ;;  %1958 = vmatprep.mubr.bf16.mxu0 %v3320_v43  ;;  %v2903_v43 = vld [vmem:[%s3645_s1 + $0x470] sm:$0xff]  }
  0x95   : > { %1966 = vmatprep.mubr.bf16.mxu1 %v1796_v13 }
  0x96   : > { %2717 = vmatpush3.bf16.msra.mxu0 %v2898_v14 }
  0x97   : > { %2749 = vmatpush3.bf16.msra.mxu1 %v2898_v14  ;;  %2718 = vmatprep.subr.bf16.mxu0 %v2899_v15 }
  0x98   : > { %2742 = vmatprep.subr.bf16.mxu1 %v2899_v15 }
  0x9a   : > { %2719 = vmatpush3.bf16.msra.mxu0 %v2900_v16 }
  0x9b   : > { %2750 = vmatpush3.bf16.msra.mxu1 %v2900_v16  ;;  %2720 = vmatprep.subr.bf16.mxu0 %v2901_v17 }
  0x9c   : > { %2743 = vmatprep.subr.bf16.mxu1 %v2901_v17 }
  0x9e   : > { %2721 = vmatpush3.bf16.msra.mxu0 %v2902_v18 }
  0x9f   : > { %2751 = vmatpush3.bf16.msra.mxu1 %v2902_v18  ;;  %2722 = vmatprep.subr.bf16.mxu0 %v2903_v43 }
  0xa0   : > { %2744 = vmatprep.subr.bf16.mxu1 %v2903_v43 }
  0xa2   : > { %2723 = vmatpush3.bf16.msra.mxu0 %v2904_v19 }
  0xa3   : > { %2752 = vmatpush3.bf16.msra.mxu1 %v2904_v19  ;;  %2724 = vmatprep.subr.bf16.mxu0 %v2905_v23 }
  0xa4   : > { %2745 = vmatprep.subr.bf16.mxu1 %v2905_v23 }
  0xa6   : > { %2725 = vmatpush3.bf16.msra.mxu0 %v2906_v25 }
  0xa7   : > { %2753 = vmatpush3.bf16.msra.mxu1 %v2906_v25 }
  0xa9   : > { %1959 = vmatmul.mubr.bf16.vlgmr.msra.gmra.mrb[32].mxu0 %v3346_v24 }
  0xaa   : > { %1967 = vmatmul.mubr.bf16.vlgmr.msra.gmra.mrb[32].mxu1 %v1795_v30 }
  0xfc   : > { %v2502_v33 = vpop.f32.mrb[0].mxu0 }
  0xfd   : > { %v2530_v31 = vpop.f32.mrb[0].mxu1  ;;  %v2503_v26 = vpop.f32.mrb[1].mxu0 }
  0xfe   : > { %v2531_v34 = vpop.f32.mrb[1].mxu1  ;;  %v2504_v8 = vadd.f32 %v2503_v26, %v2502_v33  ;;  %v2505_v38 = vpop.f32.mrb[2].mxu0 }
  0xff   : > { %v2532_v57 = vadd.f32 %v2531_v34, %v2530_v31  ;;  %v2533_v37 = vpop.f32.mrb[2].mxu1  ;;  %v2506_v21 = vpop.f32.mrb[3].mxu0 }
 0x100   : > { %v2534_v47 = vpop.f32.mrb[3].mxu1  ;;  %v2507_v49 = vadd.f32 %v2506_v21, %v2505_v38 }
 0x101   : > { %v2535_v29 = vadd.f32 %v2534_v47, %v2533_v37  ;;  %v596_v32 = vadd.f32 %v2532_v57, %v2504_v8 }
 0x103   : > { %v599_v40 = vadd.f32 %v2535_v29, %v2507_v49 }
 0x104   : > { %v2508_v45 = vpop.f32.mrb[4].mxu0 }
 0x105   : > { %v2536_v39 = vpop.f32.mrb[4].mxu1  ;;  %v2509_v48 = vpop.f32.mrb[5].mxu0 }
 0x106   : > { %v2537_v41 = vpop.f32.mrb[5].mxu1  ;;  %v2510_v50 = vadd.f32 %v2509_v48, %v2508_v45  ;;  %v2511_v51 = vpop.f32.mrb[6].mxu0 }
 0x107   : > { %v2538_v46 = vadd.f32 %v2537_v41, %v2536_v39  ;;  %v2539_v24 = vpop.f32.mrb[6].mxu1  ;;  %v2512_v53 = vpop.f32.mrb[7].mxu0 }
 0x108   : > { %v2540_v35 = vpop.f32.mrb[7].mxu1  ;;  %v2513_v59 = vadd.f32 %v2512_v53, %v2511_v51 }
 0x109   : > { %v2541_v52 = vadd.f32 %v2540_v35, %v2539_v24  ;;  %v604_v58 = vadd.f32 %v2538_v46, %v2510_v50 }
 0x10b   : > { %v607_v61 = vadd.f32 %v2541_v52, %v2513_v59 }
 0x11c   : > { %v2558_v62 = vpop.f32.mrb[8].mxu0 }
 0x11d   : > { %v2586_v63 = vpop.f32.mrb[8].mxu1  ;;  %v2559_v0 = vpop.f32.mrb[9].mxu0 }
 0x11e   : > { %v2587_v1 = vpop.f32.mrb[9].mxu1  ;;  %v2560_v2 = vadd.f32 %v2559_v0, %v2558_v62  ;;  %v2561_v4 = vpop.f32.mrb[10].mxu0 }
 0x11f   : > { %v2588_v3 = vadd.f32 %v2587_v1, %v2586_v63  ;;  %v2589_v6 = vpop.f32.mrb[10].mxu1  ;;  %v2562_v7 = vpop.f32.mrb[11].mxu0 }
 0x120   : > { %v2590_v56 = vpop.f32.mrb[11].mxu1  ;;  %v825_v55 = vadd.f32 %v2560_v2, %v596_v32  ;;  %v2563_v5 = vadd.f32 %v2562_v7, %v2561_v4 }
 0x121   : > { %v2591_v54 = vadd.f32 %v2590_v56, %v2589_v6 }
 0x122   : > { %v1011_v60 = vadd.f32 %v2588_v3, %v825_v55  ;;  %v826_v44 = vadd.f32 %v2563_v5, %v599_v40 }
 0x124   : > { %v1012_v42 = vadd.f32 %v2591_v54, %v826_v44  ;;  %v2564_v28 = vpop.f32.mrb[12].mxu0 }
 0x125   : > { %v2565_v9 = vpop.f32.mrb[13].mxu0  ;;  %v2592_v12 = vpop.f32.mrb[12].mxu1 }
 0x126   : > { %v2566_v10 = vadd.f32 %v2565_v9, %v2564_v28  ;;  %v2567_v11 = vpop.f32.mrb[14].mxu0  ;;  %v2593_v13 = vpop.f32.mrb[13].mxu1 }
 0x127   : > { %v2568_v36 = vpop.f32.mrb[15].mxu0  ;;  %v2594_v16 = vadd.f32 %v2593_v13, %v2592_v12  ;;  %v2595_v17 = vpop.f32.mrb[14].mxu1 }
 0x128   : > { %v827_v14 = vadd.f32 %v2566_v10, %v604_v58  ;;  %v2569_v15 = vadd.f32 %v2568_v36, %v2567_v11  ;;  %v2596_v18 = vpop.f32.mrb[15].mxu1 }
 0x129   : > { %v2597_v20 = vadd.f32 %v2596_v18, %v2595_v17 }
 0x12a   : > { %v828_v43 = vadd.f32 %v2569_v15, %v607_v61  ;;  %v1013_v19 = vadd.f32 %v2594_v16, %v827_v14 }
 0x12c   : > { %v1014_v22 = vadd.f32 %v2597_v20, %v828_v43 }
 0x13c   : > { %v2614_v23 = vpop.f32.mrb[16].mxu0 }
 0x13d   : > { %v2642_v25 = vpop.f32.mrb[16].mxu1  ;;  %v2615_v27 = vpop.f32.mrb[17].mxu0 }
 0x13e   : > { %v2643_v30 = vpop.f32.mrb[17].mxu1  ;;  %v2616_v31 = vadd.f32 %v2615_v27, %v2614_v23  ;;  %v2617_v34 = vpop.f32.mrb[18].mxu0 }
 0x13f   : > { %v2644_v33 = vadd.f32 %v2643_v30, %v2642_v25  ;;  %v2645_v26 = vpop.f32.mrb[18].mxu1  ;;  %v2618_v57 = vpop.f32.mrb[19].mxu0 }
 0x140   : > { %v2646_v37 = vpop.f32.mrb[19].mxu1  ;;  %v1209_v8 = vadd.f32 %v2616_v31, %v1011_v60  ;;  %v2619_v38 = vadd.f32 %v2618_v57, %v2617_v34  ;;  %v2482_v34 = vld [vmem:[#allocation2] ss:$0 sm:$0xff] }
 0x141   : > { %v2647_v47 = vadd.f32 %v2646_v37, %v2645_v26 }
 0x142   : > { %v1403_v21 = vadd.f32 %v2644_v33, %v1209_v8  ;;  %v1210_v29 = vadd.f32 %v2619_v38, %v1012_v42 }
 0x144   : > { %v1404_v32 = vadd.f32 %v2647_v47, %v1210_v29  ;;  %v2620_v49 = vpop.f32.mrb[20].mxu0 }
 0x145   : > { %v2621_v40 = vpop.f32.mrb[21].mxu0  ;;  %v2648_v45 = vpop.f32.mrb[20].mxu1 }
 0x146   : > { %v2622_v39 = vadd.f32 %v2621_v40, %v2620_v49  ;;  %v2623_v41 = vpop.f32.mrb[22].mxu0  ;;  %v2649_v24 = vpop.f32.mrb[21].mxu1 }
 0x147   : > { %v2624_v46 = vpop.f32.mrb[23].mxu0  ;;  %v2650_v50 = vadd.f32 %v2649_v24, %v2648_v45  ;;  %v2651_v51 = vpop.f32.mrb[22].mxu1 }
 0x148   : > { %v1211_v48 = vadd.f32 %v2622_v39, %v1013_v19  ;;  %v2625_v35 = vadd.f32 %v2624_v46, %v2623_v41  ;;  %v2652_v52 = vpop.f32.mrb[23].mxu1 }
 0x149   : > { %v2653_v59 = vadd.f32 %v2652_v52, %v2651_v51 }
 0x14a   : > { %v1212_v53 = vadd.f32 %v2625_v35, %v1014_v22  ;;  %v1405_v58 = vadd.f32 %v2650_v50, %v1211_v48 }
 0x14c   : > { %v1406_v61 = vadd.f32 %v2653_v59, %v1212_v53 }
 0x15c   : > { %v2670_v62 = vpop.f32.mrb[24].mxu0 }
 0x15d   : > { %v2698_v63 = vpop.f32.mrb[24].mxu1  ;;  %v2671_v0 = vpop.f32.mrb[25].mxu0 }
 0x15e   : > { %v2672_v1 = vadd.f32 %v2671_v0, %v2670_v62  ;;  %v2699_v2 = vpop.f32.mrb[25].mxu1  ;;  %v2673_v3 = vpop.f32.mrb[26].mxu0 }
 0x15f   : > { %v2700_v4 = vadd.f32 %v2699_v2, %v2698_v63  ;;  %v2701_v6 = vpop.f32.mrb[26].mxu1  ;;  %v2674_v7 = vpop.f32.mrb[27].mxu0 }
 0x160   : > { %v1587_v56 = vadd.f32 %v2672_v1, %v1403_v21  ;;  %v2675_v55 = vadd.f32 %v2674_v7, %v2673_v3  ;;  %v2702_v5 = vpop.f32.mrb[27].mxu1 }
 0x161   : > { %v2703_v54 = vadd.f32 %v2702_v5, %v2701_v6 }
 0x162   : > { %v1783_v60 = vadd.f32 %v2700_v4, %v1587_v56  ;;  %v1588_v44 = vadd.f32 %v2675_v55, %v1404_v32 }
 0x164   : > { %v1784_v42 = vadd.f32 %v2703_v54, %v1588_v44  ;;  %v2676_v28 = vpop.f32.mrb[28].mxu0 }
 0x165   : > { %v2677_v9 = vpop.f32.mrb[29].mxu0  ;;  %v2704_v10 = vpop.f32.mrb[28].mxu1 }
 0x166   : > { %v2678_v11 = vadd.f32 %v2677_v9, %v2676_v28  ;;  %v2679_v12 = vpop.f32.mrb[30].mxu0  ;;  %v2705_v36 = vpop.f32.mrb[29].mxu1 }
 0x167   : > { %v2680_v13 = vpop.f32.mrb[31].mxu0  ;;  %v2706_v14 = vadd.f32 %v2705_v36, %v2704_v10  ;;  %v2707_v15 = vpop.f32.mrb[30].mxu1 }
 0x168   : > { %v1589_v16 = vadd.f32 %v2678_v11, %v1405_v58  ;;  %v2681_v17 = vadd.f32 %v2680_v13, %v2679_v12  ;;  %v2708_v18 = vpop.f32.mrb[31].mxu1 }
 0x169   : > { %v2709_v43 = vadd.f32 %v2708_v18, %v2707_v15 }
 0x16a   : > { %v1590_v19 = vadd.f32 %v2681_v17, %v1406_v61  ;;  %v1785_v20 = vadd.f32 %v2706_v14, %v1589_v16 }
 0x16c   : > { %v1786_v22 = vadd.f32 %v2709_v43, %v1590_v19 }
 0x17c   : > { %v2726_v23 = vpop.f32.mrb[32].mxu0 }
 0x17d   : > { %v2732_v25 = vpop.f32.mrb[32].mxu1  ;;  %v2727_v27 = vpop.f32.mrb[33].mxu0 }
 0x17e   : > { %v2728_v30 = vadd.f32 %v2727_v27, %v2726_v23  ;;  %v2733_v31 = vpop.f32.mrb[33].mxu1  ;;  %v2729_v33 = vpop.f32.mrb[34].mxu0 }
 0x17f   : > { %v2734_v26 = vadd.f32 %v2733_v31, %v2732_v25  ;;  %v2735_v57 = vpop.f32.mrb[34].mxu1  ;;  %v2730_v37 = vpop.f32.mrb[35].mxu0 }
 0x180   : > { %v1975_v8 = vadd.f32 %v2728_v30, %v1783_v60  ;;  %v2731_v38 = vadd.f32 %v2730_v37, %v2729_v33  ;;  %v2736_v47 = vpop.f32.mrb[35].mxu1 }
 0x181   : > { %v1977_v21 = vadd.f32 %v2734_v26, %v1785_v20  ;;  %v2737_v29 = vadd.f32 %v2736_v47, %v2735_v57 }
 0x182   : > { %v1986_v32 = vadd.f32 %v2482_v34, %v1975_v8  ;;  %v1976_v49 = vadd.f32 %v2731_v38, %v1784_v42 }
 0x183   : > { %v1988_v40 = vadd.f32 %v2482_v34, %v1977_v21  ;;  %v1978_v39 = vadd.f32 %v2737_v29, %v1786_v22 }
 0x184   : > { %v1990_v41 = vsub.f32 0.0, %v1986_v32  ;;  %v1987_v45 = vadd.f32 %v2482_v34, %v1976_v49 }
 0x185   : > { %v1992_v46 = vsub.f32 0.0, %v1988_v40  ;;  %v1989_v24 = vadd.f32 %v2482_v34, %v1978_v39 }
 0x186   : > { %v1994_v48 = vmul.f32 1.442695, %v1990_v41  ;;  %v1991_v35 = vsub.f32 0.0, %v1987_v45 }
 0x187   : > { %v1998_v50 = vmul.f32 1.442695, %v1992_v46  ;;  %v1993_v51 = vsub.f32 0.0, %v1989_v24 }
 0x188   : > { %2907 = vpow2.f32 %v1994_v48  ;;  %v1996_v52 = vmul.f32 1.442695, %v1991_v35 }
 0x189   : > { %2909 = vpow2.f32 %v1998_v50  ;;  %v2000_v53 = vmul.f32 1.442695, %v1993_v51 }
 0x18a   : > { %2911 = vpow2.f32 %v1996_v52 }
 0x18b   : > { %2913 = vpow2.f32 %v2000_v53 }
 0x192   : > { %v2908_v58 = vpop.eup %2907 }
 0x193   : > { %v2910_v59 = vpop.eup %2909  ;;  %v2002_v61 = vadd.f32 1.0, %v2908_v58 }
 0x194   : > { %v2912_v62 = vpop.eup %2911  ;;  %v2004_v63 = vadd.f32 1.0, %v2910_v59 }
 0x195   : > { %v2914_v0 = vpop.eup %2913  ;;  %2915 = vrcp.f32 %v2002_v61  ;;  %v2003_v1 = vadd.f32 1.0, %v2912_v62 }
 0x196   : > { %2917 = vrcp.f32 %v2004_v63  ;;  %v2005_v2 = vadd.f32 1.0, %v2914_v0 }
 0x197   : > { %2919 = vrcp.f32 %v2003_v1 }
 0x198   : > { %2921 = vrcp.f32 %v2005_v2 }
 0x19f   : > { %v2916_v3 = vpop.eup %2915 }
 0x1a0   : > { %v2918_v4 = vpop.eup %2917  ;;  %2015 = vst.msk [vmem:[%s172_s5] sm:$0xff] %vm2014_vm2, %v2916_v3 }
 0x1a1   : > { %v2920_v6 = vpop.eup %2919  ;;  %2017 = vst.msk [vmem:[%s172_s5 + $0x10] sm:$0xff] %vm2014_vm2, %v2918_v4 }
 0x1a2   : > { %v2922_v7 = vpop.eup %2921  ;;  %2016 = vst.msk [vmem:[%s172_s5 + $0x8] sm:$0xff] %vm2014_vm2, %v2920_v6 }
 0x1a3   : > { %2018 = vst.msk [vmem:[%s172_s5 + $0x18] sm:$0xff] %vm2014_vm2, %v2922_v7 }
 0x1a4 PF: > { %s15_s14 = sadd.s32 1, %s2929_s14  }
 0x1a5   : > { %p12_p4 = scmp.ge.s32.totalorder %s15_s14, 4  }
 0x1a7   :  { %14 = sbr.rel (!%p12_p4) target bundleno = 3 (0x3), region = 70 }

</bundles_post_ra>
